<compile_context>
chip_gen: v5e
topology: v5e:2x2
jax: 0.10.0
libtpu: 0.0.40
codegen_flags: <defaults>
</compile_context>

<pallas_src>
import functools

import numpy as np
import jax
import jax.numpy as jnp
from jax.experimental import pallas as pl

C_CONV = 32            # channels of every conv layer
KSZ = 3                # conv kernel size
H1, H2, H3 = 20, 10, 5  # conv1/conv2/conv3 output spatial sizes (state_shape == 42)


# ----------------------------------------------------------------------------
# Fused Pallas kernel: conv1 -> conv2 -> conv3 -> fc4 -> fc5 (-> dueling head)
# ----------------------------------------------------------------------------
def _dqn_fused_kernel(patches_ref,
                      w1_ref, b1_ref, w2_ref, b2_ref, w3_ref, b3_ref,
                      w4_ref, b4_ref, w5_ref, b5_ref,
                      m2h_ref, m2w_ref, m3h_ref, m3w_ref,
                      p23_ref, tmat_ref, sel_ref, smat_ref,
                      out_ref,
                      *, batch, action_dim, enable_dueling, dueling_type):
    f32 = jnp.float32
    C = C_CONV
    R2 = batch * H2 * H2      # rows of conv2 output, ordered (b, oh2, ow2)
    R3 = batch * H3 * H3      # rows of conv3 output, ordered (b, oh3, ow3)

    # ---- conv1: one matmul on the (parity-ordered) im2col patches -----------
    y1 = jnp.dot(patches_ref[...], w1_ref[...], preferred_element_type=f32)
    y1 = jnp.maximum(y1 + b1_ref[...], 0.0)        # (4*R2, 32) parity-plane blocks

    def conv3x3_s2(planes, w_ref, b_ref, mask_h, mask_w, rows, grid):
        """3x3 / stride-2 / pad-1 conv consuming parity planes of its input.

        planes[(p, q)] : (rows, C) activation, rows ordered (b, m, n) over the
                         output grid (input pixel (2m+p, 2n+q)).
        Output rows    : (b, oh, ow) over the same grid.
        Each tap is a constant row shift + static mask + small MXU matmul.
        """
        pad = grid + 1
        padded = {pq: jnp.concatenate([jnp.zeros((pad, C), f32), pln], axis=0)
                  for pq, pln in planes.items()}
        acc = jnp.zeros((rows, C), f32)
        for kh in range(KSZ):
            p = (kh + 1) % 2
            dm = -1 if kh == 0 else 0
            for kw in range(KSZ):
                q = (kw + 1) % 2
                dn = -1 if kw == 0 else 0
                shift = -(dm * grid + dn)                      # 0 .. grid+1
                src = padded[(p, q)][pad - shift:pad - shift + rows, :]
                if dm < 0:
                    src = src * mask_h
                if dn < 0:
                    src = src * mask_w
                tap = kh * KSZ + kw
                w_tap = w_ref[tap * C:(tap + 1) * C, :]        # (Cin, Cout)
                acc = acc + jnp.dot(src, w_tap, preferred_element_type=f32)
        return jnp.maximum(acc + b_ref[...], 0.0)

    # ---- conv2: parity planes are contiguous (8-aligned) row blocks of y1 ----
    planes2 = {(p, q): y1[(p * 2 + q) * R2:(p * 2 + q + 1) * R2, :]
               for p in range(2) for q in range(2)}
    y2 = conv3x3_s2(planes2, w2_ref, b2_ref, m2h_ref[...], m2w_ref[...], R2, H2)

    # ---- conv3: re-bucket conv2 rows into parity planes via 0/1 matmuls ------
    planes3 = {(p, q): jnp.dot(p23_ref[p * 2 + q], y2, preferred_element_type=f32)
               for p in range(2) for q in range(2)}
    y3 = conv3x3_s2(planes3, w3_ref, b3_ref, m3h_ref[...], m3w_ref[...], R3, H3)

    # ---- flatten: flat[b, p3*C + c] = y3[b*25 + p3, c]  (fc4 weight is
    # row-permuted at init so this matches torch's NCHW .view order) -----------
    tiled = jnp.dot(y3, tmat_ref[...], preferred_element_type=f32)   # (R3, 25*C)
    flat = jnp.dot(smat_ref[...], tiled * sel_ref[...],
                   preferred_element_type=f32)                        # (B, 25*C)

    # ---- fc4 / fc5 -----------------------------------------------------------
    h = jnp.maximum(jnp.dot(flat, w4_ref[...], preferred_element_type=f32)
                    + b4_ref[...], 0.0)
    q5 = jnp.dot(h, w5_ref[...], preferred_element_type=f32) + b5_ref[...]

    if enable_dueling:
        v = q5[:, 0:1]
        a = q5[:, 1:1 + action_dim]
        if dueling_type == "avg":
            q_out = v + (a - jnp.mean(a, axis=1, keepdims=True))
        elif dueling_type == "max":
            q_out = v + (a - jnp.max(a, axis=1, keepdims=True))
        elif dueling_type == "naive":
            q_out = v + a
        else:
            raise ValueError("dueling_type must be one of {'avg','max','naive'}")
        out_ref[...] = q_out
    else:
        out_ref[...] = q5


# ----------------------------------------------------------------------------
# Static geometry constants (masks / 0-1 bucketing matrices), built once per B.
# ----------------------------------------------------------------------------
@functools.lru_cache(maxsize=None)
def _geometry(batch):
    R2 = batch * H2 * H2
    R3 = batch * H3 * H3

    r2 = np.arange(R2)
    oh2, ow2 = (r2 // H2) % H2, r2 % H2
    m2h = (oh2 > 0).astype(np.float32).reshape(R2, 1)
    m2w = (ow2 > 0).astype(np.float32).reshape(R2, 1)

    r3 = np.arange(R3)
    oh3, ow3 = (r3 // H3) % H3, r3 % H3
    m3h = (oh3 > 0).astype(np.float32).reshape(R3, 1)
    m3w = (ow3 > 0).astype(np.float32).reshape(R3, 1)

    # Re-bucket conv2 rows (b, oh2, ow2) into parity planes (p2, q2) with rows
    # (b, m2, n2) where oh2 = 2*m2 + p2, ow2 = 2*n2 + q2.
    p23 = np.zeros((4, R3, R2), np.float32)
    for p2 in range(2):
        for q2 in range(2):
            for b in range(batch):
                for m2 in range(H3):
                    for n2 in range(H3):
                        dst = b * H3 * H3 + m2 * H3 + n2
                        src = b * H2 * H2 + (2 * m2 + p2) * H2 + (2 * n2 + q2)
                        p23[p2 * 2 + q2, dst, src] = 1.0

    # Flatten helpers: flat[b, p3*C + c] = y3[b*25 + p3, c].
    npos = H3 * H3
    tmat = np.tile(np.eye(C_CONV, dtype=np.float32), (1, npos))       # (C, 25*C)
    sel = np.zeros((R3, npos * C_CONV), np.float32)
    for r in range(R3):
        p3 = r % npos
        sel[r, p3 * C_CONV:(p3 + 1) * C_CONV] = 1.0
    smat = np.zeros((batch, R3), np.float32)
    for b in range(batch):
        smat[b, b * npos:(b + 1) * npos] = 1.0
    return m2h, m2w, m3h, m3w, p23, tmat, sel, smat


# ----------------------------------------------------------------------------
# conv1 im2col (XLA glue on the tiny raw input), rows ordered by output parity.
# ----------------------------------------------------------------------------
def _conv1_patches(x, hist_len):
    """Rows ordered (p1, q1, b, m1, n1) with oh1 = 2*m1+p1, ow1 = 2*n1+q1;
    columns in torch (cin, kh, kw) flatten order."""
    B = x.shape[0]
    cols = [x[:, :, kh:kh + 2 * H1:2, kw:kw + 2 * H1:2]
            for kh in range(KSZ) for kw in range(KSZ)]       # 9 x (B, C0, 20, 20)
    p = jnp.stack(cols, axis=2)                               # (B, C0, 9, 20, 20)
    p = p.reshape(B, hist_len * KSZ * KSZ, H1, H1)
    p = p.reshape(B, hist_len * KSZ * KSZ, H2, 2, H2, 2)
    p = p.transpose(3, 5, 0, 2, 4, 1)                         # (p1, q1, B, m1, n1, K)
    return p.reshape(4 * B * H2 * H2, hist_len * KSZ * KSZ)


# ----------------------------------------------------------------------------
# Parameter init (mirrors init_weights / normalized_columns_initializer) and
# packing into kernel-ready layouts (hoisted out of the forward hot path).
# ----------------------------------------------------------------------------
def init_params(key, hist_len, hidden_dim, action_dim, enable_dueling):
    ks = jax.random.split(key, 5)

    def conv_init(k, cout, cin, ksz):
        fan_in = cin * ksz * ksz
        fan_out = ksz * ksz * cout
        bound = (6.0 / (fan_in + fan_out)) ** 0.5
        w = jax.random.uniform(k, (cout, cin, ksz, ksz), jnp.float32, -bound, bound)
        return w, jnp.zeros((cout,), jnp.float32)

    def ncol_init(k, out_dim, in_dim, std):
        w = jax.random.normal(k, (out_dim, in_dim), jnp.float32)
        w = w * std / jnp.sqrt(jnp.sum(w * w, axis=1, keepdims=True))
        return w, jnp.zeros((out_dim,), jnp.float32)

    fc5_out = action_dim + 1 if enable_dueling else action_dim
    w1, b1 = conv_init(ks[0], C_CONV, hist_len, KSZ)
    w2, b2 = conv_init(ks[1], C_CONV, C_CONV, KSZ)
    w3, b3 = conv_init(ks[2], C_CONV, C_CONV, KSZ)
    w4, b4 = ncol_init(ks[3], hidden_dim, C_CONV * H3 * H3, 1e-4)
    w5, b5 = ncol_init(ks[4], fc5_out, hidden_dim, 1e-4)

    p = {}
    # conv1: columns of the patches matrix are (cin, kh, kw) -> (C0*9, 32)
    p["w1m"] = w1.reshape(C_CONV, hist_len * KSZ * KSZ).T
    p["b1"] = b1.reshape(1, C_CONV)
    # conv2/conv3: per-tap (cin, cout) blocks stacked along rows -> (9*32, 32)
    p["w2m"] = w2.transpose(2, 3, 1, 0).reshape(KSZ * KSZ * C_CONV, C_CONV)
    p["b2"] = b2.reshape(1, C_CONV)
    p["w3m"] = w3.transpose(2, 3, 1, 0).reshape(KSZ * KSZ * C_CONV, C_CONV)
    p["b3"] = b3.reshape(1, C_CONV)
    # fc4: permute torch's (c, p3) column order to the kernel's (p3, c) row order
    p["w4m"] = (w4.reshape(hidden_dim, C_CONV, H3 * H3)
                  .transpose(2, 1, 0)
                  .reshape(H3 * H3 * C_CONV, hidden_dim))
    p["b4"] = b4.reshape(1, hidden_dim)
    p["w5m"] = w5.T
    p["b5"] = b5.reshape(1, fc5_out)
    return p


# ----------------------------------------------------------------------------
# Forward pass (matches DQNCnnModel.forward)
# ----------------------------------------------------------------------------
def dqn_cnn_forward(params, x, *, hist_len, state_shape, action_dim,
                    enable_dueling=False, dueling_type="avg"):
    B = x.shape[0]
    assert state_shape == 42, "fc4 expects a 32*5*5 feature map -> state_shape == 42"
    x = x.reshape(B, hist_len, state_shape, state_shape).astype(jnp.float32)
    patches1 = _conv1_patches(x, hist_len)
    geom = tuple(jnp.asarray(g) for g in _geometry(B))

    kernel = functools.partial(
        _dqn_fused_kernel, batch=B, action_dim=action_dim,
        enable_dueling=enable_dueling, dueling_type=dueling_type)

    return pl.pallas_call(
        kernel,
        out_shape=jax.ShapeDtypeStruct((B, action_dim), jnp.float32),
    )(patches1,
      params["w1m"], params["b1"], params["w2m"], params["b2"],
      params["w3m"], params["b3"], params["w4m"], params["b4"],
      params["w5m"], params["b5"],
      *geom)


if __name__ == "__main__":
    # Architecture constraint (fc4 expects 32*5*5) implies state_shape = 42.
    batch, hist_len, state_shape = 2, 4, 42
    hidden_dim, action_dim = 64, 6
    enable_dueling = False

    key = jax.random.PRNGKey(0)
    pkey, xkey = jax.random.split(key)
    params = init_params(pkey, hist_len, hidden_dim, action_dim, enable_dueling)
    x = jax.random.normal(xkey, (batch, hist_len, state_shape, state_shape),
                          dtype=jnp.float32)

    fwd = jax.jit(functools.partial(
        dqn_cnn_forward, hist_len=hist_len, state_shape=state_shape,
        action_dim=action_dim, enable_dueling=enable_dueling))
    out = fwd(params, x)
    jax.block_until_ready(out)
    assert out.shape == (batch, action_dim), out.shape
    print("KERNEL_OK")
</pallas_src>

<mosaic_0001>
module attributes {stable_mosaic.version = 11 : i64} {
  func.func @_dqn_fused_kernel(%arg0: memref<800x36xf32, #tpu.memory_space<vmem>>, %arg1: memref<36x32xf32, #tpu.memory_space<vmem>>, %arg2: memref<1x32xf32, #tpu.memory_space<vmem>>, %arg3: memref<288x32xf32, #tpu.memory_space<vmem>>, %arg4: memref<1x32xf32, #tpu.memory_space<vmem>>, %arg5: memref<288x32xf32, #tpu.memory_space<vmem>>, %arg6: memref<1x32xf32, #tpu.memory_space<vmem>>, %arg7: memref<800x64xf32, #tpu.memory_space<vmem>>, %arg8: memref<1x64xf32, #tpu.memory_space<vmem>>, %arg9: memref<64x6xf32, #tpu.memory_space<vmem>>, %arg10: memref<1x6xf32, #tpu.memory_space<vmem>>, %arg11: memref<200x1xf32, #tpu.memory_space<vmem>>, %arg12: memref<200x1xf32, #tpu.memory_space<vmem>>, %arg13: memref<50x1xf32, #tpu.memory_space<vmem>>, %arg14: memref<50x1xf32, #tpu.memory_space<vmem>>, %arg15: memref<4x50x200xf32, #tpu.memory_space<vmem>>, %arg16: memref<32x800xf32, #tpu.memory_space<vmem>>, %arg17: memref<50x800xf32, #tpu.memory_space<vmem>>, %arg18: memref<2x50xf32, #tpu.memory_space<vmem>>, %arg19: memref<2x6xf32, #tpu.memory_space<vmem>>) attributes {dimension_semantics = [], scalar_prefetch = 0 : i64, scratch_operands = 0 : i64, tpu.core_type = #tpu.core_type<tc>} {
    %c0 = arith.constant 0 : index
    %c0_0 = arith.constant 0 : index
    %0 = vector.load %arg0[%c0, %c0_0] : memref<800x36xf32, #tpu.memory_space<vmem>>, vector<800x36xf32>
    %c0_1 = arith.constant 0 : index
    %c0_2 = arith.constant 0 : index
    %1 = vector.load %arg1[%c0_1, %c0_2] : memref<36x32xf32, #tpu.memory_space<vmem>>, vector<36x32xf32>
    %cst = arith.constant dense<0.000000e+00> : vector<800x32xf32>
    %2 = tpu.matmul %0, %1, %cst {dimension_numbers = #tpu.dot_dimension_numbers<[1], [0], [0], [1], [0, 0, 1, 1], [], []>} : vector<800x36xf32>, vector<36x32xf32>, vector<800x32xf32> -> vector<800x32xf32>
    %c0_3 = arith.constant 0 : index
    %c0_4 = arith.constant 0 : index
    %3 = vector.load %arg2[%c0_3, %c0_4] : memref<1x32xf32, #tpu.memory_space<vmem>>, vector<1x32xf32>
    %4 = vector.broadcast %3 : vector<1x32xf32> to vector<800x32xf32>
    %5 = arith.addf %2, %4 : vector<800x32xf32>
    %cst_5 = arith.constant 0.000000e+00 : f32
    %6 = vector.broadcast %cst_5 : f32 to vector<800x32xf32>
    %7 = arith.maximumf %5, %6 : vector<800x32xf32>
    %8 = vector.extract_strided_slice %7 {offsets = [0, 0], sizes = [200, 32], strides = [1, 1]} : vector<800x32xf32> to vector<200x32xf32>
    %9 = vector.extract_strided_slice %7 {offsets = [200, 0], sizes = [200, 32], strides = [1, 1]} : vector<800x32xf32> to vector<200x32xf32>
    %10 = vector.extract_strided_slice %7 {offsets = [400, 0], sizes = [200, 32], strides = [1, 1]} : vector<800x32xf32> to vector<200x32xf32>
    %11 = vector.extract_strided_slice %7 {offsets = [600, 0], sizes = [200, 32], strides = [1, 1]} : vector<800x32xf32> to vector<200x32xf32>
    %c0_6 = arith.constant 0 : index
    %c0_7 = arith.constant 0 : index
    %12 = vector.load %arg11[%c0_6, %c0_7] : memref<200x1xf32, #tpu.memory_space<vmem>>, vector<200x1xf32>
    %c0_8 = arith.constant 0 : index
    %c0_9 = arith.constant 0 : index
    %13 = vector.load %arg12[%c0_8, %c0_9] : memref<200x1xf32, #tpu.memory_space<vmem>>, vector<200x1xf32>
    %cst_10 = arith.constant 0.000000e+00 : f32
    %14 = vector.broadcast %cst_10 : f32 to vector<11x32xf32>
    %15 = tpu.concatenate %14, %8 in 0 : vector<11x32xf32>, vector<200x32xf32> -> vector<211x32xf32>
    %cst_11 = arith.constant 0.000000e+00 : f32
    %16 = vector.broadcast %cst_11 : f32 to vector<11x32xf32>
    %17 = tpu.concatenate %16, %9 in 0 : vector<11x32xf32>, vector<200x32xf32> -> vector<211x32xf32>
    %cst_12 = arith.constant 0.000000e+00 : f32
    %18 = vector.broadcast %cst_12 : f32 to vector<11x32xf32>
    %19 = tpu.concatenate %18, %10 in 0 : vector<11x32xf32>, vector<200x32xf32> -> vector<211x32xf32>
    %cst_13 = arith.constant 0.000000e+00 : f32
    %20 = vector.broadcast %cst_13 : f32 to vector<11x32xf32>
    %21 = tpu.concatenate %20, %11 in 0 : vector<11x32xf32>, vector<200x32xf32> -> vector<211x32xf32>
    %cst_14 = arith.constant 0.000000e+00 : f32
    %22 = vector.broadcast %cst_14 : f32 to vector<200x32xf32>
    %23 = vector.extract_strided_slice %21 {offsets = [0, 0], sizes = [200, 32], strides = [1, 1]} : vector<211x32xf32> to vector<200x32xf32>
    %24 = vector.broadcast %12 : vector<200x1xf32> to vector<200x32xf32>
    %25 = arith.mulf %23, %24 : vector<200x32xf32>
    %26 = vector.broadcast %13 : vector<200x1xf32> to vector<200x32xf32>
    %27 = arith.mulf %25, %26 : vector<200x32xf32>
    %c0_15 = arith.constant 0 : index
    %c0_16 = arith.constant 0 : index
    %28 = vector.load %arg3[%c0_15, %c0_16] : memref<288x32xf32, #tpu.memory_space<vmem>>, vector<32x32xf32>
    %cst_17 = arith.constant dense<0.000000e+00> : vector<200x32xf32>
    %29 = tpu.matmul %27, %28, %cst_17 {dimension_numbers = #tpu.dot_dimension_numbers<[1], [0], [0], [1], [0, 0, 1, 1], [], []>} : vector<200x32xf32>, vector<32x32xf32>, vector<200x32xf32> -> vector<200x32xf32>
    %30 = arith.addf %22, %29 : vector<200x32xf32>
    %31 = vector.extract_strided_slice %19 {offsets = [1, 0], sizes = [200, 32], strides = [1, 1]} : vector<211x32xf32> to vector<200x32xf32>
    %32 = vector.broadcast %12 : vector<200x1xf32> to vector<200x32xf32>
    %33 = arith.mulf %31, %32 : vector<200x32xf32>
    %c32 = arith.constant 32 : index
    %c0_18 = arith.constant 0 : index
    %34 = vector.load %arg3[%c32, %c0_18] : memref<288x32xf32, #tpu.memory_space<vmem>>, vector<32x32xf32>
    %cst_19 = arith.constant dense<0.000000e+00> : vector<200x32xf32>
    %35 = tpu.matmul %33, %34, %cst_19 {dimension_numbers = #tpu.dot_dimension_numbers<[1], [0], [0], [1], [0, 0, 1, 1], [], []>} : vector<200x32xf32>, vector<32x32xf32>, vector<200x32xf32> -> vector<200x32xf32>
    %36 = arith.addf %30, %35 : vector<200x32xf32>
    %37 = vector.extract_strided_slice %21 {offsets = [1, 0], sizes = [200, 32], strides = [1, 1]} : vector<211x32xf32> to vector<200x32xf32>
    %38 = vector.broadcast %12 : vector<200x1xf32> to vector<200x32xf32>
    %39 = arith.mulf %37, %38 : vector<200x32xf32>
    %c64 = arith.constant 64 : index
    %c0_20 = arith.constant 0 : index
    %40 = vector.load %arg3[%c64, %c0_20] : memref<288x32xf32, #tpu.memory_space<vmem>>, vector<32x32xf32>
    %cst_21 = arith.constant dense<0.000000e+00> : vector<200x32xf32>
    %41 = tpu.matmul %39, %40, %cst_21 {dimension_numbers = #tpu.dot_dimension_numbers<[1], [0], [0], [1], [0, 0, 1, 1], [], []>} : vector<200x32xf32>, vector<32x32xf32>, vector<200x32xf32> -> vector<200x32xf32>
    %42 = arith.addf %36, %41 : vector<200x32xf32>
    %43 = vector.extract_strided_slice %17 {offsets = [10, 0], sizes = [200, 32], strides = [1, 1]} : vector<211x32xf32> to vector<200x32xf32>
    %44 = vector.broadcast %13 : vector<200x1xf32> to vector<200x32xf32>
    %45 = arith.mulf %43, %44 : vector<200x32xf32>
    %c96 = arith.constant 96 : index
    %c0_22 = arith.constant 0 : index
    %46 = vector.load %arg3[%c96, %c0_22] : memref<288x32xf32, #tpu.memory_space<vmem>>, vector<32x32xf32>
    %cst_23 = arith.constant dense<0.000000e+00> : vector<200x32xf32>
    %47 = tpu.matmul %45, %46, %cst_23 {dimension_numbers = #tpu.dot_dimension_numbers<[1], [0], [0], [1], [0, 0, 1, 1], [], []>} : vector<200x32xf32>, vector<32x32xf32>, vector<200x32xf32> -> vector<200x32xf32>
    %48 = arith.addf %42, %47 : vector<200x32xf32>
    %49 = vector.extract_strided_slice %15 {offsets = [11, 0], sizes = [200, 32], strides = [1, 1]} : vector<211x32xf32> to vector<200x32xf32>
    %c128 = arith.constant 128 : index
    %c0_24 = arith.constant 0 : index
    %50 = vector.load %arg3[%c128, %c0_24] : memref<288x32xf32, #tpu.memory_space<vmem>>, vector<32x32xf32>
    %cst_25 = arith.constant dense<0.000000e+00> : vector<200x32xf32>
    %51 = tpu.matmul %49, %50, %cst_25 {dimension_numbers = #tpu.dot_dimension_numbers<[1], [0], [0], [1], [0, 0, 1, 1], [], []>} : vector<200x32xf32>, vector<32x32xf32>, vector<200x32xf32> -> vector<200x32xf32>
    %52 = arith.addf %48, %51 : vector<200x32xf32>
    %53 = vector.extract_strided_slice %17 {offsets = [11, 0], sizes = [200, 32], strides = [1, 1]} : vector<211x32xf32> to vector<200x32xf32>
    %c160 = arith.constant 160 : index
    %c0_26 = arith.constant 0 : index
    %54 = vector.load %arg3[%c160, %c0_26] : memref<288x32xf32, #tpu.memory_space<vmem>>, vector<32x32xf32>
    %cst_27 = arith.constant dense<0.000000e+00> : vector<200x32xf32>
    %55 = tpu.matmul %53, %54, %cst_27 {dimension_numbers = #tpu.dot_dimension_numbers<[1], [0], [0], [1], [0, 0, 1, 1], [], []>} : vector<200x32xf32>, vector<32x32xf32>, vector<200x32xf32> -> vector<200x32xf32>
    %56 = arith.addf %52, %55 : vector<200x32xf32>
    %57 = vector.extract_strided_slice %21 {offsets = [10, 0], sizes = [200, 32], strides = [1, 1]} : vector<211x32xf32> to vector<200x32xf32>
    %58 = vector.broadcast %13 : vector<200x1xf32> to vector<200x32xf32>
    %59 = arith.mulf %57, %58 : vector<200x32xf32>
    %c192 = arith.constant 192 : index
    %c0_28 = arith.constant 0 : index
    %60 = vector.load %arg3[%c192, %c0_28] : memref<288x32xf32, #tpu.memory_space<vmem>>, vector<32x32xf32>
    %cst_29 = arith.constant dense<0.000000e+00> : vector<200x32xf32>
    %61 = tpu.matmul %59, %60, %cst_29 {dimension_numbers = #tpu.dot_dimension_numbers<[1], [0], [0], [1], [0, 0, 1, 1], [], []>} : vector<200x32xf32>, vector<32x32xf32>, vector<200x32xf32> -> vector<200x32xf32>
    %62 = arith.addf %56, %61 : vector<200x32xf32>
    %63 = vector.extract_strided_slice %19 {offsets = [11, 0], sizes = [200, 32], strides = [1, 1]} : vector<211x32xf32> to vector<200x32xf32>
    %c224 = arith.constant 224 : index
    %c0_30 = arith.constant 0 : index
    %64 = vector.load %arg3[%c224, %c0_30] : memref<288x32xf32, #tpu.memory_space<vmem>>, vector<32x32xf32>
    %cst_31 = arith.constant dense<0.000000e+00> : vector<200x32xf32>
    %65 = tpu.matmul %63, %64, %cst_31 {dimension_numbers = #tpu.dot_dimension_numbers<[1], [0], [0], [1], [0, 0, 1, 1], [], []>} : vector<200x32xf32>, vector<32x32xf32>, vector<200x32xf32> -> vector<200x32xf32>
    %66 = arith.addf %62, %65 : vector<200x32xf32>
    %67 = vector.extract_strided_slice %21 {offsets = [11, 0], sizes = [200, 32], strides = [1, 1]} : vector<211x32xf32> to vector<200x32xf32>
    %c256 = arith.constant 256 : index
    %c0_32 = arith.constant 0 : index
    %68 = vector.load %arg3[%c256, %c0_32] : memref<288x32xf32, #tpu.memory_space<vmem>>, vector<32x32xf32>
    %cst_33 = arith.constant dense<0.000000e+00> : vector<200x32xf32>
    %69 = tpu.matmul %67, %68, %cst_33 {dimension_numbers = #tpu.dot_dimension_numbers<[1], [0], [0], [1], [0, 0, 1, 1], [], []>} : vector<200x32xf32>, vector<32x32xf32>, vector<200x32xf32> -> vector<200x32xf32>
    %70 = arith.addf %66, %69 : vector<200x32xf32>
    %c0_34 = arith.constant 0 : index
    %c0_35 = arith.constant 0 : index
    %71 = vector.load %arg4[%c0_34, %c0_35] : memref<1x32xf32, #tpu.memory_space<vmem>>, vector<1x32xf32>
    %72 = vector.broadcast %71 : vector<1x32xf32> to vector<200x32xf32>
    %73 = arith.addf %70, %72 : vector<200x32xf32>
    %cst_36 = arith.constant 0.000000e+00 : f32
    %74 = vector.broadcast %cst_36 : f32 to vector<200x32xf32>
    %75 = arith.maximumf %73, %74 : vector<200x32xf32>
    %c0_37 = arith.constant 0 : index
    %c0_38 = arith.constant 0 : index
    %c0_39 = arith.constant 0 : index
    %76 = vector.load %arg15[%c0_37, %c0_38, %c0_39] : memref<4x50x200xf32, #tpu.memory_space<vmem>>, vector<1x50x200xf32>
    %77 = vector.shape_cast %76 : vector<1x50x200xf32> to vector<50x200xf32>
    %cst_40 = arith.constant dense<0.000000e+00> : vector<50x32xf32>
    %78 = tpu.matmul %77, %75, %cst_40 {dimension_numbers = #tpu.dot_dimension_numbers<[1], [0], [0], [1], [0, 0, 1, 1], [], []>} : vector<50x200xf32>, vector<200x32xf32>, vector<50x32xf32> -> vector<50x32xf32>
    %c1 = arith.constant 1 : index
    %c0_41 = arith.constant 0 : index
    %c0_42 = arith.constant 0 : index
    %79 = vector.load %arg15[%c1, %c0_41, %c0_42] : memref<4x50x200xf32, #tpu.memory_space<vmem>>, vector<1x50x200xf32>
    %80 = vector.shape_cast %79 : vector<1x50x200xf32> to vector<50x200xf32>
    %cst_43 = arith.constant dense<0.000000e+00> : vector<50x32xf32>
    %81 = tpu.matmul %80, %75, %cst_43 {dimension_numbers = #tpu.dot_dimension_numbers<[1], [0], [0], [1], [0, 0, 1, 1], [], []>} : vector<50x200xf32>, vector<200x32xf32>, vector<50x32xf32> -> vector<50x32xf32>
    %c2 = arith.constant 2 : index
    %c0_44 = arith.constant 0 : index
    %c0_45 = arith.constant 0 : index
    %82 = vector.load %arg15[%c2, %c0_44, %c0_45] : memref<4x50x200xf32, #tpu.memory_space<vmem>>, vector<1x50x200xf32>
    %83 = vector.shape_cast %82 : vector<1x50x200xf32> to vector<50x200xf32>
    %cst_46 = arith.constant dense<0.000000e+00> : vector<50x32xf32>
    %84 = tpu.matmul %83, %75, %cst_46 {dimension_numbers = #tpu.dot_dimension_numbers<[1], [0], [0], [1], [0, 0, 1, 1], [], []>} : vector<50x200xf32>, vector<200x32xf32>, vector<50x32xf32> -> vector<50x32xf32>
    %c3 = arith.constant 3 : index
    %c0_47 = arith.constant 0 : index
    %c0_48 = arith.constant 0 : index
    %85 = vector.load %arg15[%c3, %c0_47, %c0_48] : memref<4x50x200xf32, #tpu.memory_space<vmem>>, vector<1x50x200xf32>
    %86 = vector.shape_cast %85 : vector<1x50x200xf32> to vector<50x200xf32>
    %cst_49 = arith.constant dense<0.000000e+00> : vector<50x32xf32>
    %87 = tpu.matmul %86, %75, %cst_49 {dimension_numbers = #tpu.dot_dimension_numbers<[1], [0], [0], [1], [0, 0, 1, 1], [], []>} : vector<50x200xf32>, vector<200x32xf32>, vector<50x32xf32> -> vector<50x32xf32>
    %c0_50 = arith.constant 0 : index
    %c0_51 = arith.constant 0 : index
    %88 = vector.load %arg13[%c0_50, %c0_51] : memref<50x1xf32, #tpu.memory_space<vmem>>, vector<50x1xf32>
    %c0_52 = arith.constant 0 : index
    %c0_53 = arith.constant 0 : index
    %89 = vector.load %arg14[%c0_52, %c0_53] : memref<50x1xf32, #tpu.memory_space<vmem>>, vector<50x1xf32>
    %cst_54 = arith.constant 0.000000e+00 : f32
    %90 = vector.broadcast %cst_54 : f32 to vector<6x32xf32>
    %91 = tpu.concatenate %90, %78 in 0 : vector<6x32xf32>, vector<50x32xf32> -> vector<56x32xf32>
    %cst_55 = arith.constant 0.000000e+00 : f32
    %92 = vector.broadcast %cst_55 : f32 to vector<6x32xf32>
    %93 = tpu.concatenate %92, %81 in 0 : vector<6x32xf32>, vector<50x32xf32> -> vector<56x32xf32>
    %cst_56 = arith.constant 0.000000e+00 : f32
    %94 = vector.broadcast %cst_56 : f32 to vector<6x32xf32>
    %95 = tpu.concatenate %94, %84 in 0 : vector<6x32xf32>, vector<50x32xf32> -> vector<56x32xf32>
    %cst_57 = arith.constant 0.000000e+00 : f32
    %96 = vector.broadcast %cst_57 : f32 to vector<6x32xf32>
    %97 = tpu.concatenate %96, %87 in 0 : vector<6x32xf32>, vector<50x32xf32> -> vector<56x32xf32>
    %cst_58 = arith.constant 0.000000e+00 : f32
    %98 = vector.broadcast %cst_58 : f32 to vector<50x32xf32>
    %99 = vector.extract_strided_slice %97 {offsets = [0, 0], sizes = [50, 32], strides = [1, 1]} : vector<56x32xf32> to vector<50x32xf32>
    %100 = vector.broadcast %88 : vector<50x1xf32> to vector<50x32xf32>
    %101 = arith.mulf %99, %100 : vector<50x32xf32>
    %102 = vector.broadcast %89 : vector<50x1xf32> to vector<50x32xf32>
    %103 = arith.mulf %101, %102 : vector<50x32xf32>
    %c0_59 = arith.constant 0 : index
    %c0_60 = arith.constant 0 : index
    %104 = vector.load %arg5[%c0_59, %c0_60] : memref<288x32xf32, #tpu.memory_space<vmem>>, vector<32x32xf32>
    %cst_61 = arith.constant dense<0.000000e+00> : vector<50x32xf32>
    %105 = tpu.matmul %103, %104, %cst_61 {dimension_numbers = #tpu.dot_dimension_numbers<[1], [0], [0], [1], [0, 0, 1, 1], [], []>} : vector<50x32xf32>, vector<32x32xf32>, vector<50x32xf32> -> vector<50x32xf32>
    %106 = arith.addf %98, %105 : vector<50x32xf32>
    %107 = vector.extract_strided_slice %95 {offsets = [1, 0], sizes = [50, 32], strides = [1, 1]} : vector<56x32xf32> to vector<50x32xf32>
    %108 = vector.broadcast %88 : vector<50x1xf32> to vector<50x32xf32>
    %109 = arith.mulf %107, %108 : vector<50x32xf32>
    %c32_62 = arith.constant 32 : index
    %c0_63 = arith.constant 0 : index
    %110 = vector.load %arg5[%c32_62, %c0_63] : memref<288x32xf32, #tpu.memory_space<vmem>>, vector<32x32xf32>
    %cst_64 = arith.constant dense<0.000000e+00> : vector<50x32xf32>
    %111 = tpu.matmul %109, %110, %cst_64 {dimension_numbers = #tpu.dot_dimension_numbers<[1], [0], [0], [1], [0, 0, 1, 1], [], []>} : vector<50x32xf32>, vector<32x32xf32>, vector<50x32xf32> -> vector<50x32xf32>
    %112 = arith.addf %106, %111 : vector<50x32xf32>
    %113 = vector.extract_strided_slice %97 {offsets = [1, 0], sizes = [50, 32], strides = [1, 1]} : vector<56x32xf32> to vector<50x32xf32>
    %114 = vector.broadcast %88 : vector<50x1xf32> to vector<50x32xf32>
    %115 = arith.mulf %113, %114 : vector<50x32xf32>
    %c64_65 = arith.constant 64 : index
    %c0_66 = arith.constant 0 : index
    %116 = vector.load %arg5[%c64_65, %c0_66] : memref<288x32xf32, #tpu.memory_space<vmem>>, vector<32x32xf32>
    %cst_67 = arith.constant dense<0.000000e+00> : vector<50x32xf32>
    %117 = tpu.matmul %115, %116, %cst_67 {dimension_numbers = #tpu.dot_dimension_numbers<[1], [0], [0], [1], [0, 0, 1, 1], [], []>} : vector<50x32xf32>, vector<32x32xf32>, vector<50x32xf32> -> vector<50x32xf32>
    %118 = arith.addf %112, %117 : vector<50x32xf32>
    %119 = vector.extract_strided_slice %93 {offsets = [5, 0], sizes = [50, 32], strides = [1, 1]} : vector<56x32xf32> to vector<50x32xf32>
    %120 = vector.broadcast %89 : vector<50x1xf32> to vector<50x32xf32>
    %121 = arith.mulf %119, %120 : vector<50x32xf32>
    %c96_68 = arith.constant 96 : index
    %c0_69 = arith.constant 0 : index
    %122 = vector.load %arg5[%c96_68, %c0_69] : memref<288x32xf32, #tpu.memory_space<vmem>>, vector<32x32xf32>
    %cst_70 = arith.constant dense<0.000000e+00> : vector<50x32xf32>
    %123 = tpu.matmul %121, %122, %cst_70 {dimension_numbers = #tpu.dot_dimension_numbers<[1], [0], [0], [1], [0, 0, 1, 1], [], []>} : vector<50x32xf32>, vector<32x32xf32>, vector<50x32xf32> -> vector<50x32xf32>
    %124 = arith.addf %118, %123 : vector<50x32xf32>
    %125 = vector.extract_strided_slice %91 {offsets = [6, 0], sizes = [50, 32], strides = [1, 1]} : vector<56x32xf32> to vector<50x32xf32>
    %c128_71 = arith.constant 128 : index
    %c0_72 = arith.constant 0 : index
    %126 = vector.load %arg5[%c128_71, %c0_72] : memref<288x32xf32, #tpu.memory_space<vmem>>, vector<32x32xf32>
    %cst_73 = arith.constant dense<0.000000e+00> : vector<50x32xf32>
    %127 = tpu.matmul %125, %126, %cst_73 {dimension_numbers = #tpu.dot_dimension_numbers<[1], [0], [0], [1], [0, 0, 1, 1], [], []>} : vector<50x32xf32>, vector<32x32xf32>, vector<50x32xf32> -> vector<50x32xf32>
    %128 = arith.addf %124, %127 : vector<50x32xf32>
    %129 = vector.extract_strided_slice %93 {offsets = [6, 0], sizes = [50, 32], strides = [1, 1]} : vector<56x32xf32> to vector<50x32xf32>
    %c160_74 = arith.constant 160 : index
    %c0_75 = arith.constant 0 : index
    %130 = vector.load %arg5[%c160_74, %c0_75] : memref<288x32xf32, #tpu.memory_space<vmem>>, vector<32x32xf32>
    %cst_76 = arith.constant dense<0.000000e+00> : vector<50x32xf32>
    %131 = tpu.matmul %129, %130, %cst_76 {dimension_numbers = #tpu.dot_dimension_numbers<[1], [0], [0], [1], [0, 0, 1, 1], [], []>} : vector<50x32xf32>, vector<32x32xf32>, vector<50x32xf32> -> vector<50x32xf32>
    %132 = arith.addf %128, %131 : vector<50x32xf32>
    %133 = vector.extract_strided_slice %97 {offsets = [5, 0], sizes = [50, 32], strides = [1, 1]} : vector<56x32xf32> to vector<50x32xf32>
    %134 = vector.broadcast %89 : vector<50x1xf32> to vector<50x32xf32>
    %135 = arith.mulf %133, %134 : vector<50x32xf32>
    %c192_77 = arith.constant 192 : index
    %c0_78 = arith.constant 0 : index
    %136 = vector.load %arg5[%c192_77, %c0_78] : memref<288x32xf32, #tpu.memory_space<vmem>>, vector<32x32xf32>
    %cst_79 = arith.constant dense<0.000000e+00> : vector<50x32xf32>
    %137 = tpu.matmul %135, %136, %cst_79 {dimension_numbers = #tpu.dot_dimension_numbers<[1], [0], [0], [1], [0, 0, 1, 1], [], []>} : vector<50x32xf32>, vector<32x32xf32>, vector<50x32xf32> -> vector<50x32xf32>
    %138 = arith.addf %132, %137 : vector<50x32xf32>
    %139 = vector.extract_strided_slice %95 {offsets = [6, 0], sizes = [50, 32], strides = [1, 1]} : vector<56x32xf32> to vector<50x32xf32>
    %c224_80 = arith.constant 224 : index
    %c0_81 = arith.constant 0 : index
    %140 = vector.load %arg5[%c224_80, %c0_81] : memref<288x32xf32, #tpu.memory_space<vmem>>, vector<32x32xf32>
    %cst_82 = arith.constant dense<0.000000e+00> : vector<50x32xf32>
    %141 = tpu.matmul %139, %140, %cst_82 {dimension_numbers = #tpu.dot_dimension_numbers<[1], [0], [0], [1], [0, 0, 1, 1], [], []>} : vector<50x32xf32>, vector<32x32xf32>, vector<50x32xf32> -> vector<50x32xf32>
    %142 = arith.addf %138, %141 : vector<50x32xf32>
    %143 = vector.extract_strided_slice %97 {offsets = [6, 0], sizes = [50, 32], strides = [1, 1]} : vector<56x32xf32> to vector<50x32xf32>
    %c256_83 = arith.constant 256 : index
    %c0_84 = arith.constant 0 : index
    %144 = vector.load %arg5[%c256_83, %c0_84] : memref<288x32xf32, #tpu.memory_space<vmem>>, vector<32x32xf32>
    %cst_85 = arith.constant dense<0.000000e+00> : vector<50x32xf32>
    %145 = tpu.matmul %143, %144, %cst_85 {dimension_numbers = #tpu.dot_dimension_numbers<[1], [0], [0], [1], [0, 0, 1, 1], [], []>} : vector<50x32xf32>, vector<32x32xf32>, vector<50x32xf32> -> vector<50x32xf32>
    %146 = arith.addf %142, %145 : vector<50x32xf32>
    %c0_86 = arith.constant 0 : index
    %c0_87 = arith.constant 0 : index
    %147 = vector.load %arg6[%c0_86, %c0_87] : memref<1x32xf32, #tpu.memory_space<vmem>>, vector<1x32xf32>
    %148 = vector.broadcast %147 : vector<1x32xf32> to vector<50x32xf32>
    %149 = arith.addf %146, %148 : vector<50x32xf32>
    %cst_88 = arith.constant 0.000000e+00 : f32
    %150 = vector.broadcast %cst_88 : f32 to vector<50x32xf32>
    %151 = arith.maximumf %149, %150 : vector<50x32xf32>
    %c0_89 = arith.constant 0 : index
    %c0_90 = arith.constant 0 : index
    %152 = vector.load %arg16[%c0_89, %c0_90] : memref<32x800xf32, #tpu.memory_space<vmem>>, vector<32x800xf32>
    %cst_91 = arith.constant dense<0.000000e+00> : vector<50x800xf32>
    %153 = tpu.matmul %151, %152, %cst_91 {dimension_numbers = #tpu.dot_dimension_numbers<[1], [0], [0], [1], [0, 0, 1, 1], [], []>} : vector<50x32xf32>, vector<32x800xf32>, vector<50x800xf32> -> vector<50x800xf32>
    %c0_92 = arith.constant 0 : index
    %c0_93 = arith.constant 0 : index
    %154 = vector.load %arg18[%c0_92, %c0_93] : memref<2x50xf32, #tpu.memory_space<vmem>>, vector<2x50xf32>
    %c0_94 = arith.constant 0 : index
    %c0_95 = arith.constant 0 : index
    %155 = vector.load %arg17[%c0_94, %c0_95] : memref<50x800xf32, #tpu.memory_space<vmem>>, vector<50x800xf32>
    %156 = arith.mulf %153, %155 : vector<50x800xf32>
    %cst_96 = arith.constant dense<0.000000e+00> : vector<2x800xf32>
    %157 = tpu.matmul %154, %156, %cst_96 {dimension_numbers = #tpu.dot_dimension_numbers<[1], [0], [0], [1], [0, 0, 1, 1], [], []>} : vector<2x50xf32>, vector<50x800xf32>, vector<2x800xf32> -> vector<2x800xf32>
    %c0_97 = arith.constant 0 : index
    %c0_98 = arith.constant 0 : index
    %158 = vector.load %arg7[%c0_97, %c0_98] : memref<800x64xf32, #tpu.memory_space<vmem>>, vector<800x64xf32>
    %cst_99 = arith.constant dense<0.000000e+00> : vector<2x64xf32>
    %159 = tpu.matmul %157, %158, %cst_99 {dimension_numbers = #tpu.dot_dimension_numbers<[1], [0], [0], [1], [0, 0, 1, 1], [], []>} : vector<2x800xf32>, vector<800x64xf32>, vector<2x64xf32> -> vector<2x64xf32>
    %c0_100 = arith.constant 0 : index
    %c0_101 = arith.constant 0 : index
    %160 = vector.load %arg8[%c0_100, %c0_101] : memref<1x64xf32, #tpu.memory_space<vmem>>, vector<1x64xf32>
    %161 = vector.broadcast %160 : vector<1x64xf32> to vector<2x64xf32>
    %162 = arith.addf %159, %161 : vector<2x64xf32>
    %cst_102 = arith.constant 0.000000e+00 : f32
    %163 = vector.broadcast %cst_102 : f32 to vector<2x64xf32>
    %164 = arith.maximumf %162, %163 : vector<2x64xf32>
    %c0_103 = arith.constant 0 : index
    %c0_104 = arith.constant 0 : index
    %165 = vector.load %arg9[%c0_103, %c0_104] : memref<64x6xf32, #tpu.memory_space<vmem>>, vector<64x6xf32>
    %cst_105 = arith.constant dense<0.000000e+00> : vector<2x6xf32>
    %166 = tpu.matmul %164, %165, %cst_105 {dimension_numbers = #tpu.dot_dimension_numbers<[1], [0], [0], [1], [0, 0, 1, 1], [], []>} : vector<2x64xf32>, vector<64x6xf32>, vector<2x6xf32> -> vector<2x6xf32>
    %c0_106 = arith.constant 0 : index
    %c0_107 = arith.constant 0 : index
    %167 = vector.load %arg10[%c0_106, %c0_107] : memref<1x6xf32, #tpu.memory_space<vmem>>, vector<1x6xf32>
    %168 = vector.broadcast %167 : vector<1x6xf32> to vector<2x6xf32>
    %169 = arith.addf %166, %168 : vector<2x6xf32>
    %c0_108 = arith.constant 0 : index
    %c0_109 = arith.constant 0 : index
    %170 = vector.load %arg19[%c0_108, %c0_109] : memref<2x6xf32, #tpu.memory_space<vmem>>, vector<2x6xf32>
    tpu.vector_store %arg19[%c0_108, %c0_109], %169 {strides = array<i32>} : memref<2x6xf32, #tpu.memory_space<vmem>>, vector<2x6xf32>,
    return
  }
}

</mosaic_0001>

<bundles_post_ra>
// kernel: dqn_cnn_forward.1
= control target key start
LH: loop header
LB: loop body
LE: loop exit
PB: predicated region body
PF: predicated region fallthrough
CT: control target
= control target key end

     0   :  { %s11259_s0 = inlined_call_operand.vmem [shape: f32[800,36], index: 0, kind: input, shape index: {}]   ;;  %s11260_s1 = inlined_call_operand.vmem [shape: f32[36,32], index: 1, kind: input, shape index: {}]   ;;  %s11261_s2 = inlined_call_operand.vmem [shape: f32[1,32], index: 2, kind: input, shape index: {}]   ;;  %s11262_s3 = inlined_call_operand.vmem [shape: f32[288,32], index: 3, kind: input, shape index: {}]   ;;  %s11263_s4 = inlined_call_operand.vmem [shape: f32[1,32], index: 4, kind: input, shape index: {}]   ;;  %s11264_s5 = inlined_call_operand.vmem [shape: f32[288,32], index: 5, kind: input, shape index: {}]   ;;  %s11265_s6 = inlined_call_operand.vmem [shape: f32[1,32], index: 6, kind: input, shape index: {}]   ;;  %s11266_s7 = inlined_call_operand.vmem [shape: f32[800,64], index: 7, kind: input, shape index: {}]   ;;  %s11267_s8 = inlined_call_operand.vmem [shape: f32[1,64], index: 8, kind: input, shape index: {}]   ;;  %s11268_s9 = inlined_call_operand.vmem [shape: f32[64,6], index: 9, kind: input, shape index: {}]   ;;  %s11269_s10 = inlined_call_operand.vmem [shape: f32[1,6], index: 10, kind: input, shape index: {}]   ;;  %s11270_s11 = inlined_call_operand.vmem [shape: f32[200,1], index: 11, kind: input, shape index: {}]   ;;  %s11271_s12 = inlined_call_operand.vmem [shape: f32[200,1], index: 12, kind: input, shape index: {}]   ;;  %s11272_s13 = inlined_call_operand.vmem [shape: f32[50,1], index: 13, kind: input, shape index: {}]   ;;  %s11273_s14 = inlined_call_operand.vmem [shape: f32[50,1], index: 14, kind: input, shape index: {}]   ;;  %s11274_s15 = inlined_call_operand.vmem [shape: f32[4,50,200], index: 15, kind: input, shape index: {}]   ;;  %s11275_s16 = inlined_call_operand.vmem [shape: f32[32,800], index: 16, kind: input, shape index: {}]   ;;  %s11276_s17 = inlined_call_operand.vmem [shape: f32[50,800], index: 17, kind: input, shape index: {}]   ;;  %s11277_s18 = inlined_call_operand.vmem [shape: f32[2,50], index: 18, kind: input, shape index: {}]   ;;  %s11278_s19 = inlined_call_operand.hbm [shape: f32[2,6], index: 19, kind: output, shape index: {}]  }
   0x1   :  { %11342 = sst [smem:[#allocation154_spill]] %s11259_s0 }
   0x2   :  { %11343 = sst [smem:[#allocation155_spill]] %s11260_s1 }
   0x3   :  { %11344 = sst [smem:[#allocation156_spill]] %s11261_s2 }
   0x4   :  { %11345 = sst [smem:[#allocation157_spill]] %s11262_s3 }
   0x5   :  { %s11346_s20 = sld [smem:[#allocation155_spill]]  ;;  %vm473_vm0 = vcmask 1043456  }
   0xb   :  { %v167_v0 = vld [vmem:[%s11346_s20 + $0x20] sm:$0xf]  ;;  %v166_v1 = vld [vmem:[%s11346_s20 + $0x18] sm:$0xff]  ;;  %v165_v2 = vld [vmem:[%s11346_s20 + $0x10] sm:$0xff] }
   0xc   :  { %6279 = vmatpush.msk.msra.mxu0 %vm473_vm0, %v167_v0  ;;  %v164_v3 = vld [vmem:[%s11346_s20 + $0x8] sm:$0xff] }
   0xe   :  { %489 = vmatpush.msra.mxu0 %v166_v1 }
  0x10   :  { %490 = vmatpush.msra.mxu0 %v165_v2 }
  0x11   :  { %24 = vsyncpa [#allocation3], 0  ;;  %v163_v4 = vld [vmem:[%s11346_s20] sm:$0xff]  ;;  %s11347_s28 = sld [smem:[#allocation154_spill]]  ;;  %vm172_vm1 = vcmask 293888   ;;  %v6852_v35 = vmov 0  }
  0x12   :  { %491 = vmatpush.msra.mxu0 %v164_v3  ;;  %6813 = vset.pattern.permute.xlu0 %v6852_v35  ;;  %v894_v36 = vld [vmem:[%s11270_s11] sm:$0xff]  ;;  %v895_v39 = vld [vmem:[%s11270_s11 + $0x8] sm:$0xff]  ;;  %v922_v48 = vld [vmem:[%s11271_s12 + $0x18] sm:$0xff]  ;;  %s11373_s25 = sld [smem:[#allocation156_spill]]  ;;  %vm969_vm2 = vcmask 1042432   ;;  %vm2748_vm3 = vcmask 1044480  }
  0x13   :  { %6814 = vset.pattern.permute.xlu1 %v6852_v35  ;;  %1325 = vperm.xlu0 %6813, %v894_v36   ;;  %v919_v40 = vld [vmem:[%s11271_s12] sm:$0xff]  ;;  %v920_v43 = vld [vmem:[%s11271_s12 + $0x8] sm:$0xff]  ;;  %v897_v49 = vld [vmem:[%s11270_s11 + $0x18] sm:$0xff]  ;;  %s11402_s20 = sld [smem:[#allocation157_spill]]  ;;  %vm1811_vm4 = vcmask 261120   ;;  %vm1627_vm5 = vcmask 1040384  }
  0x14   :  { %492 = vmatpush.msra.mxu0 %v163_v4  ;;  %6815 = vset.pattern.permute.xlu2 %v6852_v35  ;;  %v896_v52 = vld [vmem:[%s11270_s11 + $0x10] sm:$0xff]  ;;  %v923_v53 = vld [vmem:[%s11271_s12 + $0x20] sm:$0xff]  ;;  %v899_v57 = vld [vmem:[%s11270_s11 + $0x28] sm:$0xff]  ;;  %vm1759_vm6 = vcmask 1046528   ;;  %vm2392_vm7 = vcmask 1041408   ;;  %vm2524_vm8 = vcmask 1045504  }
  0x15   :  { %1330 = vperm.xlu1 %6814, %v895_v39   ;;  %1335 = vperm.xlu2 %6815, %v896_v52   ;;  %v921_v56 = vld [vmem:[%s11271_s12 + $0x10] sm:$0xff]  ;;  %v898_v0 = vld [vmem:[%s11270_s11 + $0x20] sm:$0xff]  ;;  %v926_v1 = vld [vmem:[%s11271_s12 + $0x38] sm:$0xff]  ;;  %vm3978_vm9 = vcmask 588800   ;;  %vm5812_vm10 = vcmask 408576   ;;  %vm6237_vm11 = vcmask 523264  }
  0x16   :  { %v925_v60 = vld [vmem:[%s11271_s12 + $0x30] sm:$0xff]  ;;  %v924_v4 = vld [vmem:[%s11271_s12 + $0x28] sm:$0xff]  ;;  %v930_v35 = vld [vmem:[%s11271_s12 + $0x58] sm:$0xff]  ;;  %vm6261_vm12 = vcmask 41984  }
  0x17   :  { %v63_v5 = vld [vmem:[%s11347_s28] sm:$0xff]  ;;  %v64_v6 = vld [vmem:[%s11347_s28 + $0x8] sm:$0xff]  ;;  %v65_v7 = vld [vmem:[%s11347_s28 + $0x10] sm:$0xff] }
  0x18   :  { %6280 = vmatmul.msk.f32.vlgmr.msra.gmra.mxu0 %vm172_vm1, %v63_v5  ;;  %v66_v8 = vld [vmem:[%s11347_s28 + $0x18] sm:$0xff]  ;;  %v67_v9 = vld [vmem:[%s11347_s28 + $0x20] sm:$0xff]  ;;  %v68_v10 = vld [vmem:[%s11347_s28 + $0x28] sm:$0xff] }
  0x19   :  { %v69_v11 = vld [vmem:[%s11347_s28 + $0x30] sm:$0xff]  ;;  %v70_v12 = vld [vmem:[%s11347_s28 + $0x38] sm:$0xff]  ;;  %v71_v13 = vld [vmem:[%s11347_s28 + $0x40] sm:$0xff] }
  0x1a   :  { %v72_v14 = vld [vmem:[%s11347_s28 + $0x48] sm:$0xff]  ;;  %v73_v15 = vld [vmem:[%s11347_s28 + $0x50] sm:$0xff]  ;;  %v74_v16 = vld [vmem:[%s11347_s28 + $0x58] sm:$0xff] }
  0x1b   :  { %v75_v17 = vld [vmem:[%s11347_s28 + $0x60] sm:$0xff]  ;;  %v76_v18 = vld [vmem:[%s11347_s28 + $0x68] sm:$0xff]  ;;  %v77_v19 = vld [vmem:[%s11347_s28 + $0x70] sm:$0xff]  ;;  %1475 = vperm.xlu0 %6813, %v919_v40  }
  0x1c   :  { %v78_v20 = vld [vmem:[%s11347_s28 + $0x78] sm:$0xff]  ;;  %v79_v22 = vld [vmem:[%s11347_s28 + $0x80] sm:$0xff]  ;;  %v80_v24 = vld [vmem:[%s11347_s28 + $0x88] sm:$0xff] }
  0x1d   :  { %v81_v26 = vld [vmem:[%s11347_s28 + $0x90] sm:$0xff]  ;;  %v82_v28 = vld [vmem:[%s11347_s28 + $0x98] sm:$0xff]  ;;  %v83_v30 = vld [vmem:[%s11347_s28 + $0xa0] sm:$0xff]  ;;  %1480 = vperm.xlu1 %6814, %v920_v43   ;;  %1485 = vperm.xlu2 %6815, %v921_v56  }
  0x1e   :  { %v84_v32 = vld [vmem:[%s11347_s28 + $0xa8] sm:$0xff]  ;;  %v85_v34 = vld [vmem:[%s11347_s28 + $0xb0] sm:$0xff]  ;;  %v86_v38 = vld [vmem:[%s11347_s28 + $0xb8] sm:$0xff] }
  0x1f   :  { %v87_v42 = vld [vmem:[%s11347_s28 + $0xc0] sm:$0xff]  ;;  %v88_v45 = vld [vmem:[%s11347_s28 + $0xc8] sm:$0xff]  ;;  %v89_v47 = vld [vmem:[%s11347_s28 + $0xd0] sm:$0xff] }
  0x20   :  { %6281 = vmatmul.msk.f32.gmra.mxu0 %vm172_vm1, %v64_v6  ;;  %v90_v51 = vld [vmem:[%s11347_s28 + $0xd8] sm:$0xff]  ;;  %v91_v55 = vld [vmem:[%s11347_s28 + $0xe0] sm:$0xff]  ;;  %v92_v59 = vld [vmem:[%s11347_s28 + $0xe8] sm:$0xff] }
  0x21   :  { %v900_v61 = vld [vmem:[%s11270_s11 + $0x30] sm:$0xff]  ;;  %v94_v3 = vld [vmem:[%s11347_s28 + $0xf8] sm:$0xff]  ;;  %v902_v5 = vld [vmem:[%s11270_s11 + $0x40] sm:$0xff] }
  0x22   :  { %v93_v63 = vld [vmem:[%s11347_s28 + $0xf0] sm:$0xff]  ;;  %v934_v40 = vld [vmem:[%s11271_s12 + $0x78] sm:$0xff] }
  0x23   :  { %1340 = vperm.xlu0 %6813, %v897_v49   ;;  %v908_v36 = vld [vmem:[%s11270_s11 + $0x70] sm:$0xff] }
  0x24   :  { %v101_v39 = vld [vmem:[%s11347_s28 + $0x130] sm:$0xff] }
  0x25   :  { %1490 = vperm.xlu1 %6814, %v922_v48   ;;  %1345 = vperm.xlu2 %6815, %v898_v0   ;;  %v935_v48 = vld [vmem:[%s11271_s12 + $0x80] sm:$0xff]  ;;  %v933_v52 = vld [vmem:[%s11271_s12 + $0x70] sm:$0xff] }
  0x28   :  { %6282 = vmatmul.msk.f32.gmra.mxu0 %vm172_vm1, %v65_v7  ;;  %v95_v7 = vld [vmem:[%s11347_s28 + $0x100] sm:$0xff] }
  0x2b   :  { %1495 = vperm.xlu0 %6813, %v923_v53   ;;  %v911_v53 = vld [vmem:[%s11270_s11 + $0x88] sm:$0xff] }
  0x2d   :  { %1350 = vperm.xlu1 %6814, %v899_v57   ;;  %1500 = vperm.xlu2 %6815, %v924_v4   ;;  %v104_v57 = vld [vmem:[%s11347_s28 + $0x148] sm:$0xff] }
  0x30   :  { %6283 = vmatmul.msk.f32.gmra.mxu0 %vm172_vm1, %v66_v8  ;;  %v928_v8 = vld [vmem:[%s11271_s12 + $0x48] sm:$0xff] }
  0x33   :  { %1355 = vperm.xlu0 %6813, %v900_v61   ;;  %v912_v61 = vld [vmem:[%s11270_s11 + $0x90] sm:$0xff] }
  0x35   :  { %1505 = vperm.xlu1 %6814, %v925_v60   ;;  %v937_v60 = vld [vmem:[%s11271_s12 + $0x90] sm:$0xff] }
  0x38   :  { %6284 = vmatmul.msk.f32.gmra.mxu0 %vm172_vm1, %v67_v9  ;;  %v903_v9 = vld [vmem:[%s11270_s11 + $0x48] sm:$0xff] }
  0x3b   :  { %1510 = vperm.xlu0 %6813, %v926_v1   ;;  %v105_v1 = vld [vmem:[%s11347_s28 + $0x150] sm:$0xff] }
  0x3d   :  { %1365 = vperm.xlu1 %6814, %v902_v5   ;;  %v910_v5 = vld [vmem:[%s11270_s11 + $0x80] sm:$0xff] }
  0x40   :  { %6285 = vmatmul.msk.f32.gmra.mxu0 %vm172_vm1, %v68_v10 }
  0x43   :  { %1370 = vperm.xlu0 %6813, %v903_v9  }
  0x45   :  { %1520 = vperm.xlu1 %6814, %v928_v8  }
  0x48   :  { %6286 = vmatmul.msk.f32.gmra.mxu0 %vm172_vm1, %v69_v11  ;;  %v96_v11 = vld [vmem:[%s11347_s28 + $0x108] sm:$0xff] }
  0x50   :  { %6287 = vmatmul.msk.f32.gmra.mxu0 %vm172_vm1, %v70_v12  ;;  %v901_v12 = vld [vmem:[%s11270_s11 + $0x38] sm:$0xff] }
  0x51   :  { %1360 = vperm.xlu2 %6815, %v901_v12  }
  0x58   :  { %6288 = vmatmul.msk.f32.gmra.mxu0 %vm172_vm1, %v71_v13  ;;  %v929_v13 = vld [vmem:[%s11271_s12 + $0x50] sm:$0xff] }
  0x59   :  { %1525 = vperm.xlu0 %6813, %v929_v13  }
  0x60   :  { %6289 = vmatmul.msk.f32.gmra.mxu0 %vm172_vm1, %v72_v14 }
  0x68   :  { %6290 = vmatmul.msk.f32.gmra.mxu0 %vm172_vm1, %v73_v15  ;;  %v97_v15 = vld [vmem:[%s11347_s28 + $0x110] sm:$0xff] }
  0x70   :  { %6291 = vmatmul.msk.f32.gmra.mxu0 %vm172_vm1, %v74_v16  ;;  %v927_v16 = vld [vmem:[%s11271_s12 + $0x40] sm:$0xff] }
  0x71   :  { %1515 = vperm.xlu2 %6815, %v927_v16  }
  0x78   :  { %6292 = vmatmul.msk.f32.gmra.mxu0 %vm172_vm1, %v75_v17  ;;  %v905_v17 = vld [vmem:[%s11270_s11 + $0x58] sm:$0xff] }
  0x79   :  { %1380 = vperm.xlu1 %6814, %v905_v17   ;;  %v106_v17 = vld [vmem:[%s11347_s28 + $0x158] sm:$0xff] }
  0x80   :  { %6293 = vmatmul.msk.f32.gmra.mxu0 %vm172_vm1, %v76_v18 }
  0x88   :  { %6294 = vmatmul.msk.f32.gmra.mxu0 %vm172_vm1, %v77_v19  ;;  %v98_v19 = vld [vmem:[%s11347_s28 + $0x118] sm:$0xff] }
  0x90   :  { %6295 = vmatmul.msk.f32.gmra.mxu0 %vm172_vm1, %v78_v20  ;;  %v931_v20 = vld [vmem:[%s11271_s12 + $0x60] sm:$0xff] }
  0x91   :  { %1535 = vperm.xlu1 %6814, %v931_v20   ;;  %v936_v20 = vld [vmem:[%s11271_s12 + $0x88] sm:$0xff] }
  0x95   :  { %v7033_v21 = vpop.f32.mrf.mxu0 }
  0x96   :  { %11348 = vst [vmem:[#allocation5_spill] sm:$0xff] %v7033_v21 }
  0x98   :  { %6296 = vmatmul.msk.f32.gmra.mxu0 %vm172_vm1, %v79_v22  ;;  %v906_v22 = vld [vmem:[%s11270_s11 + $0x60] sm:$0xff] }
  0x99   :  { %1385 = vperm.xlu0 %6813, %v906_v22   ;;  %1395 = vperm.xlu1 %6814, %v908_v36   ;;  %v914_v22 = vld [vmem:[%s11270_s11 + $0xa0] sm:$0xff] }
  0x9a   :  { %v107_v36 = vld [vmem:[%s11347_s28 + $0x160] sm:$0xff] }
  0x9d   :  { %v7039_v23 = vpop.f32.mrf.mxu0 }
  0x9e   :  { %11349 = vst [vmem:[#allocation6_spill] sm:$0xff] %v7039_v23 }
  0xa0   :  { %6297 = vmatmul.msk.f32.gmra.mxu0 %vm172_vm1, %v80_v24 }
  0xa1   :  { %1550 = vperm.xlu1 %6814, %v934_v40  }
  0xa5   :  { %v7045_v25 = vpop.f32.mrf.mxu0 }
  0xa6   :  { %11350 = vst [vmem:[#allocation7_spill] sm:$0xff] %v7045_v25 }
  0xa8   :  { %6298 = vmatmul.msk.f32.gmra.mxu0 %vm172_vm1, %v81_v26  ;;  %v99_v26 = vld [vmem:[%s11347_s28 + $0x120] sm:$0xff] }
  0xa9   :  { %1410 = vperm.xlu1 %6814, %v911_v53  }
  0xad   :  { %v7051_v27 = vpop.f32.mrf.mxu0 }
  0xae   :  { %11351 = vst [vmem:[#allocation8_spill] sm:$0xff] %v7051_v27 }
  0xb0   :  { %6299 = vmatmul.msk.f32.gmra.mxu0 %vm172_vm1, %v82_v28  ;;  %v904_v28 = vld [vmem:[%s11270_s11 + $0x50] sm:$0xff] }
  0xb1   :  { %1375 = vperm.xlu2 %6815, %v904_v28   ;;  %1565 = vperm.xlu1 %6814, %v937_v60   ;;  %v913_v60 = vld [vmem:[%s11270_s11 + $0x98] sm:$0xff] }
  0xb5   :  { %v7057_v29 = vpop.f32.mrf.mxu0 }
  0xb6   :  { %11352 = vst [vmem:[#allocation9_spill] sm:$0xff] %v7057_v29 }
  0xb8   :  { %6300 = vmatmul.msk.f32.gmra.mxu0 %vm172_vm1, %v83_v30  ;;  %v932_v30 = vld [vmem:[%s11271_s12 + $0x68] sm:$0xff] }
  0xb9   :  { %1540 = vperm.xlu0 %6813, %v932_v30   ;;  %1530 = vperm.xlu2 %6815, %v930_v35  }
  0xba   :  { %1425 = vperm.xlu1 %6814, %v914_v22   ;;  %v110_v22 = vld [vmem:[%s11347_s28 + $0x178] sm:$0xff] }
  0xbd   :  { %v7063_v31 = vpop.f32.mrf.mxu0 }
  0xbe   :  { %11353 = vst [vmem:[#allocation10_spill] sm:$0xff] %v7063_v31 }
  0xc0   :  { %6301 = vmatmul.msk.f32.gmra.mxu0 %vm172_vm1, %v84_v32 }
  0xc5   :  { %v7069_v33 = vpop.f32.mrf.mxu0 }
  0xc6   :  { %11354 = vst [vmem:[#allocation11_spill] sm:$0xff] %v7069_v33 }
  0xc8   :  { %6302 = vmatmul.msk.f32.gmra.mxu0 %vm172_vm1, %v85_v34  ;;  %v100_v34 = vld [vmem:[%s11347_s28 + $0x128] sm:$0xff] }
  0xcd   :  { %v7078_v37 = vpop.f32.mrf.mxu0 }
  0xce   :  { %11355 = vst [vmem:[#allocation12_spill] sm:$0xff] %v7078_v37 }
  0xd0   :  { %6303 = vmatmul.msk.f32.gmra.mxu0 %vm172_vm1, %v86_v38 }
  0xd5   :  { %v7090_v41 = vpop.f32.mrf.mxu0 }
  0xd6   :  { %11356 = vst [vmem:[#allocation13_spill] sm:$0xff] %v7090_v41 }
  0xd8   :  { %6304 = vmatmul.msk.f32.gmra.mxu0 %vm172_vm1, %v87_v42  ;;  %v909_v42 = vld [vmem:[%s11270_s11 + $0x78] sm:$0xff] }
  0xd9   :  { %1400 = vperm.xlu0 %6813, %v909_v42   ;;  %v940_v42 = vld [vmem:[%s11271_s12 + $0xa8] sm:$0xff] }
  0xda   :  { %1580 = vperm.xlu1 %6814, %v940_v42  }
  0xdd   :  { %v7099_v44 = vpop.f32.mrf.mxu0 }
  0xde   :  { %11357 = vst [vmem:[#allocation14_spill] sm:$0xff] %v7099_v44 }
  0xe0   :  { %6305 = vmatmul.msk.f32.gmra.mxu0 %vm172_vm1, %v88_v45  ;;  %v102_v45 = vld [vmem:[%s11347_s28 + $0x138] sm:$0xff] }
  0xe1   :  { %1555 = vperm.xlu0 %6813, %v935_v48  }
  0xe5   :  { %v7105_v46 = vpop.f32.mrf.mxu0 }
  0xe6   :  { %11358 = vst [vmem:[#allocation15_spill] sm:$0xff] %v7105_v46  ;;  %v4413_v46 = vld [vmem:[%s11272_s13 + $0x8] sm:$0xff] }
  0xe8   :  { %6306 = vmatmul.msk.f32.gmra.mxu0 %vm172_vm1, %v89_v47  ;;  %v907_v47 = vld [vmem:[%s11270_s11 + $0x68] sm:$0xff] }
  0xe9   :  { %1390 = vperm.xlu2 %6815, %v907_v47   ;;  %1415 = vperm.xlu0 %6813, %v912_v61   ;;  %v941_v61 = vld [vmem:[%s11271_s12 + $0xb0] sm:$0xff] }
  0xed   :  { %v7117_v50 = vpop.f32.mrf.mxu0 }
  0xee   :  { %11359 = vst [vmem:[#allocation16_spill] sm:$0xff] %v7117_v50 }
  0xf0   :  { %6307 = vmatmul.msk.f32.gmra.mxu0 %vm172_vm1, %v90_v51  ;;  %v103_v51 = vld [vmem:[%s11347_s28 + $0x140] sm:$0xff] }
  0xf1   :  { %1545 = vperm.xlu2 %6815, %v933_v52  }
  0xf5   :  { %v7129_v54 = vpop.f32.mrf.mxu0 }
  0xf6   :  { %11360 = vst [vmem:[#allocation17_spill] sm:$0xff] %v7129_v54  ;;  %v7684_v54 = vpop.permute.xlu2 %1335 }
  0xf8   :  { %6308 = vmatmul.msk.f32.gmra.mxu0 %vm172_vm1, %v91_v55  ;;  %v7288_v55 = vld [vmem:[%s11373_s25] ss:$0 sm:$0xff] }
  0xf9   :  { %1405 = vperm.xlu2 %6815, %v910_v5   ;;  %v109_v5 = vld [vmem:[%s11347_s28 + $0x170] sm:$0xff] }
  0xfd   :  { %v7141_v58 = vpop.f32.mrf.mxu0 }
  0xfe   :  { %11361 = vst [vmem:[#allocation18_spill] sm:$0xff] %v7141_v58 }
 0x100   :  { %6309 = vmatmul.msk.f32.gmra.mxu0 %vm172_vm1, %v92_v59 }
 0x101   :  { %1560 = vperm.xlu2 %6815, %v936_v20  }
 0x105   :  { %v7153_v62 = vpop.f32.mrf.mxu0 }
 0x106   :  { %11362 = vst [vmem:[#allocation19_spill] sm:$0xff] %v7153_v62 }
 0x108   :  { %6310 = vmatmul.msk.f32.gmra.mxu0 %vm172_vm1, %v93_v63 }
 0x109   :  { %1420 = vperm.xlu2 %6815, %v913_v60  }
 0x10d   :  { %v7165_v2 = vpop.f32.mrf.mxu0 }
 0x10e   :  { %11363 = vst [vmem:[#allocation20_spill] sm:$0xff] %v7165_v2  ;;  %v1732_v2 = vld [vmem:[%s11402_s20 + $0x38] sm:$0xff] }
 0x10f   :  { %1874 = vmatpush.msra.mxu1 %v1732_v2 }
 0x110   :  { %6311 = vmatmul.msk.f32.gmra.mxu0 %vm172_vm1, %v94_v3 }
 0x115   :  { %v7177_v6 = vpop.f32.mrf.mxu0 }
 0x116   :  { %11364 = vst [vmem:[#allocation21_spill] sm:$0xff] %v7177_v6 }
 0x118   :  { %6312 = vmatmul.msk.f32.gmra.mxu0 %vm172_vm1, %v95_v7  ;;  %v938_v7 = vld [vmem:[%s11271_s12 + $0x98] sm:$0xff] }
 0x119   :  { %1570 = vperm.xlu0 %6813, %v938_v7  }
 0x11d   :  { %v7189_v10 = vpop.f32.mrf.mxu0 }
 0x11e   :  { %11365 = vst [vmem:[#allocation22_spill] sm:$0xff] %v7189_v10 }
 0x120   :  { %6313 = vmatmul.msk.f32.gmra.mxu0 %vm172_vm1, %v96_v11 }
 0x125   :  { %v7201_v14 = vpop.f32.mrf.mxu0 }
 0x126   :  { %11366 = vst [vmem:[#allocation23_spill] sm:$0xff] %v7201_v14 }
 0x128   :  { %6314 = vmatmul.msk.f32.gmra.mxu0 %vm172_vm1, %v97_v15 }
 0x12d   :  { %v7213_v18 = vpop.f32.mrf.mxu0 }
 0x12e   :  { %11367 = vst [vmem:[#allocation24_spill] sm:$0xff] %v7213_v18 }
 0x130   :  { %6315 = vmatmul.msk.f32.gmra.mxu0 %vm172_vm1, %v98_v19 }
 0x135   :  { %v7225_v24 = vpop.f32.mrf.mxu0 }
 0x136   :  { %11368 = vst [vmem:[#allocation25_spill] sm:$0xff] %v7225_v24 }
 0x138   :  { %6316 = vmatmul.msk.f32.gmra.mxu0 %vm172_vm1, %v99_v26 }
 0x13d   :  { %v7237_v32 = vpop.f32.mrf.mxu0 }
 0x13e   :  { %11369 = vst [vmem:[#allocation26_spill] sm:$0xff] %v7237_v32 }
 0x140   :  { %6317 = vmatmul.msk.f32.gmra.mxu0 %vm172_vm1, %v100_v34 }
 0x145   :  { %v7249_v38 = vpop.f32.mrf.mxu0 }
 0x146   :  { %11370 = vst [vmem:[#allocation27_spill] sm:$0xff] %v7249_v38 }
 0x148   :  { %6318 = vmatmul.msk.f32.gmra.mxu0 %vm172_vm1, %v101_v39 }
 0x14d   :  { %v7261_v43 = vpop.f32.mrf.mxu0 }
 0x14e   :  { %11371 = vst [vmem:[#allocation28_spill] sm:$0xff] %v7261_v43 }
 0x150   :  { %6319 = vmatmul.msk.f32.gmra.mxu0 %vm172_vm1, %v102_v45  ;;  %v915_v45 = vld [vmem:[%s11270_s11 + $0xa8] sm:$0xff] }
 0x151   :  { %1430 = vperm.xlu0 %6813, %v915_v45  }
 0x155   :  { %v7273_v49 = vpop.f32.mrf.mxu0 }
 0x156   :  { %11372 = vst [vmem:[#allocation29_spill] sm:$0xff] %v7273_v49 }
 0x158   :  { %6320 = vmatmul.msk.f32.gmra.mxu0 %vm172_vm1, %v103_v51 }
 0x159   :  { %1585 = vperm.xlu0 %6813, %v941_v61  }
 0x15d   :  { %v569_v56 = vpop.f32.mrf.mxu0 }
 0x15e   :  { %v570_v59 = vadd.f32 %v7288_v55, %v569_v56  ;;  %v108_v56 = vld [vmem:[%s11347_s28 + $0x168] sm:$0xff] }
 0x160   :  { %6321 = vmatmul.msk.f32.gmra.mxu0 %vm172_vm1, %v104_v57  ;;  %v819_v63 = vmax.f32 %v570_v59, 0.0 }
 0x162   :  { %v1046_v3 = vrot.slane %v819_v63, 5 }
 0x164   :  { %v7313_v9 = vsel %vm969_vm2, 0.0, %v1046_v3 }
 0x165   :  { %v572_v0 = vpop.f32.mrf.mxu0  ;;  %v2972_v13 = vrot.slane %v7313_v9, 3 }
 0x166   :  { %v573_v4 = vadd.f32 %v7288_v55, %v572_v0 }
 0x168   :  { %v820_v8 = vmax.f32 %v573_v4, 0.0  ;;  %6322 = vmatmul.msk.f32.gmra.mxu0 %vm172_vm1, %v105_v1 }
 0x16a   :  { %v1047_v11 = vrot.slane %v820_v8, 5 }
 0x16c   :  { %v7316_v12 = vsel %vm969_vm2, %v1046_v3, %v1047_v11 }
 0x16d   :  { %v2973_v15 = vrot.slane %v7316_v12, 3  ;;  %v575_v16 = vpop.f32.mrf.mxu0 }
 0x16e   :  { %v576_v19 = vadd.f32 %v7288_v55, %v575_v16 }
 0x16f   :  { %v7331_v26 = vsel %vm2748_vm3, %v2972_v13, %v2973_v15  ;;  %v917_v13 = vld [vmem:[%s11270_s11 + $0xb8] sm:$0xff] }
 0x170   :  { %11374 = vst [vmem:[#allocation30_spill] sm:$0xff] %v7331_v26  ;;  %v821_v28 = vmax.f32 %v576_v19, 0.0  ;;  %6323 = vmatmul.msk.f32.gmra.mxu0 %vm172_vm1, %v106_v17  ;;  %1440 = vperm.xlu1 %6814, %v917_v13  }
 0x172   :  { %v1049_v30 = vrot.slane %v821_v28, 5 }
 0x174   :  { %v7335_v34 = vsel %vm969_vm2, %v1047_v11, %v1049_v30  ;;  %v939_v11 = vld [vmem:[%s11271_s12 + $0xa0] sm:$0xff] }
 0x175   :  { %v578_v35 = vpop.f32.mrf.mxu0  ;;  %v2975_v39 = vrot.slane %v7335_v34, 3  ;;  %1575 = vperm.xlu2 %6815, %v939_v11  }
 0x176   :  { %v579_v40 = vadd.f32 %v7288_v55, %v578_v35  ;;  %v943_v35 = vld [vmem:[%s11271_s12 + $0xc0] sm:$0xff] }
 0x177   :  { %v7349_v47 = vsel %vm2748_vm3, %v2973_v15, %v2975_v39 }
 0x178   :  { %11375 = vst [vmem:[#allocation31_spill] sm:$0xff] %v7349_v47  ;;  %v822_v48 = vmax.f32 %v579_v40, 0.0  ;;  %6324 = vmatmul.msk.f32.gmra.mxu0 %vm172_vm1, %v107_v36  ;;  %1595 = vperm.xlu1 %6814, %v943_v35  }
 0x17a   :  { %v1051_v51 = vrot.slane %v822_v48, 5  ;;  %v111_v48 = vld [vmem:[%s11347_s28 + $0x180] sm:$0xff] }
 0x17c   :  { %v7353_v52 = vsel %vm969_vm2, %v1049_v30, %v1051_v51 }
 0x17d   :  { %v581_v53 = vpop.f32.mrf.mxu0  ;;  %v2977_v57 = vrot.slane %v7353_v52, 3 }
 0x17e   :  { %v582_v59 = vadd.f32 %v7288_v55, %v581_v53 }
 0x17f   :  { %v7367_v63 = vsel %vm2748_vm3, %v2975_v39, %v2977_v57 }
 0x180   :  { %11376 = vst [vmem:[#allocation32_spill] sm:$0xff] %v7367_v63  ;;  %v823_v0 = vmax.f32 %v582_v59, 0.0  ;;  %6325 = vmatmul.msk.f32.gmra.mxu0 %vm172_vm1, %v108_v56  ;;  %v916_v56 = vld [vmem:[%s11270_s11 + $0xb0] sm:$0xff] }
 0x181   :  { %1435 = vperm.xlu2 %6815, %v916_v56  }
 0x182   :  { %v1053_v1 = vrot.slane %v823_v0, 5 }
 0x184   :  { %v7371_v3 = vsel %vm969_vm2, %v1051_v51, %v1053_v1 }
 0x185   :  { %v584_v4 = vpop.f32.mrf.mxu0  ;;  %v2979_v7 = vrot.slane %v7371_v3, 3 }
 0x186   :  { %v585_v8 = vadd.f32 %v7288_v55, %v584_v4 }
 0x187   :  { %v7385_v15 = vsel %vm2748_vm3, %v2977_v57, %v2979_v7 }
 0x188   :  { %11377 = vst [vmem:[#allocation33_spill] sm:$0xff] %v7385_v15  ;;  %v824_v16 = vmax.f32 %v585_v8, 0.0  ;;  %6326 = vmatmul.msk.f32.gmra.mxu0 %vm172_vm1, %v109_v5 }
 0x18a   :  { %v1055_v17 = vrot.slane %v824_v16, 5 }
 0x18c   :  { %v7389_v19 = vsel %vm969_vm2, %v1053_v1, %v1055_v17  ;;  %v112_v1 = vld [vmem:[%s11347_s28 + $0x188] sm:$0xff] }
 0x18d   :  { %v587_v20 = vpop.f32.mrf.mxu0  ;;  %v2981_v28 = vrot.slane %v7389_v19, 3 }
 0x18e   :  { %v588_v30 = vadd.f32 %v7288_v55, %v587_v20  ;;  %v113_v20 = vld [vmem:[%s11347_s28 + $0x190] sm:$0xff] }
 0x18f   :  { %v7400_v36 = vsel %vm2748_vm3, %v2979_v7, %v2981_v28  ;;  %v942_v7 = vld [vmem:[%s11271_s12 + $0xb8] sm:$0xff] }
 0x190   :  { %11378 = vst [vmem:[#allocation34_spill] sm:$0xff] %v7400_v36  ;;  %v825_v39 = vmax.f32 %v588_v30, 0.0  ;;  %6327 = vmatmul.msk.f32.gmra.mxu0 %vm172_vm1, %v110_v22  ;;  %1590 = vperm.xlu2 %6815, %v942_v7  }
 0x192   :  { %v1057_v40 = vrot.slane %v825_v39, 5 }
 0x194   :  { %v7404_v42 = vsel %vm969_vm2, %v1055_v17, %v1057_v40 }
 0x195   :  { %v590_v45 = vpop.f32.mrf.mxu0  ;;  %v2983_v51 = vrot.slane %v7404_v42, 3 }
 0x196   :  { %v591_v53 = vadd.f32 %v7288_v55, %v590_v45 }
 0x197   :  { %v7415_v57 = vsel %vm2748_vm3, %v2981_v28, %v2983_v51 }
 0x198   :  { %11379 = vst [vmem:[#allocation35_spill] sm:$0xff] %v7415_v57  ;;  %v826_v59 = vmax.f32 %v591_v53, 0.0  ;;  %6328 = vmatmul.msk.f32.gmra.mxu0 %vm172_vm1, %v111_v48  ;;  %v114_v48 = vld [vmem:[%s11347_s28 + $0x198] sm:$0xff] }
 0x19a   :  { %v1059_v60 = vrot.slane %v826_v59, 5 }
 0x19c   :  { %v7419_v61 = vsel %vm969_vm2, %v1057_v40, %v1059_v60 }
 0x19d   :  { %v593_v0 = vpop.f32.mrf.mxu0  ;;  %v2985_v4 = vrot.slane %v7419_v61, 3 }
 0x19e   :  { %v594_v5 = vadd.f32 %v7288_v55, %v593_v0 }
 0x19f   :  { %v7430_v8 = vsel %vm2748_vm3, %v2983_v51, %v2985_v4 }
 0x1a0   :  { %11380 = vst [vmem:[#allocation36_spill] sm:$0xff] %v7430_v8  ;;  %v827_v11 = vmax.f32 %v594_v5, 0.0  ;;  %6329 = vmatmul.msk.f32.gmra.mxu0 %vm172_vm1, %v112_v1 }
 0x1a2   :  { %v1061_v13 = vrot.slane %v827_v11, 5 }
 0x1a4   :  { %v7434_v16 = vsel %vm969_vm2, %v1059_v60, %v1061_v13 }
 0x1a5   :  { %v596_v17 = vpop.f32.mrf.mxu0  ;;  %v2987_v22 = vrot.slane %v7434_v16, 3 }
 0x1a6   :  { %v597_v28 = vadd.f32 %v7288_v55, %v596_v17 }
 0x1a7   :  { %v7442_v30 = vsel %vm2748_vm3, %v2985_v4, %v2987_v22  ;;  %v115_v4 = vld [vmem:[%s11347_s28 + $0x1a0] sm:$0xff] }
 0x1a8   :  { %11381 = vst [vmem:[#allocation37_spill] sm:$0xff] %v7442_v30  ;;  %v828_v35 = vmax.f32 %v597_v28, 0.0  ;;  %6330 = vmatmul.msk.f32.gmra.mxu0 %vm172_vm1, %v113_v20  ;;  %v116_v28 = vld [vmem:[%s11347_s28 + $0x1a8] sm:$0xff] }
 0x1aa   :  { %v1063_v39 = vrot.slane %v828_v35, 5 }
 0x1ac   :  { %v7446_v40 = vsel %vm969_vm2, %v1061_v13, %v1063_v39 }
 0x1ad   :  { %v599_v45 = vpop.f32.mrf.mxu0  ;;  %v2989_v51 = vrot.slane %v7446_v40, 3 }
 0x1ae   :  { %v600_v53 = vadd.f32 %v7288_v55, %v599_v45 }
 0x1af   :  { %v7454_v56 = vsel %vm2748_vm3, %v2987_v22, %v2989_v51 }
 0x1b0   :  { %11382 = vst [vmem:[#allocation38_spill] sm:$0xff] %v7454_v56  ;;  %v829_v59 = vmax.f32 %v600_v53, 0.0  ;;  %6331 = vmatmul.msk.f32.gmra.mxu0 %vm172_vm1, %v114_v48 }
 0x1b2   :  { %v1065_v60 = vrot.slane %v829_v59, 5 }
 0x1b4   :  { %v7458_v0 = vsel %vm969_vm2, %v1063_v39, %v1065_v60 }
 0x1b5   :  { %v602_v1 = vpop.f32.mrf.mxu0  ;;  %v2991_v5 = vrot.slane %v7458_v0, 3 }
 0x1b6   :  { %v603_v7 = vadd.f32 %v7288_v55, %v602_v1 }
 0x1b7   :  { %v7466_v11 = vsel %vm2748_vm3, %v2989_v51, %v2991_v5 }
 0x1b8   :  { %11383 = vst [vmem:[#allocation39_spill] sm:$0xff] %v7466_v11  ;;  %v830_v13 = vmax.f32 %v603_v7, 0.0  ;;  %6332 = vmatmul.msk.f32.gmra.mxu0 %vm172_vm1, %v115_v4 }
 0x1ba   :  { %v1067_v17 = vrot.slane %v830_v13, 5 }
 0x1bc   :  { %v7470_v20 = vsel %vm969_vm2, %v1065_v60, %v1067_v17  ;;  %v117_v60 = vld [vmem:[%s11347_s28 + $0x1b0] sm:$0xff] }
 0x1bd   :  { %v605_v22 = vpop.f32.mrf.mxu0  ;;  %v2993_v35 = vrot.slane %v7470_v20, 3 }
 0x1be   :  { %v606_v39 = vadd.f32 %v7288_v55, %v605_v22 }
 0x1bf   :  { %v7478_v45 = vsel %vm2748_vm3, %v2991_v5, %v2993_v35 }
 0x1c0   :  { %11384 = vst [vmem:[#allocation40_spill] sm:$0xff] %v7478_v45  ;;  %v831_v48 = vmax.f32 %v606_v39, 0.0  ;;  %6333 = vmatmul.msk.f32.gmra.mxu0 %vm172_vm1, %v116_v28  ;;  %v118_v28 = vld [vmem:[%s11347_s28 + $0x1b8] sm:$0xff] }
 0x1c2   :  { %v1069_v51 = vrot.slane %v831_v48, 5 }
 0x1c4   :  { %v7482_v53 = vsel %vm969_vm2, %v1067_v17, %v1069_v51 }
 0x1c5   :  { %11385 = vst [vmem:[#allocation41_spill] sm:$0xff] %v7482_v53  ;;  %v608_v59 = vpop.f32.mrf.mxu0  ;;  %v2995_v1 = vrot.slane %v7482_v53, 3 }
 0x1c6   :  { %v609_v4 = vadd.f32 %v7288_v55, %v608_v59 }
 0x1c7   :  { %v7490_v7 = vsel %vm2748_vm3, %v2993_v35, %v2995_v1 }
 0x1c8   :  { %11386 = vst [vmem:[#allocation42_spill] sm:$0xff] %v7490_v7  ;;  %v832_v5 = vmax.f32 %v609_v4, 0.0  ;;  %6334 = vmatmul.msk.f32.gmra.mxu0 %vm172_vm1, %v117_v60  ;;  %v128_v7 = vld [vmem:[%s11347_s28 + $0x208] sm:$0xff] }
 0x1ca   :  { %v1071_v13 = vrot.slane %v832_v5, 5  ;;  %v119_v5 = vld [vmem:[%s11347_s28 + $0x1c0] sm:$0xff] }
 0x1cc   :  { %v7494_v22 = vsel %vm969_vm2, %v1069_v51, %v1071_v13 }
 0x1cd   :  { %11387 = vst [vmem:[#allocation43_spill] sm:$0xff] %v7494_v22  ;;  %v611_v17 = vpop.f32.mrf.mxu0  ;;  %v2997_v39 = vrot.slane %v7494_v22, 3 }
 0x1ce   :  { %v612_v48 = vadd.f32 %v7288_v55, %v611_v17 }
 0x1cf   :  { %v7502_v59 = vsel %vm2748_vm3, %v2995_v1, %v2997_v39 }
 0x1d0   :  { %11388 = vst [vmem:[#allocation44_spill] sm:$0xff] %v7502_v59  ;;  %v833_v35 = vmax.f32 %v612_v48, 0.0  ;;  %6335 = vmatmul.msk.f32.gmra.mxu0 %vm172_vm1, %v118_v28 }
 0x1d2   :  { %v1073_v60 = vrot.slane %v833_v35, 5  ;;  %v120_v35 = vld [vmem:[%s11347_s28 + $0x1c8] sm:$0xff] }
 0x1d4   :  { %v7506_v4 = vsel %vm969_vm2, %v1071_v13, %v1073_v60 }
 0x1d5   :  { %11389 = vst [vmem:[#allocation45_spill] sm:$0xff] %v7506_v4  ;;  %v614_v51 = vpop.f32.mrf.mxu0  ;;  %v2999_v49 = vrot.slane %v7506_v4, 3 }
 0x1d6   :  { %v615_v43 = vadd.f32 %v7288_v55, %v614_v51 }
 0x1d7   :  { %v7514_v17 = vsel %vm2748_vm3, %v2997_v39, %v2999_v49 }
 0x1d8   :  { %11390 = vst [vmem:[#allocation46_spill] sm:$0xff] %v7514_v17  ;;  %v834_v1 = vmax.f32 %v615_v43, 0.0  ;;  %6336 = vmatmul.msk.f32.gmra.mxu0 %vm172_vm1, %v119_v5 }
 0x1da   :  { %v1075_v28 = vrot.slane %v834_v1, 5  ;;  %v121_v1 = vld [vmem:[%s11347_s28 + $0x1d0] sm:$0xff] }
 0x1dc   :  { %v7518_v48 = vsel %vm969_vm2, %v1073_v60, %v1075_v28 }
 0x1dd   :  { %11391 = vst [vmem:[#allocation47_spill] sm:$0xff] %v7518_v48  ;;  %v617_v13 = vpop.f32.mrf.mxu0  ;;  %v3001_v38 = vrot.slane %v7518_v48, 3 }
 0x1de   :  { %v618_v32 = vadd.f32 %v7288_v55, %v617_v13 }
 0x1df   :  { %v7526_v51 = vsel %vm2748_vm3, %v2999_v49, %v3001_v38 }
 0x1e0   :  { %11392 = vst [vmem:[#allocation48_spill] sm:$0xff] %v7526_v51  ;;  %v835_v39 = vmax.f32 %v618_v32, 0.0  ;;  %6337 = vmatmul.msk.f32.gmra.mxu0 %vm172_vm1, %v120_v35 }
 0x1e2   :  { %v1077_v43 = vrot.slane %v835_v39, 5  ;;  %v122_v39 = vld [vmem:[%s11347_s28 + $0x1d8] sm:$0xff] }
 0x1e4   :  { %v7530_v5 = vsel %vm969_vm2, %v1075_v28, %v1077_v43 }
 0x1e5   :  { %11393 = vst [vmem:[#allocation49_spill] sm:$0xff] %v7530_v5  ;;  %v620_v60 = vpop.f32.mrf.mxu0  ;;  %v3003_v24 = vrot.slane %v7530_v5, 3 }
 0x1e6   :  { %v621_v18 = vadd.f32 %v7288_v55, %v620_v60 }
 0x1e7   :  { %v7538_v13 = vsel %vm2748_vm3, %v3001_v38, %v3003_v24 }
 0x1e8   :  { %11394 = vst [vmem:[#allocation50_spill] sm:$0xff] %v7538_v13  ;;  %v836_v49 = vmax.f32 %v621_v18, 0.0  ;;  %6338 = vmatmul.msk.f32.gmra.mxu0 %vm172_vm1, %v121_v1 }
 0x1ea   :  { %v1079_v32 = vrot.slane %v836_v49, 5  ;;  %v123_v49 = vld [vmem:[%s11347_s28 + $0x1e0] sm:$0xff] }
 0x1ec   :  { %v7542_v35 = vsel %vm969_vm2, %v1077_v43, %v1079_v32 }
 0x1ed   :  { %11395 = vst [vmem:[#allocation51_spill] sm:$0xff] %v7542_v35  ;;  %v623_v28 = vpop.f32.mrf.mxu0  ;;  %v3005_v14 = vrot.slane %v7542_v35, 3 }
 0x1ee   :  { %v624_v51 = vadd.f32 %v7288_v55, %v623_v28 }
 0x1ef   :  { %v7550_v60 = vsel %vm2748_vm3, %v3003_v24, %v3005_v14 }
 0x1f0   :  { %11396 = vst [vmem:[#allocation52_spill] sm:$0xff] %v7550_v60  ;;  %v837_v38 = vmax.f32 %v624_v51, 0.0  ;;  %6339 = vmatmul.msk.f32.gmra.mxu0 %vm172_vm1, %v122_v39  ;;  %v124_v60 = vld [vmem:[%s11347_s28 + $0x1e8] sm:$0xff] }
 0x1f2   :  { %v1081_v18 = vrot.slane %v837_v38, 5 }
 0x1f4   :  { %v7554_v1 = vsel %vm969_vm2, %v1079_v32, %v1081_v18  ;;  %v7568_v32 = vpop.permute.xlu0 %1325 }
 0x1f5   :  { %11397 = vst [vmem:[#allocation53_spill] sm:$0xff] %v7554_v1  ;;  %v626_v43 = vpop.f32.mrf.mxu0  ;;  %v3007_v13 = vrot.slane %v7554_v1, 3 }
 0x1f6   :  { %v627_v10 = vadd.f32 %v7288_v55, %v626_v43 }
 0x1f7   :  { %v7562_v28 = vsel %vm2748_vm3, %v3005_v14, %v3007_v13 }
 0x1f8   :  { %11398 = vst [vmem:[#allocation54_spill] sm:$0xff] %v7562_v28  ;;  %v838_v24 = vmax.f32 %v627_v10, 0.0  ;;  %6340 = vmatmul.msk.f32.gmra.mxu0 %vm172_vm1, %v123_v49  ;;  %v1626_v28 = vld [vmem:[%s11402_s20 + $0x18] sm:$0xff] }
 0x1f9   :  { %2041 = vmatpush.msra.mxu2 %v1626_v28  ;;  %v1624_v28 = vld [vmem:[%s11402_s20 + $0x8] sm:$0xff] }
 0x1fa   :  { %v1083_v51 = vrot.slane %v838_v24, 5 }
 0x1fc   :  { %v7566_v39 = vsel %vm969_vm2, %v1081_v18, %v1083_v51  ;;  %v1448_v18 = vmul.f32 0.0, %v7568_v32 }
 0x1fd   :  { %11399 = vst [vmem:[#allocation55_spill] sm:$0xff] %v7566_v39  ;;  %v629_v38 = vpop.f32.mrf.mxu0  ;;  %v3009_v17 = vrot.slane %v7566_v39, 3 }
 0x1fe   :  { %v630_v43 = vadd.f32 %v7288_v55, %v629_v38  ;;  %v125_v38 = vld [vmem:[%s11347_s28 + $0x1f0] sm:$0xff] }
 0x1ff   :  { %v7576_v14 = vsel %vm2748_vm3, %v3007_v13, %v3009_v17 }
 0x200   :  { %11400 = vst [vmem:[#allocation56_spill] sm:$0xff] %v7576_v14  ;;  %v839_v10 = vmax.f32 %v630_v43, 0.0  ;;  %6341 = vmatmul.msk.f32.gmra.mxu0 %vm172_vm1, %v124_v60  ;;  %v1625_v43 = vld [vmem:[%s11402_s20 + $0x10] sm:$0xff] }
 0x201   :  { %2042 = vmatpush.msra.mxu2 %v1625_v43 }
 0x202   :  { %v1085_v49 = vrot.slane %v839_v10, 5 }
 0x203   :  { %2043 = vmatpush.msra.mxu2 %v1624_v28 }
 0x204   :  { %v7581_v24 = vsel %vm969_vm2, %v1083_v51, %v1085_v49  ;;  %v7594_v51 = vpop.permute.xlu0 %1475 }
 0x205   :  { %11401 = vst [vmem:[#allocation57_spill] sm:$0xff] %v7581_v24  ;;  %v632_v6 = vpop.f32.mrf.mxu0  ;;  %v3011_v13 = vrot.slane %v7581_v24, 3  ;;  %v1598_v14 = vmul.f32 %v7594_v51, %v1448_v18 }
 0x206   :  { %v633_v60 = vadd.f32 %v7288_v55, %v632_v6 }
 0x207   :  { %v7597_v10 = vsel %vm2748_vm3, %v3009_v17, %v3011_v13  ;;  %v1623_v17 = vld [vmem:[%s11402_s20] sm:$0xff] }
 0x208   :  { %11403 = vst [vmem:[#allocation58_spill] sm:$0xff] %v7597_v10  ;;  %v840_v59 = vmax.f32 %v633_v60, 0.0  ;;  %6342 = vmatmul.msk.f32.gmra.mxu0 %vm172_vm1, %v125_v38  ;;  %2044 = vmatpush.msra.mxu2 %v1623_v17  ;;  %v126_v60 = vld [vmem:[%s11347_s28 + $0x1f8] sm:$0xff]  ;;  %v1729_v17 = vld [vmem:[%s11402_s20 + $0x20] sm:$0xff] }
 0x209   :  { %6405 = vmatmul.msk.f32.vlgmr.msra.gmra.mxu2 %vm1811_vm4, %v1598_v14 }
 0x20a   :  { %v1087_v6 = vrot.slane %v840_v59, 5  ;;  %v1731_v59 = vld [vmem:[%s11402_s20 + $0x30] sm:$0xff] }
 0x20b   :  { %1875 = vmatpush.msra.mxu1 %v1731_v59 }
 0x20c   :  { %v7611_v18 = vsel %vm969_vm2, %v1085_v49, %v1087_v6  ;;  %v1730_v49 = vld [vmem:[%s11402_s20 + $0x28] sm:$0xff] }
 0x20d   :  { %11404 = vst [vmem:[#allocation59_spill] sm:$0xff] %v7611_v18  ;;  %v635_v38 = vpop.f32.mrf.mxu0  ;;  %v3013_v43 = vrot.slane %v7611_v18, 3  ;;  %1876 = vmatpush.msra.mxu1 %v1730_v49  ;;  %v127_v49 = vld [vmem:[%s11347_s28 + $0x200] sm:$0xff] }
 0x20e   :  { %v636_v2 = vadd.f32 %v7288_v55, %v635_v38 }
 0x20f   :  { %v7626_v14 = vsel %vm2748_vm3, %v3011_v13, %v3013_v43  ;;  %1877 = vmatpush.msra.mxu1 %v1729_v17 }
 0x210   :  { %11405 = vst [vmem:[#allocation60_spill] sm:$0xff] %v7626_v14  ;;  %v841_v28 = vmax.f32 %v636_v2, 0.0  ;;  %6343 = vmatmul.msk.f32.gmra.mxu0 %vm172_vm1, %v126_v60 }
 0x212   :  { %v1089_v59 = vrot.slane %v841_v28, 5 }
 0x214   :  { %v7633_v10 = vsel %vm969_vm2, %v1087_v6, %v1089_v59 }
 0x215   :  { %11406 = vst [vmem:[#allocation61_spill] sm:$0xff] %v7633_v10  ;;  %v638_v38 = vpop.f32.mrf.mxu0  ;;  %v3015_v13 = vrot.slane %v7633_v10, 3 }
 0x216   :  { %v639_v2 = vadd.f32 %v7288_v55, %v638_v38 }
 0x217   :  { %v7641_v60 = vsel %vm2748_vm3, %v3013_v43, %v3015_v13 }
 0x218   :  { %11407 = vst [vmem:[#allocation62_spill] sm:$0xff] %v7641_v60  ;;  %v842_v14 = vmax.f32 %v639_v2, 0.0  ;;  %6344 = vmatmul.msk.f32.gmra.mxu0 %vm172_vm1, %v127_v49  ;;  %v1628_v2 = vrot.slane %v7568_v32, 7  ;;  %v7664_v60 = vpop.permute.xlu1 %1330 }
 0x21a   :  { %v1091_v17 = vrot.slane %v842_v14, 5 }
 0x21c   :  { %v7645_v28 = vsel %vm969_vm2, %v1089_v59, %v1091_v17 }
 0x21d   :  { %11408 = vst [vmem:[#allocation63_spill] sm:$0xff] %v7645_v28  ;;  %v641_v6 = vpop.f32.mrf.mxu0  ;;  %v3017_v62 = vrot.slane %v7645_v28, 3 }
 0x21e   :  { %v642_v45 = vadd.f32 %v7288_v55, %v641_v6 }
 0x21f   :  { %v7653_v38 = vsel %vm2748_vm3, %v3015_v13, %v3017_v62  ;;  %v129_v13 = vld [vmem:[%s11347_s28 + $0x210] sm:$0xff] }
 0x220   :  { %11409 = vst [vmem:[#allocation64_spill] sm:$0xff] %v7653_v38  ;;  %v843_v43 = vmax.f32 %v642_v45, 0.0  ;;  %6345 = vmatmul.msk.f32.gmra.mxu0 %vm172_vm1, %v128_v7  ;;  %v1629_v7 = vrot.slane %v7664_v60, 7  ;;  %v7679_v38 = vmul.f32 0.0, %v1628_v2 }
 0x222   :  { %v7656_v49 = vrot.slane %v843_v43, 5  ;;  %11414 = vst [vmem:[#allocation69_spill] sm:$0xff] %v7679_v38  ;;  %v7682_v11 = vsel %vm1627_vm5, %v1628_v2, %v1629_v7  ;;  %v130_v2 = vld [vmem:[%s11347_s28 + $0x218] sm:$0xff] }
 0x224   :  { %11410 = vst [vmem:[#allocation65_spill] sm:$0xff] %v7656_v49  ;;  %v7660_v14 = vsel %vm969_vm2, %v1091_v17, %v7656_v49  ;;  %v3021_v59 = vrot.slane %v7656_v49, 3 }
 0x225   :  { %11411 = vst [vmem:[#allocation66_spill] sm:$0xff] %v7660_v14  ;;  %v644_v58 = vpop.f32.mrf.mxu0  ;;  %v3019_v45 = vrot.slane %v7660_v14, 3 }
 0x226   :  { %v645_v6 = vadd.f32 %v7288_v55, %v644_v58  ;;  %v918_v58 = vld [vmem:[%s11270_s11 + $0xc0] sm:$0xff]  ;;  %s6270_s11 = sshll.u32 %s11278_s19, 4  ;;  %s6271_s11 = int_to_ptr.hbm [resolvable:$true] %s6270_s11 }
 0x227   :  { %v7673_v17 = vsel %vm2748_vm3, %v3017_v62, %v3019_v45  ;;  %v7676_v43 = vsel %vm2748_vm3, %v3019_v45, %v3021_v59  ;;  %1445 = vperm.xlu0 %6813, %v918_v58   ;;  %v11283_v59 = vrot.slane %v7679_v38, 1 }
 0x228   :  { %11412 = vst [vmem:[#allocation67_spill] sm:$0xff] %v7673_v17  ;;  %v844_v32 = vmax.f32 %v645_v6, 0.0  ;;  %6346 = vmatmul.msk.f32.gmra.mxu0 %vm172_vm1, %v129_v13  ;;  %v1631_v6 = vrot.slane %v7684_v54, 7 }
 0x229   :  { %11413 = vst [vmem:[#allocation68_spill] sm:$0xff] %v7676_v43 }
 0x22a   :  { %v1147_v56 = vrot.slane %v844_v32, 5  ;;  %v7702_v50 = vsel %vm1627_vm5, %v1629_v7, %v1631_v6 }
 0x22c   :  { %v1221_v62 = vsel %vm969_vm2, 0.0, %v1147_v56 }
 0x22d   :  { %v1704_v45 = vmul.f32 %v7682_v11, %v1221_v62  ;;  %v647_v13 = vpop.f32.mrf.mxu0 }
 0x22e   :  { %v648_v32 = vadd.f32 %v7288_v55, %v647_v13  ;;  %v7708_v13 = vpop.permute.xlu1 %1480 }
 0x22f   :  { %v1761_v43 = vrot.slane %v1704_v45, 1  ;;  %v7710_v45 = vpop.permute.xlu2 %1485  ;;  %4539 = vperm.xlu0 %6813, %v4413_v46  }
 0x230   :  { %v845_v17 = vmax.f32 %v648_v32, 0.0  ;;  %6347 = vmatmul.msk.f32.gmra.mxu0 %vm172_vm1, %v130_v2  ;;  %v7713_v32 = vpop.permute.xlu0 %1340 }
 0x231   :  { %v1762_v58 = vsel %vm1759_vm6, %v11283_v59, %v1761_v43  ;;  %v3469_v59 = vrot.slane %v1221_v62, 3  ;;  %v1633_v44 = vrot.slane %v7713_v32, 7 }
 0x232   :  { %v1148_v30 = vrot.slane %v845_v17, 5  ;;  %6380 = vmatmul.msk.f32.vlgmr.msra.gmra.mxu1 %vm1811_vm4, %v1762_v58  ;;  %v131_v17 = vld [vmem:[%s11347_s28 + $0x220] sm:$0xff] }
 0x233   :  { %v7727_v62 = vsel %vm1627_vm5, %v1631_v6, %v1633_v44 }
 0x234   :  { %v1149_v2 = vsel %vm969_vm2, %v1147_v56, %v1148_v30 }
 0x235   :  { %v3470_v8 = vrot.slane %v1149_v2, 3  ;;  %v650_v7 = vpop.f32.mrf.mxu0  ;;  %v1705_v58 = vmul.f32 %v7702_v50, %v1149_v2  ;;  %v4414_v2 = vld [vmem:[%s11272_s13 + $0x10] sm:$0xff] }
 0x236   :  { %v651_v57 = vadd.f32 %v7288_v55, %v650_v7  ;;  %v7736_v7 = vpop.permute.xlu1 %1490  ;;  %4544 = vperm.xlu1 %6814, %v4414_v2  }
 0x237   :  { %v1763_v41 = vrot.slane %v1705_v58, 1  ;;  %v7722_v36 = vsel %vm2748_vm3, %v3469_v59, %v3470_v8  ;;  %v4416_v59 = vld [vmem:[%s11272_s13 + $0x20] sm:$0xff] }
 0x238   :  { %11415 = vst [vmem:[#allocation70_spill] sm:$0xff] %v7722_v36  ;;  %v846_v46 = vmax.f32 %v651_v57, 0.0  ;;  %6348 = vmatmul.msk.f32.gmra.mxu0 %vm172_vm1, %v131_v17  ;;  %4554 = vperm.xlu0 %6813, %v4416_v59   ;;  %v132_v17 = vld [vmem:[%s11347_s28 + $0x228] sm:$0xff] }
 0x239   :  { %v1764_v56 = vsel %vm1759_vm6, %v1761_v43, %v1763_v41  ;;  %v7739_v43 = vpop.permute.xlu2 %1345 }
 0x23a   :  { %v1150_v37 = vrot.slane %v846_v46, 5  ;;  %6381 = vmatmul.msk.f32.gmra.mxu1 %vm1811_vm4, %v1764_v56  ;;  %v1635_v56 = vrot.slane %v7739_v43, 7 }
 0x23c   :  { %v1151_v57 = vsel %vm969_vm2, %v1148_v30, %v1150_v37  ;;  %v7753_v59 = vsel %vm1627_vm5, %v1633_v44, %v1635_v56 }
 0x23d   :  { %v653_v6 = vpop.f32.mrf.mxu0  ;;  %v1706_v58 = vmul.f32 %v7727_v62, %v1151_v57  ;;  %v3472_v46 = vrot.slane %v1151_v57, 3  ;;  %v4417_v57 = vld [vmem:[%s11272_s13 + $0x28] sm:$0xff] }
 0x23e   :  { %v654_v36 = vadd.f32 %v7288_v55, %v653_v6  ;;  %v7762_v6 = vpop.permute.xlu0 %1495  ;;  %4559 = vperm.xlu1 %6814, %v4417_v57  }
 0x23f   :  { %v1765_v15 = vrot.slane %v1706_v58, 1  ;;  %v7748_v33 = vsel %vm2748_vm3, %v3470_v8, %v3472_v46  ;;  %v4419_v8 = vld [vmem:[%s11273_s14] sm:$0xff] }
 0x240   :  { %11416 = vst [vmem:[#allocation71_spill] sm:$0xff] %v7748_v33  ;;  %v847_v30 = vmax.f32 %v654_v36, 0.0  ;;  %6349 = vmatmul.msk.f32.gmra.mxu0 %vm172_vm1, %v132_v17  ;;  %4576 = vperm.xlu0 %6813, %v4419_v8   ;;  %v133_v17 = vld [vmem:[%s11347_s28 + $0x230] sm:$0xff] }
 0x241   :  { %v1766_v2 = vsel %vm1759_vm6, %v1763_v41, %v1765_v15  ;;  %v7765_v41 = vpop.permute.xlu1 %1350 }
 0x242   :  { %v1152_v63 = vrot.slane %v847_v30, 5  ;;  %6382 = vmatmul.msk.f32.gmra.mxu1 %vm1811_vm4, %v1766_v2  ;;  %v1637_v2 = vrot.slane %v7765_v41, 7 }
 0x244   :  { %v1153_v36 = vsel %vm969_vm2, %v1150_v37, %v1152_v63  ;;  %v7779_v8 = vsel %vm1627_vm5, %v1635_v56, %v1637_v2 }
 0x245   :  { %v656_v44 = vpop.f32.mrf.mxu0  ;;  %v1707_v58 = vmul.f32 %v7753_v59, %v1153_v36  ;;  %v3474_v30 = vrot.slane %v1153_v36, 3  ;;  %v4412_v36 = vld [vmem:[%s11272_s13] sm:$0xff] }
 0x246   :  { %v657_v33 = vadd.f32 %v7288_v55, %v656_v44  ;;  %v7791_v44 = vpop.permute.xlu2 %1500  ;;  %4534 = vperm.xlu2 %6815, %v4412_v36   ;;  %v7794_v56 = vpop.permute.xlu0 %1355 }
 0x247   :  { %v1767_v31 = vrot.slane %v1707_v58, 1  ;;  %v7774_v47 = vsel %vm2748_vm3, %v3472_v46, %v3474_v30  ;;  %v4420_v46 = vld [vmem:[%s11273_s14 + $0x8] sm:$0xff]  ;;  %v134_v58 = vld [vmem:[%s11347_s28 + $0x238] sm:$0xff] }
 0x248   :  { %11417 = vst [vmem:[#allocation72_spill] sm:$0xff] %v7774_v47  ;;  %v848_v37 = vmax.f32 %v657_v33, 0.0  ;;  %6350 = vmatmul.msk.f32.gmra.mxu0 %vm172_vm1, %v133_v17  ;;  %v4422_v33 = vld [vmem:[%s11273_s14 + $0x18] sm:$0xff]  ;;  %4581 = vperm.xlu1 %6814, %v4420_v46   ;;  %v1639_v47 = vrot.slane %v7794_v56, 7 }
 0x249   :  { %v1768_v57 = vsel %vm1759_vm6, %v1765_v15, %v1767_v31  ;;  %4591 = vperm.xlu0 %6813, %v4422_v33   ;;  %v4415_v33 = vld [vmem:[%s11272_s13 + $0x18] sm:$0xff] }
 0x24a   :  { %v1154_v29 = vrot.slane %v848_v37, 5  ;;  %6383 = vmatmul.msk.f32.gmra.mxu1 %vm1811_vm4, %v1768_v57  ;;  %v7808_v38 = vsel %vm1627_vm5, %v1637_v2, %v1639_v47 }
 0x24c   :  { %v1155_v15 = vsel %vm969_vm2, %v1152_v63, %v1154_v29 }
 0x24d   :  { %v659_v17 = vpop.f32.mrf.mxu0  ;;  %v1708_v37 = vmul.f32 %v7779_v8, %v1155_v15  ;;  %v3476_v57 = vrot.slane %v1155_v15, 3  ;;  %v7820_v15 = vpop.permute.xlu1 %1505 }
 0x24e   :  { %v660_v26 = vadd.f32 %v7288_v55, %v659_v17  ;;  %4549 = vperm.xlu2 %6815, %v4415_v33   ;;  %v7823_v2 = vpop.permute.xlu2 %1360 }
 0x24f   :  { %v1769_v27 = vrot.slane %v1708_v37, 1  ;;  %v7803_v63 = vsel %vm2748_vm3, %v3474_v30, %v3476_v57  ;;  %v4423_v30 = vld [vmem:[%s11273_s14 + $0x20] sm:$0xff] }
 0x250   :  { %11418 = vst [vmem:[#allocation73_spill] sm:$0xff] %v7803_v63  ;;  %v849_v36 = vmax.f32 %v660_v26, 0.0  ;;  %6351 = vmatmul.msk.f32.gmra.mxu0 %vm172_vm1, %v134_v58  ;;  %v4425_v26 = vld [vmem:[%s11273_s14 + $0x30] sm:$0x3]  ;;  %4596 = vperm.xlu1 %6814, %v4423_v30   ;;  %v135_v58 = vld [vmem:[%s11347_s28 + $0x240] sm:$0xff] }
 0x251   :  { %v1770_v46 = vsel %vm1759_vm6, %v1767_v31, %v1769_v27  ;;  %4606 = vperm.xlu0 %6813, %v4425_v26   ;;  %v4418_v26 = vld [vmem:[%s11272_s13 + $0x30] sm:$0x3] }
 0x252   :  { %v1156_v25 = vrot.slane %v849_v36, 5  ;;  %6384 = vmatmul.msk.f32.gmra.mxu1 %vm1811_vm4, %v1770_v46  ;;  %v1641_v46 = vrot.slane %v7823_v2, 7 }
 0x254   :  { %v1157_v31 = vsel %vm969_vm2, %v1154_v29, %v1156_v25  ;;  %v7837_v21 = vsel %vm1627_vm5, %v1639_v47, %v1641_v46 }
 0x255   :  { %v662_v17 = vpop.f32.mrf.mxu0  ;;  %v1709_v37 = vmul.f32 %v7808_v38, %v1157_v31  ;;  %v3478_v36 = vrot.slane %v1157_v31, 3  ;;  %v7843_v31 = vpop.permute.xlu0 %1510 }
 0x256   :  { %v663_v63 = vadd.f32 %v7288_v55, %v662_v17  ;;  %4564 = vperm.xlu2 %6815, %v4418_v26  }
 0x257   :  { %v1771_v49 = vrot.slane %v1709_v37, 1  ;;  %v7832_v29 = vsel %vm2748_vm3, %v3476_v57, %v3478_v36 }
 0x258   :  { %11419 = vst [vmem:[#allocation74_spill] sm:$0xff] %v7832_v29  ;;  %v850_v33 = vmax.f32 %v663_v63, 0.0  ;;  %6352 = vmatmul.msk.f32.gmra.mxu0 %vm172_vm1, %v135_v58  ;;  %v7846_v63 = vpop.permute.xlu1 %1365 }
 0x259   :  { %v1772_v30 = vsel %vm1759_vm6, %v1769_v27, %v1771_v49  ;;  %v136_v27 = vld [vmem:[%s11347_s28 + $0x248] sm:$0xff]  ;;  %v1643_v37 = vrot.slane %v7846_v63, 7 }
 0x25a   :  { %v1158_v23 = vrot.slane %v850_v33, 5  ;;  %6385 = vmatmul.msk.f32.gmra.mxu1 %vm1811_vm4, %v1772_v30 }
 0x25b   :  { %v7860_v14 = vsel %vm1627_vm5, %v1641_v46, %v1643_v37 }
 0x25c   :  { %v1159_v57 = vsel %vm969_vm2, %v1156_v25, %v1158_v23 }
 0x25d   :  { %v665_v17 = vpop.f32.mrf.mxu0  ;;  %v1710_v47 = vmul.f32 %v7837_v21, %v1159_v57  ;;  %v3480_v58 = vrot.slane %v1159_v57, 3  ;;  %v4421_v57 = vld [vmem:[%s11273_s14 + $0x10] sm:$0xff] }
 0x25e   :  { %v666_v33 = vadd.f32 %v7288_v55, %v665_v17  ;;  %v7866_v17 = vpop.permute.xlu2 %1515  ;;  %4586 = vperm.xlu2 %6815, %v4421_v57  }
 0x25f   :  { %v1773_v30 = vrot.slane %v1710_v47, 1  ;;  %v7855_v29 = vsel %vm2748_vm3, %v3478_v36, %v3480_v58  ;;  %v7869_v47 = vpop.permute.xlu0 %1370 }
 0x260   :  { %11420 = vst [vmem:[#allocation75_spill] sm:$0xff] %v7855_v29  ;;  %v851_v25 = vmax.f32 %v666_v33, 0.0  ;;  %6353 = vmatmul.msk.f32.gmra.mxu0 %vm172_vm1, %v136_v27 }
 0x261   :  { %v1774_v26 = vsel %vm1759_vm6, %v1771_v49, %v1773_v30  ;;  %v137_v49 = vld [vmem:[%s11347_s28 + $0x250] sm:$0xff] }
 0x262   :  { %v1160_v28 = vrot.slane %v851_v25, 5  ;;  %6386 = vmatmul.msk.f32.gmra.mxu1 %vm1811_vm4, %v1774_v26  ;;  %v1645_v25 = vrot.slane %v7869_v47, 7 }
 0x264   :  { %v1161_v36 = vsel %vm969_vm2, %v1158_v23, %v1160_v28  ;;  %v7883_v18 = vsel %vm1627_vm5, %v1643_v37, %v1645_v25  ;;  %v138_v37 = vld [vmem:[%s11347_s28 + $0x258] sm:$0xff] }
 0x265   :  { %v668_v27 = vpop.f32.mrf.mxu0  ;;  %v1711_v46 = vmul.f32 %v7860_v14, %v1161_v36  ;;  %v3482_v33 = vrot.slane %v1161_v36, 3  ;;  %v4424_v36 = vld [vmem:[%s11273_s14 + $0x28] sm:$0xff] }
 0x266   :  { %v669_v26 = vadd.f32 %v7288_v55, %v668_v27  ;;  %v7889_v27 = vpop.permute.xlu1 %1520  ;;  %4601 = vperm.xlu2 %6815, %v4424_v36  }
 0x267   :  { %v1775_v29 = vrot.slane %v1711_v46, 1  ;;  %v7878_v10 = vsel %vm2748_vm3, %v3480_v58, %v3482_v33  ;;  %v7892_v46 = vpop.permute.xlu2 %1375 }
 0x268   :  { %11421 = vst [vmem:[#allocation76_spill] sm:$0xff] %v7878_v10  ;;  %v852_v23 = vmax.f32 %v669_v26, 0.0  ;;  %6354 = vmatmul.msk.f32.gmra.mxu0 %vm172_vm1, %v137_v49 }
 0x269   :  { %v1776_v57 = vsel %vm1759_vm6, %v1773_v30, %v1775_v29 }
 0x26a   :  { %v1162_v24 = vrot.slane %v852_v23, 5  ;;  %6387 = vmatmul.msk.f32.gmra.mxu1 %vm1811_vm4, %v1776_v57  ;;  %v1647_v23 = vrot.slane %v7892_v46, 7 }
 0x26c   :  { %v1163_v58 = vsel %vm969_vm2, %v1160_v28, %v1162_v24  ;;  %v7906_v1 = vsel %vm1627_vm5, %v1645_v25, %v1647_v23 }
 0x26d   :  { %v671_v49 = vpop.f32.mrf.mxu0  ;;  %v1712_v30 = vmul.f32 %v7883_v18, %v1163_v58  ;;  %v3484_v26 = vrot.slane %v1163_v58, 3  ;;  %v7909_v58 = vpop.permute.xlu0 %1525 }
 0x26e   :  { %v672_v57 = vadd.f32 %v7288_v55, %v671_v49  ;;  %v7912_v49 = vpop.permute.xlu1 %1380 }
 0x26f   :  { %v1777_v10 = vrot.slane %v1712_v30, 1  ;;  %v7901_v39 = vsel %vm2748_vm3, %v3482_v33, %v3484_v26  ;;  %11423 = vst [vmem:[#allocation78_spill] sm:$0xff] %v7912_v49  ;;  %v139_v33 = vld [vmem:[%s11347_s28 + $0x260] sm:$0xff]  ;;  %v1649_v25 = vrot.slane %v7912_v49, 7 }
 0x270   :  { %11422 = vst [vmem:[#allocation77_spill] sm:$0xff] %v7901_v39  ;;  %v853_v28 = vmax.f32 %v672_v57, 0.0  ;;  %6355 = vmatmul.msk.f32.gmra.mxu0 %vm172_vm1, %v138_v37 }
 0x271   :  { %v1778_v36 = vsel %vm1759_vm6, %v1775_v29, %v1777_v10  ;;  %v7926_v48 = vsel %vm1627_vm5, %v1647_v23, %v1649_v25 }
 0x272   :  { %v1164_v35 = vrot.slane %v853_v28, 5  ;;  %6388 = vmatmul.msk.f32.gmra.mxu1 %vm1811_vm4, %v1778_v36  ;;  %11425 = vst [vmem:[#allocation80_spill] sm:$0xff] %v7926_v48 }
 0x274   :  { %v1165_v5 = vsel %vm969_vm2, %v1162_v24, %v1164_v35 }
 0x275   :  { %v674_v30 = vpop.f32.mrf.mxu0  ;;  %v1713_v37 = vmul.f32 %v7906_v1, %v1165_v5  ;;  %v3486_v29 = vrot.slane %v1165_v5, 3  ;;  %v7929_v5 = vpop.permute.xlu2 %1530 }
 0x276   :  { %v675_v57 = vadd.f32 %v7288_v55, %v674_v30  ;;  %v7932_v30 = vpop.permute.xlu0 %1385 }
 0x277   :  { %v1779_v28 = vrot.slane %v1713_v37, 1  ;;  %v7921_v36 = vsel %vm2748_vm3, %v3484_v26, %v3486_v29  ;;  %11426 = vst [vmem:[#allocation81_spill] sm:$0xff] %v7932_v30  ;;  %v140_v26 = vld [vmem:[%s11347_s28 + $0x268] sm:$0xff]  ;;  %v1651_v23 = vrot.slane %v7932_v30, 7 }
 0x278   :  { %11424 = vst [vmem:[#allocation79_spill] sm:$0xff] %v7921_v36  ;;  %v854_v39 = vmax.f32 %v675_v57, 0.0  ;;  %6356 = vmatmul.msk.f32.gmra.mxu0 %vm172_vm1, %v139_v33 }
 0x279   :  { %v1780_v24 = vsel %vm1759_vm6, %v1777_v10, %v1779_v28  ;;  %v7946_v53 = vsel %vm1627_vm5, %v1649_v25, %v1651_v23 }
 0x27a   :  { %v1166_v4 = vrot.slane %v854_v39, 5  ;;  %6389 = vmatmul.msk.f32.gmra.mxu1 %vm1811_vm4, %v1780_v24  ;;  %11428 = vst [vmem:[#allocation83_spill] sm:$0xff] %v7946_v53 }
 0x27c   :  { %v1167_v22 = vsel %vm969_vm2, %v1164_v35, %v1166_v4 }
 0x27d   :  { %v677_v37 = vpop.f32.mrf.mxu0  ;;  %v1714_v33 = vmul.f32 %v7926_v48, %v1167_v22  ;;  %v3488_v10 = vrot.slane %v1167_v22, 3  ;;  %v7949_v22 = vpop.permute.xlu1 %1535 }
 0x27e   :  { %v678_v39 = vadd.f32 %v7288_v55, %v677_v37  ;;  %11429 = vst [vmem:[#allocation84_spill] sm:$0xff] %v7949_v22  ;;  %v7952_v55 = vpop.permute.xlu2 %1390 }
 0x27f   :  { %v1781_v57 = vrot.slane %v1714_v33, 1  ;;  %v7941_v24 = vsel %vm2748_vm3, %v3486_v29, %v3488_v10  ;;  %11430 = vst [vmem:[#allocation85_spill] sm:$0xff] %v7952_v55  ;;  %v141_v29 = vld [vmem:[%s11347_s28 + $0x270] sm:$0xff]  ;;  %v1653_v25 = vrot.slane %v7952_v55, 7 }
 0x280   :  { %11427 = vst [vmem:[#allocation82_spill] sm:$0xff] %v7941_v24  ;;  %v855_v36 = vmax.f32 %v678_v39, 0.0  ;;  %6357 = vmatmul.msk.f32.gmra.mxu0 %vm172_vm1, %v140_v26 }
 0x281   :  { %v1782_v35 = vsel %vm1759_vm6, %v1779_v28, %v1781_v57 }
 0x282   :  { %v1168_v49 = vrot.slane %v855_v36, 5  ;;  %6390 = vmatmul.msk.f32.gmra.mxu1 %vm1811_vm4, %v1782_v35  ;;  %v7962_v36 = vld [vmem:[%s11373_s25] ss:$0 sm:$0xff] }
 0x284   :  { %v1169_v30 = vsel %vm969_vm2, %v1166_v4, %v1168_v49 }
 0x285   :  { %v680_v37 = vpop.f32.mrf.mxu0  ;;  %v1715_v26 = vmul.f32 %v7946_v53, %v1169_v30  ;;  %v3490_v28 = vrot.slane %v1169_v30, 3  ;;  %v7971_v30 = vsel %vm1627_vm5, %v1651_v23, %v1653_v25  ;;  %v7974_v53 = vpop.permute.xlu0 %1540 }
 0x286   :  { %v681_v33 = vadd.f32 %v7962_v36, %v680_v37  ;;  %11432 = vst [vmem:[#allocation87_spill] sm:$0xff] %v7971_v30  ;;  %v7977_v37 = vpop.permute.xlu1 %1395 }
 0x287   :  { %v1783_v4 = vrot.slane %v1715_v26, 1  ;;  %v7966_v39 = vsel %vm2748_vm3, %v3488_v10, %v3490_v28  ;;  %11433 = vst [vmem:[#allocation88_spill] sm:$0xff] %v7974_v53  ;;  %v142_v10 = vld [vmem:[%s11347_s28 + $0x278] sm:$0xff]  ;;  %v1655_v23 = vrot.slane %v7977_v37, 7 }
 0x288   :  { %11431 = vst [vmem:[#allocation86_spill] sm:$0xff] %v7966_v39  ;;  %v856_v35 = vmax.f32 %v681_v33, 0.0  ;;  %6358 = vmatmul.msk.f32.gmra.mxu0 %vm172_vm1, %v141_v29 }
 0x289   :  { %v1784_v24 = vsel %vm1759_vm6, %v1781_v57, %v1783_v4  ;;  %11434 = vst [vmem:[#allocation89_spill] sm:$0xff] %v7977_v37  ;;  %v7991_v53 = vsel %vm1627_vm5, %v1653_v25, %v1655_v23 }
 0x28a   :  { %v1170_v55 = vrot.slane %v856_v35, 5  ;;  %6391 = vmatmul.msk.f32.gmra.mxu1 %vm1811_vm4, %v1784_v24  ;;  %11436 = vst [vmem:[#allocation91_spill] sm:$0xff] %v7991_v53 }
 0x28c   :  { %v1171_v48 = vsel %vm969_vm2, %v1168_v49, %v1170_v55 }
 0x28d   :  { %v683_v26 = vpop.f32.mrf.mxu0  ;;  %v1716_v29 = vmul.f32 %v7971_v30, %v1171_v48  ;;  %v3492_v57 = vrot.slane %v1171_v48, 3  ;;  %v7994_v48 = vpop.permute.xlu2 %1545 }
 0x28e   :  { %v684_v33 = vadd.f32 %v7962_v36, %v683_v26  ;;  %11437 = vst [vmem:[#allocation92_spill] sm:$0xff] %v7994_v48  ;;  %v7997_v26 = vpop.permute.xlu0 %1400 }
 0x28f   :  { %v1785_v35 = vrot.slane %v1716_v29, 1  ;;  %v7986_v24 = vsel %vm2748_vm3, %v3490_v28, %v3492_v57  ;;  %11438 = vst [vmem:[#allocation93_spill] sm:$0xff] %v7997_v26  ;;  %v143_v28 = vld [vmem:[%s11347_s28 + $0x280] sm:$0xff]  ;;  %v1657_v25 = vrot.slane %v7997_v26, 7 }
 0x290   :  { %11435 = vst [vmem:[#allocation90_spill] sm:$0xff] %v7986_v24  ;;  %v857_v39 = vmax.f32 %v684_v33, 0.0  ;;  %6359 = vmatmul.msk.f32.gmra.mxu0 %vm172_vm1, %v142_v10 }
 0x291   :  { %v1786_v49 = vsel %vm1759_vm6, %v1783_v4, %v1785_v35  ;;  %v8011_v30 = vsel %vm1627_vm5, %v1655_v23, %v1657_v25 }
 0x292   :  { %v1172_v22 = vrot.slane %v857_v39, 5  ;;  %6392 = vmatmul.msk.f32.gmra.mxu1 %vm1811_vm4, %v1786_v49  ;;  %11440 = vst [vmem:[#allocation95_spill] sm:$0xff] %v8011_v30 }
 0x294   :  { %v1173_v37 = vsel %vm969_vm2, %v1170_v55, %v1172_v22 }
 0x295   :  { %v686_v29 = vpop.f32.mrf.mxu0  ;;  %v1717_v10 = vmul.f32 %v7991_v53, %v1173_v37  ;;  %v3494_v4 = vrot.slane %v1173_v37, 3  ;;  %v8014_v37 = vpop.permute.xlu1 %1550 }
 0x296   :  { %v687_v39 = vadd.f32 %v7962_v36, %v686_v29  ;;  %11441 = vst [vmem:[#allocation96_spill] sm:$0xff] %v8014_v37  ;;  %v8017_v29 = vpop.permute.xlu2 %1405 }
 0x297   :  { %v1787_v33 = vrot.slane %v1717_v10, 1  ;;  %v8006_v49 = vsel %vm2748_vm3, %v3492_v57, %v3494_v4  ;;  %11442 = vst [vmem:[#allocation97_spill] sm:$0xff] %v8017_v29  ;;  %v144_v57 = vld [vmem:[%s11347_s28 + $0x288] sm:$0xff]  ;;  %v1659_v23 = vrot.slane %v8017_v29, 7 }
 0x298   :  { %11439 = vst [vmem:[#allocation94_spill] sm:$0xff] %v8006_v49  ;;  %v858_v24 = vmax.f32 %v687_v39, 0.0  ;;  %6360 = vmatmul.msk.f32.gmra.mxu0 %vm172_vm1, %v143_v28 }
 0x299   :  { %v1788_v55 = vsel %vm1759_vm6, %v1785_v35, %v1787_v33  ;;  %v8031_v53 = vsel %vm1627_vm5, %v1657_v25, %v1659_v23 }
 0x29a   :  { %v1174_v48 = vrot.slane %v858_v24, 5  ;;  %6393 = vmatmul.msk.f32.gmra.mxu1 %vm1811_vm4, %v1788_v55  ;;  %11444 = vst [vmem:[#allocation99_spill] sm:$0xff] %v8031_v53 }
 0x29c   :  { %v1175_v26 = vsel %vm969_vm2, %v1172_v22, %v1174_v48 }
 0x29d   :  { %v689_v10 = vpop.f32.mrf.mxu0  ;;  %v1718_v28 = vmul.f32 %v8011_v30, %v1175_v26  ;;  %v3496_v35 = vrot.slane %v1175_v26, 3  ;;  %v8034_v26 = vpop.permute.xlu0 %1555 }
 0x29e   :  { %v690_v24 = vadd.f32 %v7962_v36, %v689_v10  ;;  %11445 = vst [vmem:[#allocation100_spill] sm:$0xff] %v8034_v26  ;;  %v8037_v10 = vpop.permute.xlu1 %1410 }
 0x29f   :  { %v1789_v39 = vrot.slane %v1718_v28, 1  ;;  %v8026_v55 = vsel %vm2748_vm3, %v3494_v4, %v3496_v35  ;;  %11446 = vst [vmem:[#allocation101_spill] sm:$0xff] %v8037_v10  ;;  %v145_v4 = vld [vmem:[%s11347_s28 + $0x290] sm:$0xff]  ;;  %v1661_v25 = vrot.slane %v8037_v10, 7 }
 0x2a0   :  { %11443 = vst [vmem:[#allocation98_spill] sm:$0xff] %v8026_v55  ;;  %v859_v49 = vmax.f32 %v690_v24, 0.0  ;;  %6361 = vmatmul.msk.f32.gmra.mxu0 %vm172_vm1, %v144_v57 }
 0x2a1   :  { %v1790_v22 = vsel %vm1759_vm6, %v1787_v33, %v1789_v39  ;;  %v8051_v30 = vsel %vm1627_vm5, %v1659_v23, %v1661_v25 }
 0x2a2   :  { %v1176_v37 = vrot.slane %v859_v49, 5  ;;  %6394 = vmatmul.msk.f32.gmra.mxu1 %vm1811_vm4, %v1790_v22  ;;  %11448 = vst [vmem:[#allocation103_spill] sm:$0xff] %v8051_v30 }
 0x2a4   :  { %v1177_v29 = vsel %vm969_vm2, %v1174_v48, %v1176_v37 }
 0x2a5   :  { %v692_v28 = vpop.f32.mrf.mxu0  ;;  %v1719_v57 = vmul.f32 %v8031_v53, %v1177_v29  ;;  %v3498_v33 = vrot.slane %v1177_v29, 3  ;;  %v8054_v29 = vpop.permute.xlu2 %1560 }
 0x2a6   :  { %v693_v49 = vadd.f32 %v7962_v36, %v692_v28  ;;  %11449 = vst [vmem:[#allocation104_spill] sm:$0xff] %v8054_v29  ;;  %v8057_v28 = vpop.permute.xlu0 %1415 }
 0x2a7   :  { %v1791_v24 = vrot.slane %v1719_v57, 1  ;;  %v8046_v22 = vsel %vm2748_vm3, %v3496_v35, %v3498_v33  ;;  %11450 = vst [vmem:[#allocation105_spill] sm:$0xff] %v8057_v28  ;;  %v146_v35 = vld [vmem:[%s11347_s28 + $0x298] sm:$0xff]  ;;  %v1663_v23 = vrot.slane %v8057_v28, 7 }
 0x2a8   :  { %11447 = vst [vmem:[#allocation102_spill] sm:$0xff] %v8046_v22  ;;  %v860_v55 = vmax.f32 %v693_v49, 0.0  ;;  %6362 = vmatmul.msk.f32.gmra.mxu0 %vm172_vm1, %v145_v4 }
 0x2a9   :  { %v1792_v48 = vsel %vm1759_vm6, %v1789_v39, %v1791_v24  ;;  %v8073_v29 = vsel %vm1627_vm5, %v1661_v25, %v1663_v23 }
 0x2aa   :  { %v1178_v26 = vrot.slane %v860_v55, 5  ;;  %6395 = vmatmul.msk.f32.gmra.mxu1 %vm1811_vm4, %v1792_v48  ;;  %11453 = vst [vmem:[#allocation108_spill] sm:$0xff] %v8073_v29 }
 0x2ac   :  { %v1179_v10 = vsel %vm969_vm2, %v1176_v37, %v1178_v26 }
 0x2ad   :  { %v695_v57 = vpop.f32.mrf.mxu0  ;;  %v1720_v4 = vmul.f32 %v8051_v30, %v1179_v10  ;;  %v3500_v39 = vrot.slane %v1179_v10, 3  ;;  %v8076_v10 = vpop.permute.xlu1 %1565 }
 0x2ae   :  { %v696_v55 = vadd.f32 %v7962_v36, %v695_v57  ;;  %11454 = vst [vmem:[#allocation109_spill] sm:$0xff] %v8076_v10 }
 0x2af   :  { %v8065_v49 = vpop.f32.mrf.mxu1  ;;  %v1793_v48 = vrot.slane %v1720_v4, 1  ;;  %v8068_v22 = vsel %vm2748_vm3, %v3498_v33, %v3500_v39  ;;  %v147_v33 = vld [vmem:[%s11347_s28 + $0x2a0] sm:$0xff] }
 0x2b0   :  { %11451 = vst [vmem:[#allocation106_spill] sm:$0xff] %v8065_v49  ;;  %v861_v37 = vmax.f32 %v696_v55, 0.0  ;;  %6363 = vmatmul.msk.f32.gmra.mxu0 %vm172_vm1, %v146_v35  ;;  %v8079_v49 = vpop.permute.xlu2 %1420 }
 0x2b1   :  { %11452 = vst [vmem:[#allocation107_spill] sm:$0xff] %v8068_v22  ;;  %v1794_v53 = vsel %vm1759_vm6, %v1791_v24, %v1793_v48  ;;  %v1665_v25 = vrot.slane %v8079_v49, 7 }
 0x2b2   :  { %v1180_v30 = vrot.slane %v861_v37, 5  ;;  %6396 = vmatmul.msk.f32.gmra.mxu1 %vm1811_vm4, %v1794_v53  ;;  %11455 = vst [vmem:[#allocation110_spill] sm:$0xff] %v8079_v49 }
 0x2b3   :  { %v8095_v10 = vsel %vm1627_vm5, %v1663_v23, %v1665_v25 }
 0x2b4   :  { %v1181_v57 = vsel %vm969_vm2, %v1178_v26, %v1180_v30  ;;  %11458 = vst [vmem:[#allocation113_spill] sm:$0xff] %v8095_v10 }
 0x2b5   :  { %v698_v4 = vpop.f32.mrf.mxu0  ;;  %v1721_v35 = vmul.f32 %v8073_v29, %v1181_v57  ;;  %v3502_v24 = vrot.slane %v1181_v57, 3  ;;  %v8098_v57 = vpop.permute.xlu0 %1570 }
 0x2b6   :  { %v699_v55 = vadd.f32 %v7962_v36, %v698_v4  ;;  %11459 = vst [vmem:[#allocation114_spill] sm:$0xff] %v8098_v57  ;;  %v8101_v49 = vpop.permute.xlu1 %1425 }
 0x2b7   :  { %v8087_v37 = vpop.f32.mrf.mxu1  ;;  %v1795_v53 = vrot.slane %v1721_v35, 1  ;;  %v8090_v22 = vsel %vm2748_vm3, %v3500_v39, %v3502_v24  ;;  %11460 = vst [vmem:[#allocation115_spill] sm:$0xff] %v8101_v49  ;;  %v148_v39 = vld [vmem:[%s11347_s28 + $0x2a8] sm:$0xff]  ;;  %v1667_v23 = vrot.slane %v8101_v49, 7 }
 0x2b8   :  { %11456 = vst [vmem:[#allocation111_spill] sm:$0xff] %v8087_v37  ;;  %v862_v26 = vmax.f32 %v699_v55, 0.0  ;;  %6364 = vmatmul.msk.f32.gmra.mxu0 %vm172_vm1, %v147_v33 }
 0x2b9   :  { %11457 = vst [vmem:[#allocation112_spill] sm:$0xff] %v8090_v22  ;;  %v1796_v28 = vsel %vm1759_vm6, %v1793_v48, %v1795_v53  ;;  %v8117_v57 = vsel %vm1627_vm5, %v1665_v25, %v1667_v23 }
 0x2ba   :  { %v1182_v29 = vrot.slane %v862_v26, 5  ;;  %6397 = vmatmul.msk.f32.gmra.mxu1 %vm1811_vm4, %v1796_v28  ;;  %11463 = vst [vmem:[#allocation118_spill] sm:$0xff] %v8117_v57 }
 0x2bc   :  { %v1183_v4 = vsel %vm969_vm2, %v1180_v30, %v1182_v29 }
 0x2bd   :  { %v701_v35 = vpop.f32.mrf.mxu0  ;;  %v1722_v33 = vmul.f32 %v8095_v10, %v1183_v4  ;;  %v3504_v48 = vrot.slane %v1183_v4, 3  ;;  %v8120_v4 = vpop.permute.xlu2 %1575 }
 0x2be   :  { %v702_v55 = vadd.f32 %v7962_v36, %v701_v35  ;;  %11464 = vst [vmem:[#allocation119_spill] sm:$0xff] %v8120_v4  ;;  %v8123_v49 = vpop.permute.xlu0 %1430 }
 0x2bf   :  { %v8109_v26 = vpop.f32.mrf.mxu1  ;;  %v1797_v28 = vrot.slane %v1722_v33, 1  ;;  %v8112_v22 = vsel %vm2748_vm3, %v3502_v24, %v3504_v48  ;;  %11465 = vst [vmem:[#allocation120_spill] sm:$0xff] %v8123_v49  ;;  %v149_v24 = vld [vmem:[%s11347_s28 + $0x2b0] sm:$0xff]  ;;  %v1669_v25 = vrot.slane %v8123_v49, 7 }
 0x2c0   :  { %11461 = vst [vmem:[#allocation116_spill] sm:$0xff] %v8109_v26  ;;  %v863_v30 = vmax.f32 %v702_v55, 0.0  ;;  %6365 = vmatmul.msk.f32.gmra.mxu0 %vm172_vm1, %v148_v39 }
 0x2c1   :  { %11462 = vst [vmem:[#allocation117_spill] sm:$0xff] %v8112_v22  ;;  %v1798_v37 = vsel %vm1759_vm6, %v1795_v53, %v1797_v28  ;;  %v8139_v4 = vsel %vm1627_vm5, %v1667_v23, %v1669_v25 }
 0x2c2   :  { %v1184_v10 = vrot.slane %v863_v30, 5  ;;  %6398 = vmatmul.msk.f32.gmra.mxu1 %vm1811_vm4, %v1798_v37  ;;  %11468 = vst [vmem:[#allocation123_spill] sm:$0xff] %v8139_v4 }
 0x2c4   :  { %v1185_v35 = vsel %vm969_vm2, %v1182_v29, %v1184_v10 }
 0x2c5   :  { %v704_v33 = vpop.f32.mrf.mxu0  ;;  %v1723_v39 = vmul.f32 %v8117_v57, %v1185_v35  ;;  %v3506_v53 = vrot.slane %v1185_v35, 3  ;;  %v8142_v35 = vpop.permute.xlu1 %1580 }
 0x2c6   :  { %v705_v55 = vadd.f32 %v7962_v36, %v704_v33  ;;  %11469 = vst [vmem:[#allocation124_spill] sm:$0xff] %v8142_v35  ;;  %v8145_v49 = vpop.permute.xlu2 %1435 }
 0x2c7   :  { %v8131_v30 = vpop.f32.mrf.mxu1  ;;  %v1799_v37 = vrot.slane %v1723_v39, 1  ;;  %v8134_v22 = vsel %vm2748_vm3, %v3504_v48, %v3506_v53  ;;  %11470 = vst [vmem:[#allocation125_spill] sm:$0xff] %v8145_v49  ;;  %v150_v48 = vld [vmem:[%s11347_s28 + $0x2b8] sm:$0xff]  ;;  %v1671_v23 = vrot.slane %v8145_v49, 7 }
 0x2c8   :  { %11466 = vst [vmem:[#allocation121_spill] sm:$0xff] %v8131_v30  ;;  %v864_v29 = vmax.f32 %v705_v55, 0.0  ;;  %6366 = vmatmul.msk.f32.gmra.mxu0 %vm172_vm1, %v149_v24 }
 0x2c9   :  { %11467 = vst [vmem:[#allocation122_spill] sm:$0xff] %v8134_v22  ;;  %v1800_v26 = vsel %vm1759_vm6, %v1797_v28, %v1799_v37  ;;  %v8161_v35 = vsel %vm1627_vm5, %v1669_v25, %v1671_v23 }
 0x2ca   :  { %v1186_v57 = vrot.slane %v864_v29, 5  ;;  %6399 = vmatmul.msk.f32.gmra.mxu1 %vm1811_vm4, %v1800_v26  ;;  %11473 = vst [vmem:[#allocation128_spill] sm:$0xff] %v8161_v35 }
 0x2cc   :  { %v1187_v33 = vsel %vm969_vm2, %v1184_v10, %v1186_v57 }
 0x2cd   :  { %v707_v39 = vpop.f32.mrf.mxu0  ;;  %v1724_v24 = vmul.f32 %v8139_v4, %v1187_v33  ;;  %v3508_v28 = vrot.slane %v1187_v33, 3  ;;  %v2497_v33 = vld [vmem:[%s11402_s20 + $0x78] sm:$0xff] }
 0x2ce   :  { %v708_v55 = vadd.f32 %v7962_v36, %v707_v39  ;;  %2638 = vmatpush.msrb.mxu1 %v2497_v33  ;;  %v8167_v39 = vpop.permute.xlu0 %1585 }
 0x2cf   :  { %v8153_v29 = vpop.f32.mrf.mxu1  ;;  %v1801_v26 = vrot.slane %v1724_v24, 1  ;;  %v8156_v22 = vsel %vm2748_vm3, %v3506_v53, %v3508_v28  ;;  %11474 = vst [vmem:[#allocation129_spill] sm:$0xff] %v8167_v39 }
 0x2d0   :  { %11471 = vst [vmem:[#allocation126_spill] sm:$0xff] %v8153_v29  ;;  %v865_v10 = vmax.f32 %v708_v55, 0.0  ;;  %6367 = vmatmul.msk.f32.gmra.mxu0 %vm172_vm1, %v150_v48  ;;  %v2496_v48 = vld [vmem:[%s11402_s20 + $0x70] sm:$0xff] }
 0x2d1   :  { %11472 = vst [vmem:[#allocation127_spill] sm:$0xff] %v8156_v22  ;;  %v1802_v30 = vsel %vm1759_vm6, %v1799_v37, %v1801_v26  ;;  %v8173_v37 = vpop.permute.xlu1 %1440  ;;  %2639 = vmatpush.msrb.mxu1 %v2496_v48 }
 0x2d2   :  { %v1188_v4 = vrot.slane %v865_v10, 5  ;;  %6400 = vmatmul.msk.f32.gmra.mxu1 %vm1811_vm4, %v1802_v30  ;;  %11475 = vst [vmem:[#allocation130_spill] sm:$0xff] %v8173_v37  ;;  %v151_v30 = vld [vmem:[%s11347_s28 + $0x2c0] sm:$0xff]  ;;  %v1673_v10 = vrot.slane %v8173_v37, 7 }
 0x2d4   :  { %v1189_v53 = vsel %vm969_vm2, %v1186_v57, %v1188_v4  ;;  %v2495_v57 = vld [vmem:[%s11402_s20 + $0x68] sm:$0xff] }
 0x2d5   :  { %v710_v25 = vpop.f32.mrf.mxu0  ;;  %v1725_v24 = vmul.f32 %v8161_v35, %v1189_v53  ;;  %v3510_v55 = vrot.slane %v1189_v53, 3  ;;  %2640 = vmatpush.msrb.mxu1 %v2495_v57  ;;  %v2494_v53 = vld [vmem:[%s11402_s20 + $0x60] sm:$0xff] }
 0x2d6   :  { %v711_v33 = vadd.f32 %v7962_v36, %v710_v25  ;;  %v8195_v25 = vsel %vm1627_vm5, %v1671_v23, %v1673_v10  ;;  %v152_v23 = vld [vmem:[%s11347_s28 + $0x2c8] sm:$0xff] }
 0x2d7   :  { %v8184_v22 = vpop.f32.mrf.mxu1  ;;  %v1803_v49 = vrot.slane %v1725_v24, 1  ;;  %v8187_v29 = vsel %vm2748_vm3, %v3508_v28, %v3510_v55  ;;  %2641 = vmatpush.msrb.mxu1 %v2494_v53  ;;  %11478 = vst [vmem:[#allocation133_spill] sm:$0xff] %v8195_v25  ;;  %v2149_v28 = vld [vmem:[%s11402_s20 + $0x58] sm:$0xff]  ;;  %v2148_v24 = vld [vmem:[%s11402_s20 + $0x50] sm:$0xff] }
 0x2d8   :  { %11476 = vst [vmem:[#allocation131_spill] sm:$0xff] %v8184_v22  ;;  %v866_v39 = vmax.f32 %v711_v33, 0.0  ;;  %6368 = vmatmul.msk.f32.gmra.mxu0 %vm172_vm1, %v151_v30  ;;  %6803 = vmatpush.msra.mxu3 %v2149_v28 }
 0x2d9   :  { %11477 = vst [vmem:[#allocation132_spill] sm:$0xff] %v8187_v29  ;;  %v1804_v48 = vsel %vm1759_vm6, %v1801_v26, %v1803_v49  ;;  %2287 = vmatpush.msrb.mxu2 %v2149_v28  ;;  %v8205_v26 = vpop.permute.xlu0 %1445 }
 0x2da   :  { %v1190_v37 = vrot.slane %v866_v39, 5  ;;  %6401 = vmatmul.msk.f32.gmra.mxu1 %vm1811_vm4, %v1804_v48  ;;  %11479 = vst [vmem:[#allocation134_spill] sm:$0xff] %v8205_v26  ;;  %6804 = vmatpush.msra.mxu3 %v2148_v24  ;;  %v8212_v53 = vrot.slane %v8205_v26, 7  ;;  %v2147_v48 = vld [vmem:[%s11402_s20 + $0x48] sm:$0xff] }
 0x2db   :  { %2288 = vmatpush.msrb.mxu2 %v2148_v24 }
 0x2dc   :  { %v1191_v30 = vsel %vm969_vm2, %v1188_v4, %v1190_v37  ;;  %11480 = vst [vmem:[#allocation135_spill] sm:$0xff] %v8212_v53  ;;  %6805 = vmatpush.msra.mxu3 %v2147_v48 }
 0x2dd   :  { %v713_v33 = vpop.f32.mrf.mxu0  ;;  %v1726_v39 = vmul.f32 %v8195_v25, %v1191_v30  ;;  %v3512_v57 = vrot.slane %v1191_v30, 3  ;;  %2289 = vmatpush.msrb.mxu2 %v2147_v48  ;;  %v2146_v30 = vld [vmem:[%s11402_s20 + $0x40] sm:$0xff] }
 0x2de   :  { %v714_v4 = vadd.f32 %v7962_v36, %v713_v33  ;;  %6806 = vmatpush.msra.mxu3 %v2146_v30  ;;  %v8230_v33 = vsel %vm1627_vm5, %v1673_v10, %v8212_v53 }
 0x2df   :  { %v8218_v28 = vpop.f32.mrf.mxu1  ;;  %v1805_v29 = vrot.slane %v1726_v39, 1  ;;  %v8221_v22 = vsel %vm2748_vm3, %v3510_v55, %v3512_v57  ;;  %2290 = vmatpush.msrb.mxu2 %v2146_v30  ;;  %11483 = vst [vmem:[#allocation138_spill] sm:$0xff] %v8230_v33 }
 0x2e0   :  { %11481 = vst [vmem:[#allocation136_spill] sm:$0xff] %v8218_v28  ;;  %v867_v25 = vmax.f32 %v714_v4, 0.0  ;;  %6369 = vmatmul.msk.f32.gmra.mxu0 %vm172_vm1, %v152_v23  ;;  %v153_v23 = vld [vmem:[%s11347_s28 + $0x2d0] sm:$0xff] }
 0x2e1   :  { %11482 = vst [vmem:[#allocation137_spill] sm:$0xff] %v8221_v22  ;;  %v1806_v24 = vsel %vm1759_vm6, %v1803_v49, %v1805_v29 }
 0x2e2   :  { %v1192_v39 = vrot.slane %v867_v25, 5  ;;  %6402 = vmatmul.msk.f32.gmra.mxu1 %vm1811_vm4, %v1806_v24  ;;  %v2394_v24 = vrot.slane %v7708_v13, 6 }
 0x2e4   :  { %v1193_v55 = vsel %vm969_vm2, %v1190_v37, %v1192_v39 }
 0x2e5   :  { %v716_v4 = vpop.f32.mrf.mxu0  ;;  %v1727_v48 = vmul.f32 %v8230_v33, %v1193_v55  ;;  %v3514_v22 = vrot.slane %v1193_v55, 3  ;;  %v2393_v55 = vrot.slane %v7594_v51, 6 }
 0x2e6   :  { %v717_v49 = vadd.f32 %v7962_v36, %v716_v4 }
 0x2e7   :  { %v8239_v30 = vpop.f32.mrf.mxu1  ;;  %v1807_v26 = vrot.slane %v1727_v48, 1  ;;  %v8242_v10 = vsel %vm2748_vm3, %v3512_v57, %v3514_v22 }
 0x2e8   :  { %11484 = vst [vmem:[#allocation139_spill] sm:$0xff] %v8239_v30  ;;  %v868_v25 = vmax.f32 %v717_v49, 0.0  ;;  %6370 = vmatmul.msk.f32.gmra.mxu0 %vm172_vm1, %v153_v23  ;;  %v154_v23 = vld [vmem:[%s11347_s28 + $0x2d8] sm:$0xff] }
 0x2e9   :  { %11485 = vst [vmem:[#allocation140_spill] sm:$0xff] %v8242_v10  ;;  %v1808_v37 = vsel %vm1759_vm6, %v1805_v29, %v1807_v26  ;;  %v2395_v29 = vsel %vm2392_vm7, %v2393_v55, %v2394_v24 }
 0x2ea   :  { %v1194_v28 = vrot.slane %v868_v25, 5  ;;  %6403 = vmatmul.msk.f32.gmra.mxu1 %vm1811_vm4, %v1808_v37 }
 0x2ec   :  { %v1195_v4 = vsel %vm969_vm2, %v1192_v39, %v1194_v28  ;;  %v3518_v30 = vrot.slane %v1194_v28, 3 }
 0x2ed   :  { %v1728_v48 = vmul.f32 %v8212_v53, %v1195_v4  ;;  %v719_v57 = vpop.f32.mrf.mxu0  ;;  %v3516_v49 = vrot.slane %v1195_v4, 3  ;;  %v2469_v53 = vmul.f32 %v2395_v29, %v7316_v12  ;;  %v2396_v4 = vrot.slane %v7710_v45, 6 }
 0x2ee   :  { %v720_v25 = vadd.f32 %v7962_v36, %v719_v57 }
 0x2ef   :  { %v8256_v10 = vpop.f32.mrf.mxu1  ;;  %v1809_v37 = vrot.slane %v1728_v48, 1  ;;  %v8259_v51 = vsel %vm2748_vm3, %v3514_v22, %v3516_v49  ;;  %v8262_v28 = vsel %vm2748_vm3, %v3516_v49, %v3518_v30  ;;  %v2468_v48 = vmul.f32 %v2393_v55, %v7313_v9 }
 0x2f0   :  { %11486 = vst [vmem:[#allocation141_spill] sm:$0xff] %v8256_v10  ;;  %v869_v39 = vmax.f32 %v720_v25, 0.0  ;;  %6371 = vmatmul.msk.f32.gmra.mxu0 %vm172_vm1, %v154_v23  ;;  %v2526_v57 = vrot.slane %v2469_v53, 2  ;;  %v2397_v30 = vsel %vm2392_vm7, %v2394_v24, %v2396_v4  ;;  %v155_v23 = vld [vmem:[%s11347_s28 + $0x2e0] sm:$0xff]  ;;  %v2398_v53 = vrot.slane %v7736_v7, 6 }
 0x2f1   :  { %11487 = vst [vmem:[#allocation142_spill] sm:$0xff] %v8259_v51  ;;  %v1810_v33 = vsel %vm1759_vm6, %v1807_v26, %v1809_v37  ;;  %v2525_v26 = vrot.slane %v2468_v48, 2 }
 0x2f2   :  { %11488 = vst [vmem:[#allocation143_spill] sm:$0xff] %v8262_v28  ;;  %v1247_v35 = vrot.slane %v869_v39, 5  ;;  %6404 = vmatmul.msk.f32.gmra.mxu1 %vm1811_vm4, %v1810_v33  ;;  %v2470_v33 = vmul.f32 %v2397_v30, %v7335_v34 }
 0x2f3   :  { %v2527_v39 = vsel %vm2524_vm8, %v2525_v26, %v2526_v57  ;;  %v156_v26 = vld [vmem:[%s11347_s28 + $0x2e8] sm:$0xff] }
 0x2f4   :  { %v1322_v22 = vsel %vm969_vm2, 0.0, %v1247_v35 }
 0x2f5   :  { %v722_v49 = vpop.f32.mrf.mxu0  ;;  %v1449_v12 = vmul.f32 %v7664_v60, %v1322_v22  ;;  %v3190_v60 = vmul.f32 %v2393_v55, %v1322_v22  ;;  %v8287_v48 = vmul.f32 %v7682_v11, %v1322_v22  ;;  %v3692_v34 = vrot.slane %v1322_v22, 3 }
 0x2f6   :  { %v723_v25 = vadd.f32 %v7962_v36, %v722_v49  ;;  %v2528_v49 = vrot.slane %v2470_v33, 2 }
 0x2f7   :  { %v8277_v37 = vpop.f32.mrf.mxu1  ;;  %v1599_v9 = vmul.f32 %v7708_v13, %v1449_v12  ;;  %v2399_v13 = vsel %vm2392_vm7, %v2396_v4, %v2398_v53  ;;  %v11339_v33 = vrot.slane %v8287_v48, 1 }
 0x2f8   :  { %11489 = vst [vmem:[#allocation144_spill] sm:$0xff] %v8277_v37  ;;  %v870_v24 = vmax.f32 %v723_v25, 0.0  ;;  %6372 = vmatmul.msk.f32.gmra.mxu0 %vm172_vm1, %v155_v23  ;;  %v2471_v37 = vmul.f32 %v2399_v13, %v7353_v52 }
 0x2f9   :  { %6406 = vmatmul.msk.f32.gmra.mxu2 %vm1811_vm4, %v1599_v9 }
 0x2fa   :  { %v1248_v28 = vrot.slane %v870_v24, 5  ;;  %6455 = vmatmul.msk.f32.vlgmr.msrb.gmra.mxu1 %vm1811_vm4, %v2527_v39  ;;  %v3246_v24 = vrot.slane %v3190_v60, 2  ;;  %v2529_v60 = vsel %vm2524_vm8, %v2526_v57, %v2528_v49  ;;  %v2530_v52 = vrot.slane %v2471_v37, 2 }
 0x2fc   :  { %v1249_v12 = vsel %vm969_vm2, %v1247_v35, %v1248_v28 }
 0x2fd   :  { %v3191_v25 = vmul.f32 %v2395_v29, %v1249_v12  ;;  %v3693_v51 = vrot.slane %v1249_v12, 3  ;;  %v725_v23 = vpop.f32.mrf.mxu0  ;;  %v1450_v55 = vmul.f32 %v7684_v54, %v1249_v12  ;;  %v2122_v9 = vmul.f32 %v7702_v50, %v1249_v12 }
 0x2fe   :  { %v726_v11 = vadd.f32 %v7962_v36, %v725_v23  ;;  %v2400_v54 = vrot.slane %v7762_v6, 6 }
 0x2ff   :  { %v3247_v4 = vrot.slane %v3191_v25, 2  ;;  %v8298_v22 = vpop.f32.mrf.mxu1  ;;  %v1600_v35 = vmul.f32 %v7710_v45, %v1450_v55  ;;  %v2177_v29 = vrot.slane %v2122_v9, 1  ;;  %v8302_v39 = vsel %vm2748_vm3, %v3692_v34, %v3693_v51 }
 0x300   :  { %11490 = vst [vmem:[#allocation145_spill] sm:$0xff] %v8302_v39  ;;  %v871_v10 = vmax.f32 %v726_v11, 0.0  ;;  %6373 = vmatmul.msk.f32.gmra.mxu0 %vm172_vm1, %v156_v26  ;;  %v2401_v12 = vsel %vm2392_vm7, %v2398_v53, %v2400_v54  ;;  %v157_v26 = vld [vmem:[%s11347_s28 + $0x2f0] sm:$0xff] }
 0x301   :  { %6407 = vmatmul.msk.f32.gmra.mxu2 %vm1811_vm4, %v1600_v35  ;;  %v2178_v50 = vsel %vm1759_vm6, %v11339_v33, %v2177_v29  ;;  %v8313_v45 = vsel %vm2524_vm8, %v3246_v24, %v3247_v4  ;;  %v11514_v33 = vld [vmem:[#allocation96_spill] sm:$0xff] }
 0x302   :  { %v1250_v34 = vrot.slane %v871_v10, 5  ;;  %6431 = vmatmul.msk.f32.vlgmr.msra.gmra.mxu3 %vm1811_vm4, %v2178_v50  ;;  %6456 = vmatmul.msk.f32.gmra.mxu1 %vm1811_vm4, %v2529_v60  ;;  %v2472_v50 = vmul.f32 %v2401_v12, %v7371_v3  ;;  %v2402_v60 = vrot.slane %v7791_v44, 6 }
 0x304   :  { %v1251_v25 = vsel %vm969_vm2, %v1248_v28, %v1250_v34  ;;  %v2532_v3 = vrot.slane %v2472_v50, 2 }
 0x305   :  { %v728_v23 = vpop.f32.mrf.mxu0  ;;  %v1451_v57 = vmul.f32 %v7713_v32, %v1251_v25  ;;  %v2123_v55 = vmul.f32 %v7727_v62, %v1251_v25  ;;  %v3192_v9 = vmul.f32 %v2397_v30, %v1251_v25  ;;  %v3695_v10 = vrot.slane %v1251_v25, 3 }
 0x306   :  { %v729_v24 = vadd.f32 %v7962_v36, %v728_v23  ;;  %v2531_v30 = vsel %vm2524_vm8, %v2528_v49, %v2530_v52 }
 0x307   :  { %v8325_v11 = vpop.f32.mrf.mxu1  ;;  %v1601_v37 = vmul.f32 %v7736_v7, %v1451_v57  ;;  %v2179_v53 = vrot.slane %v2123_v55, 1  ;;  %v3249_v35 = vrot.slane %v3192_v9, 2  ;;  %v8329_v28 = vsel %vm2748_vm3, %v3693_v51, %v3695_v10 }
 0x308   :  { %11491 = vst [vmem:[#allocation146_spill] sm:$0xff] %v8329_v28  ;;  %v872_v32 = vmax.f32 %v729_v24, 0.0  ;;  %6374 = vmatmul.msk.f32.gmra.mxu0 %vm172_vm1, %v157_v26  ;;  %v2403_v51 = vsel %vm2392_vm7, %v2400_v54, %v2402_v60 }
 0x309   :  { %6408 = vmatmul.msk.f32.gmra.mxu2 %vm1811_vm4, %v1601_v37  ;;  %v2180_v62 = vsel %vm1759_vm6, %v2177_v29, %v2179_v53  ;;  %v8338_v7 = vsel %vm2524_vm8, %v3247_v4, %v3249_v35  ;;  %v158_v29 = vld [vmem:[%s11347_s28 + $0x2f8] sm:$0xff] }
 0x30a   :  { %v1252_v25 = vrot.slane %v872_v32, 5  ;;  %6432 = vmatmul.msk.f32.gmra.mxu3 %vm1811_vm4, %v2180_v62  ;;  %6457 = vmatmul.msk.f32.gmra.mxu1 %vm1811_vm4, %v2531_v30  ;;  %v2473_v32 = vmul.f32 %v2403_v51, %v7389_v19  ;;  %v2404_v62 = vrot.slane %v7820_v15, 6 }
 0x30c   :  { %v1253_v23 = vsel %vm969_vm2, %v1250_v34, %v1252_v25  ;;  %v2534_v19 = vrot.slane %v2473_v32, 2 }
 0x30d   :  { %v731_v26 = vpop.f32.mrf.mxu0  ;;  %v1452_v49 = vmul.f32 %v7739_v43, %v1253_v23  ;;  %v2124_v4 = vmul.f32 %v7753_v59, %v1253_v23  ;;  %v3193_v57 = vmul.f32 %v2399_v13, %v1253_v23  ;;  %v3697_v55 = vrot.slane %v1253_v23, 3 }
 0x30e   :  { %v732_v9 = vadd.f32 %v7962_v36, %v731_v26  ;;  %v2533_v13 = vsel %vm2524_vm8, %v2530_v52, %v2532_v3 }
 0x30f   :  { %v8350_v24 = vpop.f32.mrf.mxu1  ;;  %v1602_v37 = vmul.f32 %v7762_v6, %v1452_v49  ;;  %v2181_v54 = vrot.slane %v2124_v4, 1  ;;  %v3251_v50 = vrot.slane %v3193_v57, 2  ;;  %v8354_v34 = vsel %vm2748_vm3, %v3695_v10, %v3697_v55 }
 0x310   :  { %11492 = vst [vmem:[#allocation147_spill] sm:$0xff] %v8354_v34  ;;  %v873_v43 = vmax.f32 %v732_v9, 0.0  ;;  %6375 = vmatmul.msk.f32.gmra.mxu0 %vm172_vm1, %v158_v29  ;;  %v2405_v10 = vsel %vm2392_vm7, %v2402_v60, %v2404_v62  ;;  %v11537_v34 = vld [vmem:[#allocation53_spill] sm:$0xff] }
 0x311   :  { %6409 = vmatmul.msk.f32.gmra.mxu2 %vm1811_vm4, %v1602_v37  ;;  %v2182_v59 = vsel %vm1759_vm6, %v2179_v53, %v2181_v54  ;;  %v8363_v6 = vsel %vm2524_vm8, %v3249_v35, %v3251_v50  ;;  %v159_v53 = vld [vmem:[%s11347_s28 + $0x300] sm:$0xff]  ;;  %v2474_v32 = vmul.f32 %v2405_v10, %v7404_v42 }
 0x312   :  { %v1254_v30 = vrot.slane %v873_v43, 5  ;;  %6433 = vmatmul.msk.f32.gmra.mxu3 %vm1811_vm4, %v2182_v59  ;;  %6458 = vmatmul.msk.f32.gmra.mxu1 %vm1811_vm4, %v2533_v13  ;;  %v2406_v43 = vrot.slane %v7843_v31, 6 }
 0x313   :  { %v2536_v42 = vrot.slane %v2474_v32, 2  ;;  %v2408_v32 = vrot.slane %v7866_v17, 6 }
 0x314   :  { %v1255_v23 = vsel %vm969_vm2, %v1252_v25, %v1254_v30 }
 0x315   :  { %v734_v26 = vpop.f32.mrf.mxu0  ;;  %v1453_v52 = vmul.f32 %v7765_v41, %v1255_v23  ;;  %v2125_v35 = vmul.f32 %v7779_v8, %v1255_v23  ;;  %v3194_v29 = vmul.f32 %v2401_v12, %v1255_v23  ;;  %v3699_v49 = vrot.slane %v1255_v23, 3 }
 0x316   :  { %v735_v4 = vadd.f32 %v7962_v36, %v734_v26  ;;  %v2535_v12 = vsel %vm2524_vm8, %v2532_v3, %v2534_v19 }
 0x317   :  { %v8375_v57 = vpop.f32.mrf.mxu1  ;;  %v1603_v9 = vmul.f32 %v7791_v44, %v1453_v52  ;;  %v2183_v60 = vrot.slane %v2125_v35, 1  ;;  %v3253_v37 = vrot.slane %v3194_v29, 2  ;;  %v8379_v25 = vsel %vm2748_vm3, %v3697_v55, %v3699_v49 }
 0x318   :  { %11493 = vst [vmem:[#allocation148_spill] sm:$0xff] %v8379_v25  ;;  %v874_v41 = vmax.f32 %v735_v4, 0.0  ;;  %6376 = vmatmul.msk.f32.gmra.mxu0 %vm172_vm1, %v159_v53  ;;  %v2407_v55 = vsel %vm2392_vm7, %v2404_v62, %v2406_v43 }
 0x319   :  { %6410 = vmatmul.msk.f32.gmra.mxu2 %vm1811_vm4, %v1603_v9  ;;  %v2184_v8 = vsel %vm1759_vm6, %v2181_v54, %v2183_v60  ;;  %v8388_v44 = vsel %vm2524_vm8, %v3251_v50, %v3253_v37  ;;  %v160_v54 = vld [vmem:[%s11347_s28 + $0x308] sm:$0xff]  ;;  %v2475_v9 = vmul.f32 %v2407_v55, %v7419_v61 }
 0x31a   :  { %v1256_v59 = vrot.slane %v874_v41, 5  ;;  %6434 = vmatmul.msk.f32.gmra.mxu3 %vm1811_vm4, %v2184_v8  ;;  %6459 = vmatmul.msk.f32.gmra.mxu1 %vm1811_vm4, %v2535_v12 }
 0x31b   :  { %v2538_v61 = vrot.slane %v2475_v9, 2 }
 0x31c   :  { %v1257_v13 = vsel %vm969_vm2, %v1254_v30, %v1256_v59 }
 0x31d   :  { %v737_v23 = vpop.f32.mrf.mxu0  ;;  %v1454_v3 = vmul.f32 %v7794_v56, %v1257_v13  ;;  %v2126_v50 = vmul.f32 %v7808_v38, %v1257_v13  ;;  %v3195_v26 = vmul.f32 %v2403_v51, %v1257_v13  ;;  %v3701_v53 = vrot.slane %v1257_v13, 3 }
 0x31e   :  { %v738_v52 = vadd.f32 %v7962_v36, %v737_v23  ;;  %v2537_v51 = vsel %vm2524_vm8, %v2534_v19, %v2536_v42 }
 0x31f   :  { %v8400_v35 = vpop.f32.mrf.mxu1  ;;  %v1604_v29 = vmul.f32 %v7820_v15, %v1454_v3  ;;  %v2185_v62 = vrot.slane %v2126_v50, 1  ;;  %v3255_v4 = vrot.slane %v3195_v26, 2  ;;  %v8404_v30 = vsel %vm2748_vm3, %v3699_v49, %v3701_v53 }
 0x320   :  { %11494 = vst [vmem:[#allocation149_spill] sm:$0xff] %v8404_v30  ;;  %v875_v56 = vmax.f32 %v738_v52, 0.0  ;;  %6377 = vmatmul.msk.f32.gmra.mxu0 %vm172_vm1, %v160_v54  ;;  %v2409_v49 = vsel %vm2392_vm7, %v2406_v43, %v2408_v32 }
 0x321   :  { %6411 = vmatmul.msk.f32.gmra.mxu2 %vm1811_vm4, %v1604_v29  ;;  %v2186_v38 = vsel %vm1759_vm6, %v2183_v60, %v2185_v62  ;;  %v8413_v15 = vsel %vm2524_vm8, %v3253_v37, %v3255_v4  ;;  %v161_v60 = vld [vmem:[%s11347_s28 + $0x310] sm:$0xff]  ;;  %v2476_v52 = vmul.f32 %v2409_v49, %v7434_v16  ;;  %v2410_v29 = vrot.slane %v7889_v27, 6 }
 0x322   :  { %v1258_v41 = vrot.slane %v875_v56, 5  ;;  %6435 = vmatmul.msk.f32.gmra.mxu3 %vm1811_vm4, %v2186_v38  ;;  %6460 = vmatmul.msk.f32.gmra.mxu1 %vm1811_vm4, %v2537_v51 }
 0x323   :  { %v2540_v16 = vrot.slane %v2476_v52, 2 }
 0x324   :  { %v1259_v8 = vsel %vm969_vm2, %v1256_v59, %v1258_v41 }
 0x325   :  { %v740_v12 = vpop.f32.mrf.mxu0  ;;  %v1455_v19 = vmul.f32 %v7823_v2, %v1259_v8  ;;  %v2127_v37 = vmul.f32 %v7837_v21, %v1259_v8  ;;  %v3196_v13 = vmul.f32 %v2405_v10, %v1259_v8  ;;  %v3703_v23 = vrot.slane %v1259_v8, 3 }
 0x326   :  { %v741_v54 = vadd.f32 %v7962_v36, %v740_v12  ;;  %v2539_v10 = vsel %vm2524_vm8, %v2536_v42, %v2538_v61 }
 0x327   :  { %v8425_v3 = vpop.f32.mrf.mxu1  ;;  %v1605_v50 = vmul.f32 %v7843_v31, %v1455_v19  ;;  %v2187_v43 = vrot.slane %v2127_v37, 1  ;;  %v3257_v26 = vrot.slane %v3196_v13, 2  ;;  %v8429_v59 = vsel %vm2748_vm3, %v3701_v53, %v3703_v23 }
 0x328   :  { %11495 = vst [vmem:[#allocation150_spill] sm:$0xff] %v8429_v59  ;;  %v876_v2 = vmax.f32 %v741_v54, 0.0  ;;  %6378 = vmatmul.msk.f32.gmra.mxu0 %vm172_vm1, %v161_v60  ;;  %v2411_v53 = vsel %vm2392_vm7, %v2408_v32, %v2410_v29  ;;  %v2412_v54 = vrot.slane %v7909_v58, 6 }
 0x329   :  { %6412 = vmatmul.msk.f32.gmra.mxu2 %vm1811_vm4, %v1605_v50  ;;  %v2188_v21 = vsel %vm1759_vm6, %v2185_v62, %v2187_v43  ;;  %v8438_v31 = vsel %vm2524_vm8, %v3255_v4, %v3257_v26  ;;  %v162_v62 = vld [vmem:[%s11347_s28 + $0x318] sm:$0xff]  ;;  %v2477_v13 = vmul.f32 %v2411_v53, %v7446_v40 }
 0x32a   :  { %v1260_v9 = vrot.slane %v876_v2, 5  ;;  %6436 = vmatmul.msk.f32.gmra.mxu3 %vm1811_vm4, %v2188_v21  ;;  %6461 = vmatmul.msk.f32.gmra.mxu1 %vm1811_vm4, %v2539_v10 }
 0x32b   :  { %v2542_v40 = vrot.slane %v2477_v13, 2 }
 0x32c   :  { %v1261_v56 = vsel %vm969_vm2, %v1258_v41, %v1260_v9 }
 0x32d   :  { %v743_v38 = vpop.f32.mrf.mxu0  ;;  %v1456_v42 = vmul.f32 %v7846_v63, %v1261_v56  ;;  %v2128_v4 = vmul.f32 %v7860_v14, %v1261_v56  ;;  %v3197_v51 = vmul.f32 %v2407_v55, %v1261_v56  ;;  %v3705_v8 = vrot.slane %v1261_v56, 3 }
 0x32e   :  { %v744_v12 = vadd.f32 %v7962_v36, %v743_v38  ;;  %v2541_v55 = vsel %vm2524_vm8, %v2538_v61, %v2540_v16 }
 0x32f   :  { %v8450_v60 = vpop.f32.mrf.mxu1  ;;  %v1606_v19 = vmul.f32 %v7866_v17, %v1456_v42  ;;  %v2189_v32 = vrot.slane %v2128_v4, 1  ;;  %v3259_v37 = vrot.slane %v3197_v51, 2  ;;  %v8454_v41 = vsel %vm2748_vm3, %v3703_v23, %v3705_v8 }
 0x330   :  { %11496 = vst [vmem:[#allocation151_spill] sm:$0xff] %v8454_v41  ;;  %v877_v63 = vmax.f32 %v744_v12, 0.0  ;;  %6379 = vmatmul.msk.f32.gmra.mxu0 %vm172_vm1, %v162_v62  ;;  %v2413_v23 = vsel %vm2392_vm7, %v2410_v29, %v2412_v54 }
 0x331   :  { %6413 = vmatmul.msk.f32.gmra.mxu2 %vm1811_vm4, %v1606_v19  ;;  %v2190_v14 = vsel %vm1759_vm6, %v2187_v43, %v2189_v32  ;;  %v8463_v17 = vsel %vm2524_vm8, %v3257_v26, %v3259_v37  ;;  %v2478_v29 = vmul.f32 %v2413_v23, %v7458_v0 }
 0x332   :  { %v1262_v50 = vrot.slane %v877_v63, 5  ;;  %6437 = vmatmul.msk.f32.gmra.mxu3 %vm1811_vm4, %v2190_v14  ;;  %6462 = vmatmul.msk.f32.gmra.mxu1 %vm1811_vm4, %v2541_v55 }
 0x334   :  { %v1263_v52 = vsel %vm969_vm2, %v1260_v9, %v1262_v50  ;;  %v2414_v9 = vrot.slane %v7929_v5, 6 }
 0x335   :  { %v746_v2 = vpop.f32.mrf.mxu0  ;;  %v1457_v21 = vmul.f32 %v7869_v47, %v1263_v52  ;;  %v2129_v43 = vmul.f32 %v7883_v18, %v1263_v52  ;;  %v3198_v10 = vmul.f32 %v2409_v49, %v1263_v52  ;;  %v3707_v61 = vrot.slane %v1263_v52, 3 }
 0x336   :  { %v747_v26 = vadd.f32 %v7962_v36, %v746_v2  ;;  %v2543_v49 = vsel %vm2524_vm8, %v2540_v16, %v2542_v40  ;;  %v2415_v0 = vsel %vm2392_vm7, %v2412_v54, %v2414_v9 }
 0x337   :  { %v8472_v56 = vpop.f32.mrf.mxu1  ;;  %v1607_v38 = vmul.f32 %v7889_v27, %v1457_v21  ;;  %v2191_v62 = vrot.slane %v2129_v43, 1  ;;  %v3261_v42 = vrot.slane %v3198_v10, 2  ;;  %v8476_v4 = vsel %vm2748_vm3, %v3705_v8, %v3707_v61 }
 0x338   :  { %11497 = vst [vmem:[#allocation152_spill] sm:$0xff] %v8476_v4  ;;  %v878_v47 = vmax.f32 %v747_v26, 0.0  ;;  %v2544_v8 = vrot.slane %v2478_v29, 2  ;;  %v2479_v54 = vmul.f32 %v2415_v0, %v7470_v20  ;;  %v11525_v4 = vld [vmem:[#allocation104_spill] sm:$0xff] }
 0x339   :  { %6414 = vmatmul.msk.f32.gmra.mxu2 %vm1811_vm4, %v1607_v38  ;;  %v2192_v18 = vsel %vm1759_vm6, %v2189_v32, %v2191_v62  ;;  %v8484_v51 = vsel %vm2524_vm8, %v3259_v37, %v3261_v42  ;;  %v11500_v38 = vld [vmem:[#allocation78_spill] sm:$0xff]  ;;  %v2426_v41 = vrot.slane %v11525_v4, 6 }
 0x33a   :  { %v1264_v27 = vrot.slane %v878_v47, 5  ;;  %6438 = vmatmul.msk.f32.gmra.mxu3 %vm1811_vm4, %v2192_v18  ;;  %6463 = vmatmul.msk.f32.gmra.mxu1 %vm1811_vm4, %v2543_v49  ;;  %v2546_v10 = vrot.slane %v2479_v54, 2  ;;  %v11501_v47 = vld [vmem:[#allocation80_spill] sm:$0xff] }
 0x33c   :  { %v1265_v12 = vsel %vm969_vm2, %v1262_v50, %v1264_v27  ;;  %v11499_v50 = vld [vmem:[#allocation84_spill] sm:$0xff] }
 0x33d   :  { %v749_v19 = vpop.f32.mrf.mxu0  ;;  %v1458_v13 = vmul.f32 %v7892_v46, %v1265_v12  ;;  %v2130_v32 = vmul.f32 %v7906_v1, %v1265_v12  ;;  %v3199_v63 = vmul.f32 %v2411_v53, %v1265_v12  ;;  %v3709_v16 = vrot.slane %v1265_v12, 3 }
 0x33e   :  { %v750_v37 = vadd.f32 %v7962_v36, %v749_v19  ;;  %v2416_v43 = vrot.slane %v11499_v50, 6  ;;  %v2545_v36 = vsel %vm2524_vm8, %v2542_v40, %v2544_v8 }
 0x33f   :  { %v8493_v14 = vpop.f32.mrf.mxu1  ;;  %v1608_v55 = vmul.f32 %v7909_v58, %v1458_v13  ;;  %v2193_v52 = vrot.slane %v2130_v32, 1  ;;  %v3263_v2 = vrot.slane %v3199_v63, 2  ;;  %v8497_v21 = vsel %vm2748_vm3, %v3707_v61, %v3709_v16  ;;  %v11503_v32 = vld [vmem:[#allocation41_spill] sm:$0xff] }
 0x340   :  { %11498 = vst [vmem:[#allocation153_spill] sm:$0xff] %v8497_v21  ;;  %v879_v46 = vmax.f32 %v750_v37, 0.0  ;;  %v2417_v20 = vsel %vm2392_vm7, %v2414_v9, %v2416_v43 }
 0x341   :  { %6415 = vmatmul.msk.f32.gmra.mxu2 %vm1811_vm4, %v1608_v55  ;;  %v2194_v1 = vsel %vm1759_vm6, %v2191_v62, %v2193_v52  ;;  %v8505_v53 = vsel %vm2524_vm8, %v3261_v42, %v3263_v2  ;;  %v8516_v42 = vld [vmem:[%s11373_s25] ss:$0 sm:$0xff]  ;;  %v2480_v63 = vmul.f32 %v2417_v20, %v11503_v32 }
 0x342   :  { %v1266_v58 = vrot.slane %v879_v46, 5  ;;  %6439 = vmatmul.msk.f32.gmra.mxu3 %vm1811_vm4, %v2194_v1  ;;  %6464 = vmatmul.msk.f32.gmra.mxu1 %vm1811_vm4, %v2545_v36  ;;  %v2547_v46 = vsel %vm2524_vm8, %v2544_v8, %v2546_v10 }
 0x344   :  { %v1267_v61 = vsel %vm969_vm2, %v1264_v27, %v1266_v58 }
 0x345   :  { %v752_v26 = vpop.f32.mrf.mxu0  ;;  %v1459_v29 = vmul.f32 %v11500_v38, %v1267_v61  ;;  %v2131_v62 = vmul.f32 %v11501_v47, %v1267_v61  ;;  %v3200_v18 = vmul.f32 %v2413_v23, %v1267_v61  ;;  %v3711_v40 = vrot.slane %v1267_v61, 3  ;;  %v11504_v23 = vld [vmem:[#allocation88_spill] sm:$0xff]  ;;  %v11505_v38 = vld [vmem:[#allocation81_spill] sm:$0xff]  ;;  %v11506_v47 = vld [vmem:[#allocation83_spill] sm:$0xff] }
 0x346   :  { %v753_v49 = vadd.f32 %v8516_v42, %v752_v26  ;;  %v2418_v37 = vrot.slane %v11504_v23, 6 }
 0x347   :  { %v8519_v12 = vpop.f32.mrf.mxu1  ;;  %v1609_v9 = vmul.f32 %v7929_v5, %v1459_v29  ;;  %v2195_v19 = vrot.slane %v2131_v62, 1  ;;  %v3265_v27 = vrot.slane %v3200_v18, 2  ;;  %v8523_v13 = vsel %vm2748_vm3, %v3709_v16, %v3711_v40 }
 0x348   :  { %11502 = vst [vmem:[#allocation84_spill] sm:$0xff] %v8523_v13  ;;  %v880_v55 = vmax.f32 %v753_v49, 0.0  ;;  %v2548_v16 = vrot.slane %v2480_v63, 2  ;;  %v2419_v36 = vsel %vm2392_vm7, %v2416_v43, %v2418_v37  ;;  %v11508_v43 = vld [vmem:[#allocation43_spill] sm:$0xff]  ;;  %v11519_v13 = vld [vmem:[#allocation100_spill] sm:$0xff] }
 0x349   :  { %6416 = vmatmul.msk.f32.gmra.mxu2 %vm1811_vm4, %v1609_v9  ;;  %v2196_v54 = vsel %vm1759_vm6, %v2193_v52, %v2195_v19  ;;  %v8531_v1 = vsel %vm2524_vm8, %v3263_v2, %v3265_v27  ;;  %v2424_v21 = vrot.slane %v11519_v13, 6 }
 0x34a   :  { %v1268_v5 = vrot.slane %v880_v55, 5  ;;  %6440 = vmatmul.msk.f32.gmra.mxu3 %vm1811_vm4, %v2196_v54  ;;  %6465 = vmatmul.msk.f32.gmra.mxu1 %vm1811_vm4, %v2547_v46  ;;  %v11509_v55 = vld [vmem:[#allocation92_spill] sm:$0xff] }
 0x34b   :  { %v2420_v54 = vrot.slane %v11509_v55, 6 }
 0x34c   :  { %v1269_v61 = vsel %vm969_vm2, %v1266_v58, %v1268_v5  ;;  %v2481_v58 = vmul.f32 %v2419_v36, %v11508_v43 }
 0x34d   :  { %v755_v26 = vpop.f32.mrf.mxu0  ;;  %v1460_v29 = vmul.f32 %v11505_v38, %v1269_v61  ;;  %v2132_v52 = vmul.f32 %v11506_v47, %v1269_v61  ;;  %v3201_v62 = vmul.f32 %v2415_v0, %v1269_v61  ;;  %v3713_v8 = vrot.slane %v1269_v61, 3 }
 0x34e   :  { %v756_v2 = vadd.f32 %v8516_v42, %v755_v26  ;;  %v2549_v61 = vsel %vm2524_vm8, %v2546_v10, %v2548_v16  ;;  %v2421_v38 = vsel %vm2392_vm7, %v2418_v37, %v2420_v54  ;;  %v11513_v37 = vld [vmem:[#allocation45_spill] sm:$0xff] }
 0x34f   :  { %v8540_v18 = vpop.f32.mrf.mxu1  ;;  %v1610_v49 = vmul.f32 %v11499_v50, %v1460_v29  ;;  %v2197_v9 = vrot.slane %v2132_v52, 1  ;;  %v3267_v32 = vrot.slane %v3201_v62, 2  ;;  %v8544_v63 = vsel %vm2748_vm3, %v3711_v40, %v3713_v8  ;;  %v11510_v52 = vld [vmem:[#allocation85_spill] sm:$0xff] }
 0x350   :  { %11507 = vst [vmem:[#allocation78_spill] sm:$0xff] %v8544_v63  ;;  %v881_v46 = vmax.f32 %v756_v2, 0.0  ;;  %v2550_v40 = vrot.slane %v2481_v58, 2  ;;  %v11511_v2 = vld [vmem:[#allocation87_spill] sm:$0xff]  ;;  %v2422_v63 = vrot.slane %v11514_v33, 6 }
 0x351   :  { %6417 = vmatmul.msk.f32.gmra.mxu2 %vm1811_vm4, %v1610_v49  ;;  %v2198_v0 = vsel %vm1759_vm6, %v2195_v19, %v2197_v9  ;;  %v8552_v26 = vsel %vm2524_vm8, %v3265_v27, %v3267_v32 }
 0x352   :  { %v1270_v50 = vrot.slane %v881_v46, 5  ;;  %6441 = vmatmul.msk.f32.gmra.mxu3 %vm1811_vm4, %v2198_v0  ;;  %6466 = vmatmul.msk.f32.gmra.mxu1 %vm1811_vm4, %v2549_v61 }
 0x354   :  { %v1271_v29 = vsel %vm969_vm2, %v1268_v5, %v1270_v50  ;;  %v2482_v5 = vmul.f32 %v2421_v38, %v11513_v37 }
 0x355   :  { %v758_v47 = vpop.f32.mrf.mxu0  ;;  %v1461_v62 = vmul.f32 %v11510_v52, %v1271_v29  ;;  %v2133_v19 = vmul.f32 %v11511_v2, %v1271_v29  ;;  %v3202_v49 = vmul.f32 %v2417_v20, %v1271_v29  ;;  %v3715_v10 = vrot.slane %v1271_v29, 3 }
 0x356   :  { %v759_v27 = vadd.f32 %v8516_v42, %v758_v47  ;;  %v2551_v29 = vsel %vm2524_vm8, %v2548_v16, %v2550_v40 }
 0x357   :  { %v8561_v43 = vpop.f32.mrf.mxu1  ;;  %v1611_v46 = vmul.f32 %v11504_v23, %v1461_v62  ;;  %v2199_v0 = vrot.slane %v2133_v19, 1  ;;  %v3269_v61 = vrot.slane %v3202_v49, 2  ;;  %v8565_v58 = vsel %vm2748_vm3, %v3713_v8, %v3715_v10  ;;  %v11515_v49 = vld [vmem:[#allocation89_spill] sm:$0xff] }
 0x358   :  { %11512 = vst [vmem:[#allocation80_spill] sm:$0xff] %v8565_v58  ;;  %v882_v52 = vmax.f32 %v759_v27, 0.0  ;;  %v2552_v8 = vrot.slane %v2482_v5, 2  ;;  %v2423_v62 = vsel %vm2392_vm7, %v2420_v54, %v2422_v63  ;;  %v11518_v54 = vld [vmem:[#allocation47_spill] sm:$0xff] }
 0x359   :  { %6418 = vmatmul.msk.f32.gmra.mxu2 %vm1811_vm4, %v1611_v46  ;;  %v2200_v20 = vsel %vm1759_vm6, %v2197_v9, %v2199_v0  ;;  %v8573_v47 = vsel %vm2524_vm8, %v3267_v32, %v3269_v61  ;;  %v11516_v46 = vld [vmem:[#allocation91_spill] sm:$0xff] }
 0x35a   :  { %v1272_v23 = vrot.slane %v882_v52, 5  ;;  %6442 = vmatmul.msk.f32.gmra.mxu3 %vm1811_vm4, %v2200_v20  ;;  %6467 = vmatmul.msk.f32.gmra.mxu1 %vm1811_vm4, %v2551_v29 }
 0x35c   :  { %v1273_v2 = vsel %vm969_vm2, %v1270_v50, %v1272_v23  ;;  %v2483_v50 = vmul.f32 %v2423_v62, %v11518_v54 }
 0x35d   :  { %v761_v19 = vpop.f32.mrf.mxu0  ;;  %v1462_v27 = vmul.f32 %v11515_v49, %v1273_v2  ;;  %v2134_v9 = vmul.f32 %v11516_v46, %v1273_v2  ;;  %v3203_v37 = vmul.f32 %v2419_v36, %v1273_v2  ;;  %v3717_v16 = vrot.slane %v1273_v2, 3 }
 0x35e   :  { %v762_v32 = vadd.f32 %v8516_v42, %v761_v19  ;;  %v2553_v2 = vsel %vm2524_vm8, %v2550_v40, %v2552_v8 }
 0x35f   :  { %v8582_v58 = vpop.f32.mrf.mxu1  ;;  %v1612_v52 = vmul.f32 %v11509_v55, %v1462_v27  ;;  %v2201_v20 = vrot.slane %v2134_v9, 1  ;;  %v3271_v29 = vrot.slane %v3203_v37, 2  ;;  %v8586_v5 = vsel %vm2748_vm3, %v3715_v10, %v3717_v16  ;;  %v11520_v37 = vld [vmem:[#allocation93_spill] sm:$0xff] }
 0x360   :  { %11517 = vst [vmem:[#allocation41_spill] sm:$0xff] %v8586_v5  ;;  %v883_v49 = vmax.f32 %v762_v32, 0.0  ;;  %v2554_v10 = vrot.slane %v2483_v50, 2  ;;  %v2425_v27 = vsel %vm2392_vm7, %v2422_v63, %v2424_v21  ;;  %v11524_v63 = vld [vmem:[#allocation49_spill] sm:$0xff] }
 0x361   :  { %6419 = vmatmul.msk.f32.gmra.mxu2 %vm1811_vm4, %v1612_v52  ;;  %v2202_v36 = vsel %vm1759_vm6, %v2199_v0, %v2201_v20  ;;  %v8594_v19 = vsel %vm2524_vm8, %v3269_v61, %v3271_v29  ;;  %v11521_v52 = vld [vmem:[#allocation95_spill] sm:$0xff] }
 0x362   :  { %v1274_v55 = vrot.slane %v883_v49, 5  ;;  %6443 = vmatmul.msk.f32.gmra.mxu3 %vm1811_vm4, %v2202_v36  ;;  %6468 = vmatmul.msk.f32.gmra.mxu1 %vm1811_vm4, %v2553_v2 }
 0x364   :  { %v1275_v46 = vsel %vm969_vm2, %v1272_v23, %v1274_v55  ;;  %v2484_v23 = vmul.f32 %v2425_v27, %v11524_v63 }
 0x365   :  { %v764_v9 = vpop.f32.mrf.mxu0  ;;  %v1463_v32 = vmul.f32 %v11520_v37, %v1275_v46  ;;  %v2135_v0 = vmul.f32 %v11521_v52, %v1275_v46  ;;  %v3204_v54 = vmul.f32 %v2421_v38, %v1275_v46  ;;  %v3719_v40 = vrot.slane %v1275_v46, 3 }
 0x366   :  { %v765_v61 = vadd.f32 %v8516_v42, %v764_v9  ;;  %v2555_v46 = vsel %vm2524_vm8, %v2552_v8, %v2554_v10 }
 0x367   :  { %v8603_v5 = vpop.f32.mrf.mxu1  ;;  %v1613_v49 = vmul.f32 %v11514_v33, %v1463_v32  ;;  %v2203_v36 = vrot.slane %v2135_v0, 1  ;;  %v3273_v2 = vrot.slane %v3204_v54, 2  ;;  %v8607_v50 = vsel %vm2748_vm3, %v3717_v16, %v3719_v40  ;;  %v11526_v54 = vld [vmem:[#allocation97_spill] sm:$0xff] }
 0x368   :  { %11522 = vst [vmem:[#allocation88_spill] sm:$0xff] %v8603_v5  ;;  %v884_v37 = vmax.f32 %v765_v61, 0.0  ;;  %v2556_v16 = vrot.slane %v2484_v23, 2  ;;  %v2427_v32 = vsel %vm2392_vm7, %v2424_v21, %v2426_v41  ;;  %v11530_v21 = vld [vmem:[#allocation51_spill] sm:$0xff] }
 0x369   :  { %11523 = vst [vmem:[#allocation81_spill] sm:$0xff] %v8607_v50  ;;  %6420 = vmatmul.msk.f32.gmra.mxu2 %vm1811_vm4, %v1613_v49  ;;  %v2204_v38 = vsel %vm1759_vm6, %v2201_v20, %v2203_v36  ;;  %v8615_v9 = vsel %vm2524_vm8, %v3271_v29, %v3273_v2  ;;  %v11527_v49 = vld [vmem:[#allocation99_spill] sm:$0xff] }
 0x36a   :  { %v1276_v33 = vrot.slane %v884_v37, 5  ;;  %6444 = vmatmul.msk.f32.gmra.mxu3 %vm1811_vm4, %v2204_v38  ;;  %6469 = vmatmul.msk.f32.gmra.mxu1 %vm1811_vm4, %v2555_v46 }
 0x36c   :  { %v1277_v52 = vsel %vm969_vm2, %v1274_v55, %v1276_v33  ;;  %v2485_v55 = vmul.f32 %v2427_v32, %v11530_v21 }
 0x36d   :  { %v767_v0 = vpop.f32.mrf.mxu0  ;;  %v1464_v61 = vmul.f32 %v11526_v54, %v1277_v52  ;;  %v2136_v20 = vmul.f32 %v11527_v49, %v1277_v52  ;;  %v3205_v63 = vmul.f32 %v2423_v62, %v1277_v52  ;;  %v3721_v8 = vrot.slane %v1277_v52, 3 }
 0x36e   :  { %v768_v29 = vadd.f32 %v8516_v42, %v767_v0  ;;  %v2557_v62 = vsel %vm2524_vm8, %v2554_v10, %v2556_v16  ;;  %v11531_v0 = vld [vmem:[#allocation109_spill] sm:$0xff] }
 0x36f   :  { %v8624_v50 = vpop.f32.mrf.mxu1  ;;  %v1614_v37 = vmul.f32 %v11519_v13, %v1464_v61  ;;  %v2205_v38 = vrot.slane %v2136_v20, 1  ;;  %v3275_v46 = vrot.slane %v3205_v63, 2  ;;  %v8628_v23 = vsel %vm2748_vm3, %v3719_v40, %v3721_v8  ;;  %v8640_v61 = vpop.f32.mrf.mxu2 }
 0x370   :  { %11528 = vst [vmem:[#allocation83_spill] sm:$0xff] %v8624_v50  ;;  %v885_v59 = vmax.f32 %v768_v29, 0.0  ;;  %v2428_v49 = vrot.slane %v11531_v0, 6  ;;  %v2558_v40 = vrot.slane %v2485_v55, 2  ;;  %v11533_v29 = vld [vmem:[#allocation101_spill] sm:$0xff] }
 0x371   :  { %11529 = vst [vmem:[#allocation43_spill] sm:$0xff] %v8628_v23  ;;  %6421 = vmatmul.msk.f32.gmra.mxu2 %vm1811_vm4, %v1614_v37  ;;  %v2206_v54 = vsel %vm1759_vm6, %v2203_v36, %v2205_v38  ;;  %v8635_v52 = vsel %vm2524_vm8, %v3273_v2, %v3275_v46  ;;  %v11534_v37 = vld [vmem:[#allocation103_spill] sm:$0xff] }
 0x372   :  { %v1278_v13 = vrot.slane %v885_v59, 5  ;;  %6445 = vmatmul.msk.f32.gmra.mxu3 %vm1811_vm4, %v2206_v54  ;;  %6470 = vmatmul.msk.f32.gmra.mxu1 %vm1811_vm4, %v2557_v62  ;;  %11532 = vst [vmem:[#allocation92_spill] sm:$0xff] %v8640_v61  ;;  %v2429_v23 = vsel %vm2392_vm7, %v2426_v41, %v2428_v49  ;;  %v2559_v41 = vsel %vm2524_vm8, %v2556_v16, %v2558_v40 }
 0x374   :  { %v1279_v20 = vsel %vm969_vm2, %v1276_v33, %v1278_v13 }
 0x375   :  { %v770_v63 = vpop.f32.mrf.mxu0  ;;  %v1465_v36 = vmul.f32 %v11533_v29, %v1279_v20  ;;  %v2137_v10 = vmul.f32 %v11534_v37, %v1279_v20  ;;  %v3206_v21 = vmul.f32 %v2425_v27, %v1279_v20  ;;  %v3723_v2 = vrot.slane %v1279_v20, 3 }
 0x376   :  { %v771_v59 = vadd.f32 %v8516_v42, %v770_v63  ;;  %v2486_v29 = vmul.f32 %v2429_v23, %v11537_v34  ;;  %v11539_v63 = vld [vmem:[#allocation114_spill] sm:$0xff] }
 0x377   :  { %v8647_v30 = vpop.f32.mrf.mxu1  ;;  %v1615_v54 = vmul.f32 %v11525_v4, %v1465_v36  ;;  %v2207_v55 = vrot.slane %v2137_v10, 1  ;;  %v3277_v62 = vrot.slane %v3206_v21, 2  ;;  %v8651_v25 = vsel %vm2748_vm3, %v3721_v8, %v3723_v2  ;;  %v11540_v21 = vld [vmem:[#allocation105_spill] sm:$0xff] }
 0x378   :  { %11535 = vst [vmem:[#allocation85_spill] sm:$0xff] %v8647_v30  ;;  %v886_v33 = vmax.f32 %v771_v59, 0.0  ;;  %v2430_v37 = vrot.slane %v11539_v63, 6  ;;  %v2560_v34 = vrot.slane %v2486_v29, 2  ;;  %v11543_v29 = vld [vmem:[#allocation55_spill] sm:$0xff] }
 0x379   :  { %11536 = vst [vmem:[#allocation87_spill] sm:$0xff] %v8651_v25  ;;  %6422 = vmatmul.msk.f32.gmra.mxu2 %vm1811_vm4, %v1615_v54  ;;  %v2208_v27 = vsel %vm1759_vm6, %v2205_v38, %v2207_v55  ;;  %v8658_v20 = vsel %vm2524_vm8, %v3275_v46, %v3277_v62  ;;  %v11541_v38 = vld [vmem:[#allocation108_spill] sm:$0xff] }
 0x37a   :  { %11538 = vst [vmem:[#allocation45_spill] sm:$0xff] %v8658_v20  ;;  %v1280_v4 = vrot.slane %v886_v33, 5  ;;  %6446 = vmatmul.msk.f32.gmra.mxu3 %vm1811_vm4, %v2208_v27  ;;  %6471 = vmatmul.msk.f32.gmra.mxu1 %vm1811_vm4, %v2559_v41  ;;  %v2431_v46 = vsel %vm2392_vm7, %v2428_v49, %v2430_v37  ;;  %v2561_v49 = vsel %vm2524_vm8, %v2558_v40, %v2560_v34  ;;  %v11547_v40 = vld [vmem:[#allocation110_spill] sm:$0xff] }
 0x37b   :  { %v8673_v61 = vmul.f32 %v2431_v46, %v11543_v29 }
 0x37c   :  { %v1281_v8 = vsel %vm969_vm2, %v1278_v13, %v1280_v4  ;;  %v2049_v36 = vpop.f32.mrf.mxu2 }
 0x37d   :  { %v773_v10 = vpop.f32.mrf.mxu0  ;;  %v1466_v59 = vmul.f32 %v11540_v21, %v1281_v8  ;;  %v2138_v54 = vmul.f32 %v11541_v38, %v1281_v8  ;;  %v3207_v16 = vmul.f32 %v2427_v32, %v1281_v8  ;;  %v3725_v28 = vrot.slane %v1281_v8, 3 }
 0x37e   :  { %v774_v25 = vadd.f32 %v8516_v42, %v773_v10  ;;  %v11545_v10 = vld [vmem:[#allocation119_spill] sm:$0xff] }
 0x37f   :  { %v2646_v33 = vpop.f32.mrf.mxu1  ;;  %v1616_v27 = vmul.f32 %v11531_v0, %v1466_v59  ;;  %v2209_v39 = vrot.slane %v2138_v54, 1  ;;  %v3279_v41 = vrot.slane %v3207_v16, 2  ;;  %v8670_v13 = vsel %vm2748_vm3, %v3723_v2, %v3725_v28 }
 0x380   :  { %v887_v30 = vmax.f32 %v774_v25, 0.0  ;;  %11542 = vst [vmem:[#allocation96_spill] sm:$0xff] %v8670_v13  ;;  %v2432_v0 = vrot.slane %v11545_v10, 6  ;;  %v11546_v25 = vld [vmem:[#allocation111_spill] sm:$0xff]  ;;  %v2562_v54 = vrot.slane %v8673_v61, 2 }
 0x381   :  { %6423 = vmatmul.msk.f32.gmra.mxu2 %vm1811_vm4, %v1616_v27  ;;  %v2210_v32 = vsel %vm1759_vm6, %v2207_v55, %v2209_v39  ;;  %v8679_v8 = vsel %vm2524_vm8, %v3277_v62, %v3279_v41  ;;  %v2050_v2 = vadd.f32 %v2049_v36, %v11546_v25  ;;  %v11548_v62 = vld [vmem:[#allocation113_spill] sm:$0xff] }
 0x382   :  { %11544 = vst [vmem:[#allocation89_spill] sm:$0xff] %v8679_v8  ;;  %v1282_v21 = vrot.slane %v887_v30, 5  ;;  %6447 = vmatmul.msk.f32.gmra.mxu3 %vm1811_vm4, %v2210_v32  ;;  %6472 = vmatmul.msk.f32.gmra.mxu1 %vm1811_vm4, %v2561_v49  ;;  %v2433_v30 = vsel %vm2392_vm7, %v2430_v37, %v2432_v0  ;;  %v2563_v37 = vsel %vm2524_vm8, %v2560_v34, %v2562_v54  ;;  %v11555_v34 = vld [vmem:[#allocation115_spill] sm:$0xff] }
 0x384   :  { %v1283_v59 = vsel %vm969_vm2, %v1280_v4, %v1282_v21  ;;  %v2052_v38 = vpop.f32.mrf.mxu2 }
 0x385   :  { %v776_v55 = vpop.f32.mrf.mxu0  ;;  %v2295_v16 = vpop.f32.mrf.mxu3  ;;  %v1467_v27 = vmul.f32 %v11547_v40, %v1283_v59  ;;  %v2139_v29 = vmul.f32 %v11548_v62, %v1283_v59  ;;  %v3208_v13 = vmul.f32 %v2429_v23, %v1283_v59  ;;  %v3727_v49 = vrot.slane %v1283_v59, 3  ;;  %v11551_v40 = vld [vmem:[#allocation57_spill] sm:$0xff] }
 0x386   :  { %v777_v32 = vadd.f32 %v8516_v42, %v776_v55  ;;  %v2368_v8 = vadd.f32 %v2295_v16, %v2050_v2  ;;  %v8698_v62 = vmul.f32 %v2433_v30, %v11551_v40 }
 0x387   :  { %v2649_v50 = vpop.f32.mrf.mxu1  ;;  %v1617_v36 = vmul.f32 %v11539_v63, %v1467_v27  ;;  %v2211_v4 = vrot.slane %v2139_v29, 1  ;;  %v3281_v25 = vrot.slane %v3208_v13, 2  ;;  %v8695_v5 = vsel %vm2748_vm3, %v3725_v28, %v3727_v49  ;;  %v11553_v63 = vld [vmem:[#allocation124_spill] sm:$0xff] }
 0x388   :  { %v888_v20 = vmax.f32 %v777_v32, 0.0  ;;  %v8692_v61 = vadd.f32 %v2646_v33, %v2368_v8  ;;  %11550 = vst [vmem:[#allocation47_spill] sm:$0xff] %v8695_v5  ;;  %v2434_v13 = vrot.slane %v11553_v63, 6  ;;  %v11554_v28 = vld [vmem:[#allocation116_spill] sm:$0xff]  ;;  %v2564_v16 = vrot.slane %v8698_v62, 2 }
 0x389   :  { %6424 = vmatmul.msk.f32.gmra.mxu2 %vm1811_vm4, %v1617_v36  ;;  %v2212_v23 = vsel %vm1759_vm6, %v2209_v39, %v2211_v4  ;;  %v8704_v2 = vsel %vm2524_vm8, %v3279_v41, %v3281_v25  ;;  %v2053_v33 = vadd.f32 %v2052_v38, %v11554_v28  ;;  %v11556_v41 = vld [vmem:[#allocation118_spill] sm:$0xff] }
 0x38a   :  { %11549 = vst [vmem:[#allocation91_spill] sm:$0xff] %v8692_v61  ;;  %v1284_v59 = vrot.slane %v888_v20, 5  ;;  %6448 = vmatmul.msk.f32.gmra.mxu3 %vm1811_vm4, %v2212_v23  ;;  %6473 = vmatmul.msk.f32.gmra.mxu1 %vm1811_vm4, %v2563_v37  ;;  %v8715_v20 = vsel %vm2392_vm7, %v2432_v0, %v2434_v13 }
 0x38b   :  { %11552 = vst [vmem:[#allocation100_spill] sm:$0xff] %v8704_v2 }
 0x38c   :  { %v1285_v8 = vsel %vm969_vm2, %v1282_v21, %v1284_v59  ;;  %v2055_v55 = vpop.f32.mrf.mxu2 }
 0x38d   :  { %v779_v39 = vpop.f32.mrf.mxu0  ;;  %v2298_v27 = vpop.f32.mrf.mxu3  ;;  %v1468_v29 = vmul.f32 %v11555_v34, %v1285_v8  ;;  %v2140_v32 = vmul.f32 %v11556_v41, %v1285_v8  ;;  %v3209_v36 = vmul.f32 %v2431_v46, %v1285_v8  ;;  %v3729_v37 = vrot.slane %v1285_v8, 3  ;;  %v11559_v41 = vld [vmem:[#allocation59_spill] sm:$0xff]  ;;  %v11561_v8 = vld [vmem:[#allocation129_spill] sm:$0xff] }
 0x38e   :  { %v780_v40 = vadd.f32 %v8516_v42, %v779_v39  ;;  %v2369_v23 = vadd.f32 %v2298_v27, %v2053_v33  ;;  %v8726_v46 = vmul.f32 %v8715_v20, %v11559_v41  ;;  %v2565_v33 = vsel %vm2524_vm8, %v2562_v54, %v2564_v16 }
 0x38f   :  { %v2652_v38 = vpop.f32.mrf.mxu1  ;;  %v1618_v21 = vmul.f32 %v11545_v10, %v1468_v29  ;;  %v2213_v28 = vrot.slane %v2140_v32, 1  ;;  %v3283_v5 = vrot.slane %v3209_v36, 2  ;;  %v8722_v34 = vsel %vm2748_vm3, %v3727_v49, %v3729_v37  ;;  %v11562_v49 = vld [vmem:[#allocation121_spill] sm:$0xff] }
 0x390   :  { %v889_v62 = vmax.f32 %v780_v40, 0.0  ;;  %v8719_v61 = vadd.f32 %v2649_v50, %v2369_v23  ;;  %11558 = vst [vmem:[#allocation95_spill] sm:$0xff] %v8722_v34  ;;  %v2436_v39 = vrot.slane %v11561_v8, 6  ;;  %v2056_v27 = vadd.f32 %v2055_v55, %v11562_v49  ;;  %v11564_v23 = vld [vmem:[#allocation123_spill] sm:$0xff] }
 0x391   :  { %6425 = vmatmul.msk.f32.gmra.mxu2 %vm1811_vm4, %v1618_v21  ;;  %v2214_v0 = vsel %vm1759_vm6, %v2211_v4, %v2213_v28  ;;  %v8732_v10 = vsel %vm2524_vm8, %v3281_v25, %v3283_v5  ;;  %v11563_v25 = vld [vmem:[#allocation120_spill] sm:$0xff] }
 0x392   :  { %11557 = vst [vmem:[#allocation93_spill] sm:$0xff] %v8719_v61  ;;  %v1286_v50 = vrot.slane %v889_v62, 5  ;;  %6449 = vmatmul.msk.f32.gmra.mxu3 %vm1811_vm4, %v2214_v0  ;;  %6474 = vmatmul.msk.f32.gmra.mxu1 %vm1811_vm4, %v2565_v33  ;;  %v8752_v55 = vsel %vm2392_vm7, %v2434_v13, %v2436_v39  ;;  %v8756_v33 = vpop.permute.xlu2 %1590  ;;  %v11567_v61 = vld [vmem:[#allocation61_spill] sm:$0xff] }
 0x393   :  { %11560 = vst [vmem:[#allocation49_spill] sm:$0xff] %v8732_v10 }
 0x394   :  { %v8739_v29 = vsel %vm969_vm2, %v1284_v59, %v1286_v50  ;;  %v2058_v32 = vpop.f32.mrf.mxu2 }
 0x395   :  { %v782_v36 = vpop.f32.mrf.mxu0  ;;  %v2301_v54 = vpop.f32.mrf.mxu3  ;;  %v1469_v40 = vmul.f32 %v11563_v25, %v8739_v29  ;;  %v8746_v21 = vmul.f32 %v11564_v23, %v8739_v29  ;;  %v8749_v62 = vmul.f32 %v2433_v30, %v8739_v29  ;;  %v3731_v0 = vrot.slane %v8739_v29, 3 }
 0x396   :  { %v783_v59 = vadd.f32 %v8516_v42, %v782_v36  ;;  %v2370_v41 = vadd.f32 %v2301_v54, %v2056_v27  ;;  %v8768_v27 = vmul.f32 %v8752_v55, %v11567_v61  ;;  %v11341_v61 = vrot.slane %v8756_v33, 6 }
 0x397   :  { %v2655_v49 = vpop.f32.mrf.mxu1  ;;  %v1619_v25 = vmul.f32 %v11553_v63, %v1469_v40  ;;  %v2215_v4 = vrot.slane %v8746_v21, 1  ;;  %v11340_v23 = vrot.slane %v8749_v62, 2  ;;  %v8764_v13 = vsel %vm2748_vm3, %v3729_v37, %v3731_v0  ;;  %v11570_v40 = vld [vmem:[#allocation126_spill] sm:$0xff] }
 0x398   :  { %v890_v34 = vmax.f32 %v783_v59, 0.0  ;;  %v8761_v30 = vadd.f32 %v2652_v38, %v2370_v41  ;;  %11566 = vst [vmem:[#allocation97_spill] sm:$0xff] %v8764_v13  ;;  %v11568_v63 = vrot.slane %v8726_v46, 2  ;;  %v2746_v38 = vld [vmem:[%s11402_s20 + $0x98] sm:$0xff]  ;;  %v2969_v41 = vld [vmem:[%s11402_s20 + $0xb0] sm:$0xff] }
 0x399   :  { %6426 = vmatmul.msk.f32.gmra.mxu2 %vm1811_vm4, %v1619_v25  ;;  %v2216_v29 = vsel %vm1759_vm6, %v2213_v28, %v2215_v4  ;;  %v8781_v37 = vsel %vm2524_vm8, %v3283_v5, %v11340_v23  ;;  %v3219_v28 = vld [vmem:[%s11402_s20 + $0xd8] sm:$0xff]  ;;  %v2745_v5 = vld [vmem:[%s11402_s20 + $0x90] sm:$0xff]  ;;  %v8817_v23 = vsel %vm2392_vm7, %v2436_v39, %v11341_v61 }
 0x39a   :  { %11565 = vst [vmem:[#allocation104_spill] sm:$0xff] %v8761_v30  ;;  %v2567_v36 = vsel %vm2524_vm8, %v2564_v16, %v11568_v63  ;;  %v1288_v54 = vrot.slane %v890_v34, 5  ;;  %6450 = vmatmul.msk.f32.gmra.mxu3 %vm1811_vm4, %v2216_v29  ;;  %v2970_v16 = vld [vmem:[%s11402_s20 + $0xb8] sm:$0xff]  ;;  %2862 = vmatpush.msra.mxu2 %v2746_v38  ;;  %v2059_v34 = vadd.f32 %v2058_v32, %v11570_v40  ;;  %v3218_v25 = vld [vmem:[%s11402_s20 + $0xd0] sm:$0xff]  ;;  %v11571_v38 = vld [vmem:[#allocation125_spill] sm:$0xff] }
 0x39b   :  { %11569 = vst [vmem:[#allocation99_spill] sm:$0xff] %v8781_v37  ;;  %6475 = vmatmul.msk.f32.gmra.mxu1 %vm1811_vm4, %v2567_v36  ;;  %3085 = vmatpush.msrb.mxu3 %v2970_v16 }
 0x39c   :  { %v8797_v21 = vsel %vm969_vm2, %v1286_v50, %v1288_v54  ;;  %v2061_v59 = vpop.f32.mrf.mxu2  ;;  %3359 = vmatpush.msra.mxu1 %v3219_v28  ;;  %v11572_v50 = vld [vmem:[#allocation128_spill] sm:$0xff]  ;;  %2863 = vmatpush.msra.mxu2 %v2745_v5  ;;  %v2744_v28 = vld [vmem:[%s11402_s20 + $0x88] sm:$0xff] }
 0x39d   :  { %v785_v63 = vpop.f32.mrf.mxu0  ;;  %v2304_v36 = vpop.f32.mrf.mxu3  ;;  %v1470_v32 = vmul.f32 %v11571_v38, %v8797_v21  ;;  %v2142_v16 = vmul.f32 %v11572_v50, %v8797_v21  ;;  %3086 = vmatpush.msrb.mxu3 %v2969_v41  ;;  %v3733_v40 = vrot.slane %v8797_v21, 3  ;;  %v2968_v5 = vld [vmem:[%s11402_s20 + $0xa8] sm:$0xff]  ;;  %v3211_v38 = vmul.f32 %v8715_v20, %v8797_v21  ;;  %v2967_v20 = vld [vmem:[%s11402_s20 + $0xa0] sm:$0xff] }
 0x39e   :  { %v786_v29 = vadd.f32 %v8516_v42, %v785_v63  ;;  %v2371_v13 = vadd.f32 %v2304_v36, %v2059_v34  ;;  %3360 = vmatpush.msra.mxu1 %v3218_v25  ;;  %v3217_v41 = vld [vmem:[%s11402_s20 + $0xc8] sm:$0xff]  ;;  %v8828_v50 = vpop.permute.xlu1 %1595  ;;  %2864 = vmatpush.msra.mxu2 %v2744_v28  ;;  %v2743_v63 = vld [vmem:[%s11402_s20 + $0x80] sm:$0xff]  ;;  %v11577_v28 = vrot.slane %v8726_v46, 2 }
 0x39f   :  { %v2658_v30 = vpop.f32.mrf.mxu1  ;;  %v1620_v39 = vmul.f32 %v11561_v8, %v1470_v32  ;;  %v2217_v61 = vrot.slane %v2142_v16, 1  ;;  %3087 = vmatpush.msrb.mxu3 %v2968_v5  ;;  %v8832_v34 = vsel %vm2748_vm3, %v3731_v0, %v3733_v40  ;;  %v3216_v8 = vld [vmem:[%s11402_s20 + $0xc0] sm:$0xff]  ;;  %v3287_v21 = vrot.slane %v3211_v38, 2  ;;  %v11575_v32 = vld [vmem:[#allocation63_spill] sm:$0xff] }
 0x3a0   :  { %11573 = vst [vmem:[#allocation51_spill] sm:$0xff] %v8832_v34  ;;  %v891_v25 = vmax.f32 %v786_v29, 0.0  ;;  %3361 = vmatpush.msra.mxu1 %v3217_v41  ;;  %v8843_v36 = vadd.f32 %v2655_v49, %v2371_v13  ;;  %v8847_v0 = vmul.f32 %v8817_v23, %v11575_v32  ;;  %v11576_v16 = vrot.slane %v8768_v27, 2  ;;  %2865 = vmatpush.msra.mxu2 %v2743_v63  ;;  %v11582_v34 = vld [vmem:[#allocation133_spill] sm:$0xff] }
 0x3a1   :  { %6427 = vmatmul.msk.f32.gmra.mxu2 %vm1811_vm4, %v1620_v39  ;;  %v2218_v29 = vsel %vm1759_vm6, %v2215_v4, %v2217_v61  ;;  %3088 = vmatpush.msrb.mxu3 %v2967_v20  ;;  %v8857_v41 = vrot.slane %v8828_v50, 6  ;;  %v11578_v13 = vrot.slane %v8749_v62, 2  ;;  %v11580_v4 = vld [vmem:[#allocation131_spill] sm:$0xff] }
 0x3a2   :  { %11574 = vst [vmem:[#allocation109_spill] sm:$0xff] %v8843_v36  ;;  %v2569_v5 = vsel %vm2524_vm8, %v11577_v28, %v11576_v16  ;;  %v1290_v49 = vrot.slane %v891_v25, 5  ;;  %6451 = vmatmul.msk.f32.gmra.mxu3 %vm1811_vm4, %v2218_v29  ;;  %3362 = vmatpush.msra.mxu1 %v3216_v8  ;;  %v2062_v46 = vadd.f32 %v2061_v59, %v11580_v4  ;;  %v2570_v32 = vrot.slane %v8847_v0, 2  ;;  %v11581_v28 = vld [vmem:[#allocation130_spill] sm:$0xff] }
 0x3a3   :  { %6476 = vmatmul.msk.f32.gmra.mxu1 %vm1811_vm4, %v2569_v5  ;;  %v8864_v38 = vsel %vm2524_vm8, %v11578_v13, %v3287_v21  ;;  %v11583_v13 = vrot.slane %v8756_v33, 6 }
 0x3a4   :  { %11579 = vst [vmem:[#allocation101_spill] sm:$0xff] %v8864_v38  ;;  %v1291_v39 = vsel %vm969_vm2, %v1288_v54, %v1290_v49  ;;  %v2064_v20 = vpop.f32.mrf.mxu2 }
 0x3a5   :  { %v788_v16 = vpop.f32.mrf.mxu0  ;;  %v2307_v25 = vpop.f32.mrf.mxu3  ;;  %v1471_v29 = vmul.f32 %v11581_v28, %v1291_v39  ;;  %v2143_v5 = vmul.f32 %v11582_v34, %v1291_v39  ;;  %v3212_v62 = vmul.f32 %v8752_v55, %v1291_v39  ;;  %v2441_v63 = vsel %vm2392_vm7, %v11583_v13, %v8857_v41  ;;  %v11586_v55 = vld [vmem:[#allocation66_spill] sm:$0xff] }
 0x3a6   :  { %v789_v59 = vadd.f32 %v8516_v42, %v788_v16  ;;  %v2372_v8 = vadd.f32 %v2307_v25, %v2062_v46  ;;  %v3735_v54 = vrot.slane %v1291_v39, 3  ;;  %v8884_v10 = vmul.f32 %v2441_v63, %v11586_v55 }
 0x3a7   :  { %v2661_v4 = vpop.f32.mrf.mxu1  ;;  %v1621_v0 = vmul.f32 %v8756_v33, %v1471_v29  ;;  %v2219_v36 = vrot.slane %v2143_v5, 1  ;;  %v3289_v38 = vrot.slane %v3212_v62, 2  ;;  %v11587_v46 = vrot.slane %v8768_v27, 2  ;;  %v11590_v29 = vld [vmem:[#allocation136_spill] sm:$0xff] }
 0x3a8   :  { %v892_v37 = vmax.f32 %v789_v59, 0.0  ;;  %v8878_v28 = vadd.f32 %v2658_v30, %v2372_v8  ;;  %v8881_v34 = vsel %vm2748_vm3, %v3733_v40, %v3735_v54  ;;  %v11589_v30 = vld [vmem:[#allocation6_spill] sm:$0xff]  ;;  %v2065_v5 = vadd.f32 %v2064_v20, %v11590_v29 }
 0x3a9   :  { %11585 = vst [vmem:[#allocation53_spill] sm:$0xff] %v8881_v34  ;;  %6428 = vmatmul.msk.f32.gmra.mxu2 %vm1811_vm4, %v1621_v0  ;;  %v2220_v16 = vsel %vm1759_vm6, %v2217_v61, %v2219_v36  ;;  %v2571_v39 = vsel %vm2524_vm8, %v11587_v46, %v2570_v32  ;;  %v8892_v33 = vsel %vm2524_vm8, %v3287_v21, %v3289_v38  ;;  %v2572_v27 = vrot.slane %v8884_v10, 2  ;;  %v11591_v8 = vld [vmem:[#allocation134_spill] sm:$0xff] }
 0x3aa   :  { %11584 = vst [vmem:[#allocation103_spill] sm:$0xff] %v8878_v28  ;;  %v1292_v25 = vrot.slane %v892_v37, 5  ;;  %6452 = vmatmul.msk.f32.gmra.mxu3 %vm1811_vm4, %v2220_v16  ;;  %v498_v40 = vadd.f32 %v8516_v42, %v11589_v30  ;;  %v11592_v0 = vld [vmem:[#allocation138_spill] sm:$0xff]  ;;  %v11593_v16 = vld [vmem:[#allocation5_spill] sm:$0xff] }
 0x3ab   :  { %11588 = vst [vmem:[#allocation114_spill] sm:$0xff] %v8892_v33  ;;  %6477 = vmatmul.msk.f32.gmra.mxu1 %vm1811_vm4, %v2571_v39  ;;  %v495_v46 = vadd.f32 %v8516_v42, %v11593_v16 }
 0x3ac   :  { %v1293_v62 = vsel %vm969_vm2, %v1290_v49, %v1292_v25  ;;  %v2067_v61 = vpop.f32.mrf.mxu2  ;;  %v795_v29 = vmax.f32 %v498_v40, 0.0  ;;  %v2573_v40 = vsel %vm2524_vm8, %v2570_v32, %v2572_v27 }
 0x3ad   :  { %v791_v13 = vpop.f32.mrf.mxu0  ;;  %v2310_v59 = vpop.f32.mrf.mxu3  ;;  %v1472_v21 = vmul.f32 %v11591_v8, %v1293_v62  ;;  %v2144_v37 = vmul.f32 %v11592_v0, %v1293_v62  ;;  %v3213_v55 = vmul.f32 %v8817_v23, %v1293_v62  ;;  %v3737_v20 = vrot.slane %v1293_v62, 3  ;;  %v11595_v23 = vld [vmem:[#allocation65_spill] sm:$0xff] }
 0x3ae   :  { %v792_v39 = vadd.f32 %v8516_v42, %v791_v13  ;;  %v2373_v30 = vadd.f32 %v2310_v59, %v2065_v5  ;;  %v2493_v0 = vmul.f32 %v8857_v41, %v11595_v23 }
 0x3af   :  { %v2664_v49 = vpop.f32.mrf.mxu1  ;;  %v1622_v34 = vmul.f32 %v8828_v50, %v1472_v21  ;;  %v2221_v10 = vrot.slane %v2144_v37, 1  ;;  %v3291_v28 = vrot.slane %v3213_v55, 2  ;;  %v8911_v8 = vsel %vm2748_vm3, %v3735_v54, %v3737_v20  ;;  %v11597_v21 = vld [vmem:[#allocation139_spill] sm:$0xff] }
 0x3b0   :  { %v893_v33 = vmax.f32 %v792_v39, 0.0  ;;  %v8908_v2 = vadd.f32 %v2661_v4, %v2373_v30  ;;  %11594 = vst [vmem:[#allocation105_spill] sm:$0xff] %v8911_v8  ;;  %v794_v50 = vmax.f32 %v495_v46, 0.0  ;;  %v971_v54 = vrot.slane %v795_v29, 5  ;;  %v11596_v4 = vld [vmem:[#allocation7_spill] sm:$0xff] }
 0x3b1   :  { %6429 = vmatmul.msk.f32.gmra.mxu2 %vm1811_vm4, %v1622_v34  ;;  %v2222_v5 = vsel %vm1759_vm6, %v2219_v36, %v2221_v10  ;;  %v8919_v62 = vsel %vm2524_vm8, %v3289_v38, %v3291_v28  ;;  %v501_v59 = vadd.f32 %v8516_v42, %v11596_v4  ;;  %v2068_v37 = vadd.f32 %v2067_v61, %v11597_v21  ;;  %v11598_v46 = vld [vmem:[#allocation135_spill] sm:$0xff]  ;;  %v11600_v21 = vld [vmem:[#allocation69_spill] sm:$0xff] }
 0x3b2   :  { %v1294_v13 = vrot.slane %v893_v33, 5  ;;  %6453 = vmatmul.msk.f32.gmra.mxu3 %vm1811_vm4, %v2222_v5  ;;  %v2574_v38 = vrot.slane %v2493_v0, 2  ;;  %v970_v23 = vrot.slane %v794_v50, 5 }
 0x3b3   :  { %6478 = vmatmul.msk.f32.gmra.mxu1 %vm1811_vm4, %v2573_v40  ;;  %v796_v0 = vmax.f32 %v501_v59, 0.0  ;;  %v11602_v59 = vld [vmem:[#allocation141_spill] sm:$0xff] }
 0x3b4   :  { %v1295_v34 = vsel %vm969_vm2, %v1292_v25, %v1294_v13  ;;  %v3215_v36 = vmul.f32 %v8857_v41, %v1294_v13  ;;  %v3741_v32 = vrot.slane %v1294_v13, 3  ;;  %v2070_v55 = vpop.f32.mrf.mxu2  ;;  %v972_v41 = vsel %vm969_vm2, %v970_v23, %v971_v54 }
 0x3b5   :  { %v2313_v16 = vpop.f32.mrf.mxu3  ;;  %v2145_v33 = vmul.f32 %v11598_v46, %v1295_v34  ;;  %v3214_v39 = vmul.f32 %v2441_v63, %v1295_v34  ;;  %v3739_v30 = vrot.slane %v1295_v34, 3  ;;  %v11599_v13 = vrot.slane %v8287_v48, 1 }
 0x3b6   :  { %v3295_v5 = vrot.slane %v3215_v36, 2  ;;  %v2374_v29 = vadd.f32 %v2313_v16, %v2068_v37  ;;  %v11601_v63 = vrot.slane %v11600_v21, 1  ;;  %v1020_v48 = vsel %vm969_vm2, 0.0, %v970_v23  ;;  %v11604_v23 = vld [vmem:[#allocation30_spill] sm:$0xff] }
 0x3b7   :  { %v2667_v40 = vpop.f32.mrf.mxu1  ;;  %v2223_v8 = vrot.slane %v2145_v33, 1  ;;  %v3293_v4 = vrot.slane %v3214_v39, 2  ;;  %v8930_v61 = vsel %vm2748_vm3, %v3737_v20, %v3739_v30  ;;  %v8933_v25 = vsel %vm2748_vm3, %v3739_v30, %v3741_v32 }
 0x3b8   :  { %v2176_v50 = vsel %vm1759_vm6, %v11601_v63, %v11599_v13  ;;  %v8941_v34 = vadd.f32 %v2664_v49, %v2374_v29  ;;  %v2575_v20 = vsel %vm2524_vm8, %v2572_v27, %v2574_v38  ;;  %v2750_v49 = vrot.slane %v972_v41, 3  ;;  %v11605_v41 = vld [vmem:[#allocation144_spill] sm:$0xff]  ;;  %v11606_v63 = vld [vmem:[#allocation9_spill] sm:$0xff] }
 0x3b9   :  { %6430 = vmatmul.msk.f32.vlgmr.msrb.gmra.mxu2 %vm1811_vm4, %v2176_v50  ;;  %v2224_v37 = vsel %vm1759_vm6, %v2221_v10, %v2223_v8  ;;  %v8947_v36 = vsel %vm2524_vm8, %v3291_v28, %v3293_v4  ;;  %v8950_v32 = vsel %vm2524_vm8, %v3293_v4, %v3295_v5  ;;  %v2071_v16 = vadd.f32 %v2070_v55, %v11602_v59  ;;  %v11603_v10 = vld [vmem:[#allocation8_spill] sm:$0xff] }
 0x3ba   :  { %6454 = vmatmul.msk.f32.gmra.mxu3 %vm1811_vm4, %v2224_v37  ;;  %v973_v33 = vrot.slane %v796_v0, 5  ;;  %v504_v27 = vadd.f32 %v8516_v42, %v11603_v10  ;;  %v2749_v28 = vrot.slane %v1020_v48, 3 }
 0x3bb   :  { %6479 = vmatmul.msk.f32.gmra.mxu1 %vm1811_vm4, %v2575_v20 }
 0x3bc   :  { %v2073_v46 = vpop.f32.mrf.mxu2  ;;  %v2751_v30 = vsel %vm2748_vm3, %v2749_v28, %v2750_v49  ;;  %v974_v29 = vsel %vm969_vm2, %v971_v54, %v973_v33  ;;  %v797_v4 = vmax.f32 %v504_v27, 0.0  ;;  %v11608_v28 = vld [vmem:[#allocation10_spill] sm:$0xff] }
 0x3bd   :  { %v2316_v8 = vpop.f32.mrf.mxu3  ;;  %v2752_v55 = vrot.slane %v974_v29, 3  ;;  %v2074_v0 = vadd.f32 %v2073_v46, %v11605_v41 }
 0x3be   :  { %v2375_v38 = vadd.f32 %v2316_v8, %v2071_v16  ;;  %v975_v21 = vrot.slane %v797_v4, 5 }
 0x3bf   :  { %v2670_v39 = vpop.f32.mrf.mxu1  ;;  %v2753_v20 = vsel %vm2748_vm3, %v2750_v49, %v2752_v55  ;;  %v510_v49 = vadd.f32 %v8516_v42, %v11608_v28 }
 0x3c0   :  { %v8959_v5 = vadd.f32 %v2667_v40, %v2375_v38  ;;  %v507_v40 = vadd.f32 %v8516_v42, %v11606_v63  ;;  %v976_v59 = vsel %vm969_vm2, %v973_v33, %v975_v21  ;;  %v11610_v63 = vld [vmem:[#allocation11_spill] sm:$0xff] }
 0x3c1   :  { %6480 = vmatmul.msk.f32.vlgmr.msra.gmra.mxu2 %vm1811_vm4, %v2751_v30  ;;  %v2754_v46 = vrot.slane %v976_v59, 3 }
 0x3c2   :  { %6505 = vmatmul.msk.f32.vlgmr.msrb.gmra.mxu3 %vm1811_vm4, %v11604_v23  ;;  %v798_v16 = vmax.f32 %v507_v40, 0.0  ;;  %v799_v23 = vmax.f32 %v510_v49, 0.0 }
 0x3c3   :  { %6530 = vmatmul.msk.f32.vlgmr.msra.gmra.mxu1 %vm1811_vm4, %v8313_v45  ;;  %v11607_v45 = vld [vmem:[#allocation31_spill] sm:$0xff]  ;;  %v2755_v30 = vsel %vm2748_vm3, %v2752_v55, %v2754_v46  ;;  %v513_v55 = vadd.f32 %v8516_v42, %v11610_v63 }
 0x3c4   :  { %v2076_v13 = vpop.f32.mrf.mxu2  ;;  %v977_v8 = vrot.slane %v798_v16, 5 }
 0x3c5   :  { %v2319_v50 = vpop.f32.mrf.mxu3  ;;  %v2077_v10 = vadd.f32 %v2076_v13, %v8298_v22  ;;  %v979_v13 = vrot.slane %v799_v23, 5  ;;  %v800_v59 = vmax.f32 %v513_v55, 0.0 }
 0x3c6   :  { %v2376_v37 = vadd.f32 %v2319_v50, %v2074_v0  ;;  %v978_v4 = vsel %vm969_vm2, %v975_v21, %v977_v8 }
 0x3c7   :  { %v2673_v54 = vpop.f32.mrf.mxu1  ;;  %v2756_v22 = vrot.slane %v978_v4, 3 }
 0x3c8   :  { %v8971_v48 = vadd.f32 %v2670_v39, %v2376_v37 }
 0x3c9   :  { %6481 = vmatmul.msk.f32.gmra.mxu2 %vm1811_vm4, %v2753_v20  ;;  %v2757_v37 = vsel %vm2748_vm3, %v2754_v46, %v2756_v22  ;;  %v980_v20 = vsel %vm969_vm2, %v977_v8, %v979_v13 }
 0x3ca   :  { %6506 = vmatmul.msk.f32.gmra.mxu3 %vm1811_vm4, %v11607_v45 }
 0x3cb   :  { %6531 = vmatmul.msk.f32.gmra.mxu1 %vm1811_vm4, %v8338_v7  ;;  %v11609_v7 = vld [vmem:[#allocation32_spill] sm:$0xff] }
 0x3cc   :  { %v2079_v27 = vpop.f32.mrf.mxu2 }
 0x3cd   :  { %v2322_v38 = vpop.f32.mrf.mxu3  ;;  %v2080_v41 = vadd.f32 %v2079_v27, %v8325_v11  ;;  %v2758_v11 = vrot.slane %v980_v20, 3  ;;  %v11612_v27 = vld [vmem:[#allocation12_spill] sm:$0xff] }
 0x3ce   :  { %v2377_v39 = vadd.f32 %v2322_v38, %v2077_v10  ;;  %v981_v10 = vrot.slane %v800_v59, 5  ;;  %v516_v46 = vadd.f32 %v8516_v42, %v11612_v27  ;;  %v9031_v59 = vld [vmem:[%s11373_s25] ss:$0 sm:$0xff] }
 0x3cf   :  { %v2676_v33 = vpop.f32.mrf.mxu1  ;;  %v2759_v38 = vsel %vm2748_vm3, %v2756_v22, %v2758_v11 }
 0x3d0   :  { %v8983_v29 = vadd.f32 %v2673_v54, %v2377_v39 }
 0x3d1   :  { %6482 = vmatmul.msk.f32.gmra.mxu2 %vm1811_vm4, %v2755_v30  ;;  %v801_v30 = vmax.f32 %v516_v46, 0.0 }
 0x3d2   :  { %6507 = vmatmul.msk.f32.gmra.mxu3 %vm1811_vm4, %v11609_v7 }
 0x3d3   :  { %6532 = vmatmul.msk.f32.gmra.mxu1 %vm1811_vm4, %v8363_v6  ;;  %v11611_v6 = vld [vmem:[#allocation33_spill] sm:$0xff]  ;;  %v983_v7 = vrot.slane %v801_v30, 5  ;;  %v11618_v30 = vld [vmem:[#allocation15_spill] sm:$0xff] }
 0x3d4   :  { %v2082_v0 = vpop.f32.mrf.mxu2 }
 0x3d5   :  { %v2325_v40 = vpop.f32.mrf.mxu3  ;;  %v2083_v16 = vadd.f32 %v2082_v0, %v8350_v24 }
 0x3d6   :  { %v2378_v50 = vadd.f32 %v2325_v40, %v2080_v41  ;;  %v11614_v41 = vld [vmem:[#allocation13_spill] sm:$0xff] }
 0x3d7   :  { %v2679_v21 = vpop.f32.mrf.mxu1  ;;  %v519_v22 = vadd.f32 %v8516_v42, %v11614_v41 }
 0x3d8   :  { %v8995_v54 = vadd.f32 %v2676_v33, %v2378_v50  ;;  %v982_v33 = vsel %vm969_vm2, %v979_v13, %v981_v10  ;;  %v984_v50 = vsel %vm969_vm2, %v981_v10, %v983_v7 }
 0x3d9   :  { %6483 = vmatmul.msk.f32.gmra.mxu2 %vm1811_vm4, %v2757_v37  ;;  %v2760_v24 = vrot.slane %v982_v33, 3 }
 0x3da   :  { %6508 = vmatmul.msk.f32.gmra.mxu3 %vm1811_vm4, %v11611_v6  ;;  %v11616_v6 = vld [vmem:[#allocation14_spill] sm:$0xff] }
 0x3db   :  { %6533 = vmatmul.msk.f32.gmra.mxu1 %vm1811_vm4, %v8388_v44  ;;  %v11613_v44 = vld [vmem:[#allocation34_spill] sm:$0xff]  ;;  %v2761_v55 = vsel %vm2748_vm3, %v2758_v11, %v2760_v24  ;;  %v522_v11 = vadd.f32 %v9031_v59, %v11616_v6 }
 0x3dc   :  { %v2085_v45 = vpop.f32.mrf.mxu2 }
 0x3dd   :  { %v2328_v28 = vpop.f32.mrf.mxu3  ;;  %v2086_v4 = vadd.f32 %v2085_v45, %v8375_v57  ;;  %v2762_v57 = vrot.slane %v984_v50, 3  ;;  %v11620_v50 = vld [vmem:[#allocation16_spill] sm:$0xff] }
 0x3de   :  { %v2379_v49 = vadd.f32 %v2328_v28, %v2083_v16  ;;  %v11617_v28 = vld [vmem:[#allocation36_spill] sm:$0xff] }
 0x3df   :  { %v2682_v8 = vpop.f32.mrf.mxu1  ;;  %v2763_v27 = vsel %vm2748_vm3, %v2760_v24, %v2762_v57 }
 0x3e0   :  { %v9007_v39 = vadd.f32 %v2679_v21, %v2379_v49  ;;  %v802_v21 = vmax.f32 %v519_v22, 0.0 }
 0x3e1   :  { %6484 = vmatmul.msk.f32.gmra.mxu2 %vm1811_vm4, %v2759_v38 }
 0x3e2   :  { %6509 = vmatmul.msk.f32.gmra.mxu3 %vm1811_vm4, %v11613_v44  ;;  %v985_v20 = vrot.slane %v802_v21, 5  ;;  %v525_v44 = vadd.f32 %v9031_v59, %v11618_v30  ;;  %v528_v21 = vadd.f32 %v9031_v59, %v11620_v50 }
 0x3e3   :  { %6534 = vmatmul.msk.f32.gmra.mxu1 %vm1811_vm4, %v8413_v15  ;;  %v11615_v15 = vld [vmem:[#allocation35_spill] sm:$0xff] }
 0x3e4   :  { %v2088_v23 = vpop.f32.mrf.mxu2 }
 0x3e5   :  { %v2331_v0 = vpop.f32.mrf.mxu3  ;;  %v2089_v42 = vadd.f32 %v2088_v23, %v8400_v35  ;;  %v803_v35 = vmax.f32 %v522_v11, 0.0  ;;  %v805_v11 = vmax.f32 %v528_v21, 0.0 }
 0x3e6   :  { %v2380_v63 = vadd.f32 %v2331_v0, %v2086_v4  ;;  %v804_v0 = vmax.f32 %v525_v44, 0.0 }
 0x3e7   :  { %v2685_v13 = vpop.f32.mrf.mxu1  ;;  %v987_v33 = vrot.slane %v803_v35, 5 }
 0x3e8   :  { %v9019_v40 = vadd.f32 %v2682_v8, %v2380_v63 }
 0x3e9   :  { %6485 = vmatmul.msk.f32.gmra.mxu2 %vm1811_vm4, %v2761_v55  ;;  %v988_v22 = vsel %vm969_vm2, %v985_v20, %v987_v33  ;;  %v989_v55 = vrot.slane %v804_v0, 5 }
 0x3ea   :  { %6510 = vmatmul.msk.f32.gmra.mxu3 %vm1811_vm4, %v11615_v15 }
 0x3eb   :  { %6535 = vmatmul.msk.f32.gmra.mxu1 %vm1811_vm4, %v8438_v31  ;;  %v986_v31 = vsel %vm969_vm2, %v983_v7, %v985_v20  ;;  %v990_v6 = vsel %vm969_vm2, %v987_v33, %v989_v55 }
 0x3ec   :  { %v2091_v37 = vpop.f32.mrf.mxu2  ;;  %v2764_v49 = vrot.slane %v986_v31, 3 }
 0x3ed   :  { %v2334_v16 = vpop.f32.mrf.mxu3  ;;  %v2092_v8 = vadd.f32 %v2091_v37, %v8425_v3  ;;  %v2766_v3 = vrot.slane %v988_v22, 3 }
 0x3ee   :  { %v2381_v45 = vadd.f32 %v2334_v16, %v2089_v42  ;;  %v2765_v7 = vsel %vm2748_vm3, %v2762_v57, %v2764_v49 }
 0x3ef   :  { %v2688_v10 = vpop.f32.mrf.mxu1  ;;  %v2767_v37 = vsel %vm2748_vm3, %v2764_v49, %v2766_v3 }
 0x3f0   :  { %v9036_v46 = vadd.f32 %v2685_v13, %v2381_v45 }
 0x3f1   :  { %6486 = vmatmul.msk.f32.gmra.mxu2 %vm1811_vm4, %v2763_v27  ;;  %v11622_v27 = vld [vmem:[#allocation17_spill] sm:$0xff] }
 0x3f2   :  { %6511 = vmatmul.msk.f32.gmra.mxu3 %vm1811_vm4, %v11617_v28  ;;  %v531_v31 = vadd.f32 %v9031_v59, %v11622_v27 }
 0x3f3   :  { %6536 = vmatmul.msk.f32.gmra.mxu1 %vm1811_vm4, %v8463_v17  ;;  %v11619_v17 = vld [vmem:[#allocation37_spill] sm:$0xff] }
 0x3f4   :  { %v2094_v38 = vpop.f32.mrf.mxu2  ;;  %v806_v30 = vmax.f32 %v531_v31, 0.0 }
 0x3f5   :  { %v2337_v24 = vpop.f32.mrf.mxu3  ;;  %v2095_v63 = vadd.f32 %v2094_v38, %v8450_v60  ;;  %v2768_v60 = vrot.slane %v990_v6, 3 }
 0x3f6   :  { %v2382_v4 = vadd.f32 %v2337_v24, %v2092_v8 }
 0x3f7   :  { %v2691_v23 = vpop.f32.mrf.mxu1  ;;  %v2769_v8 = vsel %vm2748_vm3, %v2766_v3, %v2768_v60 }
 0x3f8   :  { %v9048_v41 = vadd.f32 %v2688_v10, %v2382_v4  ;;  %v991_v10 = vrot.slane %v805_v11, 5  ;;  %v993_v4 = vrot.slane %v806_v30, 5 }
 0x3f9   :  { %6487 = vmatmul.msk.f32.gmra.mxu2 %vm1811_vm4, %v2765_v7 }
 0x3fa   :  { %6512 = vmatmul.msk.f32.gmra.mxu3 %vm1811_vm4, %v11619_v17  ;;  %v992_v33 = vsel %vm969_vm2, %v989_v55, %v991_v10 }
 0x3fb   :  { %6537 = vmatmul.msk.f32.gmra.mxu1 %vm1811_vm4, %v8484_v51  ;;  %v11621_v51 = vld [vmem:[#allocation38_spill] sm:$0xff] }
 0x3fc   :  { %v2097_v13 = vpop.f32.mrf.mxu2 }
 0x3fd   :  { %v2340_v15 = vpop.f32.mrf.mxu3  ;;  %v2098_v16 = vadd.f32 %v2097_v13, %v8472_v56  ;;  %v2770_v56 = vrot.slane %v992_v33, 3  ;;  %v994_v13 = vsel %vm969_vm2, %v991_v10, %v993_v4 }
 0x3fe   :  { %v2383_v57 = vadd.f32 %v2340_v15, %v2095_v63 }
 0x3ff   :  { %v2694_v42 = vpop.f32.mrf.mxu1  ;;  %v2771_v3 = vsel %vm2748_vm3, %v2768_v60, %v2770_v56 }
 0x400   :  { %v9060_v20 = vadd.f32 %v2691_v23, %v2383_v57  ;;  %v11624_v23 = vld [vmem:[#allocation18_spill] sm:$0xff]  ;;  %v11626_v57 = vld [vmem:[#allocation19_spill] sm:$0xff] }
 0x401   :  { %6488 = vmatmul.msk.f32.gmra.mxu2 %vm1811_vm4, %v2767_v37  ;;  %v534_v7 = vadd.f32 %v9031_v59, %v11624_v23 }
 0x402   :  { %6513 = vmatmul.msk.f32.gmra.mxu3 %vm1811_vm4, %v11621_v51 }
 0x403   :  { %6538 = vmatmul.msk.f32.gmra.mxu1 %vm1811_vm4, %v8505_v53  ;;  %v11623_v53 = vld [vmem:[#allocation39_spill] sm:$0xff]  ;;  %v807_v55 = vmax.f32 %v534_v7, 0.0  ;;  %v11630_v7 = vld [vmem:[#allocation21_spill] sm:$0xff] }
 0x404   :  { %v2100_v45 = vpop.f32.mrf.mxu2 }
 0x405   :  { %v2343_v35 = vpop.f32.mrf.mxu3  ;;  %v2101_v44 = vadd.f32 %v2100_v45, %v8493_v14  ;;  %v2772_v14 = vrot.slane %v994_v13, 3  ;;  %v995_v15 = vrot.slane %v807_v55, 5 }
 0x406   :  { %v2384_v28 = vadd.f32 %v2343_v35, %v2098_v16  ;;  %v11628_v35 = vld [vmem:[#allocation20_spill] sm:$0xff] }
 0x407   :  { %v2697_v49 = vpop.f32.mrf.mxu1  ;;  %v2773_v51 = vsel %vm2748_vm3, %v2770_v56, %v2772_v14  ;;  %v996_v16 = vsel %vm969_vm2, %v993_v4, %v995_v15 }
 0x408   :  { %v9072_v38 = vadd.f32 %v2694_v42, %v2384_v28  ;;  %v537_v42 = vadd.f32 %v9031_v59, %v11626_v57  ;;  %v540_v28 = vadd.f32 %v9031_v59, %v11628_v35  ;;  %v11632_v57 = vld [vmem:[#allocation22_spill] sm:$0xff]  ;;  %v11635_v35 = vld [vmem:[#allocation23_spill] sm:$0xff] }
 0x409   :  { %6489 = vmatmul.msk.f32.gmra.mxu2 %vm1811_vm4, %v2769_v8 }
 0x40a   :  { %6514 = vmatmul.msk.f32.gmra.mxu3 %vm1811_vm4, %v11623_v53  ;;  %v808_v45 = vmax.f32 %v537_v42, 0.0  ;;  %v546_v42 = vadd.f32 %v9031_v59, %v11632_v57 }
 0x40b   :  { %6539 = vmatmul.msk.f32.gmra.mxu1 %vm1811_vm4, %v8531_v1  ;;  %v11625_v1 = vld [vmem:[#allocation40_spill] sm:$0xff] }
 0x40c   :  { %v2103_v24 = vpop.f32.mrf.mxu2  ;;  %v997_v31 = vrot.slane %v808_v45, 5  ;;  %v811_v45 = vmax.f32 %v546_v42, 0.0  ;;  %v11642_v42 = vld [vmem:[#allocation52_spill] sm:$0xff] }
 0x40d   :  { %v2346_v22 = vpop.f32.mrf.mxu3  ;;  %v2104_v50 = vadd.f32 %v2103_v24, %v8519_v12  ;;  %v2774_v12 = vrot.slane %v996_v16, 3 }
 0x40e   :  { %v2385_v0 = vadd.f32 %v2346_v22, %v2101_v44  ;;  %v998_v56 = vsel %vm969_vm2, %v995_v15, %v997_v31  ;;  %v809_v44 = vmax.f32 %v540_v28, 0.0  ;;  %v543_v22 = vadd.f32 %v9031_v59, %v11630_v7 }
 0x40f   :  { %v2700_v17 = vpop.f32.mrf.mxu1  ;;  %v2775_v30 = vsel %vm2748_vm3, %v2772_v14, %v2774_v12  ;;  %v11631_v14 = vld [vmem:[#allocation46_spill] sm:$0xff]  ;;  %v549_v28 = vadd.f32 %v9031_v59, %v11635_v35 }
 0x410   :  { %v9084_v63 = vadd.f32 %v2697_v49, %v2385_v0  ;;  %v999_v23 = vrot.slane %v809_v44, 5 }
 0x411   :  { %6490 = vmatmul.msk.f32.gmra.mxu2 %vm1811_vm4, %v2771_v3  ;;  %v812_v44 = vmax.f32 %v549_v28, 0.0 }
 0x412   :  { %6515 = vmatmul.msk.f32.gmra.mxu3 %vm1811_vm4, %v11625_v1  ;;  %v1000_v55 = vsel %vm969_vm2, %v997_v31, %v999_v23  ;;  %v810_v1 = vmax.f32 %v543_v22, 0.0  ;;  %v1003_v31 = vrot.slane %v811_v45, 5  ;;  %v11639_v22 = vld [vmem:[#allocation24_spill] sm:$0xff] }
 0x413   :  { %6540 = vmatmul.msk.f32.gmra.mxu1 %vm1811_vm4, %v8552_v26  ;;  %v11627_v26 = vld [vmem:[#allocation42_spill] sm:$0xff]  ;;  %v1005_v7 = vrot.slane %v812_v44, 5 }
 0x414   :  { %v2106_v21 = vpop.f32.mrf.mxu2  ;;  %v1001_v15 = vrot.slane %v810_v1, 5 }
 0x415   :  { %v2349_v37 = vpop.f32.mrf.mxu3  ;;  %v2107_v10 = vadd.f32 %v2106_v21, %v8540_v18  ;;  %v2776_v18 = vrot.slane %v998_v56, 3 }
 0x416   :  { %v2386_v6 = vadd.f32 %v2349_v37, %v2104_v50  ;;  %v1002_v16 = vsel %vm969_vm2, %v999_v23, %v1001_v15  ;;  %v1004_v56 = vsel %vm969_vm2, %v1001_v15, %v1003_v31  ;;  %v1006_v15 = vsel %vm969_vm2, %v1003_v31, %v1005_v7 }
 0x417   :  { %v2777_v3 = vsel %vm2748_vm3, %v2774_v12, %v2776_v18 }
 0x418   :  { %v2703_v11 = vpop.f32.mrf.mxu1  ;;  %v9096_v60 = vadd.f32 %v2700_v17, %v2386_v6 }
 0x419   :  { %6491 = vmatmul.msk.f32.gmra.mxu2 %vm1811_vm4, %v2773_v51 }
 0x41a   :  { %6516 = vmatmul.msk.f32.gmra.mxu3 %vm1811_vm4, %v11627_v26  ;;  %v11634_v26 = vld [vmem:[#allocation88_spill] sm:$0xff] }
 0x41b   :  { %6541 = vmatmul.msk.f32.gmra.mxu1 %vm1811_vm4, %v8573_v47  ;;  %v11629_v47 = vld [vmem:[#allocation44_spill] sm:$0xff] }
 0x41c   :  { %v2109_v27 = vpop.f32.mrf.mxu2 }
 0x41d   :  { %v2352_v49 = vpop.f32.mrf.mxu3  ;;  %v2110_v24 = vadd.f32 %v2109_v27, %v8561_v43  ;;  %v2778_v43 = vrot.slane %v1000_v55, 3 }
 0x41e   :  { %v2387_v8 = vadd.f32 %v2352_v49, %v2107_v10 }
 0x420   :  { %v2706_v33 = vpop.f32.mrf.mxu1  ;;  %v9108_v53 = vadd.f32 %v2703_v11, %v2387_v8  ;;  %v2779_v11 = vsel %vm2748_vm3, %v2776_v18, %v2778_v43  ;;  %v2782_v18 = vrot.slane %v1004_v56, 3  ;;  %v11647_v56 = vld [vmem:[#allocation100_spill] sm:$0xff] }
 0x421   :  { %6492 = vmatmul.msk.f32.gmra.mxu2 %vm1811_vm4, %v2775_v30 }
 0x422   :  { %6517 = vmatmul.msk.f32.gmra.mxu3 %vm1811_vm4, %v11629_v47  ;;  %v11637_v47 = vld [vmem:[#allocation45_spill] sm:$0xff] }
 0x423   :  { %6542 = vmatmul.msk.f32.gmra.mxu1 %vm1811_vm4, %v8594_v19 }
 0x424   :  { %v2112_v4 = vpop.f32.mrf.mxu2 }
 0x425   :  { %v2355_v0 = vpop.f32.mrf.mxu3  ;;  %v2113_v50 = vadd.f32 %v2112_v4, %v8582_v58  ;;  %v2780_v58 = vrot.slane %v1002_v16, 3  ;;  %v2784_v16 = vrot.slane %v1006_v15, 3 }
 0x426   :  { %v2388_v17 = vadd.f32 %v2355_v0, %v2110_v24  ;;  %v11638_v24 = vld [vmem:[#allocation83_spill] sm:$0xff]  ;;  %v552_v0 = vadd.f32 %v9031_v59, %v11639_v22 }
 0x427   :  { %v2785_v35 = vsel %vm2748_vm3, %v2782_v18, %v2784_v16 }
 0x428   :  { %v9120_v13 = vadd.f32 %v2706_v33, %v2388_v17  ;;  %v2709_v19 = vpop.f32.mrf.mxu1  ;;  %v2781_v33 = vsel %vm2748_vm3, %v2778_v43, %v2780_v58  ;;  %v11640_v17 = vld [vmem:[#allocation106_spill] sm:$0xff]  ;;  %v813_v57 = vmax.f32 %v552_v0, 0.0 }
 0x429   :  { %6493 = vmatmul.msk.f32.gmra.mxu2 %vm1811_vm4, %v2777_v3  ;;  %v11641_v3 = vld [vmem:[#allocation92_spill] sm:$0xff] }
 0x42a   :  { %6518 = vmatmul.msk.f32.gmra.mxu3 %vm1811_vm4, %v11631_v14  ;;  %v2047_v55 = vadd.f32 %v11641_v3, %v11640_v17 }
 0x42b   :  { %6543 = vmatmul.msk.f32.gmra.mxu1 %vm1811_vm4, %v8615_v9  ;;  %v11633_v9 = vld [vmem:[#allocation48_spill] sm:$0xff] }
 0x42c   :  { %v2115_v21 = vpop.f32.mrf.mxu2 }
 0x42d   :  { %v2358_v37 = vpop.f32.mrf.mxu3  ;;  %v2116_v12 = vadd.f32 %v2115_v21, %v11634_v26  ;;  %v11645_v26 = vld [vmem:[#allocation25_spill] sm:$0xff] }
 0x42e   :  { %v2389_v6 = vadd.f32 %v2358_v37, %v2113_v50  ;;  %v2783_v50 = vsel %vm2748_vm3, %v2780_v58, %v2782_v18  ;;  %v11643_v37 = vld [vmem:[#allocation89_spill] sm:$0xff]  ;;  %v555_v58 = vadd.f32 %v9031_v59, %v11645_v26  ;;  %v11649_v18 = vld [vmem:[#allocation91_spill] sm:$0xff]  ;;  %v11654_v26 = vld [vmem:[#allocation58_spill] sm:$0xff] }
 0x430   :  { %v9132_v51 = vadd.f32 %v2709_v19, %v2389_v6  ;;  %v2712_v10 = vpop.f32.mrf.mxu1  ;;  %v11644_v6 = vld [vmem:[#allocation85_spill] sm:$0xff] }
 0x431   :  { %6494 = vmatmul.msk.f32.gmra.mxu2 %vm1811_vm4, %v2779_v11 }
 0x432   :  { %6519 = vmatmul.msk.f32.gmra.mxu3 %vm1811_vm4, %v11633_v9  ;;  %v1007_v9 = vrot.slane %v813_v57, 5  ;;  %v11653_v57 = vld [vmem:[#allocation93_spill] sm:$0xff] }
 0x433   :  { %6544 = vmatmul.msk.f32.gmra.mxu1 %vm1811_vm4, %v8635_v52  ;;  %v11636_v52 = vld [vmem:[#allocation50_spill] sm:$0xff] }
 0x434   :  { %v2118_v27 = vpop.f32.mrf.mxu2  ;;  %v1008_v28 = vsel %vm969_vm2, %v1005_v7, %v1007_v9 }
 0x435   :  { %v2361_v49 = vpop.f32.mrf.mxu3  ;;  %v2119_v4 = vadd.f32 %v2118_v27, %v11638_v24  ;;  %v2786_v44 = vrot.slane %v1008_v28, 3  ;;  %v11648_v24 = vld [vmem:[#allocation26_spill] sm:$0xff] }
 0x436   :  { %v2390_v8 = vadd.f32 %v2361_v49, %v2116_v12  ;;  %v814_v49 = vmax.f32 %v555_v58, 0.0  ;;  %v11655_v58 = vld [vmem:[#allocation99_spill] sm:$0xff] }
 0x437   :  { %v2787_v0 = vsel %vm2748_vm3, %v2784_v16, %v2786_v44 }
 0x438   :  { %v9144_v30 = vadd.f32 %v2712_v10, %v2390_v8  ;;  %v2715_v19 = vpop.f32.mrf.mxu1 }
 0x439   :  { %6495 = vmatmul.msk.f32.gmra.mxu2 %vm1811_vm4, %v2781_v33  ;;  %v11646_v33 = vld [vmem:[#allocation54_spill] sm:$0xff] }
 0x43a   :  { %6520 = vmatmul.msk.f32.gmra.mxu3 %vm1811_vm4, %v11636_v52 }
 0x43b   :  { %6545 = vmatmul.msk.f32.gmra.mxu1 %vm1811_vm4, %v11637_v47  ;;  %v1009_v47 = vrot.slane %v814_v49, 5  ;;  %v11657_v49 = vld [vmem:[#allocation104_spill] sm:$0xff] }
 0x43c   :  { %v2292_v23 = vpop.f32.mrf.mxu2 }
 0x43d   :  { %v2364_v1 = vpop.f32.mrf.mxu3  ;;  %v2367_v43 = vadd.f32 %v2292_v23, %v2047_v55  ;;  %v1010_v17 = vsel %vm969_vm2, %v1007_v9, %v1009_v47  ;;  %v11650_v55 = vld [vmem:[#allocation56_spill] sm:$0xff] }
 0x43e   :  { %v2391_v14 = vadd.f32 %v2364_v1, %v2119_v4  ;;  %v558_v4 = vadd.f32 %v9031_v59, %v11648_v24  ;;  %v11651_v1 = vld [vmem:[#allocation49_spill] sm:$0xff] }
 0x43f   :  { %v2718_v11 = vadd.f32 %v11644_v6, %v2367_v43 }
 0x440   :  { %v9158_v21 = vadd.f32 %v2715_v19, %v2391_v14  ;;  %v3364_v31 = vpop.f32.mrf.mxu1  ;;  %v815_v3 = vmax.f32 %v558_v4, 0.0  ;;  %v2788_v19 = vrot.slane %v1010_v17, 3  ;;  %v11658_v4 = vld [vmem:[#allocation60_spill] sm:$0xff] }
 0x441   :  { %6496 = vmatmul.msk.f32.gmra.mxu2 %vm1811_vm4, %v2783_v50  ;;  %v11652_v50 = vld [vmem:[#allocation27_spill] sm:$0xff] }
 0x442   :  { %6521 = vmatmul.msk.f32.gmra.mxu3 %vm1811_vm4, %v11642_v42  ;;  %v1011_v43 = vrot.slane %v815_v3, 5  ;;  %v561_v15 = vadd.f32 %v9031_v59, %v11652_v50  ;;  %v2789_v16 = vsel %vm2748_vm3, %v2786_v44, %v2788_v19  ;;  %v11660_v3 = vld [vmem:[#allocation29_spill] sm:$0xff] }
 0x443   :  { %6546 = vmatmul.msk.f32.gmra.mxu1 %vm1811_vm4, %v11643_v37  ;;  %v3465_v50 = vld [vmem:[%s11402_s20 + $0xe8] sm:$0xff] }
 0x444   :  { %v2867_v45 = vpop.f32.mrf.mxu2  ;;  %v816_v9 = vmax.f32 %v561_v15, 0.0 }
 0x445   :  { %v2942_v12 = vadd.f32 %v2867_v45, %v2718_v11  ;;  %v3090_v10 = vpop.f32.mrf.mxu3  ;;  %v3467_v11 = vld [vmem:[%s11402_s20 + $0xf8] sm:$0xff]  ;;  %v1012_v45 = vsel %vm969_vm2, %v1009_v47, %v1011_v43 }
 0x446   :  { %3582 = vmatpush.msrb.mxu2 %v3467_v11 }
 0x447   :  { %v3165_v27 = vadd.f32 %v3090_v10, %v2942_v12  ;;  %v3690_v12 = vld [vmem:[%s11402_s20 + $0x118] sm:$0xff]  ;;  %v2790_v10 = vrot.slane %v1012_v45, 3  ;;  %v11662_v45 = vld [vmem:[#allocation62_spill] sm:$0xff] }
 0x448   :  { %3805 = vmatpush.msra.mxu3 %v3690_v12 }
 0x449   :  { %6497 = vmatmul.msk.f32.gmra.mxu2 %vm1811_vm4, %v2785_v35  ;;  %v9172_v8 = vadd.f32 %v3364_v31, %v3165_v27  ;;  %v1013_v31 = vrot.slane %v816_v9, 5  ;;  %v11656_v35 = vld [vmem:[#allocation28_spill] sm:$0xff]  ;;  %v11663_v9 = vld [vmem:[#allocation114_spill] sm:$0xff] }
 0x44a   :  { %6522 = vmatmul.msk.f32.gmra.mxu3 %vm1811_vm4, %v11646_v33  ;;  %v564_v28 = vadd.f32 %v9031_v59, %v11656_v35 }
 0x44b   :  { %6547 = vmatmul.msk.f32.gmra.mxu1 %vm1811_vm4, %v11647_v56  ;;  %v1014_v47 = vsel %vm969_vm2, %v1011_v43, %v1013_v31  ;;  %v3689_v43 = vld [vmem:[%s11402_s20 + $0x110] sm:$0xff] }
 0x44c   :  { %v2870_v52 = vpop.f32.mrf.mxu2  ;;  %v817_v24 = vmax.f32 %v564_v28, 0.0  ;;  %3806 = vmatpush.msra.mxu3 %v3689_v43  ;;  %v11668_v43 = vld [vmem:[#allocation70_spill] sm:$0xff] }
 0x44d   :  { %v2943_v23 = vadd.f32 %v2870_v52, %v11649_v18  ;;  %v3093_v7 = vpop.f32.mrf.mxu3  ;;  %v2791_v52 = vsel %vm2748_vm3, %v2788_v19, %v2790_v10  ;;  %v11659_v18 = vld [vmem:[#allocation101_spill] sm:$0xff] }
 0x44e   :  { %v1015_v17 = vrot.slane %v817_v24, 5 }
 0x44f   :  { %v9181_v22 = vadd.f32 %v3093_v7, %v2943_v23  ;;  %v2792_v23 = vrot.slane %v1014_v47, 3 }
 0x451   :  { %6498 = vmatmul.msk.f32.gmra.mxu2 %vm1811_vm4, %v2787_v0  ;;  %v3466_v0 = vld [vmem:[%s11402_s20 + $0xf0] sm:$0xff] }
 0x452   :  { %6523 = vmatmul.msk.f32.gmra.mxu3 %vm1811_vm4, %v11650_v55  ;;  %v567_v55 = vadd.f32 %v9031_v59, %v11660_v3  ;;  %3583 = vmatpush.msrb.mxu2 %v3466_v0  ;;  %v3688_v59 = vld [vmem:[%s11402_s20 + $0x108] sm:$0xff] }
 0x453   :  { %6548 = vmatmul.msk.f32.gmra.mxu1 %vm1811_vm4, %v11651_v1  ;;  %v11661_v1 = vld [vmem:[#allocation109_spill] sm:$0xff]  ;;  %3807 = vmatpush.msra.mxu3 %v3688_v59 }
 0x454   :  { %v2873_v14 = vpop.f32.mrf.mxu2  ;;  %3584 = vmatpush.msrb.mxu2 %v3465_v50  ;;  %v818_v11 = vmax.f32 %v567_v55, 0.0  ;;  %v11669_v50 = vld [vmem:[#allocation145_spill] sm:$0xff] }
 0x455   :  { %v2944_v42 = vadd.f32 %v2873_v14, %v11653_v57  ;;  %v3096_v37 = vpop.f32.mrf.mxu3  ;;  %v2793_v57 = vsel %vm2748_vm3, %v2790_v10, %v2792_v23  ;;  %v11664_v10 = vld [vmem:[#allocation103_spill] sm:$0xff] }
 0x456   :  { %v1017_v12 = vrot.slane %v818_v11, 5  ;;  %v11670_v11 = vld [vmem:[#allocation71_spill] sm:$0xff] }
 0x457   :  { %v9193_v6 = vadd.f32 %v3096_v37, %v2944_v42  ;;  %v3464_v42 = vld [vmem:[%s11402_s20 + $0xe0] sm:$0xff]  ;;  %v1016_v37 = vsel %vm969_vm2, %v1013_v31, %v1015_v17 }
 0x458   :  { %3585 = vmatpush.msrb.mxu2 %v3464_v42 }
 0x459   :  { %6499 = vmatmul.msk.f32.gmra.mxu2 %vm1811_vm4, %v2789_v16  ;;  %v3687_v16 = vld [vmem:[%s11402_s20 + $0x100] sm:$0xff] }
 0x45a   :  { %6524 = vmatmul.msk.f32.gmra.mxu3 %vm1811_vm4, %v11654_v26  ;;  %v2794_v26 = vrot.slane %v1016_v37, 3 }
 0x45b   :  { %6549 = vmatmul.msk.f32.gmra.mxu1 %vm1811_vm4, %v11655_v58  ;;  %3808 = vmatpush.msra.mxu3 %v3687_v16 }
 0x45c   :  { %v2876_v27 = vpop.f32.mrf.mxu2  ;;  %v2795_v28 = vsel %vm2748_vm3, %v2792_v23, %v2794_v26  ;;  %v11666_v23 = vld [vmem:[#allocation67_spill] sm:$0xff] }
 0x45d   :  { %v2945_v33 = vadd.f32 %v2876_v27, %v11657_v49  ;;  %v3099_v56 = vpop.f32.mrf.mxu3  ;;  %v1018_v49 = vsel %vm969_vm2, %v1015_v17, %v1017_v12 }
 0x45f   :  { %v9211_v44 = vadd.f32 %v3099_v56, %v2945_v33  ;;  %v11665_v33 = vld [vmem:[#allocation64_spill] sm:$0xff]  ;;  %v2796_v56 = vrot.slane %v1018_v49, 3 }
 0x461   :  { %6500 = vmatmul.msk.f32.gmra.mxu2 %vm1811_vm4, %v2791_v52 }
 0x462   :  { %6525 = vmatmul.msk.f32.gmra.mxu3 %vm1811_vm4, %v11658_v4 }
 0x463   :  { %6550 = vmatmul.msk.f32.gmra.mxu1 %vm1811_vm4, %v11659_v18  ;;  %v2797_v18 = vsel %vm2748_vm3, %v2794_v26, %v2796_v56  ;;  %v11672_v26 = vld [vmem:[#allocation72_spill] sm:$0xff] }
 0x464   :  { %v2879_v7 = vpop.f32.mrf.mxu2 }
 0x465   :  { %v2946_v19 = vadd.f32 %v2879_v7, %v11661_v1  ;;  %v3102_v14 = vpop.f32.mrf.mxu3  ;;  %v2798_v7 = vrot.slane %v1017_v12, 3  ;;  %v11667_v1 = vld [vmem:[#allocation68_spill] sm:$0xff] }
 0x467   :  { %v9232_v15 = vadd.f32 %v3102_v14, %v2946_v19  ;;  %v2799_v55 = vsel %vm2748_vm3, %v2796_v56, %v2798_v7  ;;  %v11678_v7 = vld [vmem:[#allocation75_spill] sm:$0xff] }
 0x469   :  { %6501 = vmatmul.msk.f32.gmra.mxu2 %vm1811_vm4, %v2793_v57 }
 0x46a   :  { %6526 = vmatmul.msk.f32.gmra.mxu3 %vm1811_vm4, %v11662_v45 }
 0x46b   :  { %6551 = vmatmul.msk.f32.gmra.mxu1 %vm1811_vm4, %v11663_v9 }
 0x46c   :  { %v2882_v58 = vpop.f32.mrf.mxu2 }
 0x46d   :  { %v2947_v27 = vadd.f32 %v2882_v58, %v11664_v10  ;;  %v3105_v31 = vpop.f32.mrf.mxu3  ;;  %v11673_v58 = vld [vmem:[#allocation147_spill] sm:$0xff] }
 0x46f   :  { %v9251_v35 = vadd.f32 %v3105_v31, %v2947_v27  ;;  %v11674_v31 = vld [vmem:[#allocation73_spill] sm:$0xff] }
 0x471   :  { %6502 = vmatmul.msk.f32.gmra.mxu2 %vm1811_vm4, %v2795_v28  ;;  %v11675_v28 = vld [vmem:[#allocation148_spill] sm:$0xff] }
 0x472   :  { %6527 = vmatmul.msk.f32.gmra.mxu3 %vm1811_vm4, %v11665_v33 }
 0x473   :  { %6552 = vmatmul.msk.f32.gmra.mxu1 %vm1811_vm4, %v8919_v62 }
 0x474   :  { %v2885_v52 = vpop.f32.mrf.mxu2 }
 0x475   :  { %v2948_v47 = vadd.f32 %v2885_v52, %v8908_v2  ;;  %v3108_v24 = vpop.f32.mrf.mxu3  ;;  %v4985_v2 = vld [vmem:[%s11264_s5 + $0x98] sm:$0xff]  ;;  %v11676_v52 = vld [vmem:[#allocation74_spill] sm:$0xff] }
 0x476   :  { %5026 = vmatpush.msrb.mxu0 %v4985_v2 }
 0x477   :  { %v9261_v4 = vadd.f32 %v3108_v24, %v2948_v47  ;;  %v11677_v47 = vld [vmem:[#allocation149_spill] sm:$0xff] }
 0x479   :  { %6503 = vmatmul.msk.f32.gmra.mxu2 %vm1811_vm4, %v2797_v18 }
 0x47a   :  { %6528 = vmatmul.msk.f32.gmra.mxu3 %vm1811_vm4, %v11666_v23 }
 0x47b   :  { %6553 = vmatmul.msk.f32.gmra.mxu1 %vm1811_vm4, %v8947_v36 }
 0x47c   :  { %v2888_v0 = vpop.f32.mrf.mxu2 }
 0x47d   :  { %v2949_v62 = vadd.f32 %v2888_v0, %v8941_v34  ;;  %v3111_v17 = vpop.f32.mrf.mxu3  ;;  %v11679_v0 = vld [vmem:[#allocation150_spill] sm:$0xff] }
 0x47f   :  { %v9270_v3 = vadd.f32 %v3111_v17, %v2949_v62 }
 0x481   :  { %6504 = vmatmul.msk.f32.gmra.mxu2 %vm1811_vm4, %v2799_v55  ;;  %v11680_v55 = vld [vmem:[#allocation76_spill] sm:$0xff] }
 0x482   :  { %6529 = vmatmul.msk.f32.gmra.mxu3 %vm1811_vm4, %v11667_v1  ;;  %v11681_v1 = vld [vmem:[#allocation151_spill] sm:$0xff] }
 0x483   :  { %6554 = vmatmul.msk.f32.gmra.mxu1 %vm1811_vm4, %v8950_v32  ;;  %v11671_v32 = vld [vmem:[#allocation146_spill] sm:$0xff] }
 0x484   :  { %v2891_v36 = vpop.f32.mrf.mxu2 }
 0x485   :  { %v2950_v34 = vadd.f32 %v2891_v36, %v8959_v5  ;;  %v3114_v19 = vpop.f32.mrf.mxu3 }
 0x487   :  { %v9282_v14 = vadd.f32 %v3114_v19, %v2950_v34 }
 0x489   :  { %6555 = vmatmul.msk.f32.vlgmr.msrb.gmra.mxu2 %vm1811_vm4, %v11668_v43  ;;  %v11682_v43 = vld [vmem:[#allocation77_spill] sm:$0xff] }
 0x48a   :  { %6580 = vmatmul.msk.f32.vlgmr.msra.gmra.mxu3 %vm1811_vm4, %v11669_v50  ;;  %v11683_v50 = vld [vmem:[#allocation152_spill] sm:$0xff] }
 0x48c   :  { %v2894_v59 = vpop.f32.mrf.mxu2 }
 0x48d   :  { %v2951_v57 = vadd.f32 %v2894_v59, %v8971_v48  ;;  %v3117_v42 = vpop.f32.mrf.mxu3 }
 0x48f   :  { %v9289_v37 = vadd.f32 %v3117_v42, %v2951_v57 }
 0x491   :  { %6556 = vmatmul.msk.f32.gmra.mxu2 %vm1811_vm4, %v11670_v11  ;;  %v11685_v11 = vld [vmem:[#allocation79_spill] sm:$0xff] }
 0x492   :  { %6581 = vmatmul.msk.f32.gmra.mxu3 %vm1811_vm4, %v11671_v32  ;;  %v11686_v32 = vld [vmem:[#allocation153_spill] sm:$0xff] }
 0x494   :  { %v2897_v5 = vpop.f32.mrf.mxu2 }
 0x495   :  { %v2952_v16 = vadd.f32 %v2897_v5, %v8983_v29  ;;  %v3120_v45 = vpop.f32.mrf.mxu3 }
 0x497   :  { %v9296_v9 = vadd.f32 %v3120_v45, %v2952_v16 }
 0x499   :  { %6557 = vmatmul.msk.f32.gmra.mxu2 %vm1811_vm4, %v11672_v26  ;;  %v11688_v26 = vld [vmem:[#allocation82_spill] sm:$0xff] }
 0x49a   :  { %6582 = vmatmul.msk.f32.gmra.mxu3 %vm1811_vm4, %v11673_v58  ;;  %v11689_v58 = vld [vmem:[#allocation84_spill] sm:$0xff] }
 0x49c   :  { %v2900_v48 = vpop.f32.mrf.mxu2 }
 0x49d   :  { %v2953_v12 = vadd.f32 %v2900_v48, %v8995_v54  ;;  %v3123_v10 = vpop.f32.mrf.mxu3 }
 0x49f   :  { %v9303_v27 = vadd.f32 %v3123_v10, %v2953_v12 }
 0x4a1   :  { %6558 = vmatmul.msk.f32.gmra.mxu2 %vm1811_vm4, %v11674_v31  ;;  %v11691_v31 = vld [vmem:[#allocation86_spill] sm:$0xff] }
 0x4a2   :  { %6583 = vmatmul.msk.f32.gmra.mxu3 %vm1811_vm4, %v11675_v28  ;;  %v11692_v28 = vld [vmem:[#allocation78_spill] sm:$0xff] }
 0x4a4   :  { %v2903_v29 = vpop.f32.mrf.mxu2 }
 0x4a5   :  { %v2954_v49 = vadd.f32 %v2903_v29, %v9007_v39  ;;  %v3126_v33 = vpop.f32.mrf.mxu3 }
 0x4a7   :  { %v9310_v56 = vadd.f32 %v3126_v33, %v2954_v49 }
 0x4a9   :  { %6559 = vmatmul.msk.f32.gmra.mxu2 %vm1811_vm4, %v11676_v52  ;;  %v11694_v52 = vld [vmem:[#allocation90_spill] sm:$0xff] }
 0x4aa   :  { %6584 = vmatmul.msk.f32.gmra.mxu3 %vm1811_vm4, %v11677_v47  ;;  %v11695_v47 = vld [vmem:[#allocation80_spill] sm:$0xff] }
 0x4ac   :  { %v2906_v54 = vpop.f32.mrf.mxu2 }
 0x4ad   :  { %v2955_v24 = vadd.f32 %v2906_v54, %v9019_v40  ;;  %v3129_v18 = vpop.f32.mrf.mxu3 }
 0x4af   :  { %v9317_v23 = vadd.f32 %v3129_v18, %v2955_v24 }
 0x4b1   :  { %6560 = vmatmul.msk.f32.gmra.mxu2 %vm1811_vm4, %v11678_v7 }
 0x4b2   :  { %6585 = vmatmul.msk.f32.gmra.mxu3 %vm1811_vm4, %v11679_v0  ;;  %v11698_v0 = vld [vmem:[#allocation94_spill] sm:$0xff] }
 0x4b4   :  { %v2909_v39 = vpop.f32.mrf.mxu2 }
 0x4b5   :  { %v2956_v62 = vadd.f32 %v2909_v39, %v9036_v46  ;;  %v3132_v17 = vpop.f32.mrf.mxu3 }
 0x4b7   :  { %v9324_v2 = vadd.f32 %v3132_v17, %v2956_v62 }
 0x4b9   :  { %6561 = vmatmul.msk.f32.gmra.mxu2 %vm1811_vm4, %v11680_v55 }
 0x4ba   :  { %6586 = vmatmul.msk.f32.gmra.mxu3 %vm1811_vm4, %v11681_v1 }
 0x4bc   :  { %v2912_v40 = vpop.f32.mrf.mxu2 }
 0x4bd   :  { %v2957_v36 = vadd.f32 %v2912_v40, %v9048_v41  ;;  %v3135_v34 = vpop.f32.mrf.mxu3  ;;  %v11701_v40 = vld [vmem:[#allocation98_spill] sm:$0xff] }
 0x4bf   :  { %v9331_v19 = vadd.f32 %v3135_v34, %v2957_v36 }
 0x4c1   :  { %6562 = vmatmul.msk.f32.gmra.mxu2 %vm1811_vm4, %v11682_v43 }
 0x4c2   :  { %6587 = vmatmul.msk.f32.gmra.mxu3 %vm1811_vm4, %v11683_v50 }
 0x4c4   :  { %v2915_v46 = vpop.f32.mrf.mxu2 }
 0x4c5   :  { %v2958_v59 = vadd.f32 %v2915_v46, %v9060_v20  ;;  %v3138_v57 = vpop.f32.mrf.mxu3 }
 0x4c7   :  { %v9338_v42 = vadd.f32 %v3138_v57, %v2958_v59  ;;  %v11705_v59 = vld [vmem:[#allocation43_spill] sm:$0xff] }
 0x4c9   :  { %11684 = vst [vmem:[#allocation108_spill] sm:$0xff] %v9338_v42  ;;  %6563 = vmatmul.msk.f32.gmra.mxu2 %vm1811_vm4, %v11685_v11 }
 0x4ca   :  { %6588 = vmatmul.msk.f32.gmra.mxu3 %vm1811_vm4, %v11686_v32 }
 0x4cc   :  { %v2918_v41 = vpop.f32.mrf.mxu2 }
 0x4cd   :  { %v2959_v5 = vadd.f32 %v2918_v41, %v9072_v38  ;;  %v3141_v16 = vpop.f32.mrf.mxu3 }
 0x4cf   :  { %v9345_v45 = vadd.f32 %v3141_v16, %v2959_v5  ;;  %v11707_v5 = vld [vmem:[#allocation107_spill] sm:$0xff] }
 0x4d0   :  { %v11708_v16 = vld [vmem:[#allocation87_spill] sm:$0xff] }
 0x4d1   :  { %11687 = vst [vmem:[#allocation55_spill] sm:$0xff] %v9345_v45  ;;  %6564 = vmatmul.msk.f32.gmra.mxu2 %vm1811_vm4, %v11688_v26 }
 0x4d2   :  { %6589 = vmatmul.msk.f32.gmra.mxu3 %vm1811_vm4, %v11689_v58 }
 0x4d4   :  { %v2921_v20 = vpop.f32.mrf.mxu2 }
 0x4d5   :  { %v2960_v48 = vadd.f32 %v2921_v20, %v9084_v63  ;;  %v3144_v12 = vpop.f32.mrf.mxu3  ;;  %v9365_v63 = vpop.f32.mrf.mxu1 }
 0x4d6   :  { %11696 = vst [vmem:[#allocation110_spill] sm:$0xff] %v9365_v63 }
 0x4d7   :  { %v9352_v10 = vadd.f32 %v3144_v12, %v2960_v48  ;;  %v11710_v12 = vld [vmem:[#allocation112_spill] sm:$0xff] }
 0x4d9   :  { %11690 = vst [vmem:[#allocation119_spill] sm:$0xff] %v9352_v10  ;;  %6565 = vmatmul.msk.f32.gmra.mxu2 %vm1811_vm4, %v11691_v31 }
 0x4da   :  { %6590 = vmatmul.msk.f32.gmra.mxu3 %vm1811_vm4, %v11692_v28 }
 0x4dc   :  { %v2924_v38 = vpop.f32.mrf.mxu2 }
 0x4dd   :  { %v2961_v29 = vadd.f32 %v2924_v38, %v9096_v60  ;;  %v3147_v49 = vpop.f32.mrf.mxu3  ;;  %v11699_v60 = vld [vmem:[#allocation41_spill] sm:$0xff]  ;;  %v9375_v55 = vpop.f32.mrf.mxu1 }
 0x4df   :  { %v9359_v33 = vadd.f32 %v3147_v49, %v2961_v29 }
 0x4e1   :  { %11693 = vst [vmem:[#allocation111_spill] sm:$0xff] %v9359_v33  ;;  %6566 = vmatmul.msk.f32.gmra.mxu2 %vm1811_vm4, %v11694_v52  ;;  %v11713_v52 = vld [vmem:[#allocation117_spill] sm:$0xff] }
 0x4e2   :  { %6591 = vmatmul.msk.f32.gmra.mxu3 %vm1811_vm4, %v11695_v47 }
 0x4e4   :  { %v2927_v54 = vpop.f32.mrf.mxu2 }
 0x4e5   :  { %v2962_v24 = vadd.f32 %v2927_v54, %v9108_v53  ;;  %v3150_v18 = vpop.f32.mrf.mxu3  ;;  %v11702_v53 = vld [vmem:[#allocation81_spill] sm:$0xff]  ;;  %v9386_v46 = vpop.f32.mrf.mxu1 }
 0x4e7   :  { %v9368_v7 = vadd.f32 %v3150_v18, %v2962_v24  ;;  %v11717_v18 = vld [vmem:[#allocation122_spill] sm:$0xff] }
 0x4e9   :  { %11697 = vst [vmem:[#allocation113_spill] sm:$0xff] %v9368_v7  ;;  %6567 = vmatmul.msk.f32.gmra.mxu2 %vm1811_vm4, %v11698_v0  ;;  %v11718_v0 = vld [vmem:[#allocation95_spill] sm:$0xff] }
 0x4ea   :  { %6592 = vmatmul.msk.f32.gmra.mxu3 %vm1811_vm4, %v11699_v60 }
 0x4ec   :  { %v2930_v39 = vpop.f32.mrf.mxu2 }
 0x4ed   :  { %v2963_v62 = vadd.f32 %v2930_v39, %v9120_v13  ;;  %v3153_v17 = vpop.f32.mrf.mxu3  ;;  %v11704_v13 = vld [vmem:[#allocation102_spill] sm:$0xff] }
 0x4ef   :  { %v9377_v1 = vadd.f32 %v3153_v17, %v2963_v62  ;;  %v11721_v62 = vld [vmem:[#allocation127_spill] sm:$0xff]  ;;  %v11722_v17 = vld [vmem:[#allocation97_spill] sm:$0xff] }
 0x4f1   :  { %11700 = vst [vmem:[#allocation57_spill] sm:$0xff] %v9377_v1  ;;  %6568 = vmatmul.msk.f32.gmra.mxu2 %vm1811_vm4, %v11701_v40 }
 0x4f2   :  { %6593 = vmatmul.msk.f32.gmra.mxu3 %vm1811_vm4, %v11702_v53 }
 0x4f4   :  { %v2933_v36 = vpop.f32.mrf.mxu2 }
 0x4f5   :  { %v2964_v34 = vadd.f32 %v2933_v36, %v9132_v51  ;;  %v3156_v43 = vpop.f32.mrf.mxu3  ;;  %v9397_v51 = vpop.f32.mrf.mxu1  ;;  %v11724_v36 = vld [vmem:[#allocation132_spill] sm:$0xff] }
 0x4f7   :  { %v9384_v50 = vadd.f32 %v3156_v43, %v2964_v34  ;;  %v11725_v43 = vld [vmem:[#allocation51_spill] sm:$0xff] }
 0x4f9   :  { %11703 = vst [vmem:[#allocation124_spill] sm:$0xff] %v9384_v50  ;;  %6569 = vmatmul.msk.f32.gmra.mxu2 %vm1811_vm4, %v11704_v13 }
 0x4fa   :  { %6594 = vmatmul.msk.f32.gmra.mxu3 %vm1811_vm4, %v11705_v59 }
 0x4fc   :  { %v2936_v57 = vpop.f32.mrf.mxu2 }
 0x4fd   :  { %v2965_v11 = vadd.f32 %v2936_v57, %v9144_v30  ;;  %v3159_v32 = vpop.f32.mrf.mxu3  ;;  %v11711_v30 = vld [vmem:[#allocation96_spill] sm:$0xff]  ;;  %v9408_v31 = vpop.f32.mrf.mxu1  ;;  %v11727_v57 = vld [vmem:[#allocation137_spill] sm:$0xff] }
 0x4ff   :  { %v9393_v41 = vadd.f32 %v3159_v32, %v2965_v11  ;;  %v11728_v11 = vld [vmem:[#allocation53_spill] sm:$0xff] }
 0x501   :  { %11706 = vst [vmem:[#allocation116_spill] sm:$0xff] %v9393_v41  ;;  %6570 = vmatmul.msk.f32.gmra.mxu2 %vm1811_vm4, %v11707_v5 }
 0x502   :  { %6595 = vmatmul.msk.f32.gmra.mxu3 %vm1811_vm4, %v11708_v16 }
 0x504   :  { %v2939_v26 = vpop.f32.mrf.mxu2 }
 0x505   :  { %v2966_v58 = vadd.f32 %v2939_v26, %v9158_v21  ;;  %v3162_v20 = vpop.f32.mrf.mxu3  ;;  %v11714_v21 = vld [vmem:[#allocation47_spill] sm:$0xff]  ;;  %v9421_v24 = vpop.f32.mrf.mxu1  ;;  %v11729_v26 = vld [vmem:[#allocation140_spill] sm:$0xff] }
 0x507   :  { %v9402_v48 = vadd.f32 %v3162_v20, %v2966_v58  ;;  %v11730_v58 = vld [vmem:[#allocation105_spill] sm:$0xff] }
 0x509   :  { %11709 = vst [vmem:[#allocation115_spill] sm:$0xff] %v9402_v48  ;;  %6571 = vmatmul.msk.f32.gmra.mxu2 %vm1811_vm4, %v11710_v12 }
 0x50a   :  { %6596 = vmatmul.msk.f32.gmra.mxu3 %vm1811_vm4, %v11711_v30 }
 0x50c   :  { %v3587_v28 = vpop.f32.mrf.mxu2 }
 0x50d   :  { %v3662_v38 = vadd.f32 %v3587_v28, %v9172_v8  ;;  %v3810_v29 = vpop.f32.mrf.mxu3  ;;  %v9431_v39 = vpop.f32.mrf.mxu1  ;;  %v11731_v28 = vld [vmem:[#allocation142_spill] sm:$0xff] }
 0x50f   :  { %v9411_v49 = vadd.f32 %v3810_v29, %v3662_v38 }
 0x511   :  { %11712 = vst [vmem:[#allocation118_spill] sm:$0xff] %v9411_v49  ;;  %6572 = vmatmul.msk.f32.gmra.mxu2 %vm1811_vm4, %v11713_v52 }
 0x512   :  { %6597 = vmatmul.msk.f32.gmra.mxu3 %vm1811_vm4, %v11714_v21  ;;  %v11732_v21 = vld [vmem:[#allocation143_spill] sm:$0xff] }
 0x514   :  { %v9417_v47 = vpop.f32.mrf.mxu2 }
 0x515   :  { %11715 = vst [vmem:[#allocation59_spill] sm:$0xff] %v9417_v47  ;;  %v9419_v54 = vpop.f32.mrf.mxu3  ;;  %v9443_v34 = vpop.f32.mrf.mxu1 }
 0x516   :  { %11716 = vst [vmem:[#allocation129_spill] sm:$0xff] %v9419_v54 }
 0x519   :  { %6573 = vmatmul.msk.f32.gmra.mxu2 %vm1811_vm4, %v11717_v18  ;;  %v4984_v18 = vld [vmem:[%s11264_s5 + $0x90] sm:$0xff] }
 0x51a   :  { %6598 = vmatmul.msk.f32.gmra.mxu3 %vm1811_vm4, %v11718_v0  ;;  %5027 = vmatpush.msrb.mxu0 %v4984_v18 }
 0x51c   :  { %v9427_v8 = vpop.f32.mrf.mxu2 }
 0x51d   :  { %11719 = vst [vmem:[#allocation121_spill] sm:$0xff] %v9427_v8  ;;  %v9429_v60 = vpop.f32.mrf.mxu3  ;;  %v3391_v32 = vpop.f32.mrf.mxu1 }
 0x51e   :  { %11720 = vst [vmem:[#allocation120_spill] sm:$0xff] %v9429_v60 }
 0x521   :  { %6574 = vmatmul.msk.f32.gmra.mxu2 %vm1811_vm4, %v11721_v62 }
 0x522   :  { %6599 = vmatmul.msk.f32.gmra.mxu3 %vm1811_vm4, %v11722_v17 }
 0x524   :  { %v9437_v40 = vpop.f32.mrf.mxu2 }
 0x525   :  { %v9439_v53 = vpop.f32.mrf.mxu3  ;;  %v3394_v30 = vpop.f32.mrf.mxu1 }
 0x526   :  { %11723 = vst [vmem:[#allocation123_spill] sm:$0xff] %v9439_v53 }
 0x529   :  { %6575 = vmatmul.msk.f32.gmra.mxu2 %vm1811_vm4, %v11724_v36 }
 0x52a   :  { %6600 = vmatmul.msk.f32.gmra.mxu3 %vm1811_vm4, %v11725_v43 }
 0x52c   :  { %v9447_v13 = vpop.f32.mrf.mxu2 }
 0x52d   :  { %v9449_v59 = vpop.f32.mrf.mxu3  ;;  %v3397_v52 = vpop.f32.mrf.mxu1 }
 0x52e   :  { %11726 = vst [vmem:[#allocation61_spill] sm:$0xff] %v9449_v59  ;;  %v3450_v47 = vadd.f32 %v3397_v52, %v9303_v27 }
 0x531   :  { %6576 = vmatmul.msk.f32.gmra.mxu2 %vm1811_vm4, %v11727_v57 }
 0x532   :  { %6601 = vmatmul.msk.f32.gmra.mxu3 %vm1811_vm4, %v11728_v11 }
 0x534   :  { %v9455_v5 = vpop.f32.mrf.mxu2 }
 0x535   :  { %v9457_v16 = vpop.f32.mrf.mxu3 }
 0x539   :  { %6577 = vmatmul.msk.f32.gmra.mxu2 %vm1811_vm4, %v11729_v26 }
 0x53a   :  { %6602 = vmatmul.msk.f32.gmra.mxu3 %vm1811_vm4, %v11730_v58 }
 0x53c   :  { %v9463_v20 = vpop.f32.mrf.mxu2 }
 0x53d   :  { %v9465_v12 = vpop.f32.mrf.mxu3 }
 0x541   :  { %6578 = vmatmul.msk.f32.gmra.mxu2 %vm1811_vm4, %v11731_v28 }
 0x542   :  { %6603 = vmatmul.msk.f32.gmra.mxu3 %vm1811_vm4, %v8930_v61  ;;  %v3400_v61 = vpop.f32.mrf.mxu1 }
 0x543   :  { %v3451_v41 = vadd.f32 %v3400_v61, %v9310_v56 }
 0x544   :  { %v9471_v38 = vpop.f32.mrf.mxu2 }
 0x545   :  { %v9473_v29 = vpop.f32.mrf.mxu3 }
 0x549   :  { %6579 = vmatmul.msk.f32.gmra.mxu2 %vm1811_vm4, %v11732_v21 }
 0x54a   :  { %6604 = vmatmul.msk.f32.gmra.mxu3 %vm1811_vm4, %v8933_v25  ;;  %v3403_v43 = vpop.f32.mrf.mxu1 }
 0x54b   :  { %v3452_v1 = vadd.f32 %v3403_v43, %v9317_v23  ;;  %v3449_v23 = vadd.f32 %v3394_v30, %v9296_v9  ;;  %v3446_v9 = vadd.f32 %v9431_v39, %v9270_v3  ;;  %v3441_v43 = vadd.f32 %v9375_v55, %v9193_v6  ;;  %v11736_v6 = vld [vmem:[#allocation61_spill] sm:$0xff] }
 0x54c   :  { %v3611_v0 = vpop.f32.mrf.mxu2 }
 0x54d   :  { %v9482_v62 = vpop.f32.mrf.mxu3  ;;  %v3669_v3 = vadd.f32 %v9471_v38, %v3446_v9  ;;  %v3443_v38 = vadd.f32 %v9397_v51, %v9232_v15 }
 0x552   :  { %v3406_v28 = vpop.f32.mrf.mxu1 }
 0x553   :  { %v3453_v48 = vadd.f32 %v3406_v28, %v9324_v2  ;;  %v9496_v2 = vld [vmem:[%s11263_s4] ss:$0 sm:$0xff] }
 0x554   :  { %v3614_v17 = vpop.f32.mrf.mxu2 }
 0x555   :  { %v3837_v36 = vpop.f32.mrf.mxu3 }
 0x55a   :  { %v3409_v25 = vpop.f32.mrf.mxu1 }
 0x55b   :  { %v3454_v54 = vadd.f32 %v3409_v25, %v9331_v19  ;;  %v3448_v19 = vadd.f32 %v3391_v32, %v9289_v37 }
 0x55c   :  { %v3617_v57 = vpop.f32.mrf.mxu2 }
 0x55d   :  { %v3840_v11 = vpop.f32.mrf.mxu3 }
 0x562   :  { %v9484_v33 = vpop.f32.mrf.mxu1 }
 0x563   :  { %11733 = vst [vmem:[#allocation126_spill] sm:$0xff] %v9484_v33 }
 0x564   :  { %v3620_v26 = vpop.f32.mrf.mxu2 }
 0x565   :  { %v3843_v58 = vpop.f32.mrf.mxu3  ;;  %v3673_v56 = vadd.f32 %v3620_v26, %v3450_v47  ;;  %v3445_v47 = vadd.f32 %v9421_v24, %v9261_v4 }
 0x567   :  { %v3668_v32 = vadd.f32 %v9463_v20, %v3445_v47  ;;  %v3442_v20 = vadd.f32 %v9386_v46, %v9211_v44 }
 0x569   :  { %v3891_v15 = vadd.f32 %v9465_v12, %v3668_v32  ;;  %v3665_v44 = vadd.f32 %v9437_v40, %v3442_v20 }
 0x56a   :  { %v9490_v60 = vpop.f32.mrf.mxu1 }
 0x56b   :  { %v3920_v40 = vadd.f32 %v9496_v2, %v3891_v15 }
 0x56c   :  { %v3623_v21 = vpop.f32.mrf.mxu2 }
 0x56d   :  { %v3846_v42 = vpop.f32.mrf.mxu3  ;;  %v3674_v59 = vadd.f32 %v3623_v21, %v3451_v41  ;;  %v3447_v41 = vadd.f32 %v9443_v34, %v9282_v14  ;;  %v11737_v21 = vld [vmem:[#allocation59_spill] sm:$0xff] }
 0x56f   :  { %v3670_v37 = vadd.f32 %v3611_v0, %v3447_v41 }
 0x571   :  { %v3893_v30 = vadd.f32 %v9482_v62, %v3670_v37 }
 0x572   :  { %v9518_v14 = vpop.f32.mrf.mxu1 }
 0x573   :  { %v3922_v51 = vadd.f32 %v9496_v2, %v3893_v30 }
 0x574   :  { %v3626_v45 = vpop.f32.mrf.mxu2 }
 0x575   :  { %v3849_v10 = vpop.f32.mrf.mxu3  ;;  %v3675_v49 = vadd.f32 %v3626_v45, %v3452_v1  ;;  %v3672_v1 = vadd.f32 %v3617_v57, %v3449_v23 }
 0x577   :  { %v3898_v45 = vadd.f32 %v3849_v10, %v3675_v49 }
 0x579   :  { %v3927_v52 = vadd.f32 %v9496_v2, %v3898_v45 }
 0x57a   :  { %v9568_v57 = vpop.f32.mrf.mxu1 }
 0x57b   :  { %v9524_v34 = vmax.f32 %v3927_v52, 0.0 }
 0x57c   :  { %v3629_v7 = vpop.f32.mrf.mxu2 }
 0x57d   :  { %v3852_v18 = vpop.f32.mrf.mxu3  ;;  %v3676_v50 = vadd.f32 %v3629_v7, %v3453_v48  ;;  %v3897_v48 = vadd.f32 %v3846_v42, %v3674_v59  ;;  %v3895_v42 = vadd.f32 %v3840_v11, %v3672_v1  ;;  %v3444_v59 = vadd.f32 %v9408_v31, %v9251_v35  ;;  %v11734_v11 = vld [vmem:[#allocation110_spill] sm:$0xff] }
 0x57e   :  { %v3440_v26 = vadd.f32 %v11734_v11, %v9181_v22  ;;  %v3970_v11 = vld [vmem:[%s11274_s15 + $0x30] sm:$0xff] }
 0x57f   :  { %v3899_v8 = vadd.f32 %v3852_v18, %v3676_v50  ;;  %v3924_v4 = vadd.f32 %v9496_v2, %v3895_v42  ;;  %v3667_v0 = vadd.f32 %v9455_v5, %v3444_v59  ;;  %v11738_v18 = vld [vmem:[#allocation123_spill] sm:$0xff] }
 0x580   :  { %v3663_v25 = vadd.f32 %v11737_v21, %v3440_v26  ;;  %v3888_v23 = vadd.f32 %v11738_v18, %v3665_v44  ;;  %v3972_v18 = vld [vmem:[%s11274_s15 + $0x40] sm:$0xff] }
 0x581   :  { %v3928_v27 = vadd.f32 %v9496_v2, %v3899_v8  ;;  %v9553_v5 = vmax.f32 %v3924_v4, 0.0  ;;  %v3890_v46 = vadd.f32 %v9457_v16, %v3667_v0  ;;  %v9575_v16 = vmax.f32 %v3922_v51, 0.0  ;;  %v3964_v4 = vld [vmem:[%s11274_s15] sm:$0xff] }
 0x582   :  { %v3424_v37 = vpop.f32.mrf.mxu1  ;;  %v3968_v51 = vld [vmem:[%s11274_s15 + $0x20] sm:$0xff] }
 0x584   :  { %v3632_v53 = vpop.f32.mrf.mxu2 }
 0x585   :  { %v3677_v33 = vadd.f32 %v3632_v53, %v3454_v54  ;;  %v3855_v63 = vpop.f32.mrf.mxu3  ;;  %v3671_v54 = vadd.f32 %v3614_v17, %v3448_v19  ;;  %v3896_v53 = vadd.f32 %v3843_v58, %v3673_v56  ;;  %v3892_v17 = vadd.f32 %v9473_v29, %v3669_v3  ;;  %v11735_v58 = vld [vmem:[#allocation121_spill] sm:$0xff]  ;;  %v11741_v3 = vld [vmem:[#allocation118_spill] sm:$0xff] }
 0x586   :  { %v3664_v28 = vadd.f32 %v11735_v58, %v3441_v43  ;;  %v3919_v56 = vadd.f32 %v9496_v2, %v3890_v46 }
 0x587   :  { %v3900_v7 = vadd.f32 %v3855_v63, %v3677_v33  ;;  %v3926_v33 = vadd.f32 %v9496_v2, %v3897_v48  ;;  %v9512_v63 = vmax.f32 %v3928_v27, 0.0  ;;  %v3894_v8 = vadd.f32 %v3837_v36, %v3671_v54 }
 0x588   :  { %v3925_v39 = vadd.f32 %v9496_v2, %v3896_v53  ;;  %v3666_v36 = vadd.f32 %v9447_v13, %v3443_v38  ;;  %v3921_v13 = vadd.f32 %v9496_v2, %v3892_v17  ;;  %v9590_v48 = vmax.f32 %v3920_v40, 0.0  ;;  %v11743_v40 = vld [vmem:[#allocation124_spill] sm:$0xff] }
 0x589   :  { %v3929_v50 = vadd.f32 %v9496_v2, %v3900_v7  ;;  %v9533_v24 = vmax.f32 %v3926_v33, 0.0  ;;  %v3923_v35 = vadd.f32 %v9496_v2, %v3894_v8  ;;  %v11739_v7 = vld [vmem:[#allocation120_spill] sm:$0xff]  ;;  %v3917_v54 = vadd.f32 %v9496_v2, %v3888_v23 }
 0x58a   :  { %v9542_v31 = vmax.f32 %v3925_v39, 0.0  ;;  %v3889_v55 = vadd.f32 %v11736_v6, %v3666_v36  ;;  %v9582_v45 = vmax.f32 %v3921_v13, 0.0  ;;  %v3887_v19 = vadd.f32 %v11739_v7, %v3664_v28  ;;  %v3427_v38 = vpop.f32.mrf.mxu1  ;;  %v6612_v13 = vld [vmem:[%s11274_s15 + $0x70] sm:$0xff]  ;;  %v11742_v28 = vld [vmem:[#allocation116_spill] sm:$0xff] }
 0x58b   :  { %v9505_v61 = vmax.f32 %v3929_v50, 0.0  ;;  %v9564_v12 = vmax.f32 %v3923_v35, 0.0  ;;  %v11740_v50 = vld [vmem:[#allocation129_spill] sm:$0xff]  ;;  %v9598_v53 = vmax.f32 %v3919_v56, 0.0  ;;  %v9608_v33 = vmax.f32 %v3917_v54, 0.0  ;;  %v3966_v35 = vld [vmem:[%s11274_s15 + $0x10] sm:$0xff] }
 0x58c   :  { %v9509_v10 = vpop.f32.mrf.mxu2  ;;  %v3918_v1 = vadd.f32 %v9496_v2, %v3889_v55  ;;  %v3886_v41 = vadd.f32 %v11740_v50, %v3663_v25  ;;  %v3916_v52 = vadd.f32 %v9496_v2, %v3887_v19  ;;  %v3914_v8 = vadd.f32 %v9496_v2, %v11741_v3  ;;  %v6614_v55 = vld [vmem:[%s11274_s15 + $0x80] sm:$0xff] }
 0x58d   :  { %v9514_v49 = vpop.f32.mrf.mxu3  ;;  %4000 = vmatpush.msrb.mxu1 %v9505_v61  ;;  %4112 = vmatpush.msrb.mxu3 %v9505_v61  ;;  %v11744_v56 = vld [vmem:[#allocation57_spill] sm:$0xff] }
 0x58e   :  { %v9603_v9 = vmax.f32 %v3918_v1, 0.0  ;;  %v3915_v42 = vadd.f32 %v9496_v2, %v3886_v41  ;;  %v9614_v39 = vmax.f32 %v3916_v52, 0.0  ;;  %v9624_v30 = vmax.f32 %v3914_v8, 0.0  ;;  %v11745_v1 = vld [vmem:[#allocation115_spill] sm:$0xff]  ;;  %v11746_v54 = vld [vmem:[#allocation113_spill] sm:$0xff] }
 0x58f   :  { %4001 = vmatpush.msrb.mxu1 %v9512_v63  ;;  %4113 = vmatpush.msrb.mxu3 %v9512_v63  ;;  %v3460_v7 = vadd.f32 %v3427_v38, %v11744_v56  ;;  %v3459_v52 = vadd.f32 %v3424_v37, %v11746_v54 }
 0x590   :  { %v9620_v32 = vmax.f32 %v3915_v42, 0.0 }
 0x591   :  { %4002 = vmatpush.msrb.mxu1 %v9524_v34  ;;  %4114 = vmatpush.msrb.mxu3 %v9524_v34 }
 0x592   :  { %v3430_v15 = vpop.f32.mrf.mxu1 }
 0x593   :  { %4003 = vmatpush.msrb.mxu1 %v9533_v24  ;;  %4115 = vmatpush.msrb.mxu3 %v9533_v24  ;;  %v3461_v21 = vadd.f32 %v3430_v15, %v11743_v40 }
 0x594   :  { %v9548_v62 = vpop.f32.mrf.mxu2 }
 0x595   :  { %v9555_v29 = vpop.f32.mrf.mxu3  ;;  %4004 = vmatpush.msrb.mxu1 %v9542_v31  ;;  %4116 = vmatpush.msrb.mxu3 %v9542_v31 }
 0x597   :  { %4005 = vmatpush.msrb.mxu1 %v9553_v5  ;;  %4117 = vmatpush.msrb.mxu3 %v9553_v5 }
 0x599   :  { %4006 = vmatpush.msrb.mxu1 %v9564_v12  ;;  %4118 = vmatpush.msrb.mxu3 %v9564_v12 }
 0x59a   :  { %v3433_v46 = vpop.f32.mrf.mxu1 }
 0x59b   :  { %4007 = vmatpush.msrb.mxu1 %v9575_v16  ;;  %4119 = vmatpush.msrb.mxu3 %v9575_v16  ;;  %v3462_v6 = vadd.f32 %v3433_v46, %v11742_v28 }
 0x59c   :  { %v9586_v22 = vpop.f32.mrf.mxu2 }
 0x59d   :  { %v9592_v27 = vpop.f32.mrf.mxu3  ;;  %4008 = vmatpush.msrb.mxu1 %v9582_v45  ;;  %4120 = vmatpush.msrb.mxu3 %v9582_v45 }
 0x59f   :  { %4009 = vmatpush.msrb.mxu1 %v9590_v48  ;;  %4121 = vmatpush.msrb.mxu3 %v9590_v48 }
 0x5a1   :  { %4010 = vmatpush.msrb.mxu1 %v9598_v53  ;;  %4122 = vmatpush.msrb.mxu3 %v9598_v53 }
 0x5a2   :  { %v3436_v23 = vpop.f32.mrf.mxu1 }
 0x5a3   :  { %4011 = vmatpush.msrb.mxu1 %v9603_v9  ;;  %4123 = vmatpush.msrb.mxu3 %v9603_v9  ;;  %v3463_v50 = vadd.f32 %v3436_v23, %v11745_v1 }
 0x5a4   :  { %v3644_v47 = vpop.f32.mrf.mxu2 }
 0x5a5   :  { %v9616_v59 = vpop.f32.mrf.mxu3  ;;  %4012 = vmatpush.msrb.mxu1 %v9608_v33  ;;  %4124 = vmatpush.msrb.mxu3 %v9608_v33 }
 0x5a7   :  { %4013 = vmatpush.msrb.mxu1 %v9614_v39  ;;  %4125 = vmatpush.msrb.mxu3 %v9614_v39 }
 0x5a9   :  { %4014 = vmatpush.msrb.mxu1 %v9620_v32  ;;  %4126 = vmatpush.msrb.mxu3 %v9620_v32 }
 0x5ab   :  { %4015 = vmatpush.msrb.mxu1 %v9624_v30  ;;  %4127 = vmatpush.msrb.mxu3 %v9624_v30 }
 0x5ac   :  { %v3647_v0 = vpop.f32.mrf.mxu2  ;;  %4016 = vmatmul.f32.vlgmr.msrb.gmra.mxu1 %v3964_v4  ;;  %4128 = vmatmul.f32.vlgmr.msrb.gmra.mxu3 %v6612_v13 }
 0x5ad   :  { %v3870_v17 = vpop.f32.mrf.mxu3 }
 0x5b4   :  { %v3650_v20 = vpop.f32.mrf.mxu2  ;;  %4019 = vmatmul.f32.gmra.mxu1 %v3966_v35  ;;  %4131 = vmatmul.f32.gmra.mxu3 %v6614_v55  ;;  %v11747_v35 = vld [vmem:[#allocation111_spill] sm:$0xff] }
 0x5b5   :  { %v3873_v36 = vpop.f32.mrf.mxu3  ;;  %v3683_v42 = vadd.f32 %v3650_v20, %v3460_v7  ;;  %v3458_v15 = vadd.f32 %v9568_v57, %v11747_v35  ;;  %v3974_v57 = vld [vmem:[%s11274_s15 + $0x50] sm:$0xff]  ;;  %v6638_v35 = vld [vmem:[%s11274_s15 + $0x108] sm:$0xff] }
 0x5b7   :  { %v3906_v28 = vadd.f32 %v3873_v36, %v3683_v42  ;;  %v11751_v36 = vld [vmem:[#allocation126_spill] sm:$0xff]  ;;  %v6613_v42 = vld [vmem:[%s11274_s15 + $0x78] sm:$0xff] }
 0x5bc   :  { %v3653_v43 = vpop.f32.mrf.mxu2  ;;  %4022 = vmatmul.f32.gmra.mxu1 %v3968_v51  ;;  %v3682_v51 = vadd.f32 %v3647_v0, %v3459_v52  ;;  %v11749_v0 = vld [vmem:[#allocation55_spill] sm:$0xff] }
 0x5bd   :  { %v3876_v44 = vpop.f32.mrf.mxu3  ;;  %v3684_v19 = vadd.f32 %v3653_v43, %v3461_v21  ;;  %v6616_v43 = vld [vmem:[%s11274_s15 + $0x90] sm:$0xff] }
 0x5be   :  { %4134 = vmatmul.f32.gmra.mxu3 %v6616_v43  ;;  %v6639_v43 = vld [vmem:[%s11274_s15 + $0x110] sm:$0xff] }
 0x5bf   :  { %v3907_v46 = vadd.f32 %v3876_v44, %v3684_v19  ;;  %v3456_v44 = vadd.f32 %v9490_v60, %v11749_v0  ;;  %v6656_v0 = vld [vmem:[%s11274_s15 + $0x160] sm:$0xff] }
 0x5c1   :  { %v3679_v21 = vadd.f32 %v9548_v62, %v3456_v44 }
 0x5c3   :  { %v3902_v62 = vadd.f32 %v9555_v29, %v3679_v21  ;;  %v9921_v21 = vld [vmem:[%s11264_s5 + $0x80] sm:$0xff] }
 0x5c4   :  { %v3656_v26 = vpop.f32.mrf.mxu2  ;;  %4025 = vmatmul.f32.gmra.mxu1 %v3970_v11  ;;  %v11748_v11 = vld [vmem:[#allocation119_spill] sm:$0xff] }
 0x5c5   :  { %v3879_v58 = vpop.f32.mrf.mxu3  ;;  %v3685_v25 = vadd.f32 %v3656_v26, %v3462_v6  ;;  %v3457_v38 = vadd.f32 %v9518_v14, %v11748_v11  ;;  %v3681_v26 = vadd.f32 %v3644_v47, %v3458_v15  ;;  %v3936_v6 = vadd.f32 %v9496_v2, %v3907_v46  ;;  %v11750_v47 = vld [vmem:[#allocation108_spill] sm:$0xff]  ;;  %v6635_v46 = vld [vmem:[%s11274_s15 + $0xf0] sm:$0xff] }
 0x5c6   :  { %v3455_v40 = vadd.f32 %v11751_v36, %v11750_v47  ;;  %v3931_v29 = vadd.f32 %v9496_v2, %v3902_v62  ;;  %v6633_v15 = vld [vmem:[%s11274_s15 + $0xe0] sm:$0xff] }
 0x5c7   :  { %v3908_v3 = vadd.f32 %v3879_v58, %v3685_v25  ;;  %v3680_v14 = vadd.f32 %v9586_v22, %v3457_v38  ;;  %v3905_v58 = vadd.f32 %v3870_v17, %v3682_v51  ;;  %v3904_v25 = vadd.f32 %v9616_v59, %v3681_v26  ;;  %v6640_v51 = vld [vmem:[%s11274_s15 + $0x118] sm:$0xff]  ;;  %v6637_v11 = vld [vmem:[%s11274_s15 + $0x100] sm:$0xff]  ;;  %v6646_v26 = vld [vmem:[%s11274_s15 + $0x148] sm:$0x3] }
 0x5c8   :  { %v3678_v60 = vadd.f32 %v9509_v10, %v3455_v40  ;;  %v9687_v56 = vmax.f32 %v3936_v6, 0.0  ;;  %v3976_v10 = vld [vmem:[%s11274_s15 + $0x60] sm:$0x3]  ;;  %v9721_v54 = vmax.f32 %v3931_v29, 0.0  ;;  %v6644_v38 = vld [vmem:[%s11274_s15 + $0x138] sm:$0xff] }
 0x5c9   :  { %v3937_v37 = vadd.f32 %v9496_v2, %v3908_v3  ;;  %v3903_v22 = vadd.f32 %v9592_v27, %v3680_v14  ;;  %v3934_v17 = vadd.f32 %v9496_v2, %v3905_v58  ;;  %v3933_v59 = vadd.f32 %v9496_v2, %v3904_v25  ;;  %v6618_v3 = vld [vmem:[%s11274_s15 + $0xa0] sm:$0xff]  ;;  %v6658_v58 = vld [vmem:[%s11274_s15 + $0x170] sm:$0xff]  ;;  %v6657_v25 = vld [vmem:[%s11274_s15 + $0x168] sm:$0xff] }
 0x5ca   :  { %v3901_v27 = vadd.f32 %v9514_v49, %v3678_v60  ;;  %4137 = vmatmul.f32.gmra.mxu3 %v6618_v3  ;;  %v6645_v14 = vld [vmem:[%s11274_s15 + $0x140] sm:$0x3]  ;;  %v6659_v60 = vld [vmem:[%s11274_s15 + $0x178] sm:$0xff] }
 0x5cb   :  { %v9679_v23 = vmax.f32 %v3937_v37, 0.0  ;;  %v3932_v19 = vadd.f32 %v9496_v2, %v3903_v22  ;;  %v9704_v1 = vmax.f32 %v3934_v17, 0.0  ;;  %v6641_v37 = vld [vmem:[%s11274_s15 + $0x120] sm:$0xff] }
 0x5cc   :  { %v3659_v41 = vpop.f32.mrf.mxu2  ;;  %4028 = vmatmul.f32.gmra.mxu1 %v3972_v18  ;;  %v3935_v18 = vadd.f32 %v9496_v2, %v3906_v28  ;;  %v3930_v49 = vadd.f32 %v9496_v2, %v3901_v27  ;;  %v6654_v28 = vld [vmem:[%s11274_s15 + $0x150] sm:$0xff]  ;;  %v6660_v47 = vld [vmem:[%s11274_s15 + $0x180] sm:$0xff] }
 0x5cd   :  { %v3686_v8 = vadd.f32 %v3659_v41, %v3463_v50  ;;  %v3882_v4 = vpop.f32.mrf.mxu3  ;;  %v9710_v50 = vmax.f32 %v3933_v59, 0.0  ;;  %v9716_v41 = vmax.f32 %v3932_v19, 0.0  ;;  %v6664_v17 = vld [vmem:[%s11274_s15 + $0x1a0] sm:$0xff] }
 0x5ce   :  { %v9694_v7 = vmax.f32 %v3935_v18, 0.0  ;;  %v9726_v52 = vmax.f32 %v3930_v49, 0.0  ;;  %v6662_v18 = vld [vmem:[%s11274_s15 + $0x190] sm:$0xff] }
 0x5cf   :  { %v3909_v13 = vadd.f32 %v3882_v4, %v3686_v8  ;;  %v3967_v8 = vld [vmem:[%s11274_s15 + $0x18] sm:$0xff]  ;;  %v6615_v4 = vld [vmem:[%s11274_s15 + $0x88] sm:$0xff] }
 0x5d1   :  { %v3938_v20 = vadd.f32 %v9496_v2, %v3909_v13  ;;  %v3965_v2 = vld [vmem:[%s11274_s15 + $0x8] sm:$0xff] }
 0x5d2   :  { %v6642_v13 = vld [vmem:[%s11274_s15 + $0x128] sm:$0xff] }
 0x5d3   :  { %v9672_v55 = vmax.f32 %v3938_v20, 0.0 }
 0x5d4   :  { %4031 = vmatmul.f32.gmra.mxu1 %v3974_v57  ;;  %v6643_v57 = vld [vmem:[%s11274_s15 + $0x130] sm:$0xff] }
 0x5d5   :  { %4045 = vmatpush.msra.mxu2 %v9672_v55  ;;  %4157 = vmatpush.msra.mxu1 %v9672_v55 }
 0x5d6   :  { %4269 = vmatpush.msra.mxu3 %v9672_v55 }
 0x5d7   :  { %4046 = vmatpush.msra.mxu2 %v9679_v23  ;;  %4158 = vmatpush.msra.mxu1 %v9679_v23 }
 0x5d8   :  { %4270 = vmatpush.msra.mxu3 %v9679_v23 }
 0x5d9   :  { %4047 = vmatpush.msra.mxu2 %v9687_v56  ;;  %4159 = vmatpush.msra.mxu1 %v9687_v56 }
 0x5da   :  { %4271 = vmatpush.msra.mxu3 %v9687_v56 }
 0x5db   :  { %4048 = vmatpush.msra.mxu2 %v9694_v7  ;;  %4160 = vmatpush.msra.mxu1 %v9694_v7 }
 0x5dc   :  { %4272 = vmatpush.msra.mxu3 %v9694_v7  ;;  %4034 = vmatmul.f32.gmra.mxu1 %v3976_v10  ;;  %v6666_v10 = vld [vmem:[%s11274_s15 + $0x1b0] sm:$0x3] }
 0x5dd   :  { %4049 = vmatpush.msra.mxu2 %v9704_v1  ;;  %4161 = vmatpush.msra.mxu1 %v9704_v1 }
 0x5de   :  { %4273 = vmatpush.msra.mxu3 %v9704_v1 }
 0x5df   :  { %4050 = vmatpush.msra.mxu2 %v9710_v50  ;;  %4162 = vmatpush.msra.mxu1 %v9710_v50 }
 0x5e0   :  { %4274 = vmatpush.msra.mxu3 %v9710_v50 }
 0x5e1   :  { %4051 = vmatpush.msra.mxu2 %v9716_v41  ;;  %4163 = vmatpush.msra.mxu1 %v9716_v41 }
 0x5e2   :  { %4275 = vmatpush.msra.mxu3 %v9716_v41 }
 0x5e3   :  { %4052 = vmatpush.msra.mxu2 %v9721_v54  ;;  %4164 = vmatpush.msra.mxu1 %v9721_v54 }
 0x5e4   :  { %4276 = vmatpush.msra.mxu3 %v9721_v54 }
 0x5e5   :  { %4053 = vmatpush.msra.mxu2 %v9726_v52  ;;  %4165 = vmatpush.msra.mxu1 %v9726_v52 }
 0x5e6   :  { %4277 = vmatpush.msra.mxu3 %v9726_v52  ;;  %6605 = vmatmul.msk.f32.vlgmr.msra.gmra.mxu2 %vm3978_vm9, %v3965_v2 }
 0x5e7   :  { %6626 = vmatmul.msk.f32.vlgmr.msra.gmra.mxu1 %vm3978_vm9, %v6613_v42  ;;  %4224 = vmatpush.msrb.mxu2 %v9505_v61 }
 0x5e8   :  { %4336 = vmatpush.msrb.mxu1 %v9505_v61  ;;  %v6620_v61 = vld [vmem:[%s11274_s15 + $0xb0] sm:$0xff] }
 0x5e9   :  { %4225 = vmatpush.msrb.mxu2 %v9512_v63  ;;  %4140 = vmatmul.f32.gmra.mxu3 %v6620_v61 }
 0x5ea   :  { %4337 = vmatpush.msrb.mxu1 %v9512_v63  ;;  %v3969_v63 = vld [vmem:[%s11274_s15 + $0x28] sm:$0xff] }
 0x5eb   :  { %4226 = vmatpush.msrb.mxu2 %v9524_v34 }
 0x5ec   :  { %4338 = vmatpush.msrb.mxu1 %v9524_v34  ;;  %v6617_v34 = vld [vmem:[%s11274_s15 + $0x98] sm:$0xff] }
 0x5ed   :  { %4227 = vmatpush.msrb.mxu2 %v9533_v24 }
 0x5ee   :  { %4339 = vmatpush.msrb.mxu1 %v9533_v24  ;;  %6606 = vmatmul.msk.f32.gmra.mxu2 %vm3978_vm9, %v3967_v8  ;;  %v6622_v24 = vld [vmem:[%s11274_s15 + $0xc0] sm:$0xff] }
 0x5ef   :  { %6627 = vmatmul.msk.f32.gmra.mxu1 %vm3978_vm9, %v6615_v4  ;;  %4228 = vmatpush.msrb.mxu2 %v9542_v31 }
 0x5f0   :  { %4340 = vmatpush.msrb.mxu1 %v9542_v31  ;;  %v3971_v31 = vld [vmem:[%s11274_s15 + $0x38] sm:$0xff] }
 0x5f1   :  { %4229 = vmatpush.msrb.mxu2 %v9553_v5  ;;  %4143 = vmatmul.f32.gmra.mxu3 %v6622_v24 }
 0x5f2   :  { %4341 = vmatpush.msrb.mxu1 %v9553_v5  ;;  %v6619_v5 = vld [vmem:[%s11274_s15 + $0xa8] sm:$0xff] }
 0x5f3   :  { %4230 = vmatpush.msrb.mxu2 %v9564_v12 }
 0x5f4   :  { %4342 = vmatpush.msrb.mxu1 %v9564_v12  ;;  %v6624_v12 = vld [vmem:[%s11274_s15 + $0xd0] sm:$0x3] }
 0x5f5   :  { %4231 = vmatpush.msrb.mxu2 %v9575_v16 }
 0x5f6   :  { %4343 = vmatpush.msrb.mxu1 %v9575_v16  ;;  %6607 = vmatmul.msk.f32.gmra.mxu2 %vm3978_vm9, %v3969_v63  ;;  %v3973_v16 = vld [vmem:[%s11274_s15 + $0x48] sm:$0xff] }
 0x5f7   :  { %6628 = vmatmul.msk.f32.gmra.mxu1 %vm3978_vm9, %v6617_v34  ;;  %4232 = vmatpush.msrb.mxu2 %v9582_v45  ;;  %v6665_v34 = vld [vmem:[%s11274_s15 + $0x1a8] sm:$0xff] }
 0x5f8   :  { %4344 = vmatpush.msrb.mxu1 %v9582_v45  ;;  %v6621_v45 = vld [vmem:[%s11274_s15 + $0xb8] sm:$0xff] }
 0x5f9   :  { %4233 = vmatpush.msrb.mxu2 %v9590_v48  ;;  %4146 = vmatmul.f32.gmra.mxu3 %v6624_v12 }
 0x5fa   :  { %4345 = vmatpush.msrb.mxu1 %v9590_v48  ;;  %v6634_v48 = vld [vmem:[%s11274_s15 + $0xe8] sm:$0xff] }
 0x5fb   :  { %4234 = vmatpush.msrb.mxu2 %v9598_v53 }
 0x5fc   :  { %4346 = vmatpush.msrb.mxu1 %v9598_v53  ;;  %v9827_v53 = vld [vmem:[%s11264_s5 + $0x88] sm:$0xff] }
 0x5fd   :  { %4235 = vmatpush.msrb.mxu2 %v9603_v9  ;;  %5028 = vmatpush.msrb.mxu0 %v9827_v53 }
 0x5fe   :  { %4347 = vmatpush.msrb.mxu1 %v9603_v9  ;;  %6608 = vmatmul.msk.f32.gmra.mxu2 %vm3978_vm9, %v3971_v31  ;;  %v3975_v9 = vld [vmem:[%s11274_s15 + $0x58] sm:$0xff] }
 0x5ff   :  { %6629 = vmatmul.msk.f32.gmra.mxu1 %vm3978_vm9, %v6619_v5  ;;  %4236 = vmatpush.msrb.mxu2 %v9608_v33 }
 0x600   :  { %4348 = vmatpush.msrb.mxu1 %v9608_v33  ;;  %v6623_v33 = vld [vmem:[%s11274_s15 + $0xc8] sm:$0xff]  ;;  %5029 = vmatpush.msrb.mxu0 %v9921_v21 }
 0x601   :  { %4237 = vmatpush.msrb.mxu2 %v9614_v39  ;;  %6647 = vmatmul.msk.f32.vlgmr.msra.gmra.mxu3 %vm3978_vm9, %v6634_v48 }
 0x602   :  { %4349 = vmatpush.msrb.mxu1 %v9614_v39  ;;  %v6636_v39 = vld [vmem:[%s11274_s15 + $0xf8] sm:$0xff] }
 0x603   :  { %4238 = vmatpush.msrb.mxu2 %v9620_v32 }
 0x604   :  { %4350 = vmatpush.msrb.mxu1 %v9620_v32  ;;  %v3977_v32 = vld [vmem:[%s11274_s15 + $0x68] sm:$0x3] }
 0x605   :  { %4239 = vmatpush.msrb.mxu2 %v9624_v30 }
 0x606   :  { %4351 = vmatpush.msrb.mxu1 %v9624_v30  ;;  %6609 = vmatmul.msk.f32.gmra.mxu2 %vm3978_vm9, %v3973_v16  ;;  %v6625_v30 = vld [vmem:[%s11274_s15 + $0xd8] sm:$0x3] }
 0x607   :  { %4381 = vmatpush.msra.mxu2 %v9672_v55  ;;  %6630 = vmatmul.msk.f32.gmra.mxu1 %vm3978_vm9, %v6621_v45  ;;  %v6655_v55 = vld [vmem:[%s11274_s15 + $0x158] sm:$0xff] }
 0x609   :  { %4382 = vmatpush.msra.mxu2 %v9679_v23  ;;  %6648 = vmatmul.msk.f32.gmra.mxu3 %vm3978_vm9, %v6636_v39 }
 0x60b   :  { %4383 = vmatpush.msra.mxu2 %v9687_v56 }
 0x60d   :  { %4384 = vmatpush.msra.mxu2 %v9694_v7  ;;  %v6661_v7 = vld [vmem:[%s11274_s15 + $0x188] sm:$0xff] }
 0x60e   :  { %6610 = vmatmul.msk.f32.gmra.mxu2 %vm3978_vm9, %v3975_v9 }
 0x60f   :  { %4385 = vmatpush.msra.mxu2 %v9704_v1  ;;  %6631 = vmatmul.msk.f32.gmra.mxu1 %vm3978_vm9, %v6623_v33  ;;  %v6667_v33 = vld [vmem:[%s11274_s15 + $0x1b8] sm:$0x3] }
 0x611   :  { %4386 = vmatpush.msra.mxu2 %v9710_v50  ;;  %6649 = vmatmul.msk.f32.gmra.mxu3 %vm3978_vm9, %v6638_v35 }
 0x613   :  { %4387 = vmatpush.msra.mxu2 %v9716_v41 }
 0x615   :  { %4388 = vmatpush.msra.mxu2 %v9721_v54  ;;  %v6663_v54 = vld [vmem:[%s11274_s15 + $0x198] sm:$0xff] }
 0x616   :  { %6611 = vmatmul.msk.f32.gmra.mxu2 %vm3978_vm9, %v3977_v32 }
 0x617   :  { %4389 = vmatpush.msra.mxu2 %v9726_v52  ;;  %6632 = vmatmul.msk.f32.gmra.mxu1 %vm3978_vm9, %v6625_v30 }
 0x619   :  { %6650 = vmatmul.msk.f32.gmra.mxu3 %vm3978_vm9, %v6640_v51 }
 0x61e   :  { %4240 = vmatmul.f32.vlgmr.msrb.gmra.mxu2 %v6633_v15 }
 0x61f   :  { %4352 = vmatmul.f32.vlgmr.msrb.gmra.mxu1 %v6654_v28 }
 0x621   :  { %6651 = vmatmul.msk.f32.gmra.mxu3 %vm3978_vm9, %v6642_v13 }
 0x626   :  { %4243 = vmatmul.f32.gmra.mxu2 %v6635_v46 }
 0x627   :  { %4355 = vmatmul.f32.gmra.mxu1 %v6656_v0 }
 0x629   :  { %6652 = vmatmul.msk.f32.gmra.mxu3 %vm3978_vm9, %v6644_v38  ;;  %v4017_v20 = vpop.f32.mrf.mxu1 }
 0x62e   :  { %4246 = vmatmul.f32.gmra.mxu2 %v6637_v11  ;;  %v4650_v11 = vld [vmem:[%s11264_s5 + $0x38] sm:$0xff] }
 0x62f   :  { %4358 = vmatmul.f32.gmra.mxu1 %v6658_v58  ;;  %v9907_v6 = vpop.f32.mrf.mxu3  ;;  %4697 = vmatpush.msrb.mxu3 %v4650_v11 }
 0x631   :  { %6653 = vmatmul.msk.f32.gmra.mxu3 %vm3978_vm9, %v6646_v26  ;;  %v4020_v44 = vpop.f32.mrf.mxu1  ;;  %v4649_v26 = vld [vmem:[%s11264_s5 + $0x30] sm:$0xff] }
 0x632   :  { %4698 = vmatpush.msrb.mxu3 %v4649_v26 }
 0x636   :  { %4249 = vmatmul.f32.gmra.mxu2 %v6639_v43 }
 0x637   :  { %4361 = vmatmul.f32.gmra.mxu1 %v6660_v47  ;;  %v9916_v40 = vpop.f32.mrf.mxu3 }
 0x639   :  { %v4023_v36 = vpop.f32.mrf.mxu1 }
 0x63e   :  { %4252 = vmatmul.f32.gmra.mxu2 %v6641_v37 }
 0x63f   :  { %4364 = vmatmul.f32.gmra.mxu1 %v6662_v18 }
 0x641   :  { %v4026_v23 = vpop.f32.mrf.mxu1  ;;  %v9934_v22 = vpop.f32.mrf.mxu3 }
 0x646   :  { %4255 = vmatmul.f32.gmra.mxu2 %v6643_v57 }
 0x647   :  { %4367 = vmatmul.f32.gmra.mxu1 %v6664_v17 }
 0x649   :  { %v4029_v62 = vpop.f32.mrf.mxu1 }
 0x64d   :  { %v9946_v27 = vpop.f32.mrf.mxu3 }
 0x64e   :  { %4258 = vmatmul.f32.gmra.mxu2 %v6645_v14  ;;  %v4647_v14 = vld [vmem:[%s11264_s5 + $0x20] sm:$0xff] }
 0x64f   :  { %4370 = vmatmul.f32.gmra.mxu1 %v6666_v10 }
 0x651   :  { %v4032_v50 = vpop.f32.mrf.mxu1 }
 0x656   :  { %6668 = vmatmul.msk.f32.vlgmr.msra.gmra.mxu2 %vm3978_vm9, %v6655_v55 }
 0x659   :  { %v4035_v24 = vpop.f32.mrf.mxu1 }
 0x65e   :  { %6669 = vmatmul.msk.f32.gmra.mxu2 %vm3978_vm9, %v6657_v25 }
 0x664   :  { %v9973_v30 = vpop.f32.mrf.mxu1 }
 0x666   :  { %6670 = vmatmul.msk.f32.gmra.mxu2 %vm3978_vm9, %v6659_v60 }
 0x669   :  { %v4055_v56 = vpop.f32.mrf.mxu2 }
 0x66a   :  { %v4056_v59 = vadd.f32 %v4055_v56, %v4017_v20  ;;  %v4648_v20 = vld [vmem:[%s11264_s5 + $0x28] sm:$0xff] }
 0x66b   :  { %4699 = vmatpush.msrb.mxu3 %v4648_v20 }
 0x66c   :  { %v4433_v19 = vrot.slane %v4056_v59, 2  ;;  %v9955_v3 = vpop.f32.mrf.mxu3  ;;  %v9986_v28 = vpop.f32.mrf.mxu1 }
 0x66d   :  { %4700 = vmatpush.msrb.mxu3 %v4647_v14 }
 0x66e   :  { %6671 = vmatmul.msk.f32.gmra.mxu2 %vm3978_vm9, %v6661_v7  ;;  %v4447_v49 = vsel %vm2524_vm8, 0.0, %v4433_v19 }
 0x66f   :  { %v4987_v2 = vrot.slane %v4447_v49, 6  ;;  %v10013_v49 = vpop.permute.xlu0 %4539 }
 0x671   :  { %v4058_v1 = vpop.f32.mrf.mxu2 }
 0x672   :  { %v4059_v29 = vadd.f32 %v4058_v1, %v4020_v44 }
 0x674   :  { %v4434_v41 = vrot.slane %v4059_v29, 2  ;;  %v9965_v48 = vpop.f32.mrf.mxu3 }
 0x676   :  { %v4435_v52 = vsel %vm2524_vm8, %v4433_v19, %v4434_v41  ;;  %6672 = vmatmul.msk.f32.gmra.mxu2 %vm3978_vm9, %v6663_v54 }
 0x677   :  { %v4988_v42 = vrot.slane %v4435_v52, 6  ;;  %v4621_v52 = vrot.slane %v10013_v49, 7 }
 0x679   :  { %v4061_v8 = vpop.f32.mrf.mxu2  ;;  %v4989_v4 = vsel %vm2392_vm7, %v4987_v2, %v4988_v42 }
 0x67a   :  { %v4062_v61 = vadd.f32 %v4061_v8, %v4023_v36  ;;  %6703 = vmatmul.msk.f32.vlgmr.msrb.gmra.mxu0 %vm1811_vm4, %v4989_v4 }
 0x67c   :  { %v4436_v63 = vrot.slane %v4062_v61, 2  ;;  %v9977_v46 = vpop.f32.mrf.mxu3 }
 0x67e   :  { %v4437_v31 = vsel %vm2524_vm8, %v4434_v41, %v4436_v63  ;;  %6673 = vmatmul.msk.f32.gmra.mxu2 %vm3978_vm9, %v6665_v34 }
 0x67f   :  { %v4990_v5 = vrot.slane %v4437_v31, 6 }
 0x681   :  { %v4064_v12 = vpop.f32.mrf.mxu2  ;;  %v4991_v16 = vsel %vm2392_vm7, %v4988_v42, %v4990_v5 }
 0x682   :  { %v4065_v45 = vadd.f32 %v4064_v12, %v4026_v23  ;;  %6704 = vmatmul.msk.f32.gmra.mxu0 %vm1811_vm4, %v4991_v16  ;;  %v9999_v23 = vpop.f32.mrf.mxu1  ;;  %v10029_v12 = vpop.permute.xlu1 %4544 }
 0x684   :  { %v4438_v9 = vrot.slane %v4065_v45, 2  ;;  %v4279_v44 = vpop.f32.mrf.mxu3 }
 0x686   :  { %v4439_v39 = vsel %vm2524_vm8, %v4436_v63, %v4438_v9  ;;  %6674 = vmatmul.msk.f32.gmra.mxu2 %vm3978_vm9, %v6667_v33 }
 0x687   :  { %v4992_v32 = vrot.slane %v4439_v39, 6 }
 0x689   :  { %v4993_v35 = vsel %vm2392_vm7, %v4990_v5, %v4992_v32  ;;  %v4067_v15 = vpop.f32.mrf.mxu2 }
 0x68a   :  { %6705 = vmatmul.msk.f32.gmra.mxu0 %vm1811_vm4, %v4993_v35  ;;  %v4068_v51 = vadd.f32 %v4067_v15, %v4029_v62  ;;  %v10009_v19 = vpop.f32.mrf.mxu1 }
 0x68c   :  { %v4440_v13 = vrot.slane %v4068_v51, 2  ;;  %v4282_v17 = vpop.f32.mrf.mxu3 }
 0x68e   :  { %v4441_v38 = vsel %vm2524_vm8, %v4438_v9, %v4440_v13 }
 0x68f   :  { %v4994_v43 = vrot.slane %v4441_v38, 6 }
 0x691   :  { %v4070_v37 = vpop.f32.mrf.mxu2  ;;  %v4995_v57 = vsel %vm2392_vm7, %v4992_v32, %v4994_v43  ;;  %v4623_v32 = vrot.slane %v10029_v12, 7 }
 0x692   :  { %v4071_v0 = vadd.f32 %v4070_v37, %v4032_v50  ;;  %6706 = vmatmul.msk.f32.gmra.mxu0 %vm1811_vm4, %v4995_v57  ;;  %v10011_v50 = vpop.permute.xlu2 %4534  ;;  %v10026_v34 = vpop.f32.mrf.mxu1 }
 0x693   :  { %v10016_v54 = vrot.slane %v10011_v50, 7 }
 0x694   :  { %v4442_v58 = vrot.slane %v4071_v0, 2  ;;  %v4285_v29 = vpop.f32.mrf.mxu3 }
 0x695   :  { %v10023_v61 = vsel %vm1627_vm5, %v10016_v54, %v4621_v52 }
 0x696   :  { %v4443_v55 = vsel %vm2524_vm8, %v4440_v13, %v4442_v58  ;;  %v10038_v13 = vsel %vm1627_vm5, %v4621_v52, %v4623_v32 }
 0x697   :  { %v4996_v47 = vrot.slane %v4443_v55, 6 }
 0x699   :  { %v4073_v36 = vpop.f32.mrf.mxu2  ;;  %v4997_v25 = vsel %vm2392_vm7, %v4994_v43, %v4996_v47 }
 0x69a   :  { %v4074_v18 = vadd.f32 %v4073_v36, %v4035_v24  ;;  %6707 = vmatmul.msk.f32.gmra.mxu0 %vm1811_vm4, %v4997_v25  ;;  %v10042_v26 = vpop.f32.mrf.mxu1  ;;  %v4619_v36 = vld [vmem:[%s11264_s5 + $0x18] sm:$0xff] }
 0x69b   :  { %4756 = vmatpush.msra.mxu1 %v4619_v36 }
 0x69c   :  { %v4444_v60 = vrot.slane %v4074_v18, 2  ;;  %v4288_v33 = vpop.f32.mrf.mxu3 }
 0x69e   :  { %v10002_v56 = vsel %vm2524_vm8, %v4442_v58, %v4444_v60  ;;  %v4618_v60 = vld [vmem:[%s11264_s5 + $0x10] sm:$0xff] }
 0x69f   :  { %v4998_v62 = vrot.slane %v10002_v56, 6  ;;  %4757 = vmatpush.msra.mxu1 %v4618_v60  ;;  %v4789_v60 = vld [vmem:[%s11264_s5 + $0x40] sm:$0xff] }
 0x6a1   :  { %v4241_v59 = vpop.f32.mrf.mxu2  ;;  %v4999_v7 = vsel %vm2392_vm7, %v4996_v47, %v4998_v62 }
 0x6a2   :  { %v4280_v10 = vadd.f32 %v4279_v44, %v4241_v59  ;;  %6708 = vmatmul.msk.f32.gmra.mxu0 %vm1811_vm4, %v4999_v7  ;;  %v10047_v44 = vpop.permute.xlu2 %4549  ;;  %v4617_v7 = vld [vmem:[%s11264_s5 + $0x8] sm:$0xff] }
 0x6a3   :  { %v4625_v55 = vrot.slane %v10047_v44, 7  ;;  %4758 = vmatpush.msra.mxu1 %v4617_v7 }
 0x6a4   :  { %v4483_v1 = vrot.slane %v4280_v10, 2  ;;  %v4291_v58 = vpop.f32.mrf.mxu3  ;;  %v10066_v10 = vpop.permute.xlu0 %4554 }
 0x6a5   :  { %v10056_v25 = vsel %vm1627_vm5, %v4623_v32, %v4625_v55  ;;  %v4627_v52 = vrot.slane %v10066_v10, 7 }
 0x6a6   :  { %v4503_v2 = vsel %vm2524_vm8, 0.0, %v4483_v1 }
 0x6a7   :  { %v4640_v4 = vmul.f32 %v10016_v54, %v4503_v2  ;;  %v5231_v24 = vrot.slane %v4503_v2, 6 }
 0x6a9   :  { %v4244_v41 = vpop.f32.mrf.mxu2  ;;  %v4658_v16 = vrot.slane %v4640_v4, 1 }
 0x6aa   :  { %v4283_v42 = vadd.f32 %v4282_v17, %v4244_v41 }
 0x6ac   :  { %v4484_v8 = vrot.slane %v4283_v42, 2  ;;  %v4616_v42 = vld [vmem:[%s11264_s5] sm:$0xff] }
 0x6ad   :  { %4759 = vmatpush.msra.mxu1 %v4616_v42 }
 0x6ae   :  { %v4485_v63 = vsel %vm2524_vm8, %v4483_v1, %v4484_v8 }
 0x6af   :  { %v4641_v31 = vmul.f32 %v10023_v61, %v4485_v63  ;;  %v5232_v5 = vrot.slane %v4485_v63, 6  ;;  %v5306_v63 = vld [vmem:[%s11264_s5 + $0x118] sm:$0xff] }
 0x6b0   :  { %5347 = vmatpush.msra.mxu0 %v5306_v63  ;;  %v6825_v63 = vld [vmem:[%s11264_s5 + $0x90] sm:$0xff] }
 0x6b1   :  { %v4659_v45 = vrot.slane %v4641_v31, 1  ;;  %v4247_v9 = vpop.f32.mrf.mxu2  ;;  %v10032_v39 = vsel %vm2392_vm7, %v5231_v24, %v5232_v5  ;;  %v4294_v31 = vpop.f32.mrf.mxu3 }
 0x6b2   :  { %v4286_v35 = vadd.f32 %v4285_v29, %v4247_v9  ;;  %v10092_v9 = vsel %vm1627_vm5, %v4625_v55, %v4627_v52 }
 0x6b3   :  { %v4660_v15 = vsel %vm1759_vm6, %v4658_v16, %v4659_v45  ;;  %v4902_v16 = vld [vmem:[%s11264_s5 + $0x78] sm:$0xff] }
 0x6b4   :  { %v4486_v51 = vrot.slane %v4286_v35, 2  ;;  %6675 = vmatmul.msk.f32.vlgmr.msrb.gmra.mxu3 %vm1811_vm4, %v4660_v15  ;;  %v4791_v15 = vld [vmem:[%s11264_s5 + $0x50] sm:$0xff] }
 0x6b5   :  { %4949 = vmatpush.msra.mxu3 %v4902_v16 }
 0x6b6   :  { %v4487_v11 = vsel %vm2524_vm8, %v4484_v8, %v4486_v51  ;;  %v10075_v8 = vpop.f32.mrf.mxu1 }
 0x6b7   :  { %v4642_v38 = vmul.f32 %v10038_v13, %v4487_v11  ;;  %v5234_v43 = vrot.slane %v4487_v11, 6  ;;  %v5304_v11 = vld [vmem:[%s11264_s5 + $0x108] sm:$0xff] }
 0x6b9   :  { %v4250_v37 = vpop.f32.mrf.mxu2  ;;  %v4661_v20 = vrot.slane %v4642_v38, 1  ;;  %v10045_v57 = vsel %vm2392_vm7, %v5232_v5, %v5234_v43  ;;  %v4792_v5 = vld [vmem:[%s11264_s5 + $0x58] sm:$0xff]  ;;  %v10105_v38 = vpop.permute.xlu1 %4559 }
 0x6ba   :  { %v4289_v0 = vadd.f32 %v4288_v33, %v4250_v37  ;;  %4839 = vmatpush.msrb.mxu2 %v4792_v5  ;;  %v4629_v55 = vrot.slane %v10105_v38, 7 }
 0x6bb   :  { %v4662_v14 = vsel %vm1759_vm6, %v4659_v45, %v4661_v20  ;;  %v5305_v45 = vld [vmem:[%s11264_s5 + $0x110] sm:$0xff] }
 0x6bc   :  { %v4488_v47 = vrot.slane %v4289_v0, 2  ;;  %6676 = vmatmul.msk.f32.gmra.mxu3 %vm1811_vm4, %v4662_v14  ;;  %5348 = vmatpush.msra.mxu0 %v5305_v45  ;;  %v4900_v0 = vld [vmem:[%s11264_s5 + $0x68] sm:$0xff]  ;;  %v5303_v14 = vld [vmem:[%s11264_s5 + $0x100] sm:$0xff] }
 0x6bd   :  { %4840 = vmatpush.msrb.mxu2 %v4791_v15 }
 0x6be   :  { %v4489_v18 = vsel %vm2524_vm8, %v4486_v51, %v4488_v47  ;;  %v4901_v51 = vld [vmem:[%s11264_s5 + $0x70] sm:$0xff]  ;;  %5349 = vmatpush.msra.mxu0 %v5304_v11 }
 0x6bf   :  { %v4643_v17 = vmul.f32 %v10056_v25, %v4489_v18  ;;  %v5236_v59 = vrot.slane %v4489_v18, 6  ;;  %4950 = vmatpush.msra.mxu3 %v4901_v51  ;;  %v4353_v18 = vpop.f32.mrf.mxu1 }
 0x6c0   :  { %5350 = vmatpush.msra.mxu0 %v5303_v14 }
 0x6c1   :  { %v4253_v1 = vpop.f32.mrf.mxu2  ;;  %v4663_v29 = vrot.slane %v4643_v17, 1  ;;  %v10069_v41 = vsel %vm2392_vm7, %v5234_v43, %v5236_v59  ;;  %4951 = vmatpush.msra.mxu3 %v4900_v0  ;;  %v4899_v17 = vld [vmem:[%s11264_s5 + $0x60] sm:$0xff] }
 0x6c2   :  { %v4292_v2 = vadd.f32 %v4291_v58, %v4253_v1  ;;  %v10132_v1 = vsel %vm1627_vm5, %v4627_v52, %v4629_v55 }
 0x6c3   :  { %v4664_v4 = vsel %vm1759_vm6, %v4661_v20, %v4663_v29  ;;  %v4790_v20 = vld [vmem:[%s11264_s5 + $0x48] sm:$0xff]  ;;  %4952 = vmatpush.msra.mxu3 %v4899_v17 }
 0x6c4   :  { %v4490_v24 = vrot.slane %v4292_v2, 2  ;;  %6677 = vmatmul.msk.f32.gmra.mxu3 %vm1811_vm4, %v4664_v4  ;;  %4841 = vmatpush.msrb.mxu2 %v4790_v20  ;;  %v4297_v4 = vpop.f32.mrf.mxu3 }
 0x6c6   :  { %v4491_v33 = vsel %vm2524_vm8, %v4488_v47, %v4490_v24  ;;  %4842 = vmatpush.msrb.mxu2 %v4789_v60 }
 0x6c7   :  { %v4644_v32 = vmul.f32 %v10092_v9, %v4491_v33  ;;  %v5238_v35 = vrot.slane %v4491_v33, 6  ;;  %v4356_v15 = vpop.f32.mrf.mxu1 }
 0x6c9   :  { %v4256_v43 = vpop.f32.mrf.mxu2  ;;  %v4665_v37 = vrot.slane %v4644_v32, 1  ;;  %v10117_v58 = vsel %vm2392_vm7, %v5236_v59, %v5238_v35  ;;  %v6824_v59 = vld [vmem:[%s11264_s5 + $0x98] sm:$0xff] }
 0x6ca   :  { %v4295_v47 = vadd.f32 %v4294_v31, %v4256_v43  ;;  %6807 = vmatpush.msra.mxu2 %v6824_v59  ;;  %v10139_v31 = vpop.permute.xlu2 %4564 }
 0x6cb   :  { %v4666_v36 = vsel %vm1759_vm6, %v4663_v29, %v4665_v37 }
 0x6cc   :  { %v4492_v7 = vrot.slane %v4295_v47, 2  ;;  %6678 = vmatmul.msk.f32.gmra.mxu3 %vm1811_vm4, %v4666_v36  ;;  %6808 = vmatpush.msra.mxu2 %v6825_v63 }
 0x6ce   :  { %v4493_v29 = vsel %vm2524_vm8, %v4490_v24, %v4492_v7  ;;  %6809 = vmatpush.msra.mxu2 %v9827_v53  ;;  %v4631_v24 = vrot.slane %v10139_v31, 7  ;;  %v4171_v53 = vadd.f32 %v9986_v28, %v9916_v40  ;;  %v4577_v28 = vpop.permute.xlu0 %4576 }
 0x6cf   :  { %v4645_v2 = vmul.f32 %v10132_v1, %v4493_v29  ;;  %v5240_v42 = vrot.slane %v4493_v29, 6  ;;  %v4872_v36 = vrot.slane %v4577_v28, 3  ;;  %v4359_v29 = vpop.f32.mrf.mxu1 }
 0x6d0   :  { %6810 = vmatpush.msra.mxu2 %v9921_v21  ;;  %v10150_v51 = vsel %vm1627_vm5, %v4629_v55, %v4631_v24  ;;  %v4168_v21 = vadd.f32 %v9973_v30, %v9907_v6  ;;  %v4456_v14 = vrot.slane %v4171_v53, 2  ;;  %v4582_v55 = vpop.permute.xlu1 %4581  ;;  %v4174_v30 = vadd.f32 %v9999_v23, %v9934_v22 }
 0x6d1   :  { %v4259_v5 = vpop.f32.mrf.mxu2  ;;  %v4667_v16 = vrot.slane %v4645_v2, 1  ;;  %v10143_v52 = vsel %vm2392_vm7, %v5238_v35, %v5240_v42  ;;  %v4873_v60 = vrot.slane %v4582_v55, 3 }
 0x6d2   :  { %v4298_v45 = vadd.f32 %v4297_v4, %v4259_v5  ;;  %v4455_v17 = vrot.slane %v4168_v21, 2  ;;  %v4587_v22 = vpop.permute.xlu2 %4586 }
 0x6d3   :  { %v4668_v33 = vsel %vm1759_vm6, %v4665_v37, %v4667_v16  ;;  %v4874_v2 = vsel %vm2748_vm3, %v4872_v36, %v4873_v60 }
 0x6d4   :  { %v4494_v32 = vrot.slane %v4298_v45, 2  ;;  %6679 = vmatmul.msk.f32.gmra.mxu3 %vm1811_vm4, %v4668_v33  ;;  %v10170_v6 = vsel %vm2524_vm8, %v4455_v17, %v4456_v14 }
 0x6d5   :  { %v10181_v4 = vmul.f32 %v4874_v2, %v10170_v6 }
 0x6d6   :  { %v10155_v35 = vsel %vm2524_vm8, %v4492_v7, %v4494_v32  ;;  %v4875_v32 = vrot.slane %v4587_v22, 3 }
 0x6d7   :  { %v4646_v11 = vmul.f32 %v10150_v51, %v10155_v35  ;;  %v5242_v43 = vrot.slane %v10155_v35, 6  ;;  %v4911_v53 = vrot.slane %v10181_v4, 5 }
 0x6d9   :  { %v4391_v37 = vpop.f32.mrf.mxu2  ;;  %v4669_v20 = vrot.slane %v4646_v11, 1  ;;  %v10165_v0 = vsel %vm2392_vm7, %v5240_v42, %v5242_v43  ;;  %v10178_v42 = vsel %vm2524_vm8, 0.0, %v4455_v17 }
 0x6da   :  { %v4392_v40 = vadd.f32 %v4391_v37, %v4353_v18  ;;  %v4892_v23 = vmul.f32 %v4872_v36, %v10178_v42 }
 0x6db   :  { %v4670_v47 = vsel %vm1759_vm6, %v4667_v16, %v4669_v20  ;;  %v4458_v16 = vrot.slane %v4174_v30, 2 }
 0x6dc   :  { %v4511_v7 = vrot.slane %v4392_v40, 2  ;;  %6680 = vmatmul.msk.f32.gmra.mxu3 %vm1811_vm4, %v4670_v47 }
 0x6dd   :  { %v10189_v11 = vsel %vm2524_vm8, %v4456_v14, %v4458_v16 }
 0x6de   :  { %v4531_v59 = vsel %vm2524_vm8, 0.0, %v4511_v7 }
 0x6df   :  { %v4567_v18 = vmul.f32 %v10011_v50, %v4531_v59  ;;  %v4782_v50 = vmul.f32 %v10016_v54, %v4531_v59  ;;  %v5136_v45 = vmul.f32 %v4872_v36, %v4531_v59  ;;  %v5308_v21 = vrot.slane %v4531_v59, 6 }
 0x6e0   :  { %v4910_v36 = vrot.slane %v4892_v23, 5  ;;  %v10218_v23 = vadd.f32 %v10026_v34, %v9955_v3 }
 0x6e1   :  { %v4609_v63 = vmul.f32 %v4577_v28, %v4567_v18  ;;  %v4394_v5 = vpop.f32.mrf.mxu2  ;;  %v4800_v17 = vrot.slane %v4782_v50, 1  ;;  %v5154_v30 = vrot.slane %v5136_v45, 5 }
 0x6e2   :  { %v4395_v24 = vadd.f32 %v4394_v5, %v4356_v15  ;;  %v10193_v15 = vadd.f32 %v10009_v19, %v9946_v27  ;;  %v4362_v27 = vpop.f32.mrf.mxu1 }
 0x6e3   :  { %6682 = vmatmul.msk.f32.vlgmr.msra.gmra.mxu1 %vm1811_vm4, %v4609_v63 }
 0x6e4   :  { %v4512_v33 = vrot.slane %v4395_v24, 2  ;;  %6681 = vmatmul.msk.f32.gmra.mxu3 %vm1811_vm4, %v4669_v20  ;;  %v4876_v20 = vsel %vm2748_vm3, %v4873_v60, %v4875_v32 }
 0x6e6   :  { %v4513_v37 = vsel %vm2524_vm8, %v4511_v7, %v4512_v33  ;;  %v10201_v7 = vmul.f32 %v4876_v20, %v10189_v11 }
 0x6e7   :  { %v4783_v40 = vmul.f32 %v10023_v61, %v4513_v37  ;;  %v5137_v54 = vmul.f32 %v4874_v2, %v4513_v37  ;;  %v5309_v28 = vrot.slane %v4513_v37, 6  ;;  %v4568_v47 = vmul.f32 %v10013_v49, %v4513_v37  ;;  %v4592_v49 = vpop.permute.xlu0 %4591 }
 0x6e8   :  { %v4460_v61 = vrot.slane %v10193_v15, 2  ;;  %v4912_v2 = vsel %vm969_vm2, %v4910_v36, %v4911_v53  ;;  %v4877_v5 = vrot.slane %v4592_v49, 3  ;;  %v4913_v45 = vrot.slane %v10201_v7, 5  ;;  %v5060_v7 = vld [vmem:[%s11264_s5 + $0xa8] sm:$0xff] }
 0x6e9   :  { %v4801_v14 = vrot.slane %v4783_v40, 1  ;;  %v5155_v18 = vrot.slane %v5137_v54, 5  ;;  %v4397_v4 = vpop.f32.mrf.mxu2  ;;  %v4610_v63 = vmul.f32 %v4582_v55, %v4568_v47  ;;  %v5310_v19 = vsel %vm2392_vm7, %v5308_v21, %v5309_v28  ;;  %v10225_v47 = vpop.permute.xlu1 %4596 }
 0x6ea   :  { %v4398_v59 = vadd.f32 %v4397_v4, %v4359_v29  ;;  %6731 = vmatmul.msk.f32.vlgmr.msra.gmra.mxu0 %vm1811_vm4, %v5310_v19  ;;  %v10214_v29 = vsel %vm2524_vm8, %v4458_v16, %v4460_v61  ;;  %v4878_v54 = vsel %vm2748_vm3, %v4875_v32, %v4877_v5  ;;  %v4914_v32 = vsel %vm969_vm2, %v4911_v53, %v4913_v45 }
 0x6eb   :  { %6683 = vmatmul.msk.f32.gmra.mxu1 %vm1811_vm4, %v4610_v63  ;;  %v4802_v60 = vsel %vm1759_vm6, %v4800_v17, %v4801_v14  ;;  %v10209_v55 = vsel %vm969_vm2, %v5154_v30, %v5155_v18  ;;  %v10229_v34 = vmul.f32 %v4878_v54, %v10214_v29  ;;  %v5062_v63 = vld [vmem:[%s11264_s5 + $0xb8] sm:$0xff] }
 0x6ec   :  { %v4514_v24 = vrot.slane %v4398_v59, 2  ;;  %6689 = vmatmul.msk.f32.vlgmr.msrb.gmra.mxu2 %vm1811_vm4, %v4802_v60  ;;  %6696 = vmatmul.msk.f32.vlgmr.msra.gmra.mxu3 %vm1811_vm4, %v4912_v2 }
 0x6ed   :  { %5103 = vmatpush.msrb.mxu1 %v5062_v63  ;;  %v4915_v19 = vrot.slane %v10229_v34, 5  ;;  %v5229_v34 = vld [vmem:[%s11264_s5 + $0xf8] sm:$0xff] }
 0x6ee   :  { %v4515_v50 = vsel %vm2524_vm8, %v4512_v33, %v4514_v24  ;;  %v4462_v33 = vrot.slane %v10218_v23, 2  ;;  %5270 = vmatpush.msrb.mxu3 %v5229_v34 }
 0x6ef   :  { %v4569_v15 = vmul.f32 %v10029_v12, %v4515_v50  ;;  %v4784_v21 = vmul.f32 %v10038_v13, %v4515_v50  ;;  %v5138_v37 = vmul.f32 %v4876_v20, %v4515_v50  ;;  %v5311_v40 = vrot.slane %v4515_v50, 6  ;;  %v4365_v20 = vpop.f32.mrf.mxu1 }
 0x6f0   :  { %v10249_v53 = vsel %vm2524_vm8, %v4460_v61, %v4462_v33 }
 0x6f1   :  { %v4400_v16 = vpop.f32.mrf.mxu2  ;;  %v4611_v36 = vmul.f32 %v4587_v22, %v4569_v15  ;;  %v4803_v17 = vrot.slane %v4784_v21, 1  ;;  %v5157_v30 = vrot.slane %v5138_v37, 5  ;;  %v5312_v3 = vsel %vm2392_vm7, %v5309_v28, %v5311_v40  ;;  %v10264_v21 = vpop.permute.xlu2 %4601 }
 0x6f2   :  { %v4401_v12 = vadd.f32 %v4400_v16, %v4362_v27  ;;  %6732 = vmatmul.msk.f32.gmra.mxu0 %vm1811_vm4, %v5312_v3  ;;  %v4879_v28 = vrot.slane %v10225_v47, 3 }
 0x6f3   :  { %6684 = vmatmul.msk.f32.gmra.mxu1 %vm1811_vm4, %v4611_v36  ;;  %v4804_v13 = vsel %vm1759_vm6, %v4801_v14, %v4803_v17  ;;  %v10237_v22 = vsel %vm969_vm2, %v5155_v18, %v5157_v30  ;;  %v5061_v14 = vld [vmem:[%s11264_s5 + $0xb0] sm:$0xff]  ;;  %v10253_v18 = vadd.f32 %v10042_v26, %v9965_v48  ;;  %v4881_v36 = vrot.slane %v10264_v21, 3 }
 0x6f4   :  { %v4516_v4 = vrot.slane %v4401_v12, 2  ;;  %6690 = vmatmul.msk.f32.gmra.mxu2 %vm1811_vm4, %v4804_v13  ;;  %6697 = vmatmul.msk.f32.gmra.mxu3 %vm1811_vm4, %v4914_v32  ;;  %v4880_v23 = vsel %vm2748_vm3, %v4877_v5, %v4879_v28  ;;  %v4916_v5 = vsel %vm969_vm2, %v4913_v45, %v4915_v19  ;;  %v4186_v45 = vadd.f32 %v10075_v8, %v9977_v46 }
 0x6f5   :  { %5104 = vmatpush.msrb.mxu1 %v5061_v14  ;;  %v10267_v37 = vmul.f32 %v4880_v23, %v10249_v53 }
 0x6f6   :  { %v4517_v27 = vsel %vm2524_vm8, %v4514_v24, %v4516_v4 }
 0x6f7   :  { %v4570_v59 = vmul.f32 %v10047_v44, %v4517_v27  ;;  %v4785_v60 = vmul.f32 %v10056_v25, %v4517_v27  ;;  %v5139_v2 = vmul.f32 %v4878_v54, %v4517_v27  ;;  %v5313_v61 = vrot.slane %v4517_v27, 6  ;;  %5105 = vmatpush.msrb.mxu1 %v5060_v7  ;;  %v5059_v54 = vld [vmem:[%s11264_s5 + $0xa0] sm:$0xff]  ;;  %v4368_v3 = vpop.f32.mrf.mxu1 }
 0x6f8   :  { %v4464_v44 = vrot.slane %v10253_v18, 2  ;;  %v4917_v12 = vrot.slane %v10267_v37, 5  ;;  %v4607_v18 = vpop.permute.xlu0 %4606  ;;  %v5144_v37 = vld [vmem:[%s11264_s5 + $0xc8] sm:$0xff] }
 0x6f9   :  { %v4403_v50 = vpop.f32.mrf.mxu2  ;;  %v4612_v48 = vmul.f32 %v4592_v49, %v4570_v59  ;;  %v4805_v26 = vrot.slane %v4785_v60, 1  ;;  %v5159_v24 = vrot.slane %v5139_v2, 5  ;;  %v5314_v15 = vsel %vm2392_vm7, %v5311_v40, %v5313_v61  ;;  %5106 = vmatpush.msrb.mxu1 %v5059_v54  ;;  %v5226_v2 = vld [vmem:[%s11264_s5 + $0xe0] sm:$0xff] }
 0x6fa   :  { %v4404_v25 = vadd.f32 %v4403_v50, %v4365_v20  ;;  %6733 = vmatmul.msk.f32.gmra.mxu0 %vm1811_vm4, %v5314_v15  ;;  %v5228_v20 = vld [vmem:[%s11264_s5 + $0xf0] sm:$0xff]  ;;  %v4466_v59 = vrot.slane %v4186_v45, 2 }
 0x6fb   :  { %6685 = vmatmul.msk.f32.gmra.mxu1 %vm1811_vm4, %v4612_v48  ;;  %v4806_v49 = vsel %vm1759_vm6, %v4803_v17, %v4805_v26  ;;  %v10278_v40 = vsel %vm969_vm2, %v5157_v30, %v5159_v24  ;;  %v10287_v17 = vsel %vm2524_vm8, %v4462_v33, %v4464_v44  ;;  %v4882_v33 = vsel %vm2748_vm3, %v4879_v28, %v4881_v36  ;;  %v5146_v48 = vld [vmem:[%s11264_s5 + $0xd8] sm:$0xff] }
 0x6fc   :  { %v4518_v16 = vrot.slane %v4404_v25, 2  ;;  %6691 = vmatmul.msk.f32.gmra.mxu2 %vm1811_vm4, %v4806_v49  ;;  %6698 = vmatmul.msk.f32.gmra.mxu3 %vm1811_vm4, %v4916_v5  ;;  %v4897_v7 = vmul.f32 %v4882_v33, %v10287_v17 }
 0x6fd   :  { %5271 = vmatpush.msrb.mxu3 %v5228_v20  ;;  %5193 = vmatpush.msrb.mxu2 %v5146_v48 }
 0x6fe   :  { %v4519_v30 = vsel %vm2524_vm8, %v4516_v4, %v4518_v16  ;;  %v4919_v15 = vrot.slane %v4897_v7, 5 }
 0x6ff   :  { %v4571_v13 = vmul.f32 %v10066_v10, %v4519_v30  ;;  %v4786_v32 = vmul.f32 %v10092_v9, %v4519_v30  ;;  %v5140_v63 = vmul.f32 %v4880_v23, %v4519_v30  ;;  %v5315_v14 = vrot.slane %v4519_v30, 6  ;;  %v5227_v10 = vld [vmem:[%s11264_s5 + $0xe8] sm:$0xff]  ;;  %v4371_v25 = vpop.f32.mrf.mxu1 }
 0x700   :  { %5272 = vmatpush.msrb.mxu3 %v5227_v10 }
 0x701   :  { %v4406_v46 = vpop.f32.mrf.mxu2  ;;  %v4613_v8 = vmul.f32 %v10225_v47, %v4571_v13  ;;  %v4807_v4 = vrot.slane %v4786_v32, 1  ;;  %v5161_v27 = vrot.slane %v5140_v63, 5  ;;  %v5316_v9 = vsel %vm2392_vm7, %v5313_v61, %v5315_v14 }
 0x702   :  { %v4407_v60 = vadd.f32 %v4406_v46, %v4368_v3  ;;  %6734 = vmatmul.msk.f32.gmra.mxu0 %vm1811_vm4, %v5316_v9  ;;  %v4918_v47 = vsel %vm969_vm2, %v4915_v19, %v4917_v12  ;;  %v4883_v61 = vrot.slane %v4607_v18, 3  ;;  %v5145_v19 = vld [vmem:[%s11264_s5 + $0xd0] sm:$0xff]  ;;  %5273 = vmatpush.msrb.mxu3 %v5226_v2 }
 0x703   :  { %6686 = vmatmul.msk.f32.gmra.mxu1 %vm1811_vm4, %v4613_v8  ;;  %v4808_v28 = vsel %vm1759_vm6, %v4805_v26, %v4807_v4  ;;  %v10313_v23 = vsel %vm969_vm2, %v5159_v24, %v5161_v27  ;;  %v10324_v26 = vsel %vm2524_vm8, %v4464_v44, %v4466_v59  ;;  %5194 = vmatpush.msrb.mxu2 %v5145_v19 }
 0x704   :  { %v4520_v50 = vrot.slane %v4407_v60, 2  ;;  %6692 = vmatmul.msk.f32.gmra.mxu2 %vm1811_vm4, %v4808_v28  ;;  %6699 = vmatmul.msk.f32.gmra.mxu3 %vm1811_vm4, %v4918_v47  ;;  %v4884_v34 = vsel %vm2748_vm3, %v4881_v36, %v4883_v61  ;;  %v5067_v47 = vrot.slane %v10189_v11, 6  ;;  %v5071_v11 = vrot.slane %v10249_v53, 6 }
 0x705   :  { %5195 = vmatpush.msrb.mxu2 %v5144_v37  ;;  %v4898_v32 = vmul.f32 %v4884_v34, %v10324_v26 }
 0x706   :  { %v4521_v24 = vsel %vm2524_vm8, %v4518_v16, %v4520_v50 }
 0x707   :  { %v4572_v54 = vmul.f32 %v10105_v38, %v4521_v24  ;;  %v4787_v49 = vmul.f32 %v10132_v1, %v4521_v24  ;;  %v5141_v5 = vmul.f32 %v4882_v33, %v4521_v24  ;;  %v5317_v3 = vrot.slane %v4521_v24, 6 }
 0x708   :  { %v4920_v1 = vsel %vm969_vm2, %v4917_v12, %v4919_v15  ;;  %v4921_v33 = vrot.slane %v4898_v32, 5 }
 0x709   :  { %v4409_v45 = vpop.f32.mrf.mxu2  ;;  %v4614_v44 = vmul.f32 %v10264_v21, %v4572_v54  ;;  %v4809_v30 = vrot.slane %v4787_v49, 1  ;;  %v5163_v16 = vrot.slane %v5141_v5, 5  ;;  %v5318_v13 = vsel %vm2392_vm7, %v5315_v14, %v5317_v3  ;;  %v5143_v21 = vld [vmem:[%s11264_s5 + $0xc0] sm:$0xff] }
 0x70a   :  { %v4410_v20 = vadd.f32 %v4409_v45, %v4371_v25  ;;  %6735 = vmatmul.msk.f32.gmra.mxu0 %vm1811_vm4, %v5318_v13  ;;  %5196 = vmatpush.msrb.mxu2 %v5143_v21  ;;  %v4922_v60 = vsel %vm969_vm2, %v4919_v15, %v4921_v33  ;;  %v5414_v21 = vld [vmem:[%s11275_s16 + $0x80] sm:$0xff] }
 0x70b   :  { %6687 = vmatmul.msk.f32.gmra.mxu1 %vm1811_vm4, %v4614_v44  ;;  %v4810_v38 = vsel %vm1759_vm6, %v4807_v4, %v4809_v30  ;;  %v5164_v36 = vsel %vm969_vm2, %v5161_v27, %v5163_v16  ;;  %v5419_v44 = vld [vmem:[%s11275_s16 + $0xa8] sm:$0xff] }
 0x70c   :  { %v4522_v63 = vrot.slane %v4410_v20, 2  ;;  %6693 = vmatmul.msk.f32.gmra.mxu2 %vm1811_vm4, %v4810_v38  ;;  %6700 = vmatmul.msk.f32.gmra.mxu3 %vm1811_vm4, %v4920_v1  ;;  %v5422_v20 = vld [vmem:[%s11275_s16 + $0xc0] sm:$0xff]  ;;  %v5412_v38 = vld [vmem:[%s11275_s16 + $0x70] sm:$0xff]  ;;  %v5413_v1 = vld [vmem:[%s11275_s16 + $0x78] sm:$0xff] }
 0x70d   :  { %5459 = vmatpush.msra.mxu1 %v5419_v44  ;;  %5573 = vmatpush.msrb.mxu0 %v5422_v20 }
 0x70e   :  { %v4523_v14 = vsel %vm2524_vm8, %v4520_v50, %v4522_v63 }
 0x70f   :  { %v4573_v46 = vmul.f32 %v10139_v31, %v4523_v14  ;;  %v4788_v8 = vmul.f32 %v10150_v51, %v4523_v14  ;;  %v5142_v12 = vmul.f32 %v4884_v34, %v4523_v14  ;;  %v5319_v4 = vrot.slane %v4523_v14, 6  ;;  %5460 = vmatpush.msra.mxu1 %v5412_v38 }
 0x710   :  { %v5064_v31 = vrot.slane %v10178_v42, 6  ;;  %v5065_v51 = vrot.slane %v10170_v6, 6  ;;  %v5069_v6 = vrot.slane %v10214_v29, 6 }
 0x711   :  { %v4615_v10 = vmul.f32 %v4607_v18, %v4573_v46  ;;  %v4811_v9 = vrot.slane %v4788_v8, 1  ;;  %v5165_v7 = vrot.slane %v5142_v12, 5  ;;  %v5320_v27 = vsel %vm2392_vm7, %v5317_v3, %v5319_v4  ;;  %v5406_v46 = vld [vmem:[%s11275_s16 + $0x40] sm:$0xff]  ;;  %v5407_v8 = vld [vmem:[%s11275_s16 + $0x48] sm:$0xff]  ;;  %v5408_v12 = vld [vmem:[%s11275_s16 + $0x50] sm:$0xff] }
 0x712   :  { %6736 = vmatmul.msk.f32.gmra.mxu0 %vm1811_vm4, %v5320_v27  ;;  %v5066_v18 = vsel %vm2392_vm7, %v5064_v31, %v5065_v51  ;;  %v5068_v2 = vsel %vm2392_vm7, %v5065_v51, %v5067_v47  ;;  %v5070_v42 = vsel %vm2392_vm7, %v5067_v47, %v5069_v6  ;;  %v5072_v56 = vsel %vm2392_vm7, %v5069_v6, %v5071_v11 }
 0x713   :  { %6688 = vmatmul.msk.f32.gmra.mxu1 %vm1811_vm4, %v4615_v10  ;;  %v4812_v59 = vsel %vm1759_vm6, %v4809_v30, %v4811_v9  ;;  %v5166_v28 = vsel %vm969_vm2, %v5163_v16, %v5165_v7  ;;  %v5420_v30 = vld [vmem:[%s11275_s16 + $0xb0] sm:$0xff]  ;;  %v5421_v16 = vld [vmem:[%s11275_s16 + $0xb8] sm:$0xff]  ;;  %v5399_v10 = vld [vmem:[%s11275_s16 + $0x8] sm:$0xff] }
 0x714   :  { %6694 = vmatmul.msk.f32.gmra.mxu2 %vm1811_vm4, %v4812_v59  ;;  %6701 = vmatmul.msk.f32.gmra.mxu3 %vm1811_vm4, %v4922_v60 }
 0x715   :  { %5535 = vmatpush.msra.mxu3 %v5421_v16 }
 0x717   :  { %5536 = vmatpush.msra.mxu3 %v5414_v21 }
 0x719   :  { %5537 = vmatpush.msra.mxu3 %v5407_v8 }
 0x71a   :  { %6737 = vmatmul.msk.f32.gmra.mxu0 %vm1811_vm4, %v5319_v4  ;;  %v5398_v4 = vld [vmem:[%s11275_s16] sm:$0xff] }
 0x71b   :  { %6710 = vmatmul.msk.f32.vlgmr.msrb.gmra.mxu1 %vm1811_vm4, %v5066_v18 }
 0x71c   :  { %6695 = vmatmul.msk.f32.gmra.mxu2 %vm1811_vm4, %v4811_v9  ;;  %6702 = vmatmul.msk.f32.gmra.mxu3 %vm1811_vm4, %v4921_v33  ;;  %v5405_v33 = vld [vmem:[%s11275_s16 + $0x38] sm:$0xff]  ;;  %v5400_v9 = vld [vmem:[%s11275_s16 + $0x10] sm:$0xff] }
 0x71d   :  { %5461 = vmatpush.msra.mxu1 %v5405_v33  ;;  %5538 = vmatpush.msra.mxu3 %v5400_v9 }
 0x71f   :  { %5462 = vmatpush.msra.mxu1 %v5398_v4 }
 0x723   :  { %6711 = vmatmul.msk.f32.gmra.mxu1 %vm1811_vm4, %v5068_v2 }
 0x724   :  { %6709 = vmatmul.msk.f32.vlgmr.msra.gmra.mxu2 %vm1811_vm4, %v4998_v62  ;;  %6724 = vmatmul.msk.f32.vlgmr.msrb.gmra.mxu3 %vm1811_vm4, %v10032_v39  ;;  %v5073_v62 = vrot.slane %v10287_v17, 6 }
 0x725   :  { %5497 = vmatpush.msra.mxu2 %v5420_v30 }
 0x727   :  { %5498 = vmatpush.msra.mxu2 %v5413_v1 }
 0x729   :  { %5499 = vmatpush.msra.mxu2 %v5406_v46 }
 0x72b   :  { %6712 = vmatmul.msk.f32.gmra.mxu1 %vm1811_vm4, %v5070_v42  ;;  %5500 = vmatpush.msra.mxu2 %v5399_v10 }
 0x72c   :  { %6717 = vmatmul.msk.f32.vlgmr.msrb.gmra.mxu2 %vm1811_vm4, %v10209_v55  ;;  %6725 = vmatmul.msk.f32.gmra.mxu3 %vm1811_vm4, %v10045_v57  ;;  %v5074_v55 = vsel %vm2392_vm7, %v5071_v11, %v5073_v62  ;;  %v5075_v57 = vrot.slane %v10324_v26, 6 }
 0x733   :  { %6713 = vmatmul.msk.f32.gmra.mxu1 %vm1811_vm4, %v5072_v56 }
 0x734   :  { %6718 = vmatmul.msk.f32.gmra.mxu2 %vm1811_vm4, %v10237_v22  ;;  %6726 = vmatmul.msk.f32.gmra.mxu3 %vm1811_vm4, %v10069_v41  ;;  %v5076_v41 = vsel %vm2392_vm7, %v5073_v62, %v5075_v57 }
 0x737   :  { %v10387_v39 = vpop.f32.mrf.mxu3 }
 0x73b   :  { %6714 = vmatmul.msk.f32.gmra.mxu1 %vm1811_vm4, %v5074_v55 }
 0x73c   :  { %6719 = vmatmul.msk.f32.gmra.mxu2 %vm1811_vm4, %v10278_v40  ;;  %6727 = vmatmul.msk.f32.gmra.mxu3 %vm1811_vm4, %v10117_v58 }
 0x73f   :  { %v10396_v29 = vpop.f32.mrf.mxu3 }
 0x743   :  { %6715 = vmatmul.msk.f32.gmra.mxu1 %vm1811_vm4, %v5076_v41 }
 0x744   :  { %6720 = vmatmul.msk.f32.gmra.mxu2 %vm1811_vm4, %v10313_v23  ;;  %6728 = vmatmul.msk.f32.gmra.mxu3 %vm1811_vm4, %v10143_v52 }
 0x747   :  { %v10404_v22 = vpop.f32.mrf.mxu3 }
 0x74b   :  { %6716 = vmatmul.msk.f32.gmra.mxu1 %vm1811_vm4, %v5075_v57 }
 0x74c   :  { %6721 = vmatmul.msk.f32.gmra.mxu2 %vm1811_vm4, %v5164_v36  ;;  %6729 = vmatmul.msk.f32.gmra.mxu3 %vm1811_vm4, %v10165_v0  ;;  %v10425_v0 = vpop.f32.mrf.mxu0  ;;  %v5415_v36 = vld [vmem:[%s11275_s16 + $0x88] sm:$0xff] }
 0x74d   :  { %5574 = vmatpush.msrb.mxu0 %v5415_v36 }
 0x74f   :  { %v10410_v58 = vpop.f32.mrf.mxu3  ;;  %5575 = vmatpush.msrb.mxu0 %v5408_v12 }
 0x754   :  { %6722 = vmatmul.msk.f32.gmra.mxu2 %vm1811_vm4, %v5166_v28  ;;  %6730 = vmatmul.msk.f32.gmra.mxu3 %vm1811_vm4, %v5242_v43  ;;  %v10429_v35 = vpop.f32.mrf.mxu0 }
 0x757   :  { %v10416_v53 = vpop.f32.mrf.mxu3 }
 0x75c   :  { %6723 = vmatmul.msk.f32.gmra.mxu2 %vm1811_vm4, %v5165_v7  ;;  %v10441_v25 = vpop.f32.mrf.mxu0  ;;  %v5401_v7 = vld [vmem:[%s11275_s16 + $0x18] sm:$0xff] }
 0x75d   :  { %5576 = vmatpush.msrb.mxu0 %v5401_v7 }
 0x75f   :  { %v10419_v52 = vpop.f32.mrf.mxu3 }
 0x760   :  { %v4761_v40 = vpop.f32.mrf.mxu1 }
 0x761   :  { %v4762_v31 = vadd.f32 %v4761_v40, %v10387_v39 }
 0x764   :  { %v10449_v3 = vpop.f32.mrf.mxu0 }
 0x767   :  { %v10421_v17 = vpop.f32.mrf.mxu3 }
 0x768   :  { %v10423_v23 = vpop.f32.mrf.mxu1 }
 0x769   :  { %v4765_v11 = vadd.f32 %v10423_v23, %v10396_v29 }
 0x76c   :  { %v10466_v32 = vpop.f32.mrf.mxu0 }
 0x76f   :  { %v4844_v61 = vpop.f32.mrf.mxu2  ;;  %v4954_v50 = vpop.f32.mrf.mxu3 }
 0x770   :  { %v10427_v48 = vpop.f32.mrf.mxu1  ;;  %v4865_v51 = vadd.f32 %v4844_v61, %v4762_v31 }
 0x771   :  { %v4768_v40 = vadd.f32 %v10427_v48, %v10404_v22 }
 0x772   :  { %v4975_v6 = vadd.f32 %v4954_v50, %v4865_v51  ;;  %v10529_v50 = vld [vmem:[%s11265_s6] ss:$0 sm:$0xff] }
 0x774   :  { %v10511_v59 = vpop.f32.mrf.mxu0  ;;  %v5052_v56 = vadd.f32 %v10425_v0, %v4975_v6 }
 0x777   :  { %v4847_v43 = vpop.f32.mrf.mxu2  ;;  %v10431_v19 = vpop.f32.mrf.mxu3 }
 0x778   :  { %v10433_v26 = vpop.f32.mrf.mxu1  ;;  %v4866_v62 = vadd.f32 %v4847_v43, %v4765_v11 }
 0x779   :  { %v4771_v21 = vadd.f32 %v10433_v26, %v10410_v58 }
 0x77a   :  { %v4976_v44 = vadd.f32 %v10431_v19, %v4866_v62 }
 0x77c   :  { %v5352_v18 = vpop.f32.mrf.mxu0  ;;  %v5053_v23 = vadd.f32 %v10429_v35, %v4976_v44 }
 0x77f   :  { %v10435_v24 = vpop.f32.mrf.mxu2  ;;  %v10437_v15 = vpop.f32.mrf.mxu3 }
 0x780   :  { %v10439_v37 = vpop.f32.mrf.mxu1  ;;  %v4867_v0 = vadd.f32 %v10435_v24, %v4768_v40  ;;  %v5411_v40 = vld [vmem:[%s11275_s16 + $0x68] sm:$0xff] }
 0x781   :  { %v4774_v9 = vadd.f32 %v10439_v37, %v10416_v53 }
 0x782   :  { %v4977_v38 = vadd.f32 %v10437_v15, %v4867_v0 }
 0x784   :  { %v5355_v39 = vpop.f32.mrf.mxu0  ;;  %v5054_v24 = vadd.f32 %v10441_v25, %v4977_v38 }
 0x787   :  { %v10443_v54 = vpop.f32.mrf.mxu2  ;;  %v10445_v49 = vpop.f32.mrf.mxu3 }
 0x788   :  { %v10447_v5 = vpop.f32.mrf.mxu1  ;;  %v4868_v15 = vadd.f32 %v10443_v54, %v4771_v21 }
 0x789   :  { %v4777_v11 = vadd.f32 %v10447_v5, %v10419_v52  ;;  %v5424_v52 = vld [vmem:[%s11275_s16 + $0xd0] sm:$0xff]  ;;  %v5425_v5 = vld [vmem:[%s11275_s16 + $0xd8] sm:$0xff] }
 0x78a   :  { %v4978_v12 = vadd.f32 %v10445_v49, %v4868_v15  ;;  %5649 = vmatpush.msrb.mxu2 %v5424_v52  ;;  %5687 = vmatpush.msrb.mxu3 %v5425_v5 }
 0x78c   :  { %v5358_v35 = vpop.f32.mrf.mxu0  ;;  %v5055_v54 = vadd.f32 %v10449_v3, %v4978_v12  ;;  %v5423_v3 = vld [vmem:[%s11275_s16 + $0xc8] sm:$0xff] }
 0x78d   :  { %5611 = vmatpush.msrb.mxu1 %v5423_v3 }
 0x78f   :  { %v10451_v34 = vpop.f32.mrf.mxu2  ;;  %v10453_v45 = vpop.f32.mrf.mxu3 }
 0x790   :  { %v10464_v13 = vpop.f32.mrf.mxu1  ;;  %v4869_v49 = vadd.f32 %v10451_v34, %v4774_v9 }
 0x794   :  { %v5361_v53 = vpop.f32.mrf.mxu0 }
 0x797   :  { %v10483_v63 = vpop.f32.mrf.mxu2  ;;  %v10485_v14 = vpop.f32.mrf.mxu3 }
 0x798   :  { %v5108_v27 = vpop.f32.mrf.mxu1 }
 0x799   :  { %v5129_v55 = vadd.f32 %v5108_v27, %v5052_v56 }
 0x79f   :  { %v10513_v60 = vpop.f32.mrf.mxu2  ;;  %v10515_v28 = vpop.f32.mrf.mxu3 }
 0x7a0   :  { %v5111_v42 = vpop.f32.mrf.mxu1 }
 0x7a1   :  { %v5130_v16 = vadd.f32 %v5111_v42, %v5053_v23 }
 0x7a7   :  { %v10518_v47 = vpop.f32.mrf.mxu2  ;;  %v5275_v2 = vpop.f32.mrf.mxu3 }
 0x7a8   :  { %v5114_v29 = vpop.f32.mrf.mxu1 }
 0x7a9   :  { %v5131_v26 = vadd.f32 %v5114_v29, %v5054_v24  ;;  %v5364_v29 = vpop.f32.mrf.mxu0 }
 0x7af   :  { %v5198_v57 = vpop.f32.mrf.mxu2  ;;  %v5278_v41 = vpop.f32.mrf.mxu3 }
 0x7b0   :  { %v5219_v30 = vadd.f32 %v5198_v57, %v5129_v55  ;;  %v5117_v58 = vpop.f32.mrf.mxu1  ;;  %v5416_v55 = vld [vmem:[%s11275_s16 + $0x90] sm:$0xff]  ;;  %v5417_v57 = vld [vmem:[%s11275_s16 + $0x98] sm:$0xff] }
 0x7b1   :  { %v5132_v37 = vadd.f32 %v5117_v58, %v5055_v54  ;;  %5612 = vmatpush.msrb.mxu1 %v5416_v55  ;;  %5650 = vmatpush.msrb.mxu2 %v5417_v57 }
 0x7b2   :  { %v5296_v61 = vadd.f32 %v5275_v2, %v5219_v30  ;;  %v4979_v2 = vadd.f32 %v10453_v45, %v4869_v49  ;;  %v4870_v45 = vadd.f32 %v10483_v63, %v4777_v11  ;;  %v5410_v63 = vld [vmem:[%s11275_s16 + $0x60] sm:$0xff] }
 0x7b3   :  { %5651 = vmatpush.msrb.mxu2 %v5410_v63 }
 0x7b4   :  { %v5373_v43 = vadd.f32 %v5352_v18, %v5296_v61  ;;  %v5056_v34 = vadd.f32 %v10466_v32, %v4979_v2  ;;  %v5409_v32 = vld [vmem:[%s11275_s16 + $0x58] sm:$0xff]  ;;  %v4980_v23 = vadd.f32 %v10485_v14, %v4870_v45  ;;  %v5404_v14 = vld [vmem:[%s11275_s16 + $0x30] sm:$0xff] }
 0x7b5   :  { %5613 = vmatpush.msrb.mxu1 %v5409_v32  ;;  %v5756_v32 = vld [vmem:[%s11276_s17 + $0x150] sm:$0x3] }
 0x7b6   :  { %v5384_v19 = vadd.f32 %v10529_v50, %v5373_v43 }
 0x7b7   :  { %v5201_v20 = vpop.f32.mrf.mxu2  ;;  %v5281_v48 = vpop.f32.mrf.mxu3 }
 0x7b8   :  { %v10535_v1 = vmax.f32 %v5384_v19, 0.0  ;;  %v5220_v22 = vadd.f32 %v5201_v20, %v5130_v16  ;;  %v5120_v51 = vpop.f32.mrf.mxu1  ;;  %v5402_v19 = vld [vmem:[%s11275_s16 + $0x20] sm:$0xff]  ;;  %v5403_v20 = vld [vmem:[%s11275_s16 + $0x28] sm:$0xff] }
 0x7b9   :  { %v5133_v30 = vadd.f32 %v5120_v51, %v5056_v34  ;;  %5614 = vmatpush.msrb.mxu1 %v5402_v19  ;;  %5652 = vmatpush.msrb.mxu2 %v5403_v20 }
 0x7ba   :  { %v5297_v36 = vadd.f32 %v5278_v41, %v5220_v22  ;;  %6738 = vmatmul.msk.f32.vlgmr.msra.gmra.mxu1 %vm1811_vm4, %v10535_v1  ;;  %6745 = vmatmul.msk.f32.vlgmr.msra.gmra.mxu2 %vm1811_vm4, %v10535_v1  ;;  %v5418_v41 = vld [vmem:[%s11275_s16 + $0xa0] sm:$0xff]  ;;  %v4780_v22 = vadd.f32 %v10464_v13, %v10421_v17 }
 0x7bb   :  { %6752 = vmatmul.msk.f32.vlgmr.msra.gmra.mxu3 %vm1811_vm4, %v10535_v1  ;;  %6759 = vmatmul.msk.f32.vlgmr.msrb.gmra.mxu0 %vm1811_vm4, %v10535_v1 }
 0x7bc   :  { %v5374_v33 = vadd.f32 %v5355_v39, %v5297_v36  ;;  %5688 = vmatpush.msrb.mxu3 %v5418_v41  ;;  %v4871_v36 = vadd.f32 %v10513_v60, %v4780_v22  ;;  %v5721_v22 = vld [vmem:[%s11276_s17 + $0x38] sm:$0xff] }
 0x7be   :  { %v5385_v46 = vadd.f32 %v10529_v50, %v5374_v33  ;;  %5689 = vmatpush.msrb.mxu3 %v5411_v40 }
 0x7bf   :  { %v5204_v8 = vpop.f32.mrf.mxu2  ;;  %v5284_v25 = vpop.f32.mrf.mxu3 }
 0x7c0   :  { %v10551_v4 = vmax.f32 %v5385_v46, 0.0  ;;  %v5221_v10 = vadd.f32 %v5204_v8, %v5131_v26  ;;  %v5123_v16 = vpop.f32.mrf.mxu1  ;;  %5690 = vmatpush.msrb.mxu3 %v5404_v14  ;;  %v5367_v46 = vpop.f32.mrf.mxu0  ;;  %v4981_v8 = vadd.f32 %v10515_v28, %v4871_v36 }
 0x7c2   :  { %v5298_v7 = vadd.f32 %v5281_v48, %v5221_v10  ;;  %6739 = vmatmul.msk.f32.gmra.mxu1 %vm1811_vm4, %v10551_v4  ;;  %6746 = vmatmul.msk.f32.gmra.mxu2 %vm1811_vm4, %v10551_v4  ;;  %v5057_v48 = vadd.f32 %v10511_v59, %v4980_v23  ;;  %v5058_v13 = vadd.f32 %v10518_v47, %v4981_v8  ;;  %v5735_v23 = vld [vmem:[%s11276_s17 + $0xa8] sm:$0xff] }
 0x7c3   :  { %6753 = vmatmul.msk.f32.gmra.mxu3 %vm1811_vm4, %v10551_v4  ;;  %6760 = vmatmul.msk.f32.gmra.mxu0 %vm1811_vm4, %v10551_v4 }
 0x7c4   :  { %v5375_v27 = vadd.f32 %v5358_v35, %v5298_v7  ;;  %v5134_v35 = vadd.f32 %v5123_v16, %v5057_v48  ;;  %v5728_v16 = vld [vmem:[%s11276_s17 + $0x70] sm:$0xff] }
 0x7c6   :  { %v5386_v31 = vadd.f32 %v10529_v50, %v5375_v27 }
 0x7c7   :  { %v5207_v18 = vpop.f32.mrf.mxu2  ;;  %v5287_v44 = vpop.f32.mrf.mxu3 }
 0x7c8   :  { %v10567_v6 = vmax.f32 %v5386_v31, 0.0  ;;  %v5222_v42 = vadd.f32 %v5207_v18, %v5132_v37  ;;  %v5126_v17 = vpop.f32.mrf.mxu1  ;;  %v5370_v49 = vpop.f32.mrf.mxu0 }
 0x7c9   :  { %v5135_v60 = vadd.f32 %v5126_v17, %v5058_v13  ;;  %v5730_v17 = vld [vmem:[%s11276_s17 + $0x80] sm:$0xff] }
 0x7ca   :  { %v5299_v56 = vadd.f32 %v5284_v25, %v5222_v42  ;;  %6740 = vmatmul.msk.f32.gmra.mxu1 %vm1811_vm4, %v10567_v6  ;;  %6747 = vmatmul.msk.f32.gmra.mxu2 %vm1811_vm4, %v10567_v6  ;;  %v5750_v13 = vld [vmem:[%s11276_s17 + $0x120] sm:$0xff] }
 0x7cb   :  { %6754 = vmatmul.msk.f32.gmra.mxu3 %vm1811_vm4, %v10567_v6  ;;  %6761 = vmatmul.msk.f32.gmra.mxu0 %vm1811_vm4, %v10567_v6 }
 0x7cc   :  { %v5376_v62 = vadd.f32 %v5361_v53, %v5299_v56 }
 0x7ce   :  { %v5387_v39 = vadd.f32 %v10529_v50, %v5376_v62 }
 0x7cf   :  { %v5210_v61 = vpop.f32.mrf.mxu2  ;;  %v5290_v33 = vpop.f32.mrf.mxu3 }
 0x7d0   :  { %v10610_v0 = vmax.f32 %v5387_v39, 0.0  ;;  %v5223_v43 = vadd.f32 %v5210_v61, %v5133_v30  ;;  %v5749_v30 = vld [vmem:[%s11276_s17 + $0x118] sm:$0xff]  ;;  %v5742_v61 = vld [vmem:[%s11276_s17 + $0xe0] sm:$0xff] }
 0x7d2   :  { %v5300_v38 = vadd.f32 %v5287_v44, %v5223_v43  ;;  %6741 = vmatmul.msk.f32.gmra.mxu1 %vm1811_vm4, %v10610_v0  ;;  %6748 = vmatmul.msk.f32.gmra.mxu2 %vm1811_vm4, %v10610_v0  ;;  %v5758_v43 = vld [vmem:[%s11276_s17 + $0x160] sm:$0x3] }
 0x7d3   :  { %6755 = vmatmul.msk.f32.gmra.mxu3 %vm1811_vm4, %v10610_v0  ;;  %6762 = vmatmul.msk.f32.gmra.mxu0 %vm1811_vm4, %v10610_v0 }
 0x7d4   :  { %v5377_v21 = vadd.f32 %v5364_v29, %v5300_v38  ;;  %v5751_v38 = vld [vmem:[%s11276_s17 + $0x128] sm:$0xff] }
 0x7d6   :  { %v5388_v24 = vadd.f32 %v10529_v50, %v5377_v21 }
 0x7d7   :  { %v5213_v15 = vpop.f32.mrf.mxu2  ;;  %v5293_v28 = vpop.f32.mrf.mxu3 }
 0x7d8   :  { %v5395_v58 = vmax.f32 %v5388_v24, 0.0  ;;  %v5224_v26 = vadd.f32 %v5213_v15, %v5134_v35  ;;  %v5744_v24 = vld [vmem:[%s11276_s17 + $0xf0] sm:$0xff]  ;;  %v5714_v15 = vld [vmem:[%s11276_s17] sm:$0xff] }
 0x7da   :  { %v5301_v12 = vadd.f32 %v5290_v33, %v5224_v26  ;;  %6742 = vmatmul.msk.f32.gmra.mxu1 %vm1811_vm4, %v5395_v58  ;;  %6749 = vmatmul.msk.f32.gmra.mxu2 %vm1811_vm4, %v5395_v58  ;;  %v5737_v26 = vld [vmem:[%s11276_s17 + $0xb8] sm:$0xff] }
 0x7db   :  { %6756 = vmatmul.msk.f32.gmra.mxu3 %vm1811_vm4, %v5395_v58  ;;  %6763 = vmatmul.msk.f32.gmra.mxu0 %vm1811_vm4, %v5395_v58 }
 0x7dc   :  { %v5378_v59 = vadd.f32 %v5367_v46, %v5301_v12  ;;  %v5757_v46 = vld [vmem:[%s11276_s17 + $0x158] sm:$0x3] }
 0x7de   :  { %v5389_v10 = vadd.f32 %v10529_v50, %v5378_v59 }
 0x7df   :  { %v5216_v9 = vpop.f32.mrf.mxu2 }
 0x7e0   :  { %v5396_v7 = vmax.f32 %v5389_v10, 0.0  ;;  %v5225_v25 = vadd.f32 %v5216_v9, %v5135_v60  ;;  %v5723_v9 = vld [vmem:[%s11276_s17 + $0x48] sm:$0xff] }
 0x7e2   :  { %v5302_v54 = vadd.f32 %v5293_v28, %v5225_v25  ;;  %6743 = vmatmul.msk.f32.gmra.mxu1 %vm1811_vm4, %v5396_v7  ;;  %6750 = vmatmul.msk.f32.gmra.mxu2 %vm1811_vm4, %v5396_v7 }
 0x7e3   :  { %6757 = vmatmul.msk.f32.gmra.mxu3 %vm1811_vm4, %v5396_v7  ;;  %6764 = vmatmul.msk.f32.gmra.mxu0 %vm1811_vm4, %v5396_v7 }
 0x7e4   :  { %v5379_v27 = vadd.f32 %v5370_v49, %v5302_v54 }
 0x7e6   :  { %v5390_v47 = vadd.f32 %v10529_v50, %v5379_v27  ;;  %v5716_v27 = vld [vmem:[%s11276_s17 + $0x10] sm:$0xff] }
 0x7e8   :  { %v5397_v53 = vmax.f32 %v5390_v47, 0.0  ;;  %v5736_v47 = vld [vmem:[%s11276_s17 + $0xb0] sm:$0xff] }
 0x7ea   :  { %6744 = vmatmul.msk.f32.gmra.mxu1 %vm1811_vm4, %v5397_v53  ;;  %6751 = vmatmul.msk.f32.gmra.mxu2 %vm1811_vm4, %v5397_v53 }
 0x7eb   :  { %6758 = vmatmul.msk.f32.gmra.mxu3 %vm1811_vm4, %v5397_v53  ;;  %6765 = vmatmul.msk.f32.gmra.mxu0 %vm1811_vm4, %v5397_v53 }
 0x7f2   :  { %6766 = vmatmul.msk.f32.vlgmr.msrb.gmra.mxu1 %vm1811_vm4, %v10535_v1  ;;  %6773 = vmatmul.msk.f32.vlgmr.msrb.gmra.mxu2 %vm1811_vm4, %v10535_v1 }
 0x7f3   :  { %6780 = vmatmul.msk.f32.vlgmr.msrb.gmra.mxu3 %vm1811_vm4, %v10535_v1 }
 0x7fa   :  { %6767 = vmatmul.msk.f32.gmra.mxu1 %vm1811_vm4, %v10551_v4  ;;  %6774 = vmatmul.msk.f32.gmra.mxu2 %vm1811_vm4, %v10551_v4 }
 0x7fb   :  { %6781 = vmatmul.msk.f32.gmra.mxu3 %vm1811_vm4, %v10551_v4 }
 0x802   :  { %6768 = vmatmul.msk.f32.gmra.mxu1 %vm1811_vm4, %v10567_v6  ;;  %6775 = vmatmul.msk.f32.gmra.mxu2 %vm1811_vm4, %v10567_v6 }
 0x803   :  { %6782 = vmatmul.msk.f32.gmra.mxu3 %vm1811_vm4, %v10567_v6 }
 0x80a   :  { %6769 = vmatmul.msk.f32.gmra.mxu1 %vm1811_vm4, %v10610_v0  ;;  %6776 = vmatmul.msk.f32.gmra.mxu2 %vm1811_vm4, %v10610_v0 }
 0x80b   :  { %6783 = vmatmul.msk.f32.gmra.mxu3 %vm1811_vm4, %v10610_v0 }
 0x812   :  { %6770 = vmatmul.msk.f32.gmra.mxu1 %vm1811_vm4, %v5395_v58  ;;  %6777 = vmatmul.msk.f32.gmra.mxu2 %vm1811_vm4, %v5395_v58 }
 0x813   :  { %6784 = vmatmul.msk.f32.gmra.mxu3 %vm1811_vm4, %v5395_v58 }
 0x81a   :  { %6771 = vmatmul.msk.f32.gmra.mxu1 %vm1811_vm4, %v5396_v7  ;;  %6778 = vmatmul.msk.f32.gmra.mxu2 %vm1811_vm4, %v5396_v7 }
 0x81b   :  { %6785 = vmatmul.msk.f32.gmra.mxu3 %vm1811_vm4, %v5396_v7  ;;  %v5743_v7 = vld [vmem:[%s11276_s17 + $0xe8] sm:$0xff] }
 0x822   :  { %6772 = vmatmul.msk.f32.gmra.mxu1 %vm1811_vm4, %v5397_v53  ;;  %6779 = vmatmul.msk.f32.gmra.mxu2 %vm1811_vm4, %v5397_v53 }
 0x823   :  { %6786 = vmatmul.msk.f32.gmra.mxu3 %vm1811_vm4, %v5397_v53 }
 0x837   :  { %v5464_v50 = vpop.f32.mrf.mxu1 }
 0x838   :  { %v10683_v1 = vpop.f32.mrf.mxu0  ;;  %v5763_v12 = vmul.f32 %v5714_v15, %v5464_v50 }
 0x83d   :  { %v10685_v4 = vpop.f32.mrf.mxu2 }
 0x83e   :  { %v10687_v37 = vpop.f32.mrf.mxu3 }
 0x83f   :  { %v5467_v31 = vpop.f32.mrf.mxu1 }
 0x840   :  { %v10693_v2 = vpop.f32.mrf.mxu0  ;;  %v5770_v58 = vmul.f32 %v5721_v22, %v5467_v31  ;;  %v5991_v22 = vld [vmem:[%s11266_s7 + $0x70] sm:$0xff] }
 0x845   :  { %v10689_v51 = vpop.f32.mrf.mxu2 }
 0x846   :  { %v10691_v18 = vpop.f32.mrf.mxu3 }
 0x847   :  { %v5470_v6 = vpop.f32.mrf.mxu1  ;;  %v5772_v53 = vmul.f32 %v5723_v9, %v10691_v18  ;;  %v5752_v18 = vld [vmem:[%s11276_s17 + $0x130] sm:$0xff]  ;;  %v5739_v9 = vld [vmem:[%s11276_s17 + $0xc8] sm:$0xff] }
 0x848   :  { %v10697_v3 = vpop.f32.mrf.mxu0  ;;  %v5777_v35 = vmul.f32 %v5728_v16, %v5470_v6  ;;  %v5759_v6 = vld [vmem:[%s11276_s17 + $0x168] sm:$0x3] }
 0x84d   :  { %v10695_v42 = vpop.f32.mrf.mxu2 }
 0x84e   :  { %v5546_v11 = vpop.f32.mrf.mxu3 }
 0x84f   :  { %v5473_v56 = vpop.f32.mrf.mxu1  ;;  %v5779_v28 = vmul.f32 %v5730_v17, %v5546_v11  ;;  %v5729_v11 = vld [vmem:[%s11276_s17 + $0x78] sm:$0xff]  ;;  %v5986_v17 = vld [vmem:[%s11266_s7 + $0x48] sm:$0xff] }
 0x850   :  { %v10701_v45 = vpop.f32.mrf.mxu0  ;;  %v5784_v20 = vmul.f32 %v5735_v23, %v5473_v56  ;;  %v5765_v56 = vmul.f32 %v5716_v27, %v10687_v37  ;;  %v5984_v27 = vld [vmem:[%s11266_s7 + $0x38] sm:$0xff] }
 0x855   :  { %v10699_v52 = vpop.f32.mrf.mxu2 }
 0x856   :  { %v5549_v5 = vpop.f32.mrf.mxu3 }
 0x857   :  { %v5476_v34 = vpop.f32.mrf.mxu1  ;;  %v5786_v59 = vmul.f32 %v5737_v26, %v5549_v5  ;;  %v5785_v5 = vmul.f32 %v5736_v47, %v10699_v52  ;;  %v5715_v52 = vld [vmem:[%s11276_s17 + $0x8] sm:$0xff]  ;;  %v5987_v26 = vld [vmem:[%s11266_s7 + $0x50] sm:$0xff] }
 0x858   :  { %v10703_v41 = vpop.f32.mrf.mxu0  ;;  %v5791_v0 = vmul.f32 %v5742_v61, %v5476_v34  ;;  %v5722_v34 = vld [vmem:[%s11276_s17 + $0x40] sm:$0xff]  ;;  %v5731_v61 = vld [vmem:[%s11276_s17 + $0x88] sm:$0xff]  ;;  %v5732_v47 = vld [vmem:[%s11276_s17 + $0x90] sm:$0xff] }
 0x859   :  { %v5780_v23 = vmul.f32 %v5731_v61, %v10697_v3 }
 0x85d   :  { %v5514_v62 = vpop.f32.mrf.mxu2 }
 0x85e   :  { %v5552_v55 = vpop.f32.mrf.mxu3  ;;  %v5792_v50 = vmul.f32 %v5743_v7, %v5514_v62  ;;  %v5761_v7 = vld [vmem:[%s11276_s17 + $0x178] sm:$0x3] }
 0x85f   :  { %v5479_v57 = vpop.f32.mrf.mxu1  ;;  %v5793_v8 = vmul.f32 %v5744_v24, %v5552_v55  ;;  %v5778_v55 = vmul.f32 %v5729_v11, %v10695_v42  ;;  %v5738_v42 = vld [vmem:[%s11276_s17 + $0xc0] sm:$0xff]  ;;  %v5988_v24 = vld [vmem:[%s11266_s7 + $0x58] sm:$0xff] }
 0x860   :  { %v5798_v29 = vmul.f32 %v5749_v30, %v5479_v57  ;;  %v5593_v48 = vpop.f32.mrf.mxu0  ;;  %v5745_v57 = vld [vmem:[%s11276_s17 + $0xf8] sm:$0xff] }
 0x865   :  { %v5517_v44 = vpop.f32.mrf.mxu2 }
 0x866   :  { %v5555_v63 = vpop.f32.mrf.mxu3  ;;  %v5799_v54 = vmul.f32 %v5750_v13, %v5517_v44  ;;  %v5801_v44 = vmul.f32 %v5752_v18, %v5593_v48  ;;  %v5746_v13 = vld [vmem:[%s11276_s17 + $0x100] sm:$0xff]  ;;  %v5725_v18 = vld [vmem:[%s11276_s17 + $0x58] sm:$0xff] }
 0x867   :  { %v5482_v39 = vpop.f32.mrf.mxu1  ;;  %v5800_v33 = vmul.f32 %v5751_v38, %v5555_v63  ;;  %v5771_v63 = vmul.f32 %v5722_v34, %v10689_v51  ;;  %v5764_v51 = vmul.f32 %v5715_v52, %v10685_v4  ;;  %v5717_v4 = vld [vmem:[%s11276_s17 + $0x18] sm:$0xff]  ;;  %v5747_v34 = vld [vmem:[%s11276_s17 + $0x108] sm:$0xff] }
 0x868   :  { %v5805_v40 = vmul.f32 %v5756_v32, %v5482_v39  ;;  %v5596_v31 = vpop.f32.mrf.mxu0  ;;  %v10806_v39 = vld [vmem:[%s11277_s18] sm:$0x3] }
 0x869   :  { %v5808_v62 = vmul.f32 %v5759_v6, %v5596_v31  ;;  %v5755_v6 = vld [vmem:[%s11276_s17 + $0x148] sm:$0xff] }
 0x86a   :  { %6787 = vmatpush.msk.msra.mxu0 %vm2392_vm7, %v5805_v40  ;;  %v5794_v40 = vmul.f32 %v5745_v57, %v10703_v41  ;;  %v5724_v41 = vld [vmem:[%s11276_s17 + $0x50] sm:$0xff] }
 0x86b   :  { %v5748_v57 = vld [vmem:[%s11276_s17 + $0x110] sm:$0xff] }
 0x86c   :  { %5847 = vmatpush.msra.mxu0 %v5798_v29  ;;  %v5787_v29 = vmul.f32 %v5738_v42, %v10701_v45  ;;  %v5740_v42 = vld [vmem:[%s11276_s17 + $0xd0] sm:$0xff] }
 0x86d   :  { %v5520_v19 = vpop.f32.mrf.mxu2 }
 0x86e   :  { %v5558_v14 = vpop.f32.mrf.mxu3  ;;  %5848 = vmatpush.msra.mxu0 %v5791_v0  ;;  %v5806_v60 = vmul.f32 %v5757_v46, %v5520_v19  ;;  %v5766_v19 = vmul.f32 %v5717_v4, %v10683_v1  ;;  %v5992_v1 = vld [vmem:[%s11266_s7 + $0x78] sm:$0xff]  ;;  %v5734_v4 = vld [vmem:[%s11276_s17 + $0xa0] sm:$0xff] }
 0x86f   :  { %v5807_v21 = vmul.f32 %v5758_v43, %v5558_v14  ;;  %v10730_v36 = vpop.f32.mrf.mxu1  ;;  %v5773_v43 = vmul.f32 %v5724_v41, %v10693_v2  ;;  %6084 = vmatpush.msra.mxu2 %v5992_v1  ;;  %v5753_v46 = vld [vmem:[%s11276_s17 + $0x138] sm:$0xff]  ;;  %v5720_v1 = vld [vmem:[%s11276_s17 + $0x30] sm:$0xff] }
 0x870   :  { %5849 = vmatpush.msra.mxu0 %v5784_v20  ;;  %v5733_v41 = vld [vmem:[%s11276_s17 + $0x98] sm:$0xff] }
 0x871   :  { %6791 = vmatpush.msk.msra.mxu1 %vm2392_vm7, %v5807_v21  ;;  %v5990_v21 = vld [vmem:[%s11266_s7 + $0x68] sm:$0xff]  ;;  %6085 = vmatpush.msra.mxu2 %v5991_v22 }
 0x872   :  { %5850 = vmatpush.msra.mxu0 %v5777_v35  ;;  %v5989_v35 = vld [vmem:[%s11266_s7 + $0x60] sm:$0xff] }
 0x873   :  { %5887 = vmatpush.msra.mxu1 %v5800_v33  ;;  %6086 = vmatpush.msra.mxu2 %v5990_v21  ;;  %v5760_v33 = vld [vmem:[%s11276_s17 + $0x170] sm:$0x3]  ;;  %v6006_v21 = vld [vmem:[%s11266_s7 + $0xe8] sm:$0xff] }
 0x874   :  { %5851 = vmatpush.msra.mxu0 %v5770_v58 }
 0x875   :  { %5888 = vmatpush.msra.mxu1 %v5793_v8  ;;  %v10751_v10 = vpop.f32.mrf.mxu2  ;;  %6087 = vmatpush.msra.mxu2 %v5989_v35 }
 0x876   :  { %v10759_v25 = vpop.f32.mrf.mxu3  ;;  %5852 = vmatpush.msra.mxu0 %v5763_v12 }
 0x877   :  { %5889 = vmatpush.msra.mxu1 %v5786_v59  ;;  %v10761_v49 = vpop.f32.mrf.mxu1  ;;  %6788 = vmatmul.msk.f32.vlgmr.msra.gmra.mxu0 %vm5812_vm10, %v10806_v39 }
 0x878   :  { %6789 = vmatpush.msk.msrb.mxu0 %vm2392_vm7, %v5806_v60  ;;  %6088 = vmatpush.msra.mxu2 %v5988_v24  ;;  %v5985_v60 = vld [vmem:[%s11266_s7 + $0x40] sm:$0xff] }
 0x879   :  { %5890 = vmatpush.msra.mxu1 %v5779_v28  ;;  %v6005_v24 = vld [vmem:[%s11266_s7 + $0xe0] sm:$0xff] }
 0x87a   :  { %5867 = vmatpush.msrb.mxu0 %v5799_v54  ;;  %6089 = vmatpush.msra.mxu2 %v5987_v26  ;;  %v5762_v54 = vld [vmem:[%s11276_s17 + $0x180] sm:$0x3]  ;;  %v6003_v26 = vld [vmem:[%s11266_s7 + $0xd0] sm:$0xff] }
 0x87b   :  { %5891 = vmatpush.msra.mxu1 %v5772_v53  ;;  %v5754_v53 = vld [vmem:[%s11276_s17 + $0x140] sm:$0xff] }
 0x87c   :  { %5868 = vmatpush.msrb.mxu0 %v5792_v50  ;;  %6090 = vmatpush.msra.mxu2 %v5986_v17  ;;  %v6055_v17 = vld [vmem:[%s11266_s7 + $0x270] sm:$0xff] }
 0x87d   :  { %5892 = vmatpush.msra.mxu1 %v5765_v56  ;;  %v10789_v37 = vpop.f32.mrf.mxu2 }
 0x87e   :  { %5869 = vmatpush.msrb.mxu0 %v5785_v5  ;;  %v10794_v32 = vpop.f32.mrf.mxu3  ;;  %6792 = vmatmul.msk.f32.vlgmr.msra.gmra.mxu1 %vm5812_vm10, %v10806_v39  ;;  %v5983_v5 = vld [vmem:[%s11266_s7 + $0x30] sm:$0xff] }
 0x87f   :  { %6793 = vmatpush.msk.msrb.mxu1 %vm2392_vm7, %v5808_v62  ;;  %v10801_v30 = vpop.f32.mrf.mxu1  ;;  %6091 = vmatpush.msra.mxu2 %v5985_v60  ;;  %v6001_v60 = vld [vmem:[%s11266_s7 + $0xc0] sm:$0xff] }
 0x880   :  { %5870 = vmatpush.msrb.mxu0 %v5778_v55  ;;  %v5781_v55 = vmul.f32 %v5732_v47, %v10801_v30  ;;  %v6019_v47 = vld [vmem:[%s11266_s7 + $0x150] sm:$0xff] }
 0x881   :  { %5907 = vmatpush.msrb.mxu1 %v5801_v44  ;;  %6092 = vmatpush.msra.mxu2 %v5984_v27  ;;  %v5982_v44 = vld [vmem:[%s11266_s7 + $0x28] sm:$0xff]  ;;  %v6053_v27 = vld [vmem:[%s11266_s7 + $0x260] sm:$0xff] }
 0x882   :  { %5871 = vmatpush.msrb.mxu0 %v5771_v63  ;;  %v5718_v63 = vld [vmem:[%s11276_s17 + $0x20] sm:$0xff] }
 0x883   :  { %5908 = vmatpush.msrb.mxu1 %v5794_v40  ;;  %6093 = vmatpush.msra.mxu2 %v5983_v5  ;;  %v5774_v40 = vmul.f32 %v5725_v18, %v10761_v49  ;;  %v5767_v49 = vmul.f32 %v5718_v63, %v10730_v36  ;;  %v5727_v36 = vld [vmem:[%s11276_s17 + $0x68] sm:$0xff]  ;;  %v6051_v5 = vld [vmem:[%s11266_s7 + $0x250] sm:$0xff]  ;;  %v5997_v18 = vld [vmem:[%s11266_s7 + $0xa0] sm:$0xff] }
 0x884   :  { %5872 = vmatpush.msrb.mxu0 %v5764_v51  ;;  %v5741_v51 = vld [vmem:[%s11276_s17 + $0xd8] sm:$0xff] }
 0x885   :  { %5909 = vmatpush.msrb.mxu1 %v5787_v29  ;;  %v10825_v0 = vpop.f32.mrf.mxu2  ;;  %6790 = vmatmul.msk.f32.vlgmr.msrb.gmra.mxu0 %vm5812_vm10, %v10806_v39  ;;  %v5981_v29 = vld [vmem:[%s11266_s7 + $0x20] sm:$0xff]  ;;  %v6072_v63 = vld [vmem:[%s11266_s7 + $0x2f8] sm:$0xff] }
 0x886   :  { %v10828_v16 = vpop.f32.mrf.mxu3  ;;  %6094 = vmatpush.msra.mxu2 %v5982_v44  ;;  %v5993_v44 = vld [vmem:[%s11266_s7 + $0x80] sm:$0xff] }
 0x887   :  { %5910 = vmatpush.msrb.mxu1 %v5780_v23  ;;  %v5625_v45 = vpop.f32.mrf.mxu1 }
 0x888   :  { %v5788_v31 = vmul.f32 %v5739_v9, %v5625_v45  ;;  %v5726_v45 = vld [vmem:[%s11276_s17 + $0x60] sm:$0xff]  ;;  %6095 = vmatpush.msra.mxu2 %v5981_v29  ;;  %v6054_v9 = vld [vmem:[%s11266_s7 + $0x268] sm:$0xff] }
 0x889   :  { %5911 = vmatpush.msrb.mxu1 %v5773_v43  ;;  %v5775_v22 = vmul.f32 %v5726_v45, %v10789_v37  ;;  %v5769_v37 = vmul.f32 %v5720_v1, %v10759_v25  ;;  %v6004_v25 = vld [vmem:[%s11266_s7 + $0xd8] sm:$0xff]  ;;  %v6066_v29 = vld [vmem:[%s11266_s7 + $0x2c8] sm:$0xff]  ;;  %v6033_v45 = vld [vmem:[%s11266_s7 + $0x1c0] sm:$0xff] }
 0x88a   :  { %v6045_v1 = vld [vmem:[%s11266_s7 + $0x220] sm:$0xff] }
 0x88b   :  { %5912 = vmatpush.msrb.mxu1 %v5766_v19 }
 0x88c   :  { %6794 = vmatmul.msk.f32.vlgmr.msrb.gmra.mxu1 %vm5812_vm10, %v10806_v39 }
 0x88d   :  { %v10835_v3 = vpop.f32.mrf.mxu2 }
 0x88e   :  { %v10837_v20 = vpop.f32.mrf.mxu3  ;;  %v5789_v43 = vmul.f32 %v5740_v42, %v10835_v3  ;;  %v5782_v3 = vmul.f32 %v5733_v41, %v10825_v0  ;;  %v6007_v0 = vld [vmem:[%s11266_s7 + $0xf0] sm:$0xff]  ;;  %v6017_v41 = vld [vmem:[%s11266_s7 + $0x140] sm:$0xff] }
 0x88f   :  { %v5628_v38 = vpop.f32.mrf.mxu1  ;;  %v5790_v19 = vmul.f32 %v5741_v51, %v10837_v20  ;;  %v5719_v20 = vld [vmem:[%s11276_s17 + $0x28] sm:$0xff]  ;;  %v6071_v42 = vld [vmem:[%s11266_s7 + $0x2f0] sm:$0xff]  ;;  %v6068_v51 = vld [vmem:[%s11266_s7 + $0x2d8] sm:$0xff] }
 0x890   :  { %v5795_v28 = vmul.f32 %v5746_v13, %v5628_v38  ;;  %v6008_v38 = vld [vmem:[%s11266_s7 + $0xf8] sm:$0xff]  ;;  %v5768_v35 = vmul.f32 %v5719_v20, %v10751_v10  ;;  %v6021_v13 = vld [vmem:[%s11266_s7 + $0x160] sm:$0xff]  ;;  %v6063_v20 = vld [vmem:[%s11266_s7 + $0x2b0] sm:$0xff] }
 0x891   :  { %v6024_v10 = vld [vmem:[%s11266_s7 + $0x178] sm:$0xff] }
 0x895   :  { %v5666_v2 = vpop.f32.mrf.mxu2 }
 0x896   :  { %v10839_v14 = vpop.f32.mrf.mxu3  ;;  %v5796_v61 = vmul.f32 %v5747_v34, %v5666_v2  ;;  %v5980_v2 = vld [vmem:[%s11266_s7 + $0x18] sm:$0xff]  ;;  %v6050_v34 = vld [vmem:[%s11266_s7 + $0x248] sm:$0xff] }
 0x897   :  { %v5631_v48 = vpop.f32.mrf.mxu1  ;;  %v5797_v23 = vmul.f32 %v5748_v57, %v10839_v14  ;;  %v5783_v14 = vmul.f32 %v5734_v4, %v10828_v16  ;;  %v5979_v16 = vld [vmem:[%s11266_s7 + $0x10] sm:$0xff]  ;;  %6096 = vmatpush.msra.mxu2 %v5980_v2  ;;  %v6065_v4 = vld [vmem:[%s11266_s7 + $0x2c0] sm:$0xff]  ;;  %v6046_v2 = vld [vmem:[%s11266_s7 + $0x228] sm:$0xff] }
 0x898   :  { %v5802_v59 = vmul.f32 %v5753_v46, %v5631_v48  ;;  %v5776_v48 = vmul.f32 %v5727_v36, %v10794_v32  ;;  %v5978_v32 = vld [vmem:[%s11266_s7 + $0x8] sm:$0xff]  ;;  %v6056_v46 = vld [vmem:[%s11266_s7 + $0x278] sm:$0xff]  ;;  %v5995_v57 = vld [vmem:[%s11266_s7 + $0x90] sm:$0xff] }
 0x899   :  { %6097 = vmatpush.msra.mxu2 %v5979_v16  ;;  %v6015_v36 = vld [vmem:[%s11266_s7 + $0x130] sm:$0xff]  ;;  %v6013_v16 = vld [vmem:[%s11266_s7 + $0x120] sm:$0xff] }
 0x89b   :  { %6098 = vmatpush.msra.mxu2 %v5978_v32  ;;  %v6043_v32 = vld [vmem:[%s11266_s7 + $0x210] sm:$0xff] }
 0x89d   :  { %v5669_v15 = vpop.f32.mrf.mxu2 }
 0x89e   :  { %v5707_v58 = vpop.f32.mrf.mxu3  ;;  %v5803_v52 = vmul.f32 %v5754_v53, %v5669_v15  ;;  %v6040_v15 = vld [vmem:[%s11266_s7 + $0x1f8] sm:$0xff] }
 0x89f   :  { %v5634_v8 = vpop.f32.mrf.mxu1  ;;  %v5804_v30 = vmul.f32 %v5755_v6, %v5707_v58  ;;  %v6023_v58 = vld [vmem:[%s11266_s7 + $0x170] sm:$0xff]  ;;  %v6036_v53 = vld [vmem:[%s11266_s7 + $0x1d8] sm:$0xff]  ;;  %v6018_v6 = vld [vmem:[%s11266_s7 + $0x148] sm:$0xff] }
 0x8a0   :  { %v5809_v12 = vmul.f32 %v5760_v33, %v5634_v8  ;;  %v5977_v33 = vld [vmem:[%s11266_s7] sm:$0xff]  ;;  %v6039_v8 = vld [vmem:[%s11266_s7 + $0x1f0] sm:$0xff] }
 0x8a1   :  { %6099 = vmatpush.msra.mxu2 %v5977_v33  ;;  %v6042_v33 = vld [vmem:[%s11266_s7 + $0x208] sm:$0xff] }
 0x8a2   :  { %6795 = vmatpush.msk.msra.mxu3 %vm2392_vm7, %v5809_v12  ;;  %v6002_v12 = vld [vmem:[%s11266_s7 + $0xc8] sm:$0xff] }
 0x8a3   :  { %6164 = vmatpush.msrb.mxu2 %v6056_v46 }
 0x8a4   :  { %5927 = vmatpush.msra.mxu3 %v5802_v59  ;;  %v6038_v59 = vld [vmem:[%s11266_s7 + $0x1e8] sm:$0xff] }
 0x8a5   :  { %v5672_v50 = vpop.f32.mrf.mxu2  ;;  %6165 = vmatpush.msrb.mxu2 %v6055_v17  ;;  %v6009_v17 = vld [vmem:[%s11266_s7 + $0x100] sm:$0xff] }
 0x8a6   :  { %v5810_v11 = vmul.f32 %v5761_v7, %v5672_v50  ;;  %v5710_v56 = vpop.f32.mrf.mxu3  ;;  %5928 = vmatpush.msra.mxu3 %v5795_v28  ;;  %v6020_v7 = vld [vmem:[%s11266_s7 + $0x158] sm:$0xff]  ;;  %v6037_v28 = vld [vmem:[%s11266_s7 + $0x1e0] sm:$0xff]  ;;  %v5999_v50 = vld [vmem:[%s11266_s7 + $0xb0] sm:$0xff] }
 0x8a7   :  { %v5811_v62 = vmul.f32 %v5762_v54, %v5710_v56  ;;  %v6000_v54 = vld [vmem:[%s11266_s7 + $0xb8] sm:$0xff]  ;;  %6166 = vmatpush.msrb.mxu2 %v6054_v9  ;;  %v5998_v56 = vld [vmem:[%s11266_s7 + $0xa8] sm:$0xff]  ;;  %v6041_v9 = vld [vmem:[%s11266_s7 + $0x200] sm:$0xff] }
 0x8a8   :  { %5929 = vmatpush.msra.mxu3 %v5788_v31  ;;  %6797 = vmatpush.msk.msra.mxu0 %vm2392_vm7, %v5810_v11  ;;  %v6052_v31 = vld [vmem:[%s11266_s7 + $0x258] sm:$0xff]  ;;  %v6035_v11 = vld [vmem:[%s11266_s7 + $0x1d0] sm:$0xff] }
 0x8a9   :  { %6799 = vmatpush.msk.msra.mxu1 %vm2392_vm7, %v5811_v62  ;;  %6167 = vmatpush.msrb.mxu2 %v6053_v27  ;;  %v5996_v62 = vld [vmem:[%s11266_s7 + $0x98] sm:$0xff]  ;;  %v6075_v27 = vld [vmem:[%s11266_s7 + $0x310] sm:$0xff] }
 0x8aa   :  { %5930 = vmatpush.msra.mxu3 %v5781_v55  ;;  %5947 = vmatpush.msra.mxu0 %v5803_v52  ;;  %v6049_v55 = vld [vmem:[%s11266_s7 + $0x240] sm:$0xff]  ;;  %v5994_v52 = vld [vmem:[%s11266_s7 + $0x88] sm:$0xff] }
 0x8ab   :  { %5967 = vmatpush.msra.mxu1 %v5804_v30  ;;  %6168 = vmatpush.msrb.mxu2 %v6052_v31  ;;  %v6070_v30 = vld [vmem:[%s11266_s7 + $0x2e8] sm:$0xff] }
 0x8ac   :  { %5931 = vmatpush.msra.mxu3 %v5774_v40  ;;  %5948 = vmatpush.msra.mxu0 %v5796_v61  ;;  %v6069_v40 = vld [vmem:[%s11266_s7 + $0x2e0] sm:$0xff]  ;;  %v6067_v61 = vld [vmem:[%s11266_s7 + $0x2d0] sm:$0xff] }
 0x8ad   :  { %5968 = vmatpush.msra.mxu1 %v5797_v23  ;;  %6169 = vmatpush.msrb.mxu2 %v6051_v5  ;;  %v6034_v23 = vld [vmem:[%s11266_s7 + $0x1c8] sm:$0xff] }
 0x8ae   :  { %5932 = vmatpush.msra.mxu3 %v5767_v49  ;;  %5949 = vmatpush.msra.mxu0 %v5789_v43  ;;  %v6048_v49 = vld [vmem:[%s11266_s7 + $0x238] sm:$0xff]  ;;  %v6230_v5 = vld [vmem:[%s11268_s9 + $0x28] sm:$0xff] }
 0x8af   :  { %5969 = vmatpush.msra.mxu1 %v5790_v19  ;;  %6796 = vmatmul.msk.f32.vlgmr.msra.gmra.mxu3 %vm5812_vm10, %v10806_v39  ;;  %v6016_v43 = vld [vmem:[%s11266_s7 + $0x138] sm:$0xff]  ;;  %v6047_v19 = vld [vmem:[%s11266_s7 + $0x230] sm:$0xff] }
 0x8b0   :  { %5950 = vmatpush.msra.mxu0 %v5782_v3  ;;  %6104 = vmatpush.msrb.mxu3 %v6008_v38  ;;  %v6064_v38 = vld [vmem:[%s11266_s7 + $0x2b8] sm:$0xff] }
 0x8b1   :  { %5970 = vmatpush.msra.mxu1 %v5783_v14  ;;  %6170 = vmatpush.msrb.mxu2 %v6050_v34  ;;  %v6032_v3 = vld [vmem:[%s11266_s7 + $0x1b8] sm:$0xff]  ;;  %v6014_v14 = vld [vmem:[%s11266_s7 + $0x128] sm:$0xff] }
 0x8b2   :  { %5951 = vmatpush.msra.mxu0 %v5775_v22  ;;  %6105 = vmatpush.msrb.mxu3 %v6007_v0  ;;  %v6031_v0 = vld [vmem:[%s11266_s7 + $0x1b0] sm:$0xff]  ;;  %v6062_v22 = vld [vmem:[%s11266_s7 + $0x2a8] sm:$0xff]  ;;  %v6228_v34 = vld [vmem:[%s11268_s9 + $0x18] sm:$0xff] }
 0x8b3   :  { %5971 = vmatpush.msra.mxu1 %v5776_v48  ;;  %6171 = vmatpush.msrb.mxu2 %v6049_v55  ;;  %v6030_v48 = vld [vmem:[%s11266_s7 + $0x1a8] sm:$0xff] }
 0x8b4   :  { %5952 = vmatpush.msra.mxu0 %v5768_v35  ;;  %6106 = vmatpush.msrb.mxu3 %v6006_v21  ;;  %v6044_v21 = vld [vmem:[%s11266_s7 + $0x218] sm:$0xff]  ;;  %v6061_v35 = vld [vmem:[%s11266_s7 + $0x2a0] sm:$0xff]  ;;  %v6226_v55 = vld [vmem:[%s11268_s9 + $0x8] sm:$0xff] }
 0x8b5   :  { %5972 = vmatpush.msra.mxu1 %v5769_v37  ;;  %6798 = vmatmul.msk.f32.vlgmr.msra.gmra.mxu0 %vm5812_vm10, %v10806_v39  ;;  %v6012_v37 = vld [vmem:[%s11266_s7 + $0x118] sm:$0xff] }
 0x8b6   :  { %6800 = vmatmul.msk.f32.vlgmr.msra.gmra.mxu1 %vm5812_vm10, %v10806_v39  ;;  %6107 = vmatpush.msrb.mxu3 %v6005_v24  ;;  %v6022_v39 = vld [vmem:[%s11266_s7 + $0x168] sm:$0xff]  ;;  %v6029_v24 = vld [vmem:[%s11266_s7 + $0x1a0] sm:$0xff] }
 0x8b7   :  { %6124 = vmatpush.msrb.mxu0 %v6024_v10  ;;  %6144 = vmatpush.msrb.mxu1 %v6040_v15  ;;  %v6060_v10 = vld [vmem:[%s11266_s7 + $0x298] sm:$0xff] }
 0x8b8   :  { %6108 = vmatpush.msrb.mxu3 %v6004_v25  ;;  %6172 = vmatpush.msrb.mxu2 %v6048_v49  ;;  %v6011_v25 = vld [vmem:[%s11266_s7 + $0x110] sm:$0xff]  ;;  %v6028_v15 = vld [vmem:[%s11266_s7 + $0x198] sm:$0xff] }
 0x8b9   :  { %6125 = vmatpush.msrb.mxu0 %v6023_v58  ;;  %6145 = vmatpush.msrb.mxu1 %v6039_v8  ;;  %v6059_v58 = vld [vmem:[%s11266_s7 + $0x290] sm:$0xff]  ;;  %v6010_v8 = vld [vmem:[%s11266_s7 + $0x108] sm:$0xff] }
 0x8ba   :  { %6109 = vmatpush.msrb.mxu3 %v6003_v26  ;;  %6173 = vmatpush.msrb.mxu2 %v6047_v19 }
 0x8bb   :  { %6126 = vmatpush.msrb.mxu0 %v6022_v39  ;;  %6146 = vmatpush.msrb.mxu1 %v6038_v59  ;;  %v6025_v59 = vld [vmem:[%s11266_s7 + $0x180] sm:$0xff] }
 0x8bc   :  { %6110 = vmatpush.msrb.mxu3 %v6002_v12  ;;  %6174 = vmatpush.msrb.mxu2 %v6046_v2  ;;  %v6027_v12 = vld [vmem:[%s11266_s7 + $0x190] sm:$0xff] }
 0x8bd   :  { %6127 = vmatpush.msrb.mxu0 %v6021_v13  ;;  %6147 = vmatpush.msrb.mxu1 %v6037_v28  ;;  %v6026_v13 = vld [vmem:[%s11266_s7 + $0x188] sm:$0xff]  ;;  %v6057_v28 = vld [vmem:[%s11266_s7 + $0x280] sm:$0xff] }
 0x8be   :  { %6111 = vmatpush.msrb.mxu3 %v6001_v60  ;;  %6175 = vmatpush.msrb.mxu2 %v6045_v1 }
 0x8bf   :  { %6128 = vmatpush.msrb.mxu0 %v6020_v7  ;;  %6148 = vmatpush.msrb.mxu1 %v6036_v53  ;;  %v6058_v7 = vld [vmem:[%s11266_s7 + $0x288] sm:$0xff]  ;;  %v6073_v53 = vld [vmem:[%s11266_s7 + $0x300] sm:$0xff] }
 0x8c0   :  { %6112 = vmatpush.msrb.mxu3 %v6000_v54  ;;  %6176 = vmatpush.msrb.mxu2 %v6044_v21  ;;  %v6076_v54 = vld [vmem:[%s11266_s7 + $0x318] sm:$0xff] }
 0x8c1   :  { %6129 = vmatpush.msrb.mxu0 %v6019_v47  ;;  %6149 = vmatpush.msrb.mxu1 %v6035_v11  ;;  %v6074_v47 = vld [vmem:[%s11266_s7 + $0x308] sm:$0xff]  ;;  %v6232_v11 = vld [vmem:[%s11268_s9 + $0x38] sm:$0xff] }
 0x8c2   :  { %6113 = vmatpush.msrb.mxu3 %v5999_v50  ;;  %6177 = vmatpush.msrb.mxu2 %v6043_v32 }
 0x8c3   :  { %6130 = vmatpush.msrb.mxu0 %v6018_v6  ;;  %6150 = vmatpush.msrb.mxu1 %v6034_v23 }
 0x8c4   :  { %6114 = vmatpush.msrb.mxu3 %v5998_v56  ;;  %6178 = vmatpush.msrb.mxu2 %v6042_v33  ;;  %v6231_v56 = vld [vmem:[%s11268_s9 + $0x30] sm:$0xff] }
 0x8c5   :  { %6131 = vmatpush.msrb.mxu0 %v6017_v41  ;;  %6151 = vmatpush.msrb.mxu1 %v6033_v45 }
 0x8c6   :  { %6115 = vmatpush.msrb.mxu3 %v5997_v18  ;;  %6179 = vmatpush.msrb.mxu2 %v6041_v9  ;;  %v6229_v18 = vld [vmem:[%s11268_s9 + $0x20] sm:$0xff] }
 0x8c7   :  { %6132 = vmatpush.msrb.mxu0 %v6016_v43  ;;  %6152 = vmatpush.msrb.mxu1 %v6032_v3 }
 0x8c8   :  { %6116 = vmatpush.msrb.mxu3 %v5996_v62  ;;  %v6227_v62 = vld [vmem:[%s11268_s9 + $0x10] sm:$0xff] }
 0x8c9   :  { %6133 = vmatpush.msrb.mxu0 %v6015_v36  ;;  %6153 = vmatpush.msrb.mxu1 %v6031_v0 }
 0x8ca   :  { %6117 = vmatpush.msrb.mxu3 %v5995_v57  ;;  %v6225_v57 = vld [vmem:[%s11268_s9] sm:$0xff] }
 0x8cb   :  { %6134 = vmatpush.msrb.mxu0 %v6014_v14  ;;  %6154 = vmatpush.msrb.mxu1 %v6030_v48 }
 0x8cc   :  { %6118 = vmatpush.msrb.mxu3 %v5994_v52  ;;  %v6819_v52 = vld [vmem:[%s11267_s8] ss:$0 sm:$0xff]  ;;  %s6853_s8 = smov [#allocation2]  }
 0x8cd   :  { %6135 = vmatpush.msrb.mxu0 %v6013_v16  ;;  %6155 = vmatpush.msrb.mxu1 %v6029_v24  ;;  %s6268_s5 = sshll.u32 %s6853_s8, 4  ;;  %s6269_s5 = int_to_ptr.vmem [resolvable:$true] %s6268_s5 }
 0x8ce   :  { %6119 = vmatpush.msrb.mxu3 %v5993_v44 }
 0x8cf   :  { %6136 = vmatpush.msrb.mxu0 %v6012_v37  ;;  %6156 = vmatpush.msrb.mxu1 %v6028_v15 }
 0x8d0   :  { %6184 = vmatpush.msra.mxu3 %v6072_v63 }
 0x8d1   :  { %6137 = vmatpush.msrb.mxu0 %v6011_v25  ;;  %6157 = vmatpush.msrb.mxu1 %v6027_v12 }
 0x8d2   :  { %6185 = vmatpush.msra.mxu3 %v6071_v42 }
 0x8d3   :  { %6138 = vmatpush.msrb.mxu0 %v6010_v8  ;;  %6158 = vmatpush.msrb.mxu1 %v6026_v13 }
 0x8d4   :  { %6186 = vmatpush.msra.mxu3 %v6070_v30 }
 0x8d5   :  { %6139 = vmatpush.msrb.mxu0 %v6009_v17  ;;  %6159 = vmatpush.msrb.mxu1 %v6025_v59 }
 0x8d6   :  { %6187 = vmatpush.msra.mxu3 %v6069_v40 }
 0x8d7   :  { %6216 = vmatpush.msra.mxu0 %v6076_v54 }
 0x8d8   :  { %6188 = vmatpush.msra.mxu3 %v6068_v51 }
 0x8d9   :  { %6217 = vmatpush.msra.mxu0 %v6075_v27 }
 0x8da   :  { %6189 = vmatpush.msra.mxu3 %v6067_v61 }
 0x8db   :  { %6218 = vmatpush.msra.mxu0 %v6074_v47 }
 0x8dc   :  { %6190 = vmatpush.msra.mxu3 %v6066_v29 }
 0x8dd   :  { %6219 = vmatpush.msra.mxu0 %v6073_v53 }
 0x8de   :  { %6191 = vmatpush.msra.mxu3 %v6065_v4 }
 0x8e0   :  { %6192 = vmatpush.msra.mxu3 %v6064_v38  ;;  %v6820_v38 = vld [vmem:[%s11269_s10] ss:$0 sm:$0xff] }
 0x8e2   :  { %6193 = vmatpush.msra.mxu3 %v6063_v20 }
 0x8e4   :  { %6194 = vmatpush.msra.mxu3 %v6062_v22 }
 0x8e6   :  { %6195 = vmatpush.msra.mxu3 %v6061_v35 }
 0x8e8   :  { %6196 = vmatpush.msra.mxu3 %v6060_v10 }
 0x8ea   :  { %6197 = vmatpush.msra.mxu3 %v6059_v58 }
 0x8ec   :  { %6198 = vmatpush.msra.mxu3 %v6058_v7 }
 0x8ee   :  { %6199 = vmatpush.msra.mxu3 %v6057_v28 }
 0x8f4   :  { %v5854_v26 = vpop.f32.mrf.mxu0 }
 0x8f5   :  { %6100 = vmatmul.f32.vlgmr.msra.gmra.mxu2 %v5854_v26 }
 0x8fb   :  { %v5894_v39 = vpop.f32.mrf.mxu1 }
 0x8fc   :  { %6140 = vmatmul.f32.vlgmr.msrb.gmra.mxu0 %v5894_v39 }
 0x8fd   :  { %6249 = vmatpush.msrb.mxu0 %v6232_v11 }
 0x8ff   :  { %6250 = vmatpush.msrb.mxu0 %v6231_v56 }
 0x901   :  { %6251 = vmatpush.msrb.mxu0 %v6230_v5 }
 0x902   :  { %v5874_v46 = vpop.f32.mrf.mxu0 }
 0x903   :  { %6120 = vmatmul.f32.vlgmr.msrb.gmra.mxu3 %v5874_v46  ;;  %6252 = vmatpush.msrb.mxu0 %v6229_v18 }
 0x905   :  { %6253 = vmatpush.msrb.mxu0 %v6228_v34 }
 0x907   :  { %6254 = vmatpush.msrb.mxu0 %v6227_v62 }
 0x909   :  { %v5914_v60 = vpop.f32.mrf.mxu1  ;;  %6255 = vmatpush.msrb.mxu0 %v6226_v55 }
 0x90a   :  { %6160 = vmatmul.f32.vlgmr.msrb.gmra.mxu1 %v5914_v60 }
 0x90b   :  { %6256 = vmatpush.msrb.mxu0 %v6225_v57 }
 0x932   :  { %v5934_v50 = vpop.f32.mrf.mxu3  ;;  %v5954_v31 = vpop.f32.mrf.mxu0 }
 0x933   :  { %6180 = vmatmul.f32.vlgmr.msrb.gmra.mxu2 %v5934_v50  ;;  %6200 = vmatmul.f32.vlgmr.msra.gmra.mxu3 %v5954_v31  ;;  %v5974_v6 = vpop.f32.mrf.mxu1 }
 0x934   :  { %6801 = vmatmul.msk.f32.vlgmr.msra.gmra.mxu0 %vm1811_vm4, %v5974_v6 }
 0x978   :  { %v6101_v44 = vpop.f32.mrf.mxu2 }
 0x979   :  { %v6102_v63 = vadd.f32 %v6819_v52, %v6101_v44  ;;  %v6141_v40 = vpop.f32.mrf.mxu0 }
 0x986   :  { %v6121_v42 = vpop.f32.mrf.mxu3 }
 0x987   :  { %v6122_v30 = vadd.f32 %v6121_v42, %v6102_v63  ;;  %v6161_v61 = vpop.f32.mrf.mxu1 }
 0x989   :  { %v6142_v51 = vadd.f32 %v6141_v40, %v6122_v30 }
 0x98b   :  { %v6162_v29 = vadd.f32 %v6161_v61, %v6142_v51 }
 0x9b1   :  { %v6221_v4 = vpop.f32.mrf.mxu0 }
 0x9b6   :  { %v6181_v41 = vpop.f32.mrf.mxu2  ;;  %v6201_v23 = vpop.f32.mrf.mxu3 }
 0x9b7   :  { %v6182_v49 = vadd.f32 %v6181_v41, %v6162_v29 }
 0x9b9   :  { %v6202_v43 = vadd.f32 %v6201_v23, %v6182_v49 }
 0x9bb   :  { %v6222_v45 = vadd.f32 %v6221_v4, %v6202_v43 }
 0x9bd   :  { %v6224_v19 = vmax.f32 %v6222_v45, 0.0 }
 0x9bf   :  { %6802 = vmatmul.msk.f32.vlgmr.msrb.gmra.mxu0 %vm6237_vm11, %v6224_v19 }
 0xa3c   :  { %v6258_v36 = vpop.f32.mrf.mxu0 }
 0xa3d   :  { %v6259_v3 = vadd.f32 %v6820_v38, %v6258_v36 }
 0xa3f   :  { %6262 = vst.msk [vmem:[#allocation2] sm:$0x3] %vm6261_vm12, %v6259_v3 }
 0xa40   :  { %6273 = dma.vmem_to_hbm [thread:$0]  %s6269_s5, 32, %s6271_s11, [#allocation3]  }
 0xa41   :  { %6850 = dma.done.wait [#allocation3], 32  }
 0xa42   :  { %6851 = vsyncadd [#allocation3], 4294967264 }
 0xa43   :  { %6278 = vsyncpa [#allocation3], 1 }

</bundles_post_ra>
